<compile_context>
chip_gen: v5e
topology: v5e:2x2
jax: 0.10.0
libtpu: 0.0.40
codegen_flags: <defaults>
</compile_context>

<pallas_src>
import functools

import jax
import jax.numpy as jnp
from jax import lax
from jax.experimental import pallas as pl
from jax.experimental.pallas import tpu as pltpu

EPS = 1e-5
LANE = 128

_S2D_TAPS = ((0, 0), (0, 1), (1, 0), (1, 1))                 # (dp, dq) for the s2d conv
_TAPS3 = tuple((dy, dx) for dy in range(3) for dx in range(3))


def _round_up(v, m):
    return (v + m - 1) // m * m


# ------------------------------ Pallas kernels -------------------------------

def _conv1_pool_kernel(z_ref, p_ref, w1_ref, w3_ref,
                       y1_ref, y3_ref, s1a_ref, s1b_ref, s3a_ref, s3b_ref,
                       *, Ho, Wo):
    """Stage 1 (one image per grid step):
       - 3x3/stride-2 conv as 4 shifted bf16 matmuls on the space-to-depth input
       - branch-2 1x1 conv on the (already pooled) input
       plus per-image partial BN statistics (sum, sum of squares)."""
    HW = Ho * Wo
    K4 = z_ref.shape[-1]
    Cp = w1_ref.shape[-1]

    acc1 = jnp.zeros((HW, Cp), jnp.float32)
    for t, (dp, dq) in enumerate(_S2D_TAPS):
        tap = z_ref[0, dp:dp + Ho, dq:dq + Wo, :].reshape(HW, K4)
        tap = jnp.maximum(tap, 0)                    # ReLU (padded zeros stay zero)
        acc1 = acc1 + jnp.dot(tap, w1_ref[t], preferred_element_type=jnp.float32)
    y1_ref[0] = acc1
    s1a_ref[0] = jnp.sum(acc1, axis=0, keepdims=True)
    s1b_ref[0] = jnp.sum(acc1 * acc1, axis=0, keepdims=True)

    pooled = jnp.maximum(p_ref[0], 0)                # (HW, Cin): ReLU after avg-pool
    acc3 = jnp.dot(pooled, w3_ref[...], preferred_element_type=jnp.float32)
    y3_ref[0] = acc3
    s3a_ref[0] = jnp.sum(acc3, axis=0, keepdims=True)
    s3b_ref[0] = jnp.sum(acc3 * acc3, axis=0, keepdims=True)


def _conv2_kernel(t_ref, w2_ref, y2_ref, s2a_ref, s2b_ref, *, Ho, Wo):
    """Stage 2: 3x3/stride-1 conv on the (already ReLU'd, zero-padded) stage-1
    output as 9 shifted bf16 matmuls + per-image partial BN statistics."""
    HW = Ho * Wo
    Cp = w2_ref.shape[-1]
    acc = jnp.zeros((HW, Cp), jnp.float32)
    for t, (dy, dx) in enumerate(_TAPS3):
        tap = t_ref[0, dy:dy + Ho, dx:dx + Wo, :].reshape(HW, Cp)
        acc = acc + jnp.dot(tap, w2_ref[t], preferred_element_type=jnp.float32)
    y2_ref[0] = acc
    s2a_ref[0] = jnp.sum(acc, axis=0, keepdims=True)
    s2b_ref[0] = jnp.sum(acc * acc, axis=0, keepdims=True)


def _bn_finalize_kernel(sa_ref, sb_ref, g_ref, b_ref, ss_ref, *, rows):
    """Combine per-image partial sums into global BN scale/shift:
       scale = gamma * rsqrt(var + eps);  shift = beta - mean * scale."""
    inv_m = 1.0 / rows
    mean = jnp.sum(sa_ref[...], axis=0) * inv_m                  # (1, Cp)
    ex2 = jnp.sum(sb_ref[...], axis=0) * inv_m
    var = jnp.maximum(ex2 - mean * mean, 0.0)
    scale = g_ref[...] * lax.rsqrt(var + EPS)
    ss_ref[0:1, :] = scale
    ss_ref[1:2, :] = b_ref[...] - mean * scale


def _bn_relu_kernel(y_ref, ss_ref, o_ref):
    """t1 = relu(BN1(y1)), stored bf16 for the stage-2 conv."""
    t = jnp.maximum(y_ref[...] * ss_ref[0:1, :] + ss_ref[1:2, :], 0.0)
    o_ref[...] = t.astype(o_ref.dtype)


def _bn_add_kernel(y2_ref, y3_ref, ss2_ref, ss3_ref, o_ref):
    """out = BN2(y2) + BN3(y3)  (the final branch add, f32)."""
    b1 = y2_ref[...] * ss2_ref[0:1, :] + ss2_ref[1:2, :]
    b2 = y3_ref[...] * ss3_ref[0:1, :] + ss3_ref[1:2, :]
    o_ref[...] = b1 + b2


# ------------------------------ forward wrapper ------------------------------

def _bn_params(gamma, beta, cp):
    g = jnp.zeros((1, cp), jnp.float32).at[0, :gamma.shape[0]].set(gamma)
    b = jnp.zeros((1, cp), jnp.float32).at[0, :beta.shape[0]].set(beta)
    return g, b


def _finalize_bn(sa, sb, g, b, rows, cp):
    vspec = pl.BlockSpec(memory_space=pltpu.MemorySpace.VMEM)
    return pl.pallas_call(
        functools.partial(_bn_finalize_kernel, rows=float(rows)),
        out_shape=jax.ShapeDtypeStruct((2, cp), jnp.float32),
        in_specs=[vspec, vspec, vspec, vspec],
        out_specs=vspec,
    )(sa, sb, g, b)


def reduction_cell_forward(x_nchw, p):
    x = jnp.transpose(x_nchw, (0, 2, 3, 1)).astype(jnp.float32)   # NCHW -> NHWC
    N, H, W, Cin = x.shape
    Cout = p["w1"].shape[0]
    assert H % 2 == 0 and W % 2 == 0
    Ho, Wo = H // 2, W // 2
    HW = Ho * Wo
    M = N * HW
    Cp = _round_up(Cout, LANE)          # lane-dense channel dimension
    K4 = 4 * Cin
    # TODO(synk): output widths that are not a multiple of 8 need masked stats / W padding.
    assert Wo % 8 == 0, "kernel assumes output width is a multiple of 8"

    # ---- layout glue in the wrapper (pure relayout / tiny weight prep) ----
    # space-to-depth of the zero-padded input: (N, Ho+1, Wo+1, 4*Cin), bf16.
    xp = jnp.pad(x, ((0, 0), (1, 1), (1, 1), (0, 0)))
    z = (xp.reshape(N, Ho + 1, 2, Wo + 1, 2, Cin)
           .transpose(0, 1, 3, 2, 4, 5)
           .reshape(N, Ho + 1, Wo + 1, K4)).astype(jnp.bfloat16)
    # branch-2 AvgPool2d(2,2) (per review: pooled in the wrapper), flattened rows.
    pooled = (x.reshape(N, Ho, 2, Wo, 2, Cin).mean(axis=(2, 4))
                .reshape(N, HW, Cin)).astype(jnp.bfloat16)

    # conv1 weights regrouped for the space-to-depth formulation:
    # tap (dp, dq) holds W[2*dp+dy, 2*dq+dx] at rows (dy*2+dx)*Cin : +Cin.
    w1_t = jnp.transpose(p["w1"].astype(jnp.float32), (2, 3, 1, 0))   # (3,3,Cin,Cout)
    w1z = jnp.zeros((4, K4, Cp), jnp.float32)
    for t, (dp, dq) in enumerate(_S2D_TAPS):
        for dy in range(2):
            for dx in range(2):
                ky, kx = 2 * dp + dy, 2 * dq + dx
                if ky < 3 and kx < 3:
                    r = (dy * 2 + dx) * Cin
                    w1z = w1z.at[t, r:r + Cin, :Cout].set(w1_t[ky, kx])
    w1z = w1z.astype(jnp.bfloat16)

    w2_t = jnp.transpose(p["w2"].astype(jnp.float32), (2, 3, 1, 0))   # (3,3,Cout,Cout)
    w2z = jnp.zeros((9, Cp, Cp), jnp.float32)
    for t, (dy, dx) in enumerate(_TAPS3):
        w2z = w2z.at[t, :Cout, :Cout].set(w2_t[dy, dx])
    w2z = w2z.astype(jnp.bfloat16)

    w3z = (jnp.zeros((Cin, Cp), jnp.float32)
             .at[:, :Cout].set(jnp.transpose(p["w3"][:, :, 0, 0], (1, 0)))
             .astype(jnp.bfloat16))

    g1, b1 = _bn_params(p["g1"], p["b1"], Cp)
    g2, b2 = _bn_params(p["g2"], p["b2"], Cp)
    g3, b3 = _bn_params(p["g3"], p["b3"], Cp)

    parallel = pltpu.CompilerParams(dimension_semantics=("parallel",))

    def img_spec(shape):   # one image per grid step
        return pl.BlockSpec((1,) + shape, lambda n: (n,) + (0,) * len(shape))

    def const_spec(shape):  # resident (weights / BN params): constant index_map
        return pl.BlockSpec(shape, lambda n: (0,) * len(shape))

    # ---- pass 1: conv1 (4 shifted matmuls) + branch-2 1x1 conv + partial stats
    y1, y3, s1a, s1b, s3a, s3b = pl.pallas_call(
        functools.partial(_conv1_pool_kernel, Ho=Ho, Wo=Wo),
        grid=(N,),
        in_specs=[img_spec((Ho + 1, Wo + 1, K4)),
                  img_spec((HW, Cin)),
                  const_spec((4, K4, Cp)),
                  const_spec((Cin, Cp))],
        out_specs=(img_spec((HW, Cp)), img_spec((HW, Cp)),
                   img_spec((1, Cp)), img_spec((1, Cp)),
                   img_spec((1, Cp)), img_spec((1, Cp))),
        out_shape=(jax.ShapeDtypeStruct((N, HW, Cp), jnp.float32),
                   jax.ShapeDtypeStruct((N, HW, Cp), jnp.float32),
                   jax.ShapeDtypeStruct((N, 1, Cp), jnp.float32),
                   jax.ShapeDtypeStruct((N, 1, Cp), jnp.float32),
                   jax.ShapeDtypeStruct((N, 1, Cp), jnp.float32),
                   jax.ShapeDtypeStruct((N, 1, Cp), jnp.float32)),
        compiler_params=parallel,
        cost_estimate=pl.CostEstimate(
            flops=2 * M * (4 * K4 + Cin) * Cp, transcendentals=0,
            bytes_accessed=z.size * 2 + pooled.size * 2 + 2 * M * Cp * 4),
    )(z, pooled, w1z, w3z)

    ss1 = _finalize_bn(s1a, s1b, g1, b1, M, Cp)
    ss3 = _finalize_bn(s3a, s3b, g3, b3, M, Cp)

    # ---- pass 2: t1 = relu(BN1(y1)) in bf16; zero-pad spatially (glue) for conv2
    t1 = pl.pallas_call(
        _bn_relu_kernel,
        grid=(N,),
        in_specs=[img_spec((HW, Cp)), const_spec((2, Cp))],
        out_specs=img_spec((HW, Cp)),
        out_shape=jax.ShapeDtypeStruct((N, HW, Cp), jnp.bfloat16),
        compiler_params=parallel,
    )(y1, ss1)
    t1p = jnp.pad(t1.reshape(N, Ho, Wo, Cp), ((0, 0), (1, 1), (1, 1), (0, 0)))

    # ---- pass 3: conv2 (9 shifted matmuls) + partial stats
    y2, s2a, s2b = pl.pallas_call(
        functools.partial(_conv2_kernel, Ho=Ho, Wo=Wo),
        grid=(N,),
        in_specs=[img_spec((Ho + 2, Wo + 2, Cp)),
                  const_spec((9, Cp, Cp))],
        out_specs=(img_spec((HW, Cp)),
                   img_spec((1, Cp)), img_spec((1, Cp))),
        out_shape=(jax.ShapeDtypeStruct((N, HW, Cp), jnp.float32),
                   jax.ShapeDtypeStruct((N, 1, Cp), jnp.float32),
                   jax.ShapeDtypeStruct((N, 1, Cp), jnp.float32)),
        compiler_params=parallel,
        cost_estimate=pl.CostEstimate(
            flops=2 * M * 9 * Cp * Cp, transcendentals=0,
            bytes_accessed=t1p.size * 2 + M * Cp * 4),
    )(t1p, w2z)

    ss2 = _finalize_bn(s2a, s2b, g2, b2, M, Cp)

    # ---- pass 4: out = BN2(y2) + BN3(y3)
    out = pl.pallas_call(
        _bn_add_kernel,
        grid=(N,),
        in_specs=[img_spec((HW, Cp)), img_spec((HW, Cp)),
                  const_spec((2, Cp)), const_spec((2, Cp))],
        out_specs=img_spec((HW, Cp)),
        out_shape=jax.ShapeDtypeStruct((N, HW, Cp), jnp.float32),
        compiler_params=parallel,
    )(y2, y3, ss2, ss3)

    out = out.reshape(N, Ho, Wo, Cp)[:, :, :, :Cout]
    return jnp.transpose(out, (0, 3, 1, 2))                      # NHWC -> NCHW


# --------------------------- reference (mirrors kernel numerics) -------------
# bf16 conv operands (MXU-native), f32 accumulation, f32 training-mode BN.

def _relu_conv_bn_ref(x, w, gamma, beta, stride, pad):
    a = jnp.maximum(x, 0.0).astype(jnp.bfloat16)
    wk = jnp.transpose(w, (2, 3, 1, 0)).astype(jnp.bfloat16)
    y = lax.conv_general_dilated(
        a, wk, window_strides=(stride, stride),
        padding=[(pad, pad), (pad, pad)],
        dimension_numbers=("NHWC", "HWIO", "NHWC"),
        preferred_element_type=jnp.float32)
    mu = jnp.mean(y, axis=(0, 1, 2), keepdims=True)
    var = jnp.mean(jnp.square(y - mu), axis=(0, 1, 2), keepdims=True)
    return (y - mu) * lax.rsqrt(var + EPS) * gamma + beta


def reduction_cell_ref(x_nchw, p):
    x = jnp.transpose(x_nchw, (0, 2, 3, 1)).astype(jnp.float32)
    N, H, W, C = x.shape
    br1 = _relu_conv_bn_ref(x, p["w1"], p["g1"], p["b1"], 2, 1)
    br1 = _relu_conv_bn_ref(br1, p["w2"], p["g2"], p["b2"], 1, 1)
    pooled = x.reshape(N, H // 2, 2, W // 2, 2, C).mean(axis=(2, 4))
    br2 = _relu_conv_bn_ref(pooled, p["w3"], p["g3"], p["b3"], 1, 0)
    return jnp.transpose(br1 + br2, (0, 3, 1, 2))


# ----------------------------------- main ------------------------------------

if __name__ == "__main__":
    N, Cin, Cout, H, W = 2, 4, 8, 32, 32
    key = jax.random.PRNGKey(0)
    ks = jax.random.split(key, 10)

    x = jax.random.normal(ks[0], (N, Cin, H, W), jnp.float32)
    params = {
        "w1": 0.1 * jax.random.normal(ks[1], (Cout, Cin, 3, 3), jnp.float32),
        "g1": 1.0 + 0.1 * jax.random.normal(ks[2], (Cout,), jnp.float32),
        "b1": 0.1 * jax.random.normal(ks[3], (Cout,), jnp.float32),
        "w2": 0.1 * jax.random.normal(ks[4], (Cout, Cout, 3, 3), jnp.float32),
        "g2": 1.0 + 0.1 * jax.random.normal(ks[5], (Cout,), jnp.float32),
        "b2": 0.1 * jax.random.normal(ks[6], (Cout,), jnp.float32),
        "w3": 0.1 * jax.random.normal(ks[7], (Cout, Cin, 1, 1), jnp.float32),
        "g3": 1.0 + 0.1 * jax.random.normal(ks[8], (Cout,), jnp.float32),
        "b3": 0.1 * jax.random.normal(ks[9], (Cout,), jnp.float32),
    }

    out = jax.jit(reduction_cell_forward)(x, params)
    out = jax.block_until_ready(out)
    assert out.shape == (N, Cout, H // 2, W // 2), out.shape

    ref = reduction_cell_ref(x, params)
    max_err = float(jnp.max(jnp.abs(out - ref)))
    # tolerance sized for bf16 matmul operands (f32 accumulation / BN / add)
    assert jnp.allclose(out, ref, rtol=5e-3, atol=5e-3), f"max abs err {max_err}"

    print("KERNEL_OK")
</pallas_src>

<mosaic_0001>
module attributes {stable_mosaic.version = 11 : i64} {
  func.func @_conv1_pool_kernel(%arg0: i32, %arg1: memref<1x17x17x16xbf16, #tpu.memory_space<vmem>>, %arg2: memref<1x256x4xbf16, #tpu.memory_space<vmem>>, %arg3: memref<4x16x128xbf16, #tpu.memory_space<vmem>>, %arg4: memref<4x128xbf16, #tpu.memory_space<vmem>>, %arg5: memref<1x256x128xf32, #tpu.memory_space<vmem>>, %arg6: memref<1x256x128xf32, #tpu.memory_space<vmem>>, %arg7: memref<1x1x128xf32, #tpu.memory_space<vmem>>, %arg8: memref<1x1x128xf32, #tpu.memory_space<vmem>>, %arg9: memref<1x1x128xf32, #tpu.memory_space<vmem>>, %arg10: memref<1x1x128xf32, #tpu.memory_space<vmem>>) attributes {dimension_semantics = [#tpu.dimension_semantics<parallel>], iteration_bounds = array<i64: 2>, scalar_prefetch = 0 : i64, scratch_operands = 0 : i64, tpu.core_type = #tpu.core_type<tc>, window_params = [{transform_indices = @transform_0, window_bounds = array<i64: 1, 17, 17, 16>}, {transform_indices = @transform_1, window_bounds = array<i64: 1, 256, 4>}, {pipeline_mode = #tpu.pipeline_mode<synchronous>, transform_indices = @transform_2, window_bounds = array<i64: 4, 16, 128>}, {pipeline_mode = #tpu.pipeline_mode<synchronous>, transform_indices = @transform_3, window_bounds = array<i64: 4, 128>}, {transform_indices = @transform_4, window_bounds = array<i64: 1, 256, 128>}, {transform_indices = @transform_5, window_bounds = array<i64: 1, 256, 128>}, {transform_indices = @transform_6, window_bounds = array<i64: 1, 1, 128>}, {transform_indices = @transform_7, window_bounds = array<i64: 1, 1, 128>}, {transform_indices = @transform_8, window_bounds = array<i64: 1, 1, 128>}, {transform_indices = @transform_9, window_bounds = array<i64: 1, 1, 128>}]} {
    %cst = arith.constant 0.000000e+00 : f32
    %0 = vector.broadcast %cst : f32 to vector<256x128xf32>
    %c0 = arith.constant 0 : index
    %c0_0 = arith.constant 0 : index
    %c0_1 = arith.constant 0 : index
    %c0_2 = arith.constant 0 : index
    %1 = vector.load %arg1[%c0, %c0_0, %c0_1, %c0_2] : memref<1x17x17x16xbf16, #tpu.memory_space<vmem>>, vector<1x16x16x16xbf16>
    %2 = vector.shape_cast %1 : vector<1x16x16x16xbf16> to vector<16x16x16xbf16>
    %3 = vector.shape_cast %2 : vector<16x16x16xbf16> to vector<256x16xbf16>
    %cst_3 = arith.constant 0.000000e+00 : bf16
    %4 = vector.broadcast %cst_3 : bf16 to vector<256x16xbf16>
    %5 = arith.maximumf %3, %4 : vector<256x16xbf16>
    %c0_4 = arith.constant 0 : index
    %c0_5 = arith.constant 0 : index
    %c0_6 = arith.constant 0 : index
    %6 = vector.load %arg3[%c0_4, %c0_5, %c0_6] : memref<4x16x128xbf16, #tpu.memory_space<vmem>>, vector<1x16x128xbf16>
    %7 = vector.shape_cast %6 : vector<1x16x128xbf16> to vector<16x128xbf16>
    %cst_7 = arith.constant dense<0.000000e+00> : vector<256x128xf32>
    %8 = tpu.matmul %5, %7, %cst_7 {dimension_numbers = #tpu.dot_dimension_numbers<[1], [0], [0], [1], [0, 0, 1, 1], [], []>} : vector<256x16xbf16>, vector<16x128xbf16>, vector<256x128xf32> -> vector<256x128xf32>
    %9 = arith.addf %0, %8 : vector<256x128xf32>
    %c0_8 = arith.constant 0 : index
    %c0_9 = arith.constant 0 : index
    %c1 = arith.constant 1 : index
    %c0_10 = arith.constant 0 : index
    %10 = vector.load %arg1[%c0_8, %c0_9, %c1, %c0_10] : memref<1x17x17x16xbf16, #tpu.memory_space<vmem>>, vector<1x16x16x16xbf16>
    %11 = vector.shape_cast %10 : vector<1x16x16x16xbf16> to vector<16x16x16xbf16>
    %12 = vector.shape_cast %11 : vector<16x16x16xbf16> to vector<256x16xbf16>
    %cst_11 = arith.constant 0.000000e+00 : bf16
    %13 = vector.broadcast %cst_11 : bf16 to vector<256x16xbf16>
    %14 = arith.maximumf %12, %13 : vector<256x16xbf16>
    %c1_12 = arith.constant 1 : index
    %c0_13 = arith.constant 0 : index
    %c0_14 = arith.constant 0 : index
    %15 = vector.load %arg3[%c1_12, %c0_13, %c0_14] : memref<4x16x128xbf16, #tpu.memory_space<vmem>>, vector<1x16x128xbf16>
    %16 = vector.shape_cast %15 : vector<1x16x128xbf16> to vector<16x128xbf16>
    %cst_15 = arith.constant dense<0.000000e+00> : vector<256x128xf32>
    %17 = tpu.matmul %14, %16, %cst_15 {dimension_numbers = #tpu.dot_dimension_numbers<[1], [0], [0], [1], [0, 0, 1, 1], [], []>} : vector<256x16xbf16>, vector<16x128xbf16>, vector<256x128xf32> -> vector<256x128xf32>
    %18 = arith.addf %9, %17 : vector<256x128xf32>
    %c0_16 = arith.constant 0 : index
    %c1_17 = arith.constant 1 : index
    %c0_18 = arith.constant 0 : index
    %c0_19 = arith.constant 0 : index
    %19 = vector.load %arg1[%c0_16, %c1_17, %c0_18, %c0_19] : memref<1x17x17x16xbf16, #tpu.memory_space<vmem>>, vector<1x16x16x16xbf16>
    %20 = vector.shape_cast %19 : vector<1x16x16x16xbf16> to vector<16x16x16xbf16>
    %21 = vector.shape_cast %20 : vector<16x16x16xbf16> to vector<256x16xbf16>
    %cst_20 = arith.constant 0.000000e+00 : bf16
    %22 = vector.broadcast %cst_20 : bf16 to vector<256x16xbf16>
    %23 = arith.maximumf %21, %22 : vector<256x16xbf16>
    %c2 = arith.constant 2 : index
    %c0_21 = arith.constant 0 : index
    %c0_22 = arith.constant 0 : index
    %24 = vector.load %arg3[%c2, %c0_21, %c0_22] : memref<4x16x128xbf16, #tpu.memory_space<vmem>>, vector<1x16x128xbf16>
    %25 = vector.shape_cast %24 : vector<1x16x128xbf16> to vector<16x128xbf16>
    %cst_23 = arith.constant dense<0.000000e+00> : vector<256x128xf32>
    %26 = tpu.matmul %23, %25, %cst_23 {dimension_numbers = #tpu.dot_dimension_numbers<[1], [0], [0], [1], [0, 0, 1, 1], [], []>} : vector<256x16xbf16>, vector<16x128xbf16>, vector<256x128xf32> -> vector<256x128xf32>
    %27 = arith.addf %18, %26 : vector<256x128xf32>
    %c0_24 = arith.constant 0 : index
    %c1_25 = arith.constant 1 : index
    %c1_26 = arith.constant 1 : index
    %c0_27 = arith.constant 0 : index
    %28 = vector.load %arg1[%c0_24, %c1_25, %c1_26, %c0_27] : memref<1x17x17x16xbf16, #tpu.memory_space<vmem>>, vector<1x16x16x16xbf16>
    %29 = vector.shape_cast %28 : vector<1x16x16x16xbf16> to vector<16x16x16xbf16>
    %30 = vector.shape_cast %29 : vector<16x16x16xbf16> to vector<256x16xbf16>
    %cst_28 = arith.constant 0.000000e+00 : bf16
    %31 = vector.broadcast %cst_28 : bf16 to vector<256x16xbf16>
    %32 = arith.maximumf %30, %31 : vector<256x16xbf16>
    %c3 = arith.constant 3 : index
    %c0_29 = arith.constant 0 : index
    %c0_30 = arith.constant 0 : index
    %33 = vector.load %arg3[%c3, %c0_29, %c0_30] : memref<4x16x128xbf16, #tpu.memory_space<vmem>>, vector<1x16x128xbf16>
    %34 = vector.shape_cast %33 : vector<1x16x128xbf16> to vector<16x128xbf16>
    %cst_31 = arith.constant dense<0.000000e+00> : vector<256x128xf32>
    %35 = tpu.matmul %32, %34, %cst_31 {dimension_numbers = #tpu.dot_dimension_numbers<[1], [0], [0], [1], [0, 0, 1, 1], [], []>} : vector<256x16xbf16>, vector<16x128xbf16>, vector<256x128xf32> -> vector<256x128xf32>
    %36 = arith.addf %27, %35 : vector<256x128xf32>
    %c0_32 = arith.constant 0 : index
    %c0_33 = arith.constant 0 : index
    %c0_34 = arith.constant 0 : index
    %37 = vector.load %arg5[%c0_32, %c0_33, %c0_34] : memref<1x256x128xf32, #tpu.memory_space<vmem>>, vector<1x256x128xf32>
    %38 = vector.shape_cast %37 : vector<1x256x128xf32> to vector<256x128xf32>
    %39 = vector.shape_cast %36 : vector<256x128xf32> to vector<1x256x128xf32>
    tpu.vector_store %arg5[%c0_32, %c0_33, %c0_34], %39 {strides = array<i32>} : memref<1x256x128xf32, #tpu.memory_space<vmem>>, vector<1x256x128xf32>,
    %cst_35 = arith.constant dense<0.000000e+00> : vector<128xf32>
    %40 = vector.multi_reduction <add>, %36, %cst_35 [0] : vector<256x128xf32> to vector<128xf32>
    %41 = vector.shape_cast %40 : vector<128xf32> to vector<1x128xf32>
    %c0_36 = arith.constant 0 : index
    %c0_37 = arith.constant 0 : index
    %c0_38 = arith.constant 0 : index
    %42 = vector.load %arg7[%c0_36, %c0_37, %c0_38] : memref<1x1x128xf32, #tpu.memory_space<vmem>>, vector<1x1x128xf32>
    %43 = vector.shape_cast %42 : vector<1x1x128xf32> to vector<1x128xf32>
    %44 = vector.shape_cast %41 : vector<1x128xf32> to vector<1x1x128xf32>
    tpu.vector_store %arg7[%c0_36, %c0_37, %c0_38], %44 {strides = array<i32>} : memref<1x1x128xf32, #tpu.memory_space<vmem>>, vector<1x1x128xf32>,
    %45 = arith.mulf %36, %36 : vector<256x128xf32>
    %cst_39 = arith.constant dense<0.000000e+00> : vector<128xf32>
    %46 = vector.multi_reduction <add>, %45, %cst_39 [0] : vector<256x128xf32> to vector<128xf32>
    %47 = vector.shape_cast %46 : vector<128xf32> to vector<1x128xf32>
    %c0_40 = arith.constant 0 : index
    %c0_41 = arith.constant 0 : index
    %c0_42 = arith.constant 0 : index
    %48 = vector.load %arg8[%c0_40, %c0_41, %c0_42] : memref<1x1x128xf32, #tpu.memory_space<vmem>>, vector<1x1x128xf32>
    %49 = vector.shape_cast %48 : vector<1x1x128xf32> to vector<1x128xf32>
    %50 = vector.shape_cast %47 : vector<1x128xf32> to vector<1x1x128xf32>
    tpu.vector_store %arg8[%c0_40, %c0_41, %c0_42], %50 {strides = array<i32>} : memref<1x1x128xf32, #tpu.memory_space<vmem>>, vector<1x1x128xf32>,
    %c0_43 = arith.constant 0 : index
    %c0_44 = arith.constant 0 : index
    %c0_45 = arith.constant 0 : index
    %51 = vector.load %arg2[%c0_43, %c0_44, %c0_45] : memref<1x256x4xbf16, #tpu.memory_space<vmem>>, vector<1x256x4xbf16>
    %52 = vector.shape_cast %51 : vector<1x256x4xbf16> to vector<256x4xbf16>
    %cst_46 = arith.constant 0.000000e+00 : bf16
    %53 = vector.broadcast %cst_46 : bf16 to vector<256x4xbf16>
    %54 = arith.maximumf %52, %53 : vector<256x4xbf16>
    %c0_47 = arith.constant 0 : index
    %c0_48 = arith.constant 0 : index
    %55 = vector.load %arg4[%c0_47, %c0_48] : memref<4x128xbf16, #tpu.memory_space<vmem>>, vector<4x128xbf16>
    %cst_49 = arith.constant dense<0.000000e+00> : vector<256x128xf32>
    %56 = tpu.matmul %54, %55, %cst_49 {dimension_numbers = #tpu.dot_dimension_numbers<[1], [0], [0], [1], [0, 0, 1, 1], [], []>} : vector<256x4xbf16>, vector<4x128xbf16>, vector<256x128xf32> -> vector<256x128xf32>
    %c0_50 = arith.constant 0 : index
    %c0_51 = arith.constant 0 : index
    %c0_52 = arith.constant 0 : index
    %57 = vector.load %arg6[%c0_50, %c0_51, %c0_52] : memref<1x256x128xf32, #tpu.memory_space<vmem>>, vector<1x256x128xf32>
    %58 = vector.shape_cast %57 : vector<1x256x128xf32> to vector<256x128xf32>
    %59 = vector.shape_cast %56 : vector<256x128xf32> to vector<1x256x128xf32>
    tpu.vector_store %arg6[%c0_50, %c0_51, %c0_52], %59 {strides = array<i32>} : memref<1x256x128xf32, #tpu.memory_space<vmem>>, vector<1x256x128xf32>,
    %cst_53 = arith.constant dense<0.000000e+00> : vector<128xf32>
    %60 = vector.multi_reduction <add>, %56, %cst_53 [0] : vector<256x128xf32> to vector<128xf32>
    %61 = vector.shape_cast %60 : vector<128xf32> to vector<1x128xf32>
    %c0_54 = arith.constant 0 : index
    %c0_55 = arith.constant 0 : index
    %c0_56 = arith.constant 0 : index
    %62 = vector.load %arg9[%c0_54, %c0_55, %c0_56] : memref<1x1x128xf32, #tpu.memory_space<vmem>>, vector<1x1x128xf32>
    %63 = vector.shape_cast %62 : vector<1x1x128xf32> to vector<1x128xf32>
    %64 = vector.shape_cast %61 : vector<1x128xf32> to vector<1x1x128xf32>
    tpu.vector_store %arg9[%c0_54, %c0_55, %c0_56], %64 {strides = array<i32>} : memref<1x1x128xf32, #tpu.memory_space<vmem>>, vector<1x1x128xf32>,
    %65 = arith.mulf %56, %56 : vector<256x128xf32>
    %cst_57 = arith.constant dense<0.000000e+00> : vector<128xf32>
    %66 = vector.multi_reduction <add>, %65, %cst_57 [0] : vector<256x128xf32> to vector<128xf32>
    %67 = vector.shape_cast %66 : vector<128xf32> to vector<1x128xf32>
    %c0_58 = arith.constant 0 : index
    %c0_59 = arith.constant 0 : index
    %c0_60 = arith.constant 0 : index
    %68 = vector.load %arg10[%c0_58, %c0_59, %c0_60] : memref<1x1x128xf32, #tpu.memory_space<vmem>>, vector<1x1x128xf32>
    %69 = vector.shape_cast %68 : vector<1x1x128xf32> to vector<1x128xf32>
    %70 = vector.shape_cast %67 : vector<1x128xf32> to vector<1x1x128xf32>
    tpu.vector_store %arg10[%c0_58, %c0_59, %c0_60], %70 {strides = array<i32>} : memref<1x1x128xf32, #tpu.memory_space<vmem>>, vector<1x1x128xf32>,
    return
  }
  func.func @transform_0(%arg0: i32) -> (i32, i32, i32, i32) {
    %c0_i32 = arith.constant 0 : i32
    %c0_i32_0 = arith.constant 0 : i32
    %c0_i32_1 = arith.constant 0 : i32
    %c0_i32_2 = arith.constant 0 : i32
    return %arg0, %c0_i32, %c0_i32_0, %c0_i32_1 : i32, i32, i32, i32
  }
  func.func @transform_1(%arg0: i32) -> (i32, i32, i32) {
    %c0_i32 = arith.constant 0 : i32
    %c0_i32_0 = arith.constant 0 : i32
    %c0_i32_1 = arith.constant 0 : i32
    return %arg0, %c0_i32, %c0_i32_0 : i32, i32, i32
  }
  func.func @transform_2(%arg0: i32) -> (i32, i32, i32) {
    %c0_i32 = arith.constant 0 : i32
    %c0_i32_0 = arith.constant 0 : i32
    %c0_i32_1 = arith.constant 0 : i32
    %c0_i32_2 = arith.constant 0 : i32
    return %c0_i32, %c0_i32_0, %c0_i32_1 : i32, i32, i32
  }
  func.func @transform_3(%arg0: i32) -> (i32, i32) {
    %c0_i32 = arith.constant 0 : i32
    %c0_i32_0 = arith.constant 0 : i32
    %c0_i32_1 = arith.constant 0 : i32
    return %c0_i32, %c0_i32_0 : i32, i32
  }
  func.func @transform_4(%arg0: i32) -> (i32, i32, i32) {
    %c0_i32 = arith.constant 0 : i32
    %c0_i32_0 = arith.constant 0 : i32
    %c0_i32_1 = arith.constant 0 : i32
    return %arg0, %c0_i32, %c0_i32_0 : i32, i32, i32
  }
  func.func @transform_5(%arg0: i32) -> (i32, i32, i32) {
    %c0_i32 = arith.constant 0 : i32
    %c0_i32_0 = arith.constant 0 : i32
    %c0_i32_1 = arith.constant 0 : i32
    return %arg0, %c0_i32, %c0_i32_0 : i32, i32, i32
  }
  func.func @transform_6(%arg0: i32) -> (i32, i32, i32) {
    %c0_i32 = arith.constant 0 : i32
    %c0_i32_0 = arith.constant 0 : i32
    %c0_i32_1 = arith.constant 0 : i32
    return %arg0, %c0_i32, %c0_i32_0 : i32, i32, i32
  }
  func.func @transform_7(%arg0: i32) -> (i32, i32, i32) {
    %c0_i32 = arith.constant 0 : i32
    %c0_i32_0 = arith.constant 0 : i32
    %c0_i32_1 = arith.constant 0 : i32
    return %arg0, %c0_i32, %c0_i32_0 : i32, i32, i32
  }
  func.func @transform_8(%arg0: i32) -> (i32, i32, i32) {
    %c0_i32 = arith.constant 0 : i32
    %c0_i32_0 = arith.constant 0 : i32
    %c0_i32_1 = arith.constant 0 : i32
    return %arg0, %c0_i32, %c0_i32_0 : i32, i32, i32
  }
  func.func @transform_9(%arg0: i32) -> (i32, i32, i32) {
    %c0_i32 = arith.constant 0 : i32
    %c0_i32_0 = arith.constant 0 : i32
    %c0_i32_1 = arith.constant 0 : i32
    return %arg0, %c0_i32, %c0_i32_0 : i32, i32, i32
  }
}

module attributes {stable_mosaic.version = 11 : i64} {
  func.func @_bn_finalize_kernel(%arg0: memref<2x1x128xf32, #tpu.memory_space<vmem>>, %arg1: memref<2x1x128xf32, #tpu.memory_space<vmem>>, %arg2: memref<1x128xf32, #tpu.memory_space<vmem>>, %arg3: memref<1x128xf32, #tpu.memory_space<vmem>>, %arg4: memref<2x128xf32, #tpu.memory_space<vmem>>) attributes {dimension_semantics = [], scalar_prefetch = 0 : i64, scratch_operands = 0 : i64, tpu.core_type = #tpu.core_type<tc>} {
    %c0 = arith.constant 0 : index
    %c0_0 = arith.constant 0 : index
    %c0_1 = arith.constant 0 : index
    %0 = vector.load %arg0[%c0, %c0_0, %c0_1] : memref<2x1x128xf32, #tpu.memory_space<vmem>>, vector<2x1x128xf32>
    %cst = arith.constant dense<0.000000e+00> : vector<1x128xf32>
    %1 = vector.multi_reduction <add>, %0, %cst [0] : vector<2x1x128xf32> to vector<1x128xf32>
    %cst_2 = arith.constant 0.001953125 : f32
    %2 = vector.broadcast %cst_2 : f32 to vector<1x128xf32>
    %3 = arith.mulf %1, %2 : vector<1x128xf32>
    %c0_3 = arith.constant 0 : index
    %c0_4 = arith.constant 0 : index
    %c0_5 = arith.constant 0 : index
    %4 = vector.load %arg1[%c0_3, %c0_4, %c0_5] : memref<2x1x128xf32, #tpu.memory_space<vmem>>, vector<2x1x128xf32>
    %cst_6 = arith.constant dense<0.000000e+00> : vector<1x128xf32>
    %5 = vector.multi_reduction <add>, %4, %cst_6 [0] : vector<2x1x128xf32> to vector<1x128xf32>
    %cst_7 = arith.constant 0.001953125 : f32
    %6 = vector.broadcast %cst_7 : f32 to vector<1x128xf32>
    %7 = arith.mulf %5, %6 : vector<1x128xf32>
    %8 = arith.mulf %3, %3 : vector<1x128xf32>
    %9 = arith.subf %7, %8 : vector<1x128xf32>
    %cst_8 = arith.constant 0.000000e+00 : f32
    %10 = vector.broadcast %cst_8 : f32 to vector<1x128xf32>
    %11 = arith.maximumf %9, %10 : vector<1x128xf32>
    %c0_9 = arith.constant 0 : index
    %c0_10 = arith.constant 0 : index
    %12 = vector.load %arg2[%c0_9, %c0_10] : memref<1x128xf32, #tpu.memory_space<vmem>>, vector<1x128xf32>
    %cst_11 = arith.constant 9.99999974E-6 : f32
    %13 = vector.broadcast %cst_11 : f32 to vector<1x128xf32>
    %14 = arith.addf %11, %13 : vector<1x128xf32>
    %15 = math.rsqrt %14 : vector<1x128xf32>
    %16 = arith.mulf %12, %15 : vector<1x128xf32>
    %c0_12 = arith.constant 0 : index
    %c0_13 = arith.constant 0 : index
    %17 = vector.load %arg4[%c0_12, %c0_13] : memref<2x128xf32, #tpu.memory_space<vmem>>, vector<1x128xf32>
    tpu.vector_store %arg4[%c0_12, %c0_13], %16 {strides = array<i32>} : memref<2x128xf32, #tpu.memory_space<vmem>>, vector<1x128xf32>,
    %c0_14 = arith.constant 0 : index
    %c0_15 = arith.constant 0 : index
    %18 = vector.load %arg3[%c0_14, %c0_15] : memref<1x128xf32, #tpu.memory_space<vmem>>, vector<1x128xf32>
    %19 = arith.mulf %3, %16 : vector<1x128xf32>
    %20 = arith.subf %18, %19 : vector<1x128xf32>
    %c1 = arith.constant 1 : index
    %c0_16 = arith.constant 0 : index
    %21 = vector.load %arg4[%c1, %c0_16] : memref<2x128xf32, #tpu.memory_space<vmem>>, vector<1x128xf32>
    tpu.vector_store %arg4[%c1, %c0_16], %20 {strides = array<i32>} : memref<2x128xf32, #tpu.memory_space<vmem>>, vector<1x128xf32>,
    return
  }
}

module attributes {stable_mosaic.version = 11 : i64} {
  func.func @_bn_relu_kernel(%arg0: i32, %arg1: memref<1x256x128xf32, #tpu.memory_space<vmem>>, %arg2: memref<2x128xf32, #tpu.memory_space<vmem>>, %arg3: memref<1x256x128xbf16, #tpu.memory_space<vmem>>) attributes {dimension_semantics = [#tpu.dimension_semantics<parallel>], iteration_bounds = array<i64: 2>, scalar_prefetch = 0 : i64, scratch_operands = 0 : i64, tpu.core_type = #tpu.core_type<tc>, window_params = [{transform_indices = @transform_0, window_bounds = array<i64: 1, 256, 128>}, {pipeline_mode = #tpu.pipeline_mode<synchronous>, transform_indices = @transform_1, window_bounds = array<i64: 2, 128>}, {transform_indices = @transform_2, window_bounds = array<i64: 1, 256, 128>}]} {
    %c0 = arith.constant 0 : index
    %c0_0 = arith.constant 0 : index
    %c0_1 = arith.constant 0 : index
    %0 = vector.load %arg1[%c0, %c0_0, %c0_1] : memref<1x256x128xf32, #tpu.memory_space<vmem>>, vector<1x256x128xf32>
    %c0_2 = arith.constant 0 : index
    %c0_3 = arith.constant 0 : index
    %1 = vector.load %arg2[%c0_2, %c0_3] : memref<2x128xf32, #tpu.memory_space<vmem>>, vector<1x128xf32>
    %2 = vector.shape_cast %1 : vector<1x128xf32> to vector<1x1x128xf32>
    %3 = vector.broadcast %2 : vector<1x1x128xf32> to vector<1x256x128xf32>
    %4 = arith.mulf %0, %3 : vector<1x256x128xf32>
    %c1 = arith.constant 1 : index
    %c0_4 = arith.constant 0 : index
    %5 = vector.load %arg2[%c1, %c0_4] : memref<2x128xf32, #tpu.memory_space<vmem>>, vector<1x128xf32>
    %6 = vector.shape_cast %5 : vector<1x128xf32> to vector<1x1x128xf32>
    %7 = vector.broadcast %6 : vector<1x1x128xf32> to vector<1x256x128xf32>
    %8 = arith.addf %4, %7 : vector<1x256x128xf32>
    %cst = arith.constant 0.000000e+00 : f32
    %9 = vector.broadcast %cst : f32 to vector<1x256x128xf32>
    %10 = arith.maximumf %8, %9 : vector<1x256x128xf32>
    %11 = arith.truncf %10 : vector<1x256x128xf32> to vector<1x256x128xbf16>
    %c0_5 = arith.constant 0 : index
    %c0_6 = arith.constant 0 : index
    %c0_7 = arith.constant 0 : index
    %12 = vector.load %arg3[%c0_5, %c0_6, %c0_7] : memref<1x256x128xbf16, #tpu.memory_space<vmem>>, vector<1x256x128xbf16>
    tpu.vector_store %arg3[%c0_5, %c0_6, %c0_7], %11 {strides = array<i32>} : memref<1x256x128xbf16, #tpu.memory_space<vmem>>, vector<1x256x128xbf16>,
    return
  }
  func.func @transform_0(%arg0: i32) -> (i32, i32, i32) {
    %c0_i32 = arith.constant 0 : i32
    %c0_i32_0 = arith.constant 0 : i32
    %c0_i32_1 = arith.constant 0 : i32
    return %arg0, %c0_i32, %c0_i32_0 : i32, i32, i32
  }
  func.func @transform_1(%arg0: i32) -> (i32, i32) {
    %c0_i32 = arith.constant 0 : i32
    %c0_i32_0 = arith.constant 0 : i32
    %c0_i32_1 = arith.constant 0 : i32
    return %c0_i32, %c0_i32_0 : i32, i32
  }
  func.func @transform_2(%arg0: i32) -> (i32, i32, i32) {
    %c0_i32 = arith.constant 0 : i32
    %c0_i32_0 = arith.constant 0 : i32
    %c0_i32_1 = arith.constant 0 : i32
    return %arg0, %c0_i32, %c0_i32_0 : i32, i32, i32
  }
}

module attributes {stable_mosaic.version = 11 : i64} {
  func.func @_conv2_kernel(%arg0: i32, %arg1: memref<1x18x18x128xbf16, #tpu.memory_space<vmem>>, %arg2: memref<9x128x128xbf16, #tpu.memory_space<vmem>>, %arg3: memref<1x256x128xf32, #tpu.memory_space<vmem>>, %arg4: memref<1x1x128xf32, #tpu.memory_space<vmem>>, %arg5: memref<1x1x128xf32, #tpu.memory_space<vmem>>) attributes {dimension_semantics = [#tpu.dimension_semantics<parallel>], iteration_bounds = array<i64: 2>, scalar_prefetch = 0 : i64, scratch_operands = 0 : i64, tpu.core_type = #tpu.core_type<tc>, window_params = [{transform_indices = @transform_0, window_bounds = array<i64: 1, 18, 18, 128>}, {pipeline_mode = #tpu.pipeline_mode<synchronous>, transform_indices = @transform_1, window_bounds = array<i64: 9, 128, 128>}, {transform_indices = @transform_2, window_bounds = array<i64: 1, 256, 128>}, {transform_indices = @transform_3, window_bounds = array<i64: 1, 1, 128>}, {transform_indices = @transform_4, window_bounds = array<i64: 1, 1, 128>}]} {
    %cst = arith.constant 0.000000e+00 : f32
    %0 = vector.broadcast %cst : f32 to vector<256x128xf32>
    %c0 = arith.constant 0 : index
    %c0_0 = arith.constant 0 : index
    %c0_1 = arith.constant 0 : index
    %c0_2 = arith.constant 0 : index
    %1 = vector.load %arg1[%c0, %c0_0, %c0_1, %c0_2] : memref<1x18x18x128xbf16, #tpu.memory_space<vmem>>, vector<1x16x16x128xbf16>
    %2 = vector.shape_cast %1 : vector<1x16x16x128xbf16> to vector<16x16x128xbf16>
    %3 = vector.shape_cast %2 : vector<16x16x128xbf16> to vector<256x128xbf16>
    %c0_3 = arith.constant 0 : index
    %c0_4 = arith.constant 0 : index
    %c0_5 = arith.constant 0 : index
    %4 = vector.load %arg2[%c0_3, %c0_4, %c0_5] : memref<9x128x128xbf16, #tpu.memory_space<vmem>>, vector<1x128x128xbf16>
    %5 = vector.shape_cast %4 : vector<1x128x128xbf16> to vector<128x128xbf16>
    %cst_6 = arith.constant dense<0.000000e+00> : vector<256x128xf32>
    %6 = tpu.matmul %3, %5, %cst_6 {dimension_numbers = #tpu.dot_dimension_numbers<[1], [0], [0], [1], [0, 0, 1, 1], [], []>} : vector<256x128xbf16>, vector<128x128xbf16>, vector<256x128xf32> -> vector<256x128xf32>
    %7 = arith.addf %0, %6 : vector<256x128xf32>
    %c0_7 = arith.constant 0 : index
    %c0_8 = arith.constant 0 : index
    %c1 = arith.constant 1 : index
    %c0_9 = arith.constant 0 : index
    %8 = vector.load %arg1[%c0_7, %c0_8, %c1, %c0_9] : memref<1x18x18x128xbf16, #tpu.memory_space<vmem>>, vector<1x16x16x128xbf16>
    %9 = vector.shape_cast %8 : vector<1x16x16x128xbf16> to vector<16x16x128xbf16>
    %10 = vector.shape_cast %9 : vector<16x16x128xbf16> to vector<256x128xbf16>
    %c1_10 = arith.constant 1 : index
    %c0_11 = arith.constant 0 : index
    %c0_12 = arith.constant 0 : index
    %11 = vector.load %arg2[%c1_10, %c0_11, %c0_12] : memref<9x128x128xbf16, #tpu.memory_space<vmem>>, vector<1x128x128xbf16>
    %12 = vector.shape_cast %11 : vector<1x128x128xbf16> to vector<128x128xbf16>
    %cst_13 = arith.constant dense<0.000000e+00> : vector<256x128xf32>
    %13 = tpu.matmul %10, %12, %cst_13 {dimension_numbers = #tpu.dot_dimension_numbers<[1], [0], [0], [1], [0, 0, 1, 1], [], []>} : vector<256x128xbf16>, vector<128x128xbf16>, vector<256x128xf32> -> vector<256x128xf32>
    %14 = arith.addf %7, %13 : vector<256x128xf32>
    %c0_14 = arith.constant 0 : index
    %c0_15 = arith.constant 0 : index
    %c2 = arith.constant 2 : index
    %c0_16 = arith.constant 0 : index
    %15 = vector.load %arg1[%c0_14, %c0_15, %c2, %c0_16] : memref<1x18x18x128xbf16, #tpu.memory_space<vmem>>, vector<1x16x16x128xbf16>
    %16 = vector.shape_cast %15 : vector<1x16x16x128xbf16> to vector<16x16x128xbf16>
    %17 = vector.shape_cast %16 : vector<16x16x128xbf16> to vector<256x128xbf16>
    %c2_17 = arith.constant 2 : index
    %c0_18 = arith.constant 0 : index
    %c0_19 = arith.constant 0 : index
    %18 = vector.load %arg2[%c2_17, %c0_18, %c0_19] : memref<9x128x128xbf16, #tpu.memory_space<vmem>>, vector<1x128x128xbf16>
    %19 = vector.shape_cast %18 : vector<1x128x128xbf16> to vector<128x128xbf16>
    %cst_20 = arith.constant dense<0.000000e+00> : vector<256x128xf32>
    %20 = tpu.matmul %17, %19, %cst_20 {dimension_numbers = #tpu.dot_dimension_numbers<[1], [0], [0], [1], [0, 0, 1, 1], [], []>} : vector<256x128xbf16>, vector<128x128xbf16>, vector<256x128xf32> -> vector<256x128xf32>
    %21 = arith.addf %14, %20 : vector<256x128xf32>
    %c0_21 = arith.constant 0 : index
    %c1_22 = arith.constant 1 : index
    %c0_23 = arith.constant 0 : index
    %c0_24 = arith.constant 0 : index
    %22 = vector.load %arg1[%c0_21, %c1_22, %c0_23, %c0_24] : memref<1x18x18x128xbf16, #tpu.memory_space<vmem>>, vector<1x16x16x128xbf16>
    %23 = vector.shape_cast %22 : vector<1x16x16x128xbf16> to vector<16x16x128xbf16>
    %24 = vector.shape_cast %23 : vector<16x16x128xbf16> to vector<256x128xbf16>
    %c3 = arith.constant 3 : index
    %c0_25 = arith.constant 0 : index
    %c0_26 = arith.constant 0 : index
    %25 = vector.load %arg2[%c3, %c0_25, %c0_26] : memref<9x128x128xbf16, #tpu.memory_space<vmem>>, vector<1x128x128xbf16>
    %26 = vector.shape_cast %25 : vector<1x128x128xbf16> to vector<128x128xbf16>
    %cst_27 = arith.constant dense<0.000000e+00> : vector<256x128xf32>
    %27 = tpu.matmul %24, %26, %cst_27 {dimension_numbers = #tpu.dot_dimension_numbers<[1], [0], [0], [1], [0, 0, 1, 1], [], []>} : vector<256x128xbf16>, vector<128x128xbf16>, vector<256x128xf32> -> vector<256x128xf32>
    %28 = arith.addf %21, %27 : vector<256x128xf32>
    %c0_28 = arith.constant 0 : index
    %c1_29 = arith.constant 1 : index
    %c1_30 = arith.constant 1 : index
    %c0_31 = arith.constant 0 : index
    %29 = vector.load %arg1[%c0_28, %c1_29, %c1_30, %c0_31] : memref<1x18x18x128xbf16, #tpu.memory_space<vmem>>, vector<1x16x16x128xbf16>
    %30 = vector.shape_cast %29 : vector<1x16x16x128xbf16> to vector<16x16x128xbf16>
    %31 = vector.shape_cast %30 : vector<16x16x128xbf16> to vector<256x128xbf16>
    %c4 = arith.constant 4 : index
    %c0_32 = arith.constant 0 : index
    %c0_33 = arith.constant 0 : index
    %32 = vector.load %arg2[%c4, %c0_32, %c0_33] : memref<9x128x128xbf16, #tpu.memory_space<vmem>>, vector<1x128x128xbf16>
    %33 = vector.shape_cast %32 : vector<1x128x128xbf16> to vector<128x128xbf16>
    %cst_34 = arith.constant dense<0.000000e+00> : vector<256x128xf32>
    %34 = tpu.matmul %31, %33, %cst_34 {dimension_numbers = #tpu.dot_dimension_numbers<[1], [0], [0], [1], [0, 0, 1, 1], [], []>} : vector<256x128xbf16>, vector<128x128xbf16>, vector<256x128xf32> -> vector<256x128xf32>
    %35 = arith.addf %28, %34 : vector<256x128xf32>
    %c0_35 = arith.constant 0 : index
    %c1_36 = arith.constant 1 : index
    %c2_37 = arith.constant 2 : index
    %c0_38 = arith.constant 0 : index
    %36 = vector.load %arg1[%c0_35, %c1_36, %c2_37, %c0_38] : memref<1x18x18x128xbf16, #tpu.memory_space<vmem>>, vector<1x16x16x128xbf16>
    %37 = vector.shape_cast %36 : vector<1x16x16x128xbf16> to vector<16x16x128xbf16>
    %38 = vector.shape_cast %37 : vector<16x16x128xbf16> to vector<256x128xbf16>
    %c5 = arith.constant 5 : index
    %c0_39 = arith.constant 0 : index
    %c0_40 = arith.constant 0 : index
    %39 = vector.load %arg2[%c5, %c0_39, %c0_40] : memref<9x128x128xbf16, #tpu.memory_space<vmem>>, vector<1x128x128xbf16>
    %40 = vector.shape_cast %39 : vector<1x128x128xbf16> to vector<128x128xbf16>
    %cst_41 = arith.constant dense<0.000000e+00> : vector<256x128xf32>
    %41 = tpu.matmul %38, %40, %cst_41 {dimension_numbers = #tpu.dot_dimension_numbers<[1], [0], [0], [1], [0, 0, 1, 1], [], []>} : vector<256x128xbf16>, vector<128x128xbf16>, vector<256x128xf32> -> vector<256x128xf32>
    %42 = arith.addf %35, %41 : vector<256x128xf32>
    %c0_42 = arith.constant 0 : index
    %c2_43 = arith.constant 2 : index
    %c0_44 = arith.constant 0 : index
    %c0_45 = arith.constant 0 : index
    %43 = vector.load %arg1[%c0_42, %c2_43, %c0_44, %c0_45] : memref<1x18x18x128xbf16, #tpu.memory_space<vmem>>, vector<1x16x16x128xbf16>
    %44 = vector.shape_cast %43 : vector<1x16x16x128xbf16> to vector<16x16x128xbf16>
    %45 = vector.shape_cast %44 : vector<16x16x128xbf16> to vector<256x128xbf16>
    %c6 = arith.constant 6 : index
    %c0_46 = arith.constant 0 : index
    %c0_47 = arith.constant 0 : index
    %46 = vector.load %arg2[%c6, %c0_46, %c0_47] : memref<9x128x128xbf16, #tpu.memory_space<vmem>>, vector<1x128x128xbf16>
    %47 = vector.shape_cast %46 : vector<1x128x128xbf16> to vector<128x128xbf16>
    %cst_48 = arith.constant dense<0.000000e+00> : vector<256x128xf32>
    %48 = tpu.matmul %45, %47, %cst_48 {dimension_numbers = #tpu.dot_dimension_numbers<[1], [0], [0], [1], [0, 0, 1, 1], [], []>} : vector<256x128xbf16>, vector<128x128xbf16>, vector<256x128xf32> -> vector<256x128xf32>
    %49 = arith.addf %42, %48 : vector<256x128xf32>
    %c0_49 = arith.constant 0 : index
    %c2_50 = arith.constant 2 : index
    %c1_51 = arith.constant 1 : index
    %c0_52 = arith.constant 0 : index
    %50 = vector.load %arg1[%c0_49, %c2_50, %c1_51, %c0_52] : memref<1x18x18x128xbf16, #tpu.memory_space<vmem>>, vector<1x16x16x128xbf16>
    %51 = vector.shape_cast %50 : vector<1x16x16x128xbf16> to vector<16x16x128xbf16>
    %52 = vector.shape_cast %51 : vector<16x16x128xbf16> to vector<256x128xbf16>
    %c7 = arith.constant 7 : index
    %c0_53 = arith.constant 0 : index
    %c0_54 = arith.constant 0 : index
    %53 = vector.load %arg2[%c7, %c0_53, %c0_54] : memref<9x128x128xbf16, #tpu.memory_space<vmem>>, vector<1x128x128xbf16>
    %54 = vector.shape_cast %53 : vector<1x128x128xbf16> to vector<128x128xbf16>
    %cst_55 = arith.constant dense<0.000000e+00> : vector<256x128xf32>
    %55 = tpu.matmul %52, %54, %cst_55 {dimension_numbers = #tpu.dot_dimension_numbers<[1], [0], [0], [1], [0, 0, 1, 1], [], []>} : vector<256x128xbf16>, vector<128x128xbf16>, vector<256x128xf32> -> vector<256x128xf32>
    %56 = arith.addf %49, %55 : vector<256x128xf32>
    %c0_56 = arith.constant 0 : index
    %c2_57 = arith.constant 2 : index
    %c2_58 = arith.constant 2 : index
    %c0_59 = arith.constant 0 : index
    %57 = vector.load %arg1[%c0_56, %c2_57, %c2_58, %c0_59] : memref<1x18x18x128xbf16, #tpu.memory_space<vmem>>, vector<1x16x16x128xbf16>
    %58 = vector.shape_cast %57 : vector<1x16x16x128xbf16> to vector<16x16x128xbf16>
    %59 = vector.shape_cast %58 : vector<16x16x128xbf16> to vector<256x128xbf16>
    %c8 = arith.constant 8 : index
    %c0_60 = arith.constant 0 : index
    %c0_61 = arith.constant 0 : index
    %60 = vector.load %arg2[%c8, %c0_60, %c0_61] : memref<9x128x128xbf16, #tpu.memory_space<vmem>>, vector<1x128x128xbf16>
    %61 = vector.shape_cast %60 : vector<1x128x128xbf16> to vector<128x128xbf16>
    %cst_62 = arith.constant dense<0.000000e+00> : vector<256x128xf32>
    %62 = tpu.matmul %59, %61, %cst_62 {dimension_numbers = #tpu.dot_dimension_numbers<[1], [0], [0], [1], [0, 0, 1, 1], [], []>} : vector<256x128xbf16>, vector<128x128xbf16>, vector<256x128xf32> -> vector<256x128xf32>
    %63 = arith.addf %56, %62 : vector<256x128xf32>
    %c0_63 = arith.constant 0 : index
    %c0_64 = arith.constant 0 : index
    %c0_65 = arith.constant 0 : index
    %64 = vector.load %arg3[%c0_63, %c0_64, %c0_65] : memref<1x256x128xf32, #tpu.memory_space<vmem>>, vector<1x256x128xf32>
    %65 = vector.shape_cast %64 : vector<1x256x128xf32> to vector<256x128xf32>
    %66 = vector.shape_cast %63 : vector<256x128xf32> to vector<1x256x128xf32>
    tpu.vector_store %arg3[%c0_63, %c0_64, %c0_65], %66 {strides = array<i32>} : memref<1x256x128xf32, #tpu.memory_space<vmem>>, vector<1x256x128xf32>,
    %cst_66 = arith.constant dense<0.000000e+00> : vector<128xf32>
    %67 = vector.multi_reduction <add>, %63, %cst_66 [0] : vector<256x128xf32> to vector<128xf32>
    %68 = vector.shape_cast %67 : vector<128xf32> to vector<1x128xf32>
    %c0_67 = arith.constant 0 : index
    %c0_68 = arith.constant 0 : index
    %c0_69 = arith.constant 0 : index
    %69 = vector.load %arg4[%c0_67, %c0_68, %c0_69] : memref<1x1x128xf32, #tpu.memory_space<vmem>>, vector<1x1x128xf32>
    %70 = vector.shape_cast %69 : vector<1x1x128xf32> to vector<1x128xf32>
    %71 = vector.shape_cast %68 : vector<1x128xf32> to vector<1x1x128xf32>
    tpu.vector_store %arg4[%c0_67, %c0_68, %c0_69], %71 {strides = array<i32>} : memref<1x1x128xf32, #tpu.memory_space<vmem>>, vector<1x1x128xf32>,
    %72 = arith.mulf %63, %63 : vector<256x128xf32>
    %cst_70 = arith.constant dense<0.000000e+00> : vector<128xf32>
    %73 = vector.multi_reduction <add>, %72, %cst_70 [0] : vector<256x128xf32> to vector<128xf32>
    %74 = vector.shape_cast %73 : vector<128xf32> to vector<1x128xf32>
    %c0_71 = arith.constant 0 : index
    %c0_72 = arith.constant 0 : index
    %c0_73 = arith.constant 0 : index
    %75 = vector.load %arg5[%c0_71, %c0_72, %c0_73] : memref<1x1x128xf32, #tpu.memory_space<vmem>>, vector<1x1x128xf32>
    %76 = vector.shape_cast %75 : vector<1x1x128xf32> to vector<1x128xf32>
    %77 = vector.shape_cast %74 : vector<1x128xf32> to vector<1x1x128xf32>
    tpu.vector_store %arg5[%c0_71, %c0_72, %c0_73], %77 {strides = array<i32>} : memref<1x1x128xf32, #tpu.memory_space<vmem>>, vector<1x1x128xf32>,
    return
  }
  func.func @transform_0(%arg0: i32) -> (i32, i32, i32, i32) {
    %c0_i32 = arith.constant 0 : i32
    %c0_i32_0 = arith.constant 0 : i32
    %c0_i32_1 = arith.constant 0 : i32
    %c0_i32_2 = arith.constant 0 : i32
    return %arg0, %c0_i32, %c0_i32_0, %c0_i32_1 : i32, i32, i32, i32
  }
  func.func @transform_1(%arg0: i32) -> (i32, i32, i32) {
    %c0_i32 = arith.constant 0 : i32
    %c0_i32_0 = arith.constant 0 : i32
    %c0_i32_1 = arith.constant 0 : i32
    %c0_i32_2 = arith.constant 0 : i32
    return %c0_i32, %c0_i32_0, %c0_i32_1 : i32, i32, i32
  }
  func.func @transform_2(%arg0: i32) -> (i32, i32, i32) {
    %c0_i32 = arith.constant 0 : i32
    %c0_i32_0 = arith.constant 0 : i32
    %c0_i32_1 = arith.constant 0 : i32
    return %arg0, %c0_i32, %c0_i32_0 : i32, i32, i32
  }
  func.func @transform_3(%arg0: i32) -> (i32, i32, i32) {
    %c0_i32 = arith.constant 0 : i32
    %c0_i32_0 = arith.constant 0 : i32
    %c0_i32_1 = arith.constant 0 : i32
    return %arg0, %c0_i32, %c0_i32_0 : i32, i32, i32
  }
  func.func @transform_4(%arg0: i32) -> (i32, i32, i32) {
    %c0_i32 = arith.constant 0 : i32
    %c0_i32_0 = arith.constant 0 : i32
    %c0_i32_1 = arith.constant 0 : i32
    return %arg0, %c0_i32, %c0_i32_0 : i32, i32, i32
  }
}

module attributes {stable_mosaic.version = 11 : i64} {
  func.func @_bn_add_kernel(%arg0: i32, %arg1: memref<1x256x128xf32, #tpu.memory_space<vmem>>, %arg2: memref<1x256x128xf32, #tpu.memory_space<vmem>>, %arg3: memref<2x128xf32, #tpu.memory_space<vmem>>, %arg4: memref<2x128xf32, #tpu.memory_space<vmem>>, %arg5: memref<1x256x128xf32, #tpu.memory_space<vmem>>) attributes {dimension_semantics = [#tpu.dimension_semantics<parallel>], iteration_bounds = array<i64: 2>, scalar_prefetch = 0 : i64, scratch_operands = 0 : i64, tpu.core_type = #tpu.core_type<tc>, window_params = [{transform_indices = @transform_0, window_bounds = array<i64: 1, 256, 128>}, {transform_indices = @transform_1, window_bounds = array<i64: 1, 256, 128>}, {pipeline_mode = #tpu.pipeline_mode<synchronous>, transform_indices = @transform_2, window_bounds = array<i64: 2, 128>}, {pipeline_mode = #tpu.pipeline_mode<synchronous>, transform_indices = @transform_3, window_bounds = array<i64: 2, 128>}, {transform_indices = @transform_4, window_bounds = array<i64: 1, 256, 128>}]} {
    %c0 = arith.constant 0 : index
    %c0_0 = arith.constant 0 : index
    %c0_1 = arith.constant 0 : index
    %0 = vector.load %arg1[%c0, %c0_0, %c0_1] : memref<1x256x128xf32, #tpu.memory_space<vmem>>, vector<1x256x128xf32>
    %c0_2 = arith.constant 0 : index
    %c0_3 = arith.constant 0 : index
    %1 = vector.load %arg3[%c0_2, %c0_3] : memref<2x128xf32, #tpu.memory_space<vmem>>, vector<1x128xf32>
    %2 = vector.shape_cast %1 : vector<1x128xf32> to vector<1x1x128xf32>
    %3 = vector.broadcast %2 : vector<1x1x128xf32> to vector<1x256x128xf32>
    %4 = arith.mulf %0, %3 : vector<1x256x128xf32>
    %c1 = arith.constant 1 : index
    %c0_4 = arith.constant 0 : index
    %5 = vector.load %arg3[%c1, %c0_4] : memref<2x128xf32, #tpu.memory_space<vmem>>, vector<1x128xf32>
    %6 = vector.shape_cast %5 : vector<1x128xf32> to vector<1x1x128xf32>
    %7 = vector.broadcast %6 : vector<1x1x128xf32> to vector<1x256x128xf32>
    %8 = arith.addf %4, %7 : vector<1x256x128xf32>
    %c0_5 = arith.constant 0 : index
    %c0_6 = arith.constant 0 : index
    %c0_7 = arith.constant 0 : index
    %9 = vector.load %arg2[%c0_5, %c0_6, %c0_7] : memref<1x256x128xf32, #tpu.memory_space<vmem>>, vector<1x256x128xf32>
    %c0_8 = arith.constant 0 : index
    %c0_9 = arith.constant 0 : index
    %10 = vector.load %arg4[%c0_8, %c0_9] : memref<2x128xf32, #tpu.memory_space<vmem>>, vector<1x128xf32>
    %11 = vector.shape_cast %10 : vector<1x128xf32> to vector<1x1x128xf32>
    %12 = vector.broadcast %11 : vector<1x1x128xf32> to vector<1x256x128xf32>
    %13 = arith.mulf %9, %12 : vector<1x256x128xf32>
    %c1_10 = arith.constant 1 : index
    %c0_11 = arith.constant 0 : index
    %14 = vector.load %arg4[%c1_10, %c0_11] : memref<2x128xf32, #tpu.memory_space<vmem>>, vector<1x128xf32>
    %15 = vector.shape_cast %14 : vector<1x128xf32> to vector<1x1x128xf32>
    %16 = vector.broadcast %15 : vector<1x1x128xf32> to vector<1x256x128xf32>
    %17 = arith.addf %13, %16 : vector<1x256x128xf32>
    %18 = arith.addf %8, %17 : vector<1x256x128xf32>
    %c0_12 = arith.constant 0 : index
    %c0_13 = arith.constant 0 : index
    %c0_14 = arith.constant 0 : index
    %19 = vector.load %arg5[%c0_12, %c0_13, %c0_14] : memref<1x256x128xf32, #tpu.memory_space<vmem>>, vector<1x256x128xf32>
    tpu.vector_store %arg5[%c0_12, %c0_13, %c0_14], %18 {strides = array<i32>} : memref<1x256x128xf32, #tpu.memory_space<vmem>>, vector<1x256x128xf32>,
    return
  }
  func.func @transform_0(%arg0: i32) -> (i32, i32, i32) {
    %c0_i32 = arith.constant 0 : i32
    %c0_i32_0 = arith.constant 0 : i32
    %c0_i32_1 = arith.constant 0 : i32
    return %arg0, %c0_i32, %c0_i32_0 : i32, i32, i32
  }
  func.func @transform_1(%arg0: i32) -> (i32, i32, i32) {
    %c0_i32 = arith.constant 0 : i32
    %c0_i32_0 = arith.constant 0 : i32
    %c0_i32_1 = arith.constant 0 : i32
    return %arg0, %c0_i32, %c0_i32_0 : i32, i32, i32
  }
  func.func @transform_2(%arg0: i32) -> (i32, i32) {
    %c0_i32 = arith.constant 0 : i32
    %c0_i32_0 = arith.constant 0 : i32
    %c0_i32_1 = arith.constant 0 : i32
    return %c0_i32, %c0_i32_0 : i32, i32
  }
  func.func @transform_3(%arg0: i32) -> (i32, i32) {
    %c0_i32 = arith.constant 0 : i32
    %c0_i32_0 = arith.constant 0 : i32
    %c0_i32_1 = arith.constant 0 : i32
    return %c0_i32, %c0_i32_0 : i32, i32
  }
  func.func @transform_4(%arg0: i32) -> (i32, i32, i32) {
    %c0_i32 = arith.constant 0 : i32
    %c0_i32_0 = arith.constant 0 : i32
    %c0_i32_1 = arith.constant 0 : i32
    return %arg0, %c0_i32, %c0_i32_0 : i32, i32, i32
  }
}

</mosaic_0001>

<bundles_post_ra>
// kernel: reduction_cell_forward.8
= control target key start
LH: loop header
LB: loop body
LE: loop exit
PB: predicated region body
PF: predicated region fallthrough
CT: control target
= control target key end

     0   :  { %vm19_vm0 = vcmask 1040384   ;;  %s106_s0 = inlined_call_operand.vmem [shape: f32[2,1,128], index: 0, kind: input, shape index: {}]   ;;  %s107_s1 = inlined_call_operand.vmem [shape: f32[2,1,128], index: 1, kind: input, shape index: {}]   ;;  %s108_s2 = inlined_call_operand.vmem [shape: f32[1,128], index: 2, kind: input, shape index: {}]   ;;  %s109_s3 = inlined_call_operand.vmem [shape: f32[1,128], index: 3, kind: input, shape index: {}]   ;;  %s110_s4 = inlined_call_operand.vmem [shape: f32[2,128], index: 4, kind: output, shape index: {}]  }
   0x1   :  { %v17_v0 = vld [vmem:[%s106_s0] sm:$0x1]  ;;  %v18_v1 = vld [vmem:[%s106_s0 + $0x1] sm:$0x1] }
   0x2   :  { %v24_v2 = vld [vmem:[%s107_s1] sm:$0x1]  ;;  %v20_v3 = vsel %vm19_vm0, %v17_v0, 0.0  ;;  %v21_v4 = vsel %vm19_vm0, %v18_v1, 0.0  ;;  %v25_v5 = vld [vmem:[%s107_s1 + $0x1] sm:$0x1] }
   0x3   :  { %v26_v6 = vsel %vm19_vm0, %v24_v2, 0.0  ;;  %v22_v7 = vadd.f32 %v21_v4, %v20_v3  ;;  %v27_v8 = vsel %vm19_vm0, %v25_v5, 0.0  ;;  %v33_v21 = vld [vmem:[%s108_s2] sm:$0x1] }
   0x4   :  { %v28_v9 = vadd.f32 %v27_v8, %v26_v6  ;;  %v47_v25 = vld [vmem:[%s109_s3] sm:$0x1] }
   0x5   :  { %v23_v10 = vmul.f32 0.001953125, %v22_v7 }
   0x6   :  { %v29_v11 = vmul.f32 0.001953125, %v28_v9 }
   0x7   :  { %v30_v12 = vmul.f32 %v23_v10, %v23_v10 }
   0x9   :  { %v31_v13 = vsub.f32 %v29_v11, %v30_v12 }
   0xb   :  { %v32_v14 = vmax.f32 %v31_v13, 0.0 }
   0xd   :  { %v34_v15 = vadd.f32 1e-05, %v32_v14 }
   0xf   :  { %55 = vrsqrt.f32 %v34_v15  ;;  %vm41_vm1 = vweird.f32 %v34_v15 }
  0x15   :  { %v56_v16 = vpop.eup %55 }
  0x16   :  { %v36_v17 = vmul.f32 %v56_v16, %v34_v15  ;;  %vm42_vm2 = vweird.f32 %v56_v16 }
  0x17   :  { %vm43_vm3 = vmor %vm41_vm1, %vm42_vm2 }
  0x18   :  { %v37_v18 = vmul.f32 %v56_v16, %v36_v17 }
  0x1a   :  { %v38_v19 = vmul.f32 0.5, %v37_v18 }
  0x1c   :  { %v39_v20 = vsub.f32 1.5, %v38_v19 }
  0x1e   :  { %v40_v22 = vmul.f32 %v56_v16, %v39_v20 }
  0x20   :  { %v44_v23 = vsel %vm43_vm3, %v56_v16, %v40_v22 }
  0x21   :  { %v45_v24 = vmul.f32 %v44_v23, %v33_v21 }
  0x23   :  { %46 = vst [vmem:[%s110_s4] sm:$0x1] %v45_v24  ;;  %v48_v26 = vmul.f32 %v45_v24, %v23_v10 }
  0x25   :  { %v49_v27 = vsub.f32 %v47_v25, %v48_v26 }
  0x27   :  { %50 = vst [vmem:[%s110_s4 + $0x1] sm:$0x1] %v49_v27 }

// kernel: reduction_cell_forward.10
= control target key start
LH: loop header
LB: loop body
LE: loop exit
PB: predicated region body
PF: predicated region fallthrough
CT: control target
= control target key end

     0   :  { %s536_s9 = smov 0   ;;  %s683_s0 = inlined_call_operand.vmem [shape: f32[2,256,128], index: 0, kind: input, shape index: {}]   ;;  %s684_s1 = inlined_call_operand.vmem [shape: f32[2,128], index: 1, kind: input, shape index: {}]   ;;  %s685_s2 = inlined_call_operand.vmem [shape: bf16[2,256,128], index: 2, kind: output, shape index: {}]  }
   0x1 LB: > { %s395_s10 = sadd.s32 4294967295, %s519_s9   ;;  %p399_p0 = scmp.ge.s32.totalorder %s519_s9, 1  ;;  %s519_s9 = sphi %s536_s9, %s12_s9  }
   0x2   : > { %p112_p1 = scmp.lt.s32.totalorder %s519_s9, 3 }
   0x4   : > { %p113_p2 = pnand %p399_p0, %p112_p1 }
   0x5   : > { %p134_p3 = scmp.lt.s32.totalorder (!%p113_p2), %s395_s10, 1 }
   0x6   : > { %116 = sbr.rel (%p113_p2) target bundleno = 49 (0x31), region = 28 }
   0xb   : > { %s687_s10 = smov (!%p134_p3, %s395_s10), 1  ;;  %v549_v0 = vld [vmem:[%s684_s1] ss:$0 sm:$0xff]  ;;  %v560_v1 = vld [vmem:[%s684_s1 + $0x1] ss:$0 sm:$0xff] }
   0xc   : > { %s406_s13 = sshll.u32 %s687_s10, 8  ;;  %s407_s19 = sshll.u32 %s687_s10, 7 }
   0xd   : > { %s555_s16 = scalar_lea.vmem %s683_s0, %s406_s13  ;;  %s592_s22 = scalar_lea.vmem %s685_s2, %s407_s19 }
   0xe   : > { %v144_v2 = vld [vmem:[%s555_s16] sm:$0xff]  ;;  %v145_v3 = vld [vmem:[%s555_s16 + $0x8] sm:$0xff]  ;;  %v146_v4 = vld [vmem:[%s555_s16 + $0x10] sm:$0xff] }
   0xf   : > { %v178_v5 = vmul.f32 %v549_v0, %v144_v2  ;;  %v179_v6 = vmul.f32 %v549_v0, %v145_v3  ;;  %v147_v7 = vld [vmem:[%s555_s16 + $0x18] sm:$0xff]  ;;  %v180_v8 = vmul.f32 %v549_v0, %v146_v4  ;;  %v148_v9 = vld [vmem:[%s555_s16 + $0x20] sm:$0xff]  ;;  %v149_v10 = vld [vmem:[%s555_s16 + $0x28] sm:$0xff] }
  0x10   : > { %v181_v11 = vmul.f32 %v549_v0, %v147_v7  ;;  %v182_v12 = vmul.f32 %v549_v0, %v148_v9  ;;  %v183_v13 = vmul.f32 %v549_v0, %v149_v10  ;;  %v150_v14 = vld [vmem:[%s555_s16 + $0x30] sm:$0xff]  ;;  %v151_v15 = vld [vmem:[%s555_s16 + $0x38] sm:$0xff]  ;;  %v152_v24 = vld [vmem:[%s555_s16 + $0x40] sm:$0xff] }
  0x11   : > { %v212_v16 = vadd.f32 %v560_v1, %v178_v5  ;;  %v213_v17 = vadd.f32 %v560_v1, %v179_v6  ;;  %v214_v18 = vadd.f32 %v560_v1, %v180_v8  ;;  %v184_v19 = vmul.f32 %v549_v0, %v150_v14  ;;  %v153_v25 = vld [vmem:[%s555_s16 + $0x48] sm:$0xff]  ;;  %v154_v30 = vld [vmem:[%s555_s16 + $0x50] sm:$0xff]  ;;  %v155_v35 = vld [vmem:[%s555_s16 + $0x58] sm:$0xff] }
  0x12   : > { %v215_v20 = vadd.f32 %v560_v1, %v181_v11  ;;  %v216_v21 = vadd.f32 %v560_v1, %v182_v12  ;;  %v217_v22 = vadd.f32 %v560_v1, %v183_v13  ;;  %v185_v23 = vmul.f32 %v549_v0, %v151_v15  ;;  %v156_v36 = vld [vmem:[%s555_s16 + $0x60] sm:$0xff]  ;;  %v157_v41 = vld [vmem:[%s555_s16 + $0x68] sm:$0xff]  ;;  %v158_v42 = vld [vmem:[%s555_s16 + $0x70] sm:$0xff] }
  0x13   : > { %v244_v26 = vmax.f32 %v212_v16, 0.0  ;;  %v245_v27 = vmax.f32 %v213_v17, 0.0  ;;  %v246_v28 = vmax.f32 %v214_v18, 0.0  ;;  %v218_v29 = vadd.f32 %v560_v1, %v184_v19  ;;  %v159_v51 = vld [vmem:[%s555_s16 + $0x78] sm:$0xff]  ;;  %v160_v56 = vld [vmem:[%s555_s16 + $0x80] sm:$0xff]  ;;  %v161_v61 = vld [vmem:[%s555_s16 + $0x88] sm:$0xff] }
  0x14   : > { %v247_v31 = vmax.f32 %v215_v20, 0.0  ;;  %v248_v32 = vmax.f32 %v216_v21, 0.0  ;;  %v249_v33 = vmax.f32 %v217_v22, 0.0  ;;  %v219_v34 = vadd.f32 %v560_v1, %v185_v23  ;;  %v162_v4 = vld [vmem:[%s555_s16 + $0x90] sm:$0xff]  ;;  %v163_v5 = vld [vmem:[%s555_s16 + $0x98] sm:$0xff]  ;;  %v164_v10 = vld [vmem:[%s555_s16 + $0xa0] sm:$0xff] }
  0x15   : > { %v411_v37 = vpack.c.bf16 %v245_v27, %v244_v26  ;;  %v250_v38 = vmax.f32 %v218_v29, 0.0  ;;  %v186_v39 = vmul.f32 %v549_v0, %v152_v24  ;;  %v187_v40 = vmul.f32 %v549_v0, %v153_v25  ;;  %v165_v15 = vld [vmem:[%s555_s16 + $0xa8] sm:$0xff]  ;;  %v166_v20 = vld [vmem:[%s555_s16 + $0xb0] sm:$0xff]  ;;  %v167_v25 = vld [vmem:[%s555_s16 + $0xb8] sm:$0xff] }
  0x16   : > { %v416_v43 = vpack.c.bf16 %v247_v31, %v246_v28  ;;  %v421_v44 = vpack.c.bf16 %v249_v33, %v248_v32  ;;  %v251_v45 = vmax.f32 %v219_v34, 0.0  ;;  %v188_v46 = vmul.f32 %v549_v0, %v154_v30  ;;  %v168_v30 = vld [vmem:[%s555_s16 + $0xc0] sm:$0xff] }
  0x17   : > { %412 = vst [vmem:[%s592_s22] sm:$0xff] %v411_v37   ;;  %v220_v47 = vadd.f32 %v560_v1, %v186_v39  ;;  %v221_v48 = vadd.f32 %v560_v1, %v187_v40  ;;  %v189_v49 = vmul.f32 %v549_v0, %v155_v35  ;;  %v190_v50 = vmul.f32 %v549_v0, %v156_v36  ;;  %v169_v35 = vld [vmem:[%s555_s16 + $0xc8] sm:$0xff]  ;;  %v170_v40 = vld [vmem:[%s555_s16 + $0xd0] sm:$0xff] }
  0x18   : > { %488 = vst [vmem:[%s592_s22 + $0x8] sm:$0xff] %v416_v43   ;;  %v426_v52 = vpack.c.bf16 %v251_v45, %v250_v38  ;;  %v222_v53 = vadd.f32 %v560_v1, %v188_v46  ;;  %v191_v54 = vmul.f32 %v549_v0, %v157_v41  ;;  %v192_v55 = vmul.f32 %v549_v0, %v158_v42  ;;  %v171_v41 = vld [vmem:[%s555_s16 + $0xd8] sm:$0xff]  ;;  %v172_v46 = vld [vmem:[%s555_s16 + $0xe0] sm:$0xff] }
  0x19   : > { %489 = vst [vmem:[%s592_s22 + $0x10] sm:$0xff] %v421_v44   ;;  %v252_v57 = vmax.f32 %v220_v47, 0.0  ;;  %v253_v58 = vmax.f32 %v221_v48, 0.0  ;;  %v223_v59 = vadd.f32 %v560_v1, %v189_v49  ;;  %v224_v60 = vadd.f32 %v560_v1, %v190_v50 }
  0x1a   : > { %490 = vst [vmem:[%s592_s22 + $0x18] sm:$0xff] %v426_v52   ;;  %v254_v62 = vmax.f32 %v222_v53, 0.0  ;;  %v225_v63 = vadd.f32 %v560_v1, %v191_v54  ;;  %v193_v2 = vmul.f32 %v549_v0, %v159_v51  ;;  %v226_v3 = vadd.f32 %v560_v1, %v192_v55  ;;  %v173_v51 = vld [vmem:[%s555_s16 + $0xe8] sm:$0xff] }
  0x1b   : > { %v431_v6 = vpack.c.bf16 %v253_v58, %v252_v57  ;;  %v255_v7 = vmax.f32 %v223_v59, 0.0  ;;  %v256_v8 = vmax.f32 %v224_v60, 0.0  ;;  %v194_v9 = vmul.f32 %v549_v0, %v160_v56  ;;  %v174_v56 = vld [vmem:[%s555_s16 + $0xf0] sm:$0xff] }
  0x1c   : > { %v257_v11 = vmax.f32 %v225_v63, 0.0  ;;  %v227_v12 = vadd.f32 %v560_v1, %v193_v2  ;;  %v258_v13 = vmax.f32 %v226_v3, 0.0  ;;  %v195_v14 = vmul.f32 %v549_v0, %v161_v61  ;;  %v175_v61 = vld [vmem:[%s555_s16 + $0xf8] sm:$0xff] }
  0x1d   : > { %491 = vst [vmem:[%s592_s22 + $0x20] sm:$0xff] %v431_v6   ;;  %v436_v16 = vpack.c.bf16 %v255_v7, %v254_v62  ;;  %v228_v17 = vadd.f32 %v560_v1, %v194_v9  ;;  %v196_v18 = vmul.f32 %v549_v0, %v162_v4  ;;  %v197_v19 = vmul.f32 %v549_v0, %v163_v5 }
  0x1e   : > { %v441_v21 = vpack.c.bf16 %v257_v11, %v256_v8  ;;  %v259_v22 = vmax.f32 %v227_v12, 0.0  ;;  %v229_v23 = vadd.f32 %v560_v1, %v195_v14  ;;  %v198_v24 = vmul.f32 %v549_v0, %v164_v10 }
  0x1f   : > { %492 = vst [vmem:[%s592_s22 + $0x28] sm:$0xff] %v436_v16   ;;  %v260_v26 = vmax.f32 %v228_v17, 0.0  ;;  %v230_v27 = vadd.f32 %v560_v1, %v196_v18  ;;  %v231_v28 = vadd.f32 %v560_v1, %v197_v19  ;;  %v199_v29 = vmul.f32 %v549_v0, %v165_v15 }
  0x20   : > { %493 = vst [vmem:[%s592_s22 + $0x30] sm:$0xff] %v441_v21   ;;  %v446_v31 = vpack.c.bf16 %v259_v22, %v258_v13  ;;  %v261_v32 = vmax.f32 %v229_v23, 0.0  ;;  %v232_v33 = vadd.f32 %v560_v1, %v198_v24  ;;  %v200_v34 = vmul.f32 %v549_v0, %v166_v20 }
  0x21   : > { %v262_v36 = vmax.f32 %v230_v27, 0.0  ;;  %v263_v37 = vmax.f32 %v231_v28, 0.0  ;;  %v233_v38 = vadd.f32 %v560_v1, %v199_v29  ;;  %v201_v39 = vmul.f32 %v549_v0, %v167_v25 }
  0x22   : > { %494 = vst [vmem:[%s592_s22 + $0x38] sm:$0xff] %v446_v31   ;;  %v451_v42 = vpack.c.bf16 %v261_v32, %v260_v26  ;;  %v264_v43 = vmax.f32 %v232_v33, 0.0  ;;  %v234_v44 = vadd.f32 %v560_v1, %v200_v34  ;;  %v202_v45 = vmul.f32 %v549_v0, %v168_v30 }
  0x23   : > { %v456_v47 = vpack.c.bf16 %v263_v37, %v262_v36  ;;  %v265_v48 = vmax.f32 %v233_v38, 0.0  ;;  %v235_v49 = vadd.f32 %v560_v1, %v201_v39  ;;  %v203_v50 = vmul.f32 %v549_v0, %v169_v35 }
  0x24   : > { %495 = vst [vmem:[%s592_s22 + $0x40] sm:$0xff] %v451_v42   ;;  %v266_v52 = vmax.f32 %v234_v44, 0.0  ;;  %v236_v53 = vadd.f32 %v560_v1, %v202_v45  ;;  %v204_v54 = vmul.f32 %v549_v0, %v170_v40  ;;  %v205_v55 = vmul.f32 %v549_v0, %v171_v41 }
  0x25   : > { %496 = vst [vmem:[%s592_s22 + $0x48] sm:$0xff] %v456_v47   ;;  %v461_v57 = vpack.c.bf16 %v265_v48, %v264_v43  ;;  %v267_v58 = vmax.f32 %v235_v49, 0.0  ;;  %v237_v59 = vadd.f32 %v560_v1, %v203_v50  ;;  %v206_v60 = vmul.f32 %v549_v0, %v172_v46 }
  0x26   : > { %v268_v62 = vmax.f32 %v236_v53, 0.0  ;;  %v238_v63 = vadd.f32 %v560_v1, %v204_v54  ;;  %v239_v2 = vadd.f32 %v560_v1, %v205_v55  ;;  %v207_v3 = vmul.f32 %v549_v0, %v173_v51 }
  0x27   : > { %497 = vst [vmem:[%s592_s22 + $0x50] sm:$0xff] %v461_v57   ;;  %v466_v4 = vpack.c.bf16 %v267_v58, %v266_v52  ;;  %v269_v5 = vmax.f32 %v237_v59, 0.0  ;;  %v240_v6 = vadd.f32 %v560_v1, %v206_v60  ;;  %v208_v7 = vmul.f32 %v549_v0, %v174_v56 }
  0x28   : > { %v270_v8 = vmax.f32 %v238_v63, 0.0  ;;  %v271_v9 = vmax.f32 %v239_v2, 0.0  ;;  %v241_v10 = vadd.f32 %v560_v1, %v207_v3  ;;  %v209_v11 = vmul.f32 %v549_v0, %v175_v61 }
  0x29   : > { %498 = vst [vmem:[%s592_s22 + $0x58] sm:$0xff] %v466_v4   ;;  %v471_v12 = vpack.c.bf16 %v269_v5, %v268_v62  ;;  %v272_v13 = vmax.f32 %v240_v6, 0.0  ;;  %v242_v14 = vadd.f32 %v560_v1, %v208_v7 }
  0x2a   : > { %v476_v15 = vpack.c.bf16 %v271_v9, %v270_v8  ;;  %v273_v16 = vmax.f32 %v241_v10, 0.0  ;;  %v243_v17 = vadd.f32 %v560_v1, %v209_v11 }
  0x2b   : > { %499 = vst [vmem:[%s592_s22 + $0x60] sm:$0xff] %v471_v12   ;;  %v274_v18 = vmax.f32 %v242_v14, 0.0 }
  0x2c   : > { %500 = vst [vmem:[%s592_s22 + $0x68] sm:$0xff] %v476_v15   ;;  %v481_v19 = vpack.c.bf16 %v273_v16, %v272_v13  ;;  %v275_v20 = vmax.f32 %v243_v17, 0.0 }
  0x2e   : > { %501 = vst [vmem:[%s592_s22 + $0x70] sm:$0xff] %v481_v19   ;;  %v486_v21 = vpack.c.bf16 %v275_v20, %v274_v18 }
  0x30   : > { %502 = vst [vmem:[%s592_s22 + $0x78] sm:$0xff] %v486_v21  }
  0x31 PF: > { %s12_s9 = sadd.s32 1, %s519_s9  }
  0x32   : > { %p9_p4 = scmp.ge.s32.totalorder %s12_s9, 4  }
  0x34   :  { %11 = sbr.rel (!%p9_p4) target bundleno = 1 (0x1), region = 58 }

// kernel: reduction_cell_forward.7
= control target key start
LH: loop header
LB: loop body
LE: loop exit
PB: predicated region body
PF: predicated region fallthrough
CT: control target
= control target key end

     0   :  { %s3478_s30 = smov 0   ;;  %s4250_s0 = inlined_call_operand.vmem [shape: bf16[2,17,17,16], index: 0, kind: input, shape index: {}]   ;;  %s4251_s1 = inlined_call_operand.vmem [shape: bf16[2,256,4], index: 1, kind: input, shape index: {}]   ;;  %s4252_s2 = inlined_call_operand.vmem [shape: bf16[4,16,128], index: 2, kind: input, shape index: {}]   ;;  %s4253_s3 = inlined_call_operand.vmem [shape: bf16[4,128], index: 3, kind: input, shape index: {}]   ;;  %s4254_s4 = inlined_call_operand.vmem [shape: f32[2,256,128], index: 4, kind: output, shape index: {0}]   ;;  %s4255_s5 = inlined_call_operand.vmem [shape: f32[2,256,128], index: 5, kind: output, shape index: {1}]   ;;  %s4256_s6 = inlined_call_operand.vmem [shape: f32[2,1,128], index: 6, kind: output, shape index: {2}]   ;;  %s4257_s7 = inlined_call_operand.vmem [shape: f32[2,1,128], index: 7, kind: output, shape index: {3}]   ;;  %s4258_s8 = inlined_call_operand.vmem [shape: f32[2,1,128], index: 8, kind: output, shape index: {4}]   ;;  %s4259_s9 = inlined_call_operand.vmem [shape: f32[2,1,128], index: 9, kind: output, shape index: {5}]  }
   0x1 LB: > { %s3066_s10 = sadd.s32 4294967295, %s3426_s30   ;;  %p3070_p0 = scmp.ge.s32.totalorder %s3426_s30, 1  ;;  %s3426_s30 = sphi %s3478_s30, %s20_s30  }
   0x2   : > { %p308_p1 = scmp.lt.s32.totalorder %s3426_s30, 3 }
   0x4   : > { %p309_p2 = pnand %p3070_p0, %p308_p1 }
   0x6   : > { %312 = sbr.rel (%p309_p2) target bundleno = 525 (0x20d), region = 36 }
   0xb   : > { %v3266_v0 = vld [vmem:[%s4252_s2 + $0x8] sm:$0xff]  ;;  %p366_p3 = scmp.lt.s32.totalorder %s3066_s10, 1  ;;  %vm529_vm0 = vsmask.f32 3328  ;;  %vm530_vm1 = vsmask.f32 7440 }
   0xc   : > { %1093 = vmatpush.bf16.msra.mxu0 %v3266_v0  ;;  %3388 = vmatpush.bf16.msra.mxu1 %v3266_v0  ;;  %v3267_v1 = vld [vmem:[%s4252_s2 + $0x10] sm:$0xff]  ;;  %v3268_v2 = vld [vmem:[%s4252_s2 + $0x18] sm:$0xff]  ;;  %v3265_v3 = vld [vmem:[%s4252_s2] sm:$0xff]  ;;  %vm1037_vm2 = vcmask 130048   ;;  %vm2633_vm4 = vcmask 1041408   ;;  %vm2584_vm5 = vcmask 31744  }
   0xd   : > { %s4269_s10 = smov (!%p366_p3, %s3066_s10), 1  ;;  %3389 = vmatpush.bf16.msra.mxu2 %v3266_v0  ;;  %3390 = vmatpush.bf16.msra.mxu3 %v3266_v0  ;;  %vm3524_vm3 = vmor %vm529_vm0, %vm530_vm1 }
   0xe   : > { %s3391_s13 = smul.u32 204, %s4269_s10  ;;  %s3262_s25 = sshll.u32 %s4269_s10, 7 }
   0xf   : > { %s3692_s28 = scalar_lea.vmem %s4251_s1, %s3262_s25  ;;  %s3263_s29 = sshll.u32 %s4269_s10, 8 }
  0x10   : > { %s3495_s16 = scalar_lea.vmem %s4250_s0, %s3391_s13  ;;  %1236 = vmatpush.bf16.msrb.mxu1 %v3265_v3  ;;  %s3908_s13 = scalar_lea.vmem %s4255_s5, %s3263_s29 }
  0x11   : > { %v3507_v4 = vld [vmem:[%s3495_s16] sm:$0xf]  ;;  %v3510_v5 = vld [vmem:[%s3495_s16 + $0x4] sm:$0xf]  ;;  %v513_v6 = vld [vmem:[%s3495_s16 + $0x8] sm:$0x1]  ;;  %1495 = vmatpush.bf16.msrb.mxu2 %v3267_v1  ;;  %2217 = vmatpush.bf16.msrb.mxu3 %v3268_v2  ;;  %s3949_s17 = scalar_lea.vmem %s4254_s4, %s3263_s29  ;;  %s394_s19 = scalar_lea.vmem %s4258_s8, %s4269_s10 }
  0x12   : > { %v533_v7 = vshrl.u32 %v3507_v4, 16  ;;  %v536_v8 = vshll.u32 %v3507_v4, 16  ;;  %v542_v9 = vshll.u32 %v3510_v5, 16  ;;  %v546_v10 = vshrl.u32 %v3510_v5, 16  ;;  %v407_v11 = vld [vmem:[%s3495_s16 + $0x30] sm:$0xf]  ;;  %s397_s22 = scalar_lea.vmem %s4259_s9, %s4269_s10  ;;  %s388_s25 = scalar_lea.vmem %s4256_s6, %s4269_s10 }
  0x13   : > { %v552_v12 = vshll.u32 %v513_v6, 16  ;;  %v408_v13 = vld [vmem:[%s3495_s16 + $0x34] sm:$0xf]  ;;  %v517_v14 = vld [vmem:[%s3495_s16 + $0x38] sm:$0x1]  ;;  %v629_v15 = vshrl.u32 %v407_v11, 16 }
  0x14   : > { %v535_v16 = vrot.slane %v533_v7, 4  ;;  %v538_v17 = vrot.slane %v536_v8, 5  ;;  %v544_v18 = vrot.slane %v542_v9, 5  ;;  %v548_v19 = vrot.slane %v546_v10, 4  ;;  %v415_v20 = vld [vmem:[%s3495_s16 + $0x60] sm:$0xf] }
  0x15   : > { %v554_v21 = vrot.slane %v552_v12, 5  ;;  %v631_v22 = vrot.slane %v629_v15, 4  ;;  %v632_v23 = vshll.u32 %v407_v11, 16  ;;  %v638_v24 = vshll.u32 %v408_v13, 16  ;;  %v416_v29 = vld [vmem:[%s3495_s16 + $0x64] sm:$0xf] }
  0x16   : > { %v539_v25 = vor.u32 %v538_v17, %v535_v16  ;;  %v549_v26 = vor.u32 %v548_v19, %v544_v18  ;;  %v642_v27 = vshrl.u32 %v408_v13, 16  ;;  %v648_v28 = vshll.u32 %v517_v14, 16  ;;  %v521_v40 = vld [vmem:[%s3495_s16 + $0x68] sm:$0x1]  ;;  %v423_v56 = vld [vmem:[%s3495_s16 + $0x90] sm:$0xf] }
  0x17   : > { %v634_v31 = vrot.slane %v632_v23, 5  ;;  %v640_v32 = vrot.slane %v638_v24, 5  ;;  %v725_v33 = vshrl.u32 %v415_v20, 16  ;;  %v728_v34 = vshll.u32 %v415_v20, 16  ;;  %v424_v1 = vld [vmem:[%s3495_s16 + $0x94] sm:$0xf] }
  0x18   : > { %v540_v35 = vrot.slane %v539_v25, 4  ;;  %v550_v36 = vrot.slane %v549_v26, 4  ;;  %v644_v37 = vrot.slane %v642_v27, 4  ;;  %v650_v38 = vrot.slane %v648_v28, 5  ;;  %v525_v7 = vld [vmem:[%s3495_s16 + $0x98] sm:$0x1] }
  0x19   : > { %v635_v39 = vor.u32 %v634_v31, %v631_v22  ;;  %v727_v41 = vrot.slane %v725_v33, 4  ;;  %v730_v42 = vrot.slane %v728_v34, 5  ;;  %v734_v43 = vshll.u32 %v416_v29, 16  ;;  %v2583_v13 = vld [vmem:[%s4253_s3] sm:$0x3] }
  0x1a   : > { %v545_v44 = vsel %vm3524_vm3, %v540_v35, %v544_v18  ;;  %v555_v45 = vsel %vm3524_vm3, %v550_v36, %v554_v21  ;;  %v645_v46 = vor.u32 %v644_v37, %v640_v32  ;;  %v738_v47 = vshrl.u32 %v416_v29, 16  ;;  %v3547_v18 = vld [vmem:[%s3495_s16 + $0xc] sm:$0xf]  ;;  %v3552_v23 = vld [vmem:[%s3495_s16 + $0x10] sm:$0xf] }
  0x1b   : > { %v948_v48 = vunpack.c.l.bf16 %v545_v44  ;;  %v949_v49 = vunpack.c.l.bf16 %v555_v45  ;;  %v636_v50 = vrot.slane %v635_v39, 4  ;;  %v731_v51 = vor.u32 %v730_v42, %v727_v41  ;;  %v514_v28 = vld [vmem:[%s3495_s16 + $0x14] sm:$0x1] }
  0x1c   : > { %v646_v52 = vrot.slane %v645_v46, 4  ;;  %v736_v53 = vrot.slane %v734_v43, 5  ;;  %v740_v54 = vrot.slane %v738_v47, 4  ;;  %v744_v55 = vshll.u32 %v521_v40, 16  ;;  %v410_v47 = vld [vmem:[%s3495_s16 + $0x40] sm:$0xf] }
  0x1d   : > { %v980_v57 = vmax.f32 %v948_v48, 0.0  ;;  %v981_v58 = vmax.f32 %v949_v49, 0.0  ;;  %v641_v59 = vsel %vm3524_vm3, %v636_v50, %v640_v32  ;;  %v732_v60 = vrot.slane %v731_v51, 4 }
  0x1e   : > { %v651_v61 = vsel %vm3524_vm3, %v646_v52, %v650_v38  ;;  %v956_v62 = vunpack.c.l.bf16 %v641_v59  ;;  %v741_v63 = vor.u32 %v740_v54, %v736_v53  ;;  %v746_v0 = vrot.slane %v744_v55, 5  ;;  %v409_v38 = vld [vmem:[%s3495_s16 + $0x3c] sm:$0xf]  ;;  %v518_v55 = vld [vmem:[%s3495_s16 + $0x44] sm:$0x1] }
  0x1f   : > { %v1012_v2 = vpack.c.bf16 %v981_v58, %v980_v57  ;;  %v957_v3 = vunpack.c.l.bf16 %v651_v61  ;;  %v737_v6 = vsel %vm3524_vm3, %v732_v60, %v736_v53  ;;  %v821_v8 = vshrl.u32 %v423_v56, 16  ;;  %v417_v61 = vld [vmem:[%s3495_s16 + $0x6c] sm:$0xf] }
  0x20   : > { %v988_v9 = vmax.f32 %v956_v62, 0.0  ;;  %v742_v10 = vrot.slane %v741_v63, 4  ;;  %v964_v11 = vunpack.c.l.bf16 %v737_v6  ;;  %v824_v12 = vshll.u32 %v423_v56, 16 }
  0x21   : > { %3084 = vmatmul.msk.bf16.vlgmr.msra.gmra.mxu0 %vm1037_vm2, %v1012_v2  ;;  %v989_v14 = vmax.f32 %v957_v3, 0.0  ;;  %v823_v15 = vrot.slane %v821_v8, 4  ;;  %v830_v16 = vshll.u32 %v424_v1, 16  ;;  %v834_v17 = vshrl.u32 %v424_v1, 16 }
  0x22   : > { %v747_v19 = vsel %vm3524_vm3, %v742_v10, %v746_v0  ;;  %v996_v20 = vmax.f32 %v964_v11, 0.0  ;;  %v826_v21 = vrot.slane %v824_v12, 5  ;;  %v840_v22 = vshll.u32 %v525_v7, 16  ;;  %v418_v11 = vld [vmem:[%s3495_s16 + $0x70] sm:$0xf] }
  0x23   : > { %v1016_v24 = vpack.c.bf16 %v989_v14, %v988_v9  ;;  %v965_v25 = vunpack.c.l.bf16 %v747_v19  ;;  %v832_v26 = vrot.slane %v830_v16, 5  ;;  %v836_v27 = vrot.slane %v834_v17, 4  ;;  %v522_v17 = vld [vmem:[%s3495_s16 + $0x74] sm:$0x1] }
  0x24   : > { %v827_v29 = vor.u32 %v826_v21, %v823_v15  ;;  %v842_v31 = vrot.slane %v840_v22, 5  ;;  %v2635_v32 = vsel %vm2633_vm4, %v2583_v13, 0  ;;  %v557_v33 = vshrl.u32 %v3547_v18, 16 }
  0x25   : > { %3088 = vmatmul.msk.bf16.vlgmr.msra.gmra.mxu1 %vm1037_vm2, %v1016_v24  ;;  %v997_v34 = vmax.f32 %v965_v25, 0.0  ;;  %v837_v35 = vor.u32 %v836_v27, %v832_v26  ;;  %2644 = vmatpush.bf16.msrb.mxu0 %v2635_v32  ;;  %v560_v36 = vshll.u32 %v3547_v18, 16  ;;  %v566_v37 = vshll.u32 %v3552_v23, 16 }
  0x26   : > { %v828_v39 = vrot.slane %v827_v29, 4  ;;  %v559_v40 = vrot.slane %v557_v33, 4  ;;  %v570_v41 = vshrl.u32 %v3552_v23, 16  ;;  %v576_v42 = vshll.u32 %v514_v28, 16  ;;  %v425_v28 = vld [vmem:[%s3495_s16 + $0x9c] sm:$0xf] }
  0x27   : > { %v1020_v43 = vpack.c.bf16 %v997_v34, %v996_v20  ;;  %v838_v44 = vrot.slane %v837_v35, 4  ;;  %v562_v45 = vrot.slane %v560_v36, 5  ;;  %v568_v46 = vrot.slane %v566_v37, 5 }
  0x28   : > { %v833_v48 = vsel %vm3524_vm3, %v828_v39, %v832_v26  ;;  %v572_v49 = vrot.slane %v570_v41, 4  ;;  %v578_v50 = vrot.slane %v576_v42, 5  ;;  %v653_v51 = vshrl.u32 %v409_v38, 16  ;;  %v526_v42 = vld [vmem:[%s3495_s16 + $0xa4] sm:$0x1] }
  0x29   : > { %3092 = vmatmul.msk.bf16.vlgmr.msra.gmra.mxu2 %vm1037_vm2, %v1020_v43  ;;  %v843_v52 = vsel %vm3524_vm3, %v838_v44, %v842_v31  ;;  %v972_v53 = vunpack.c.l.bf16 %v833_v48  ;;  %v563_v54 = vor.u32 %v562_v45, %v559_v40  ;;  %v656_v56 = vshll.u32 %v409_v38, 16  ;;  %v426_v38 = vld [vmem:[%s3495_s16 + $0xa0] sm:$0xf]  ;;  %v3585_v48 = vld [vmem:[%s3495_s16 + $0x18] sm:$0xf] }
  0x2a   : > { %v973_v57 = vunpack.c.l.bf16 %v843_v52  ;;  %v573_v58 = vor.u32 %v572_v49, %v568_v46  ;;  %v655_v59 = vrot.slane %v653_v51, 4  ;;  %v662_v60 = vshll.u32 %v410_v47, 16 }
  0x2b   : > { %v1004_v62 = vmax.f32 %v972_v53, 0.0  ;;  %v564_v63 = vrot.slane %v563_v54, 4  ;;  %v658_v0 = vrot.slane %v656_v56, 5  ;;  %v666_v1 = vshrl.u32 %v410_v47, 16 }
  0x2c   : > { %v1005_v2 = vmax.f32 %v973_v57, 0.0  ;;  %v574_v3 = vrot.slane %v573_v58, 4  ;;  %v664_v6 = vrot.slane %v662_v60, 5  ;;  %v672_v7 = vshll.u32 %v518_v55, 16  ;;  %v3589_v60 = vld [vmem:[%s3495_s16 + $0x1c] sm:$0xf] }
  0x2d   : > { %v569_v8 = vsel %vm3524_vm3, %v564_v63, %v568_v46  ;;  %v659_v9 = vor.u32 %v658_v0, %v655_v59  ;;  %v668_v10 = vrot.slane %v666_v1, 4  ;;  %v749_v12 = vshrl.u32 %v417_v61, 16 }
  0x2e   : > { %v1024_v13 = vpack.c.bf16 %v1005_v2, %v1004_v62  ;;  %v579_v14 = vsel %vm3524_vm3, %v574_v3, %v578_v50  ;;  %v950_v15 = vunpack.c.l.bf16 %v569_v8  ;;  %v674_v16 = vrot.slane %v672_v7, 5  ;;  %v515_v8 = vld [vmem:[%s3495_s16 + $0x20] sm:$0x1] }
  0x2f   : > { %v951_v19 = vunpack.c.l.bf16 %v579_v14  ;;  %v660_v20 = vrot.slane %v659_v9, 4  ;;  %v669_v21 = vor.u32 %v668_v10, %v664_v6  ;;  %v751_v22 = vrot.slane %v749_v12, 4 }
  0x30   : > { %3096 = vmatmul.msk.bf16.vlgmr.msra.gmra.mxu3 %vm1037_vm2, %v1024_v13  ;;  %v982_v24 = vmax.f32 %v950_v15, 0.0  ;;  %v752_v25 = vshll.u32 %v417_v61, 16  ;;  %v758_v26 = vshll.u32 %v418_v11, 16  ;;  %v762_v27 = vshrl.u32 %v418_v11, 16  ;;  %v3602_v13 = vld [vmem:[%s3495_s16 + $0x48] sm:$0xf] }
  0x31   : > { %v983_v29 = vmax.f32 %v951_v19, 0.0  ;;  %v665_v31 = vsel %vm3524_vm3, %v660_v20, %v664_v6  ;;  %v670_v32 = vrot.slane %v669_v21, 4  ;;  %v768_v33 = vshll.u32 %v522_v17, 16 }
  0x32   : > { %v958_v34 = vunpack.c.l.bf16 %v665_v31  ;;  %v754_v35 = vrot.slane %v752_v25, 5  ;;  %v760_v36 = vrot.slane %v758_v26, 5  ;;  %v764_v37 = vrot.slane %v762_v27, 4 }
  0x33   : > { %v1013_v39 = vpack.c.bf16 %v983_v29, %v982_v24  ;;  %v675_v40 = vsel %vm3524_vm3, %v670_v32, %v674_v16  ;;  %v770_v41 = vrot.slane %v768_v33, 5  ;;  %v845_v43 = vshrl.u32 %v425_v28, 16  ;;  %v3605_v24 = vld [vmem:[%s3495_s16 + $0x4c] sm:$0xf] }
  0x34   : > { %v959_v44 = vunpack.c.l.bf16 %v675_v40  ;;  %v990_v45 = vmax.f32 %v958_v34, 0.0  ;;  %v755_v46 = vor.u32 %v754_v35, %v751_v22  ;;  %v765_v47 = vor.u32 %v764_v37, %v760_v36  ;;  %v519_v34 = vld [vmem:[%s3495_s16 + $0x50] sm:$0x1] }
  0x35   : > { %3085 = vmatmul.msk.bf16.gmra.mxu0 %vm1037_vm2, %v1013_v39  ;;  %v847_v49 = vrot.slane %v845_v43, 4  ;;  %v848_v50 = vshll.u32 %v425_v28, 16  ;;  %v854_v51 = vshll.u32 %v426_v38, 16  ;;  %v858_v52 = vshrl.u32 %v426_v38, 16  ;;  %v419_v39 = vld [vmem:[%s3495_s16 + $0x78] sm:$0xf] }
  0x36   : > { %v991_v53 = vmax.f32 %v959_v44, 0.0  ;;  %v756_v54 = vrot.slane %v755_v46, 4  ;;  %v766_v55 = vrot.slane %v765_v47, 4  ;;  %v864_v56 = vshll.u32 %v526_v42, 16 }
  0x37   : > { %v850_v57 = vrot.slane %v848_v50, 5  ;;  %v856_v58 = vrot.slane %v854_v51, 5  ;;  %v860_v59 = vrot.slane %v858_v52, 4  ;;  %v581_v61 = vshrl.u32 %v3585_v48, 16 }
  0x38   : > { %v1017_v62 = vpack.c.bf16 %v991_v53, %v990_v45  ;;  %v761_v63 = vsel %vm3524_vm3, %v756_v54, %v760_v36  ;;  %v771_v0 = vsel %vm3524_vm3, %v766_v55, %v770_v41  ;;  %v866_v1 = vrot.slane %v864_v56, 5 }
  0x39   : > { %v966_v2 = vunpack.c.l.bf16 %v761_v63  ;;  %v967_v3 = vunpack.c.l.bf16 %v771_v0  ;;  %v851_v6 = vor.u32 %v850_v57, %v847_v49  ;;  %v861_v7 = vor.u32 %v860_v59, %v856_v58  ;;  %v420_v49 = vld [vmem:[%s3495_s16 + $0x7c] sm:$0xf]  ;;  %v427_v0 = vld [vmem:[%s3495_s16 + $0xa8] sm:$0xf] }
  0x3a   : > { %3089 = vmatmul.msk.bf16.gmra.mxu1 %vm1037_vm2, %v1017_v62  ;;  %v583_v9 = vrot.slane %v581_v61, 4  ;;  %v584_v10 = vshll.u32 %v3585_v48, 16  ;;  %v590_v11 = vshll.u32 %v3589_v60, 16  ;;  %v594_v12 = vshrl.u32 %v3589_v60, 16 }
  0x3b   : > { %v998_v14 = vmax.f32 %v966_v2, 0.0  ;;  %v999_v15 = vmax.f32 %v967_v3, 0.0  ;;  %v852_v16 = vrot.slane %v851_v6, 4  ;;  %v862_v17 = vrot.slane %v861_v7, 4 }
  0x3c   : > { %v586_v19 = vrot.slane %v584_v10, 5  ;;  %v592_v20 = vrot.slane %v590_v11, 5  ;;  %v596_v21 = vrot.slane %v594_v12, 4  ;;  %v600_v22 = vshll.u32 %v515_v8, 16  ;;  %v428_v11 = vld [vmem:[%s3495_s16 + $0xac] sm:$0xf] }
  0x3d   : > { %v1021_v25 = vpack.c.bf16 %v999_v15, %v998_v14  ;;  %v857_v26 = vsel %vm3524_vm3, %v852_v16, %v856_v58  ;;  %v867_v27 = vsel %vm3524_vm3, %v862_v17, %v866_v1  ;;  %v677_v28 = vshrl.u32 %v3602_v13, 16  ;;  %v523_v58 = vld [vmem:[%s3495_s16 + $0x80] sm:$0x1] }
  0x3e   : > { %v974_v29 = vunpack.c.l.bf16 %v857_v26  ;;  %v975_v31 = vunpack.c.l.bf16 %v867_v27  ;;  %v587_v32 = vor.u32 %v586_v19, %v583_v9  ;;  %v597_v33 = vor.u32 %v596_v21, %v592_v20 }
  0x3f   : > { %3093 = vmatmul.msk.bf16.gmra.mxu2 %vm1037_vm2, %v1021_v25  ;;  %v602_v35 = vrot.slane %v600_v22, 5  ;;  %v679_v36 = vrot.slane %v677_v28, 4  ;;  %v680_v37 = vshll.u32 %v3602_v13, 16  ;;  %v686_v38 = vshll.u32 %v3605_v24, 16  ;;  %v527_v22 = vld [vmem:[%s3495_s16 + $0xb0] sm:$0x1] }
  0x40   : > { %v1006_v40 = vmax.f32 %v974_v29, 0.0  ;;  %v1007_v41 = vmax.f32 %v975_v31, 0.0  ;;  %v588_v42 = vrot.slane %v587_v32, 4  ;;  %v598_v43 = vrot.slane %v597_v33, 4  ;;  %v3634_v29 = vld [vmem:[%s3495_s16 + $0x24] sm:$0xf] }
  0x41   : > { %v682_v44 = vrot.slane %v680_v37, 5  ;;  %v688_v45 = vrot.slane %v686_v38, 5  ;;  %v690_v46 = vshrl.u32 %v3605_v24, 16  ;;  %v696_v47 = vshll.u32 %v519_v34, 16 }
  0x42   : > { %v1025_v50 = vpack.c.bf16 %v1007_v41, %v1006_v40  ;;  %v593_v51 = vsel %vm3524_vm3, %v588_v42, %v592_v20  ;;  %v603_v52 = vsel %vm3524_vm3, %v598_v43, %v602_v35  ;;  %v773_v53 = vshrl.u32 %v419_v39, 16 }
  0x43   : > { %v952_v54 = vunpack.c.l.bf16 %v593_v51  ;;  %v953_v55 = vunpack.c.l.bf16 %v603_v52  ;;  %v683_v56 = vor.u32 %v682_v44, %v679_v36  ;;  %v692_v57 = vrot.slane %v690_v46, 4 }
  0x44   : > { %3097 = vmatmul.msk.bf16.gmra.mxu3 %vm1037_vm2, %v1025_v50  ;;  %v698_v59 = vrot.slane %v696_v47, 5  ;;  %v775_v61 = vrot.slane %v773_v53, 4  ;;  %v776_v62 = vshll.u32 %v419_v39, 16  ;;  %v782_v63 = vshll.u32 %v420_v49, 16  ;;  %v3640_v47 = vld [vmem:[%s3495_s16 + $0x28] sm:$0xf] }
  0x45   : > { %v984_v1 = vmax.f32 %v952_v54, 0.0  ;;  %v985_v2 = vmax.f32 %v953_v55, 0.0  ;;  %v684_v3 = vrot.slane %v683_v56, 4  ;;  %v693_v6 = vor.u32 %v692_v57, %v688_v45  ;;  %v3647_v54 = vld [vmem:[%s3495_s16 + $0x54] sm:$0xf] }
  0x46   : > { %v778_v7 = vrot.slane %v776_v62, 5  ;;  %v784_v8 = vrot.slane %v782_v63, 5  ;;  %v786_v9 = vshrl.u32 %v420_v49, 16  ;;  %v792_v10 = vshll.u32 %v523_v58, 16  ;;  %v516_v49 = vld [vmem:[%s3495_s16 + $0x2c] sm:$0x1] }
  0x47   : > { %v1014_v12 = vpack.c.bf16 %v985_v2, %v984_v1  ;;  %v689_v14 = vsel %vm3524_vm3, %v684_v3, %v688_v45  ;;  %v694_v15 = vrot.slane %v693_v6, 4  ;;  %v869_v16 = vshrl.u32 %v427_v0, 16 }
  0x48   : > { %v960_v17 = vunpack.c.l.bf16 %v689_v14  ;;  %v779_v19 = vor.u32 %v778_v7, %v775_v61  ;;  %v788_v20 = vrot.slane %v786_v9, 4  ;;  %v794_v21 = vrot.slane %v792_v10, 5  ;;  %v3656_v10 = vld [vmem:[%s3495_s16 + $0x58] sm:$0xf] }
  0x49   : > { %3086 = vmatmul.msk.bf16.gmra.mxu0 %vm1037_vm2, %v1014_v12  ;;  %v699_v25 = vsel %vm3524_vm3, %v694_v15, %v698_v59  ;;  %v871_v26 = vrot.slane %v869_v16, 4  ;;  %v872_v27 = vshll.u32 %v427_v0, 16  ;;  %v878_v28 = vshll.u32 %v428_v11, 16 }
  0x4a   : > { %v961_v31 = vunpack.c.l.bf16 %v699_v25  ;;  %v992_v32 = vmax.f32 %v960_v17, 0.0  ;;  %v780_v33 = vrot.slane %v779_v19, 4  ;;  %v789_v34 = vor.u32 %v788_v20, %v784_v8  ;;  %v421_v17 = vld [vmem:[%s3495_s16 + $0x84] sm:$0xf] }
  0x4b   : > { %v874_v35 = vrot.slane %v872_v27, 5  ;;  %v880_v36 = vrot.slane %v878_v28, 5  ;;  %v882_v37 = vshrl.u32 %v428_v11, 16  ;;  %v888_v38 = vshll.u32 %v527_v22, 16  ;;  %v520_v11 = vld [vmem:[%s3495_s16 + $0x5c] sm:$0x1] }
  0x4c   : > { %v993_v39 = vmax.f32 %v961_v31, 0.0  ;;  %v785_v40 = vsel %vm3524_vm3, %v780_v33, %v784_v8  ;;  %v790_v41 = vrot.slane %v789_v34, 4  ;;  %v605_v42 = vshrl.u32 %v3634_v29, 16  ;;  %v422_v34 = vld [vmem:[%s3495_s16 + $0x88] sm:$0xf] }
  0x4d   : > { %v968_v43 = vunpack.c.l.bf16 %v785_v40  ;;  %v875_v44 = vor.u32 %v874_v35, %v871_v26  ;;  %v884_v45 = vrot.slane %v882_v37, 4  ;;  %v890_v46 = vrot.slane %v888_v38, 5  ;;  %v524_v40 = vld [vmem:[%s3495_s16 + $0x8c] sm:$0x1] }
  0x4e   : > { %v1018_v50 = vpack.c.bf16 %v993_v39, %v992_v32  ;;  %v795_v51 = vsel %vm3524_vm3, %v790_v41, %v794_v21  ;;  %v607_v52 = vrot.slane %v605_v42, 4  ;;  %v608_v53 = vshll.u32 %v3634_v29, 16 }
  0x4f   : > { %v969_v55 = vunpack.c.l.bf16 %v795_v51  ;;  %v1000_v56 = vmax.f32 %v968_v43, 0.0  ;;  %v876_v57 = vrot.slane %v875_v44, 4  ;;  %v885_v58 = vor.u32 %v884_v45, %v880_v36  ;;  %v429_v45 = vld [vmem:[%s3495_s16 + $0xb4] sm:$0xf] }
  0x50   : > { %3090 = vmatmul.msk.bf16.gmra.mxu1 %vm1037_vm2, %v1018_v50  ;;  %v610_v59 = vrot.slane %v608_v53, 5  ;;  %v614_v61 = vshll.u32 %v3640_v47, 16  ;;  %v618_v62 = vshrl.u32 %v3640_v47, 16  ;;  %v624_v63 = vshll.u32 %v516_v49, 16 }
  0x51   : > { %v1001_v0 = vmax.f32 %v969_v55, 0.0  ;;  %v881_v1 = vsel %vm3524_vm3, %v876_v57, %v880_v36  ;;  %v886_v2 = vrot.slane %v885_v58, 4  ;;  %v701_v3 = vshrl.u32 %v3647_v54, 16 }
  0x52   : > { %v976_v6 = vunpack.c.l.bf16 %v881_v1  ;;  %v611_v7 = vor.u32 %v610_v59, %v607_v52  ;;  %v616_v8 = vrot.slane %v614_v61, 5  ;;  %v620_v9 = vrot.slane %v618_v62, 4  ;;  %v430_v61 = vld [vmem:[%s3495_s16 + $0xb8] sm:$0xf] }
  0x53   : > { %v1022_v12 = vpack.c.bf16 %v1001_v0, %v1000_v56  ;;  %v891_v14 = vsel %vm3524_vm3, %v886_v2, %v890_v46  ;;  %v626_v15 = vrot.slane %v624_v63, 5  ;;  %v703_v16 = vrot.slane %v701_v3, 4  ;;  %v528_v3 = vld [vmem:[%s3495_s16 + $0xbc] sm:$0x1] }
  0x54   : > { %v977_v19 = vunpack.c.l.bf16 %v891_v14  ;;  %v1008_v20 = vmax.f32 %v976_v6, 0.0  ;;  %v612_v21 = vrot.slane %v611_v7, 4  ;;  %v621_v22 = vor.u32 %v620_v9, %v616_v8 }
  0x55   : > { %3094 = vmatmul.msk.bf16.gmra.mxu2 %vm1037_vm2, %v1022_v12  ;;  %v704_v25 = vshll.u32 %v3647_v54, 16  ;;  %v710_v26 = vshll.u32 %v3656_v10, 16  ;;  %v714_v27 = vshrl.u32 %v3656_v10, 16  ;;  %v720_v28 = vshll.u32 %v520_v11, 16 }
  0x56   : > { %v1009_v31 = vmax.f32 %v977_v19, 0.0  ;;  %v617_v32 = vsel %vm3524_vm3, %v612_v21, %v616_v8  ;;  %v622_v33 = vrot.slane %v621_v22, 4  ;;  %v797_v35 = vshrl.u32 %v421_v17, 16 }
  0x57   : > { %v954_v36 = vunpack.c.l.bf16 %v617_v32  ;;  %v706_v37 = vrot.slane %v704_v25, 5  ;;  %v712_v38 = vrot.slane %v710_v26, 5  ;;  %v716_v39 = vrot.slane %v714_v27, 4 }
  0x58   : > { %v1026_v41 = vpack.c.bf16 %v1009_v31, %v1008_v20  ;;  %v627_v42 = vsel %vm3524_vm3, %v622_v33, %v626_v15  ;;  %v722_v43 = vrot.slane %v720_v28, 5  ;;  %v799_v44 = vrot.slane %v797_v35, 4 }
  0x59   : > { %v955_v46 = vunpack.c.l.bf16 %v627_v42  ;;  %v986_v49 = vmax.f32 %v954_v36, 0.0  ;;  %v707_v50 = vor.u32 %v706_v37, %v703_v16  ;;  %v717_v51 = vor.u32 %v716_v39, %v712_v38 }
  0x5a   : > { %3098 = vmatmul.msk.bf16.gmra.mxu3 %vm1037_vm2, %v1026_v41  ;;  %v800_v52 = vshll.u32 %v421_v17, 16  ;;  %v806_v53 = vshll.u32 %v422_v34, 16  ;;  %v810_v55 = vshrl.u32 %v422_v34, 16  ;;  %v816_v56 = vshll.u32 %v524_v40, 16  ;;  %v3174_v40 = vld [vmem:[%s3495_s16 + $0xc] sm:$0xf] }
  0x5b   : > { %v987_v57 = vmax.f32 %v955_v46, 0.0  ;;  %v708_v58 = vrot.slane %v707_v50, 4  ;;  %v718_v59 = vrot.slane %v717_v51, 4  ;;  %v893_v62 = vshrl.u32 %v429_v45, 16  ;;  %v3120_v46 = vld [vmem:[%s3495_s16 + $0xc] sm:$0xff]  }
  0x5c   : > { %v802_v63 = vrot.slane %v800_v52, 5  ;;  %v808_v0 = vrot.slane %v806_v53, 5  ;;  %v812_v1 = vrot.slane %v810_v55, 4  ;;  %v818_v2 = vrot.slane %v816_v56, 5  ;;  %v3175_v50 = vld [vmem:[%s3495_s16 + $0x10] sm:$0xf] }
  0x5d   : > { %v1015_v6 = vpack.c.bf16 %v987_v57, %v986_v49  ;;  %v713_v7 = vsel %vm3524_vm3, %v708_v58, %v712_v38  ;;  %v723_v8 = vsel %vm3524_vm3, %v718_v59, %v722_v43  ;;  %v895_v9 = vrot.slane %v893_v62, 4  ;;  %v3176_v55 = vld [vmem:[%s3495_s16 + $0x14] sm:$0x1]  ;;  %v3302_v57 = vld [vmem:[%s3692_s28] sm:$0xff]  }
  0x5e   : > { %v962_v11 = vunpack.c.l.bf16 %v713_v7  ;;  %v963_v12 = vunpack.c.l.bf16 %v723_v8  ;;  %v803_v14 = vor.u32 %v802_v63, %v799_v44  ;;  %v813_v15 = vor.u32 %v812_v1, %v808_v0 }
  0x5f   : > { %3087 = vmatmul.msk.bf16.gmra.mxu0 %vm1037_vm2, %v1015_v6  ;;  %v896_v16 = vshll.u32 %v429_v45, 16  ;;  %v902_v17 = vshll.u32 %v430_v61, 16  ;;  %v906_v19 = vshrl.u32 %v430_v61, 16  ;;  %v912_v20 = vshll.u32 %v528_v3, 16 }
  0x60   : > { %v994_v21 = vmax.f32 %v962_v11, 0.0  ;;  %v995_v22 = vmax.f32 %v963_v12, 0.0  ;;  %v804_v25 = vrot.slane %v803_v14, 4  ;;  %v814_v26 = vrot.slane %v813_v15, 4  ;;  %v3177_v14 = vld [vmem:[%s3495_s16 + $0x18] sm:$0xf] }
  0x61   : > { %v898_v27 = vrot.slane %v896_v16, 5  ;;  %v904_v28 = vrot.slane %v902_v17, 5  ;;  %v908_v31 = vrot.slane %v906_v19, 4  ;;  %v914_v35 = vrot.slane %v912_v20, 5 }
  0x62   : > { %v1019_v32 = vpack.c.bf16 %v995_v22, %v994_v21  ;;  %v809_v33 = vsel %vm3524_vm3, %v804_v25, %v808_v0  ;;  %v819_v34 = vsel %vm3524_vm3, %v814_v26, %v818_v2  ;;  %v431_v41 = vunpack.c.l.bf16 %v3507_v4  ;;  %v3178_v26 = vld [vmem:[%s3495_s16 + $0x1c] sm:$0xf] }
  0x63   : > { %v970_v36 = vunpack.c.l.bf16 %v809_v33  ;;  %v971_v37 = vunpack.c.l.bf16 %v819_v34  ;;  %v899_v38 = vor.u32 %v898_v27, %v895_v9  ;;  %v909_v39 = vor.u32 %v908_v31, %v904_v28 }
  0x64   : > { %3091 = vmatmul.msk.bf16.gmra.mxu1 %vm1037_vm2, %v1019_v32  ;;  %v432_v49 = vunpack.c.l.bf16 %v3510_v5  ;;  %v1658_v51 = vshrl.u32 %v3174_v40, 16  ;;  %v1661_v56 = vshll.u32 %v3174_v40, 16  ;;  %v463_v61 = vmax.f32 %v431_v41, 0.0 }
  0x65   : > { %v1002_v42 = vmax.f32 %v970_v36, 0.0  ;;  %v1003_v43 = vmax.f32 %v971_v37, 0.0  ;;  %v900_v44 = vrot.slane %v899_v38, 4  ;;  %v910_v45 = vrot.slane %v909_v39, 4 }
  0x66   : > { %v1351_v62 = vunpack.c.l.bf16 %v3120_v46  ;;  %v1660_v5 = vrot.slane %v1658_v51, 4  ;;  %v1663_v63 = vrot.slane %v1661_v56, 5  ;;  %v1667_v0 = vshll.u32 %v3175_v50, 16 }
  0x67   : > { %v1023_v52 = vpack.c.bf16 %v1003_v43, %v1002_v42  ;;  %v905_v53 = vsel %vm3524_vm3, %v900_v44, %v904_v28  ;;  %v915_v4 = vsel %vm3524_vm3, %v910_v45, %v914_v35  ;;  %v1671_v1 = vshrl.u32 %v3175_v50, 16  ;;  %v3373_v42 = vld [vmem:[%s3692_s28 + $0x8] sm:$0xff]  }
  0x68   : > { %v978_v58 = vunpack.c.l.bf16 %v905_v53  ;;  %v979_v59 = vunpack.c.l.bf16 %v915_v4  ;;  %v1677_v6 = vshll.u32 %v3176_v55, 16  ;;  %v3303_v7 = vunpack.c.l.bf16 %v3302_v57 }
  0x69   : > { %3095 = vmatmul.msk.bf16.gmra.mxu2 %vm1037_vm2, %v1023_v52  ;;  %v1664_v8 = vor.u32 %v1663_v63, %v1660_v5  ;;  %v1669_v9 = vrot.slane %v1667_v0, 5  ;;  %v1673_v11 = vrot.slane %v1671_v1, 4  ;;  %v3304_v12 = vunpack.c.h.bf16 %v3302_v57 }
  0x6a   : > { %v1010_v2 = vmax.f32 %v978_v58, 0.0  ;;  %v1011_v3 = vmax.f32 %v979_v59, 0.0  ;;  %v464_v16 = vmax.f32 %v432_v49, 0.0  ;;  %v1352_v17 = vunpack.c.h.bf16 %v3120_v46  ;;  %v3179_v49 = vld [vmem:[%s3495_s16 + $0x20] sm:$0x1] }
  0x6b   : > { %v2535_v19 = vmax.f32 %v3303_v7, 0.0  ;;  %v1665_v20 = vrot.slane %v1664_v8, 4  ;;  %v1674_v21 = vor.u32 %v1673_v11, %v1669_v9  ;;  %v1679_v22 = vrot.slane %v1677_v6, 5  ;;  %v3180_v8 = vld [vmem:[%s3495_s16 + $0x24] sm:$0xf] }
  0x6c   : > { %v1027_v15 = vpack.c.bf16 %v1011_v3, %v1010_v2  ;;  %v2536_v25 = vmax.f32 %v3304_v12, 0.0  ;;  %v1682_v27 = vshrl.u32 %v3177_v14, 16  ;;  %v495_v33 = vpack.c.bf16 %v464_v16, %v463_v61  ;;  %v3365_v2 = vld [vmem:[%s3495_s16 + $0x18] sm:$0xff]   ;;  %v3181_v12 = vld [vmem:[%s3495_s16 + $0x28] sm:$0xf] }
  0x6d   : > { %v1670_v28 = vsel %vm3524_vm3, %v1665_v20, %v1669_v9  ;;  %v1675_v31 = vrot.slane %v1674_v21, 4  ;;  %v1383_v34 = vmax.f32 %v1351_v62, 0.0  ;;  %v1384_v35 = vmax.f32 %v1352_v17, 0.0 }
  0x6e   : > { %3099 = vmatmul.msk.bf16.gmra.mxu3 %vm1037_vm2, %v1027_v15  ;;  %v2567_v32 = vpack.c.bf16 %v2536_v25, %v2535_v19  ;;  %v1685_v37 = vshll.u32 %v3177_v14, 16  ;;  %v1691_v38 = vshll.u32 %v3178_v26, 16  ;;  %v2073_v39 = vunpack.c.l.bf16 %v1670_v28 }
  0x6f   : > { %v1680_v36 = vsel %vm3524_vm3, %v1675_v31, %v1679_v22  ;;  %v1684_v41 = vrot.slane %v1682_v27, 4  ;;  %v1695_v45 = vshrl.u32 %v3178_v26, 16  ;;  %v1415_v46 = vpack.c.bf16 %v1384_v35, %v1383_v34 }
  0x70   : > { %3244 = vmatmul.msk.bf16.vlgmr.msrb.gmra.mxu0 %vm2584_vm5, %v2567_v32  ;;  %v2074_v40 = vunpack.c.l.bf16 %v1680_v36  ;;  %v1687_v43 = vrot.slane %v1685_v37, 5  ;;  %v1693_v44 = vrot.slane %v1691_v38, 5  ;;  %v435_v50 = vunpack.c.l.bf16 %v3585_v48  ;;  %v3374_v36 = vld [vmem:[%s3692_s28 + $0x10] sm:$0xff]  }
  0x71   : > { %v1697_v51 = vrot.slane %v1695_v45, 4  ;;  %v3307_v52 = vunpack.c.l.bf16 %v3373_v42  ;;  %v3308_v53 = vunpack.c.h.bf16 %v3373_v42  ;;  %v436_v4 = vunpack.c.l.bf16 %v3589_v60 }
  0x72   : > { %v2105_v55 = vmax.f32 %v2073_v39, 0.0  ;;  %v2106_v56 = vmax.f32 %v2074_v40, 0.0  ;;  %v1688_v57 = vor.u32 %v1687_v43, %v1684_v41  ;;  %v3717_v58 = vmax.f32 %v435_v50, 0.0  ;;  %v3182_v39 = vld [vmem:[%s3495_s16 + $0x2c] sm:$0x1] }
  0x73   : > { %v1698_v59 = vor.u32 %v1697_v51, %v1693_v44  ;;  %v1701_v61 = vshll.u32 %v3179_v49, 16  ;;  %v3719_v62 = vmax.f32 %v436_v4, 0.0  ;;  %v433_v5 = vunpack.c.l.bf16 %v3547_v18 }
  0x74   : > { %3104 = vmatmul.msk.bf16.vlgmr.msrb.gmra.mxu1 %vm1037_vm2, %v495_v33  ;;  %v434_v48 = vunpack.c.l.bf16 %v3552_v23  ;;  %v2537_v63 = vmax.f32 %v3307_v52, 0.0  ;;  %v2538_v0 = vmax.f32 %v3308_v53, 0.0  ;;  %v2137_v1 = vpack.c.bf16 %v2106_v56, %v2105_v55  ;;  %v3124_v53 = vld [vmem:[%s3495_s16 + $0x24] sm:$0xff]   ;;  %v3183_v55 = vld [vmem:[%s3495_s16 + $0x30] sm:$0xf] }
  0x75   : > { %v497_v60 = vpack.c.bf16 %v3719_v62, %v3717_v58  ;;  %v1689_v3 = vrot.slane %v1688_v57, 4  ;;  %v1699_v6 = vrot.slane %v1698_v59, 4  ;;  %v1703_v7 = vrot.slane %v1701_v61, 5  ;;  %v3184_v59 = vld [vmem:[%s3495_s16 + $0x34] sm:$0xf] }
  0x76   : > { %v465_v9 = vmax.f32 %v433_v5, 0.0  ;;  %v466_v11 = vmax.f32 %v434_v48, 0.0  ;;  %v3271_v14 = vunpack.c.l.bf16 %v3365_v2  ;;  %v3272_v18 = vunpack.c.h.bf16 %v3365_v2 }
  0x77   : > { %v2568_v15 = vpack.c.bf16 %v2538_v0, %v2537_v63  ;;  %v1694_v23 = vsel %vm3524_vm3, %v1689_v3, %v1693_v44  ;;  %v1706_v16 = vshrl.u32 %v3180_v8, 16  ;;  %v1709_v17 = vshll.u32 %v3180_v8, 16 }
  0x78   : > { %v437_v19 = vunpack.c.l.bf16 %v3634_v29  ;;  %v1704_v20 = vsel %vm3524_vm3, %v1699_v6, %v1703_v7  ;;  %v1715_v21 = vshll.u32 %v3181_v12, 16  ;;  %v1719_v22 = vshrl.u32 %v3181_v12, 16 }
  0x79   : > { %3158 = vmatmul.msk.bf16.vlgmr.msrb.gmra.mxu2 %vm1037_vm2, %v1415_v46  ;;  %v438_v25 = vunpack.c.l.bf16 %v3640_v47  ;;  %v496_v26 = vpack.c.bf16 %v466_v11, %v465_v9  ;;  %v1385_v28 = vmax.f32 %v3271_v14, 0.0  ;;  %v1386_v31 = vmax.f32 %v3272_v18, 0.0 }
  0x7a   : > { %v3736_v27 = vmax.f32 %v437_v19, 0.0  ;;  %v2075_v33 = vunpack.c.l.bf16 %v1694_v23  ;;  %v2076_v34 = vunpack.c.l.bf16 %v1704_v20  ;;  %v1708_v29 = vrot.slane %v1706_v16, 4  ;;  %v3375_v23 = vld [vmem:[%s3692_s28 + $0x18] sm:$0xff]  }
  0x7b   : > { %v3739_v32 = vmax.f32 %v438_v25, 0.0  ;;  %v1711_v35 = vrot.slane %v1709_v17, 5  ;;  %v1717_v37 = vrot.slane %v1715_v21, 5  ;;  %v1721_v38 = vrot.slane %v1719_v22, 4  ;;  %v3185_v16 = vld [vmem:[%s3495_s16 + $0x38] sm:$0x1] }
  0x7c   : > { %v1416_v40 = vpack.c.bf16 %v1386_v31, %v1385_v28  ;;  %v3311_v41 = vunpack.c.l.bf16 %v3374_v36  ;;  %v3312_v42 = vunpack.c.h.bf16 %v3374_v36  ;;  %v2107_v43 = vmax.f32 %v2075_v33, 0.0  ;;  %v3187_v36 = vld [vmem:[%s3495_s16 + $0x40] sm:$0xf] }
  0x7d   : > { %v498_v47 = vpack.c.bf16 %v3739_v32, %v3736_v27  ;;  %v2108_v44 = vmax.f32 %v2076_v34, 0.0  ;;  %v1712_v45 = vor.u32 %v1711_v35, %v1708_v29  ;;  %v1722_v46 = vor.u32 %v1721_v38, %v1717_v37  ;;  %v3366_v29 = vld [vmem:[%s3495_s16 + $0x30] sm:$0xff]   ;;  %v3128_v32 = vld [vmem:[%s3495_s16 + $0x3c] sm:$0xff]  }
  0x7e   : > { %3228 = vmatmul.msk.bf16.vlgmr.msrb.gmra.mxu3 %vm1037_vm2, %v2137_v1  ;;  %v1725_v49 = vshll.u32 %v3182_v39, 16  ;;  %v2539_v50 = vmax.f32 %v3311_v41, 0.0  ;;  %v2540_v51 = vmax.f32 %v3312_v42, 0.0  ;;  %v1355_v61 = vunpack.c.l.bf16 %v3124_v53 }
  0x7f   : > { %v2138_v52 = vpack.c.bf16 %v2108_v44, %v2107_v43  ;;  %v1713_v4 = vrot.slane %v1712_v45, 4  ;;  %v1723_v56 = vrot.slane %v1722_v46, 4  ;;  %v1356_v5 = vunpack.c.h.bf16 %v3124_v53  ;;  %v3376_v53 = vld [vmem:[%s3692_s28 + $0x20] sm:$0xff]  }
  0x80   : > { %3245 = vmatmul.msk.bf16.gmra.mxu0 %vm2584_vm5, %v2568_v15  ;;  %v1727_v57 = vrot.slane %v1725_v49, 5  ;;  %v2569_v48 = vpack.c.bf16 %v2540_v51, %v2539_v50  ;;  %v1730_v63 = vshrl.u32 %v3183_v55, 16  ;;  %v1733_v1 = vshll.u32 %v3183_v55, 16 }
  0x81   : > { %v1718_v0 = vsel %vm3524_vm3, %v1713_v4, %v1717_v37  ;;  %v1739_v2 = vshll.u32 %v3184_v59, 16  ;;  %v1743_v3 = vshrl.u32 %v3184_v59, 16  ;;  %v1387_v7 = vmax.f32 %v1355_v61, 0.0  ;;  %v3188_v59 = vld [vmem:[%s3495_s16 + $0x44] sm:$0x1] }
  0x82   : > { %v1728_v6 = vsel %vm3524_vm3, %v1723_v56, %v1727_v57  ;;  %v1388_v8 = vmax.f32 %v1356_v5, 0.0  ;;  %v2077_v9 = vunpack.c.l.bf16 %v1718_v0  ;;  %v1732_v11 = vrot.slane %v1730_v63, 4 }
  0x83   : > { %v2078_v12 = vunpack.c.l.bf16 %v1728_v6  ;;  %v1735_v14 = vrot.slane %v1733_v1, 5  ;;  %v1741_v18 = vrot.slane %v1739_v2, 5  ;;  %v1745_v15 = vrot.slane %v1743_v3, 4  ;;  %v3400_v2 = vld [vmem:[%s3495_s16 + $0x30] sm:$0xf] }
  0x84   : > { %3105 = vmatmul.msk.bf16.gmra.mxu1 %vm1037_vm2, %v496_v26  ;;  %v1417_v17 = vpack.c.bf16 %v1388_v8, %v1387_v7  ;;  %v2109_v19 = vmax.f32 %v2077_v9, 0.0  ;;  %v3315_v20 = vunpack.c.l.bf16 %v3375_v23  ;;  %v3316_v21 = vunpack.c.h.bf16 %v3375_v23  ;;  %v3401_v6 = vld [vmem:[%s3495_s16 + $0x34] sm:$0xf]  ;;  %v3190_v23 = vld [vmem:[%s3495_s16 + $0x4c] sm:$0xf] }
  0x85   : > { %v2110_v22 = vmax.f32 %v2078_v12, 0.0  ;;  %v1736_v25 = vor.u32 %v1735_v14, %v1732_v11  ;;  %v1746_v26 = vor.u32 %v1745_v15, %v1741_v18  ;;  %v1749_v28 = vshll.u32 %v3185_v16, 16  ;;  %v3189_v12 = vld [vmem:[%s3495_s16 + $0x48] sm:$0xf] }
  0x86   : > { %v2541_v31 = vmax.f32 %v3315_v20, 0.0  ;;  %v2542_v33 = vmax.f32 %v3316_v21, 0.0  ;;  %v3275_v37 = vunpack.c.l.bf16 %v3366_v29  ;;  %v3276_v38 = vunpack.c.h.bf16 %v3366_v29 }
  0x87   : > { %v2139_v34 = vpack.c.bf16 %v2110_v22, %v2109_v19  ;;  %v1737_v35 = vrot.slane %v1736_v25, 4  ;;  %v1747_v58 = vrot.slane %v1746_v26, 4  ;;  %v1751_v62 = vrot.slane %v1749_v28, 5 }
  0x88   : > { %v2570_v39 = vpack.c.bf16 %v2542_v33, %v2541_v31  ;;  %v1763_v44 = vshll.u32 %v3187_v36, 16  ;;  %v1767_v45 = vshrl.u32 %v3187_v36, 16  ;;  %v1389_v49 = vmax.f32 %v3275_v37, 0.0 }
  0x89   : > { %3159 = vmatmul.msk.bf16.gmra.mxu2 %vm1037_vm2, %v1416_v40  ;;  %v1742_v40 = vsel %vm3524_vm3, %v1737_v35, %v1741_v18  ;;  %v1752_v41 = vsel %vm3524_vm3, %v1747_v58, %v1751_v62  ;;  %v1390_v50 = vmax.f32 %v3276_v38, 0.0  ;;  %v3320_v63 = vunpack.c.h.bf16 %v3376_v53 }
  0x8a   : > { %v2079_v51 = vunpack.c.l.bf16 %v1742_v40  ;;  %v1765_v56 = vrot.slane %v1763_v44, 5  ;;  %v1769_v57 = vrot.slane %v1767_v45, 4  ;;  %v439_v3 = vunpack.c.l.bf16 %v3400_v2  ;;  %v3377_v44 = vld [vmem:[%s3692_s28 + $0x28] sm:$0xff]  }
  0x8b   : > { %v1418_v61 = vpack.c.bf16 %v1390_v50, %v1389_v49  ;;  %v440_v7 = vunpack.c.l.bf16 %v3401_v6  ;;  %v1773_v27 = vshll.u32 %v3188_v59, 16  ;;  %v2544_v11 = vmax.f32 %v3320_v63, 0.0  ;;  %v3402_v59 = vld [vmem:[%s3495_s16 + $0x3c] sm:$0xf]  ;;  %v3367_v2 = vld [vmem:[%s3495_s16 + $0x48] sm:$0xff]  }
  0x8c   : > { %v2111_v0 = vmax.f32 %v2079_v51, 0.0  ;;  %v1770_v9 = vor.u32 %v1769_v57, %v1765_v56  ;;  %v471_v18 = vmax.f32 %v439_v3, 0.0  ;;  %v1359_v21 = vunpack.c.l.bf16 %v3128_v32 }
  0x8d   : > { %v472_v16 = vmax.f32 %v440_v7, 0.0  ;;  %v1775_v20 = vrot.slane %v1773_v27, 5  ;;  %v1360_v22 = vunpack.c.h.bf16 %v3128_v32  ;;  %v1778_v25 = vshrl.u32 %v3189_v12, 16  ;;  %v3192_v32 = vld [vmem:[%s3495_s16 + $0x54] sm:$0xf] }
  0x8e   : > { %3229 = vmatmul.msk.bf16.gmra.mxu3 %vm1037_vm2, %v2138_v52  ;;  %v2080_v52 = vunpack.c.l.bf16 %v1752_v41  ;;  %v1771_v19 = vrot.slane %v1770_v9, 4  ;;  %v1781_v26 = vshll.u32 %v3189_v12, 16  ;;  %v1787_v31 = vshll.u32 %v3190_v23, 16 }
  0x8f   : > { %v1791_v33 = vshrl.u32 %v3190_v23, 16  ;;  %v1391_v62 = vmax.f32 %v1359_v21, 0.0  ;;  %v1780_v37 = vrot.slane %v1778_v25, 4  ;;  %v1805_v21 = vshll.u32 %v3192_v32, 16 }
  0x90   : > { %3246 = vmatmul.msk.bf16.gmra.mxu0 %vm2584_vm5, %v2569_v48  ;;  %v3319_v48 = vunpack.c.l.bf16 %v3376_v53  ;;  %v2112_v1 = vmax.f32 %v2080_v52, 0.0  ;;  %v1776_v35 = vsel %vm3524_vm3, %v1771_v19, %v1775_v20  ;;  %v1783_v38 = vrot.slane %v1781_v26, 5 }
  0x91   : > { %v1793_v40 = vrot.slane %v1791_v33, 4  ;;  %v1802_v20 = vshrl.u32 %v3192_v32, 16  ;;  %v3196_v32 = vld [vmem:[%s3495_s16 + $0x64] sm:$0xf] }
  0x92   : > { %v2140_v14 = vpack.c.bf16 %v2112_v1, %v2111_v0  ;;  %v1784_v50 = vor.u32 %v1783_v38, %v1780_v37  ;;  %v3378_v38 = vld [vmem:[%s3692_s28 + $0x30] sm:$0xff]  }
  0x94   : > { %3106 = vmatmul.msk.bf16.gmra.mxu1 %vm1037_vm2, %v497_v60  ;;  %v3186_v60 = vld [vmem:[%s3495_s16 + $0x3c] sm:$0xf]  ;;  %v1785_v0 = vrot.slane %v1784_v50, 4 }
  0x95   : > { %v1754_v42 = vshrl.u32 %v3186_v60, 16  ;;  %v1757_v43 = vshll.u32 %v3186_v60, 16  ;;  %v1392_v60 = vmax.f32 %v1360_v22, 0.0 }
  0x97   : > { %v1756_v4 = vrot.slane %v1754_v42, 4  ;;  %v1759_v55 = vrot.slane %v1757_v43, 5  ;;  %v2082_v42 = vunpack.c.l.bf16 %v1776_v35  ;;  %v3191_v43 = vld [vmem:[%s3495_s16 + $0x50] sm:$0x1]  ;;  %v1419_v45 = vpack.c.bf16 %v1392_v60, %v1391_v62 }
  0x98   : > { %v1797_v53 = vshll.u32 %v3191_v43, 16  ;;  %v1804_v35 = vrot.slane %v1802_v20, 4  ;;  %v1807_v62 = vrot.slane %v1805_v21, 5  ;;  %v1839_v20 = vshrl.u32 %v3196_v32, 16 }
  0x99   : > { %3160 = vmatmul.msk.bf16.gmra.mxu2 %vm1037_vm2, %v1417_v17  ;;  %v1760_v8 = vor.u32 %v1759_v55, %v1756_v4  ;;  %v3323_v4 = vunpack.c.l.bf16 %v3377_v44  ;;  %v3324_v55 = vunpack.c.h.bf16 %v3377_v44  ;;  %v2114_v57 = vmax.f32 %v2082_v42, 0.0 }
  0x9a   : > { %v1799_v6 = vrot.slane %v1797_v53, 5  ;;  %v3327_v44 = vunpack.c.l.bf16 %v3378_v38 }
  0x9b   : > { %v1761_v17 = vrot.slane %v1760_v8, 4  ;;  %v2545_v7 = vmax.f32 %v3323_v4, 0.0  ;;  %v2546_v8 = vmax.f32 %v3324_v55, 0.0 }
  0x9d   : > { %v1766_v29 = vsel %vm3524_vm3, %v1761_v17, %v1765_v56  ;;  %v2572_v17 = vpack.c.bf16 %v2546_v8, %v2545_v7 }
  0x9e   : > { %3230 = vmatmul.msk.bf16.gmra.mxu3 %vm1037_vm2, %v2139_v34  ;;  %v3771_v46 = vpop.f32.mrf.mxu0  ;;  %v499_v34 = vpack.c.bf16 %v472_v16, %v471_v18  ;;  %v2081_v41 = vunpack.c.l.bf16 %v1766_v29  ;;  %v3280_v18 = vunpack.c.h.bf16 %v3367_v2 }
  0xa0   : > { %3247 = vmatmul.msk.bf16.gmra.mxu0 %vm2584_vm5, %v2570_v39  ;;  %v1789_v39 = vrot.slane %v1787_v31, 5  ;;  %v2113_v56 = vmax.f32 %v2081_v41, 0.0  ;;  %v1394_v33 = vmax.f32 %v3280_v18, 0.0 }
  0xa2   : > { %v3780_v5 = vpop.f32.mrf.mxu1  ;;  %v1794_v52 = vor.u32 %v1793_v40, %v1789_v39  ;;  %v2141_v9 = vpack.c.bf16 %v2114_v57, %v2113_v56  ;;  %v1790_v23 = vsel %vm3524_vm3, %v1785_v0, %v1789_v39  ;;  %v3194_v40 = vld [vmem:[%s3495_s16 + $0x5c] sm:$0x1]  ;;  %v443_v56 = vunpack.c.l.bf16 %v3602_v13  ;;  %v3132_v0 = vld [vmem:[%s3495_s16 + $0x54] sm:$0xff]  }
  0xa3   : > { %v1821_v4 = vshll.u32 %v3194_v40, 16  ;;  %v444_v57 = vunpack.c.l.bf16 %v3605_v24  ;;  %v1363_v13 = vunpack.c.l.bf16 %v3132_v0 }
  0xa4   : > { %3107 = vmatmul.msk.bf16.gmra.mxu1 %vm1037_vm2, %v498_v47  ;;  %v2543_v47 = vmax.f32 %v3319_v48, 0.0  ;;  %v3403_v48 = vld [vmem:[%s3495_s16 + $0x40] sm:$0xf]  ;;  %v1795_v3 = vrot.slane %v1794_v52, 4  ;;  %v1808_v52 = vor.u32 %v1807_v62, %v1804_v35  ;;  %v475_v7 = vmax.f32 %v443_v56, 0.0 }
  0xa5   : > { %v442_v63 = vunpack.c.l.bf16 %v3403_v48  ;;  %v476_v8 = vmax.f32 %v444_v57, 0.0  ;;  %v445_v57 = vunpack.c.l.bf16 %v3647_v54 }
  0xa6   : > { %v3787_v15 = vpop.f32.mrf.mxu0  ;;  %v2571_v28 = vpack.c.bf16 %v2544_v11, %v2543_v47  ;;  %v3193_v47 = vld [vmem:[%s3495_s16 + $0x58] sm:$0xf]  ;;  %v1800_v16 = vsel %vm3524_vm3, %v1795_v3, %v1799_v6  ;;  %v1823_v6 = vrot.slane %v1821_v4, 5 }
  0xa7   : > { %v474_v12 = vmax.f32 %v442_v63, 0.0  ;;  %v1811_v22 = vshll.u32 %v3193_v47, 16  ;;  %v1815_v25 = vshrl.u32 %v3193_v47, 16  ;;  %v2084_v29 = vunpack.c.l.bf16 %v1800_v16 }
  0xa8   : > { %v501_v21 = vpack.c.bf16 %v476_v8, %v475_v7  ;;  %v3198_v8 = vld [vmem:[%s3495_s16 + $0x6c] sm:$0xf] }
  0xa9   : > { %3161 = vmatmul.msk.bf16.gmra.mxu2 %vm1037_vm2, %v1418_v61  ;;  %v441_v61 = vunpack.c.l.bf16 %v3402_v59  ;;  %v1813_v60 = vrot.slane %v1811_v22, 5  ;;  %v1817_v37 = vrot.slane %v1815_v25, 4  ;;  %v2116_v50 = vmax.f32 %v2084_v29, 0.0 }
  0xaa   : > { %v3795_v58 = vpop.f32.mrf.mxu1  ;;  %v1395_v22 = vmax.f32 %v1363_v13, 0.0 }
  0xab   : > { %v473_v11 = vmax.f32 %v441_v61, 0.0  ;;  %v1818_v53 = vor.u32 %v1817_v37, %v1813_v60  ;;  %v2547_v61 = vmax.f32 %v3327_v44, 0.0  ;;  %v1841_v37 = vrot.slane %v1839_v20, 4 }
  0xac   : > { %v3797_v36 = vpop.f32.mrf.mxu2 }
  0xad   : > { %v1819_v3 = vrot.slane %v1818_v53, 4 }
  0xae   : > { %3231 = vmatmul.msk.bf16.gmra.mxu3 %vm1037_vm2, %v2140_v14  ;;  %v3279_v14 = vunpack.c.l.bf16 %v3367_v2  ;;  %v1809_v2 = vrot.slane %v1808_v52, 4 }
  0xaf   : > { %v1824_v18 = vsel %vm3524_vm3, %v1819_v3, %v1823_v6 }
  0xb0   : > { %3248 = vmatmul.msk.bf16.gmra.mxu0 %vm2584_vm5, %v2571_v28  ;;  %v500_v28 = vpack.c.bf16 %v474_v12, %v473_v11  ;;  %v1393_v31 = vmax.f32 %v3279_v14, 0.0  ;;  %v1364_v11 = vunpack.c.h.bf16 %v3132_v0  ;;  %v1814_v14 = vsel %vm3524_vm3, %v1809_v2, %v1813_v60  ;;  %v3368_v2 = vld [vmem:[%s3495_s16 + $0x60] sm:$0xff]  }
  0xb1   : > { %v3283_v54 = vunpack.c.l.bf16 %v3368_v2 }
  0xb2   : > { %v3803_v49 = vpop.f32.mrf.mxu0  ;;  %v1420_v42 = vpack.c.bf16 %v1394_v33, %v1393_v31  ;;  %v1396_v25 = vmax.f32 %v1364_v11, 0.0  ;;  %v2086_v31 = vunpack.c.l.bf16 %v1824_v18  ;;  %v3199_v11 = vld [vmem:[%s3495_s16 + $0x70] sm:$0xf]  ;;  %v1850_v18 = vshrl.u32 %v3198_v8, 16 }
  0xb3   : > { %v3805_v51 = vpop.f32.mrf.mxu3  ;;  %v1859_v20 = vshll.u32 %v3199_v11, 16 }
  0xb4   : > { %3108 = vmatmul.msk.bf16.gmra.mxu1 %vm1037_vm2, %v499_v34  ;;  %v3813_v27 = vpop.f32.mrf.mxu2  ;;  %v2083_v34 = vunpack.c.l.bf16 %v1790_v23  ;;  %v1421_v40 = vpack.c.bf16 %v1396_v25, %v1395_v22 }
  0xb6   : > { %v2115_v43 = vmax.f32 %v2083_v34, 0.0  ;;  %v3379_v34 = vld [vmem:[%s3692_s28 + $0x38] sm:$0xff]  }
  0xb7   : > { %v3810_v1 = vpop.f32.mrf.mxu1 }
  0xb8   : > { %v2142_v63 = vpack.c.bf16 %v2116_v50, %v2115_v43  ;;  %v3332_v43 = vunpack.c.h.bf16 %v3379_v34 }
  0xb9   : > { %3162 = vmatmul.msk.bf16.gmra.mxu2 %vm1037_vm2, %v1419_v45  ;;  %v3328_v45 = vunpack.c.h.bf16 %v3378_v38  ;;  %v3197_v38 = vld [vmem:[%s3495_s16 + $0x68] sm:$0x1] }
  0xba   : > { %v3822_v19 = vpop.f32.mrf.mxu0  ;;  %v1845_v4 = vshll.u32 %v3197_v38, 16 }
  0xbb   : > { %v3824_v26 = vpop.f32.mrf.mxu3  ;;  %v2548_v48 = vmax.f32 %v3328_v45, 0.0  ;;  %v2118_v45 = vmax.f32 %v2086_v31, 0.0 }
  0xbc   : > { %v1847_v7 = vrot.slane %v1845_v4, 5 }
  0xbd   : > { %v2573_v24 = vpack.c.bf16 %v2548_v48, %v2547_v61  ;;  %v446_v61 = vunpack.c.l.bf16 %v3656_v10 }
  0xbe   : > { %3232 = vmatmul.msk.bf16.gmra.mxu3 %vm1037_vm2, %v2141_v9  ;;  %v3195_v9 = vld [vmem:[%s3495_s16 + $0x60] sm:$0xf] }
  0xbf   : > { %v3828_v39 = vpop.f32.mrf.mxu1  ;;  %v1826_v23 = vshrl.u32 %v3195_v9, 16  ;;  %v1829_v16 = vshll.u32 %v3195_v9, 16  ;;  %v478_v13 = vmax.f32 %v446_v61, 0.0 }
  0xc0   : > { %3249 = vmatmul.msk.bf16.gmra.mxu0 %vm2584_vm5, %v2572_v17  ;;  %v1835_v17 = vshll.u32 %v3196_v32, 16  ;;  %v477_v32 = vmax.f32 %v445_v57, 0.0 }
  0xc1   : > { %v1828_v35 = vrot.slane %v1826_v23, 4  ;;  %v1831_v62 = vrot.slane %v1829_v16, 5  ;;  %v1853_v23 = vshll.u32 %v3198_v8, 16 }
  0xc2   : > { %v3832_v41 = vpop.f32.mrf.mxu2  ;;  %v1837_v60 = vrot.slane %v1835_v17, 5  ;;  %v502_v22 = vpack.c.bf16 %v478_v13, %v477_v32  ;;  %v3202_v32 = vld [vmem:[%s3495_s16 + $0x7c] sm:$0xf] }
  0xc3   : > { %v1832_v52 = vor.u32 %v1831_v62, %v1828_v35  ;;  %v1855_v38 = vrot.slane %v1853_v23, 5 }
  0xc4   : > { %3109 = vmatmul.msk.bf16.gmra.mxu1 %vm1037_vm2, %v500_v28  ;;  %v2085_v28 = vunpack.c.l.bf16 %v1814_v14  ;;  %v1842_v53 = vor.u32 %v1841_v37, %v1837_v60  ;;  %v3284_v14 = vunpack.c.h.bf16 %v3368_v2  ;;  %v1852_v37 = vrot.slane %v1850_v18, 4  ;;  %v3201_v2 = vld [vmem:[%s3495_s16 + $0x78] sm:$0xf] }
  0xc5   : > { %v1833_v3 = vrot.slane %v1832_v52, 4  ;;  %v1874_v23 = vshrl.u32 %v3201_v2, 16 }
  0xc6   : > { %v3834_v55 = vpop.f32.mrf.mxu0  ;;  %v2117_v44 = vmax.f32 %v2085_v28, 0.0  ;;  %v1843_v6 = vrot.slane %v1842_v53, 4  ;;  %v1397_v28 = vmax.f32 %v3283_v54, 0.0  ;;  %v1398_v31 = vmax.f32 %v3284_v14, 0.0 }
  0xc7   : > { %v3839_v59 = vpop.f32.mrf.mxu3  ;;  %v1838_v16 = vsel %vm3524_vm3, %v1833_v3, %v1837_v60  ;;  %v3380_v60 = vld [vmem:[%s3692_s28 + $0x40] sm:$0xff]   ;;  %v1856_v61 = vor.u32 %v1855_v38, %v1852_v37 }
  0xc8   : > { %v2143_v0 = vpack.c.bf16 %v2118_v45, %v2117_v44  ;;  %v1848_v17 = vsel %vm3524_vm3, %v1843_v6, %v1847_v7  ;;  %v2087_v35 = vunpack.c.l.bf16 %v1838_v16  ;;  %v3200_v44 = vld [vmem:[%s3495_s16 + $0x74] sm:$0x1]  ;;  %v1422_v45 = vpack.c.bf16 %v1398_v31, %v1397_v28  ;;  %v3404_v3 = vld [vmem:[%s3495_s16 + $0x60] sm:$0xf]  ;;  %v3405_v7 = vld [vmem:[%s3495_s16 + $0x64] sm:$0xf] }
  0xc9   : > { %3163 = vmatmul.msk.bf16.gmra.mxu2 %vm1037_vm2, %v1420_v42  ;;  %v3331_v42 = vunpack.c.l.bf16 %v3379_v34  ;;  %v2088_v62 = vunpack.c.l.bf16 %v1848_v17  ;;  %v3335_v52 = vunpack.c.l.bf16 %v3380_v60  ;;  %v3336_v53 = vunpack.c.h.bf16 %v3380_v60 }
  0xca   : > { %v3847_v12 = vpop.f32.mrf.mxu2  ;;  %v2119_v4 = vmax.f32 %v2087_v35, 0.0  ;;  %v447_v6 = vunpack.c.l.bf16 %v3404_v3  ;;  %v448_v8 = vunpack.c.l.bf16 %v3405_v7  ;;  %v1857_v18 = vrot.slane %v1856_v61, 4  ;;  %v3203_v61 = vld [vmem:[%s3495_s16 + $0x80] sm:$0x1] }
  0xcb   : > { %v2549_v48 = vmax.f32 %v3331_v42, 0.0  ;;  %v2120_v57 = vmax.f32 %v2088_v62, 0.0  ;;  %v2552_v54 = vmax.f32 %v3336_v53, 0.0  ;;  %v1877_v16 = vshll.u32 %v3201_v2, 16 }
  0xcc   : > { %v479_v31 = vmax.f32 %v447_v6, 0.0  ;;  %v480_v35 = vmax.f32 %v448_v8, 0.0 }
  0xcd   : > { %v3844_v47 = vpop.f32.mrf.mxu1  ;;  %v2144_v14 = vpack.c.bf16 %v2120_v57, %v2119_v4 }
  0xce   : > { %3233 = vmatmul.msk.bf16.gmra.mxu3 %vm1037_vm2, %v2142_v63  ;;  %v3854_v33 = vpop.f32.mrf.mxu0  ;;  %v2550_v63 = vmax.f32 %v3332_v43, 0.0  ;;  %v503_v57 = vpack.c.bf16 %v480_v35, %v479_v31 }
  0xcf   : > { %v3857_v29 = vpop.f32.mrf.mxu3 }
  0xd0   : > { %3250 = vmatmul.msk.bf16.gmra.mxu0 %vm2584_vm5, %v2573_v24  ;;  %v2574_v10 = vpack.c.bf16 %v2550_v63, %v2549_v48 }
  0xd4   : > { %3110 = vmatmul.msk.bf16.gmra.mxu1 %vm1037_vm2, %v501_v21  ;;  %v1863_v21 = vshrl.u32 %v3199_v11, 16  ;;  %v2551_v11 = vmax.f32 %v3335_v52, 0.0 }
  0xd5   : > { %v3861_v50 = vpop.f32.mrf.mxu1 }
  0xd6   : > { %v1865_v42 = vrot.slane %v1863_v21, 4  ;;  %v1883_v21 = vshll.u32 %v3202_v32, 16  ;;  %v2575_v38 = vpack.c.bf16 %v2552_v54, %v2551_v11  ;;  %v1893_v11 = vshll.u32 %v3203_v61, 16 }
  0xd8   : > { %v3863_v56 = vpop.f32.mrf.mxu2  ;;  %v3916_v53 = vrot.slane %v1883_v21, 5 }
  0xd9   : > { %3164 = vmatmul.msk.bf16.gmra.mxu2 %vm1037_vm2, %v1421_v40  ;;  %v1861_v40 = vrot.slane %v1859_v20, 5 }
  0xdb   : > { %v1866_v63 = vor.u32 %v1865_v42, %v1861_v40  ;;  %v1876_v42 = vrot.slane %v1874_v23, 4 }
  0xdc   : > { %v3870_v9 = vpop.f32.mrf.mxu0 }
  0xdd   : > { %v3873_v24 = vpop.f32.mrf.mxu3  ;;  %v1867_v17 = vrot.slane %v1866_v63, 4 }
  0xde   : > { %3234 = vmatmul.msk.bf16.gmra.mxu3 %vm1037_vm2, %v2143_v0  ;;  %v1869_v0 = vshll.u32 %v3200_v44, 16  ;;  %v1879_v44 = vrot.slane %v1877_v16, 5 }
  0xe0   : > { %3251 = vmatmul.msk.bf16.gmra.mxu0 %vm2584_vm5, %v2574_v10  ;;  %v3883_v34 = vpop.f32.mrf.mxu2  ;;  %v3136_v10 = vld [vmem:[%s3495_s16 + $0x6c] sm:$0xff]   ;;  %v1871_v20 = vrot.slane %v1869_v0, 5  ;;  %v1880_v8 = vor.u32 %v1879_v44, %v1876_v42 }
  0xe1   : > { %v3880_v25 = vpop.f32.mrf.mxu1  ;;  %v1367_v62 = vunpack.c.l.bf16 %v3136_v10  ;;  %v1368_v37 = vunpack.c.h.bf16 %v3136_v10  ;;  %v3407_v42 = vld [vmem:[%s3495_s16 + $0x70] sm:$0xf] }
  0xe2   : > { %v1872_v52 = vsel %vm3524_vm3, %v1867_v17, %v1871_v20  ;;  %v1881_v21 = vrot.slane %v1880_v8, 4  ;;  %v450_v44 = vunpack.c.l.bf16 %v3407_v42  ;;  %v3205_v8 = vld [vmem:[%s3495_s16 + $0x88] sm:$0xf] }
  0xe3   : > { %v1399_v2 = vmax.f32 %v1367_v62, 0.0  ;;  %v1400_v3 = vmax.f32 %v1368_v37, 0.0  ;;  %v2090_v7 = vunpack.c.l.bf16 %v1872_v52  ;;  %v1895_v62 = vrot.slane %v1893_v11, 5  ;;  %v3406_v37 = vld [vmem:[%s3495_s16 + $0x6c] sm:$0xf] }
  0xe4   : > { %3111 = vmatmul.msk.bf16.gmra.mxu1 %vm1037_vm2, %v502_v22  ;;  %v3887_v43 = vpop.f32.mrf.mxu0  ;;  %v1887_v22 = vshrl.u32 %v3202_v32, 16 }
  0xe5   : > { %v3890_v48 = vpop.f32.mrf.mxu3  ;;  %v1423_v10 = vpack.c.bf16 %v1400_v3, %v1399_v2  ;;  %v2122_v17 = vmax.f32 %v2090_v7, 0.0 }
  0xe6   : > { %4262 = vst [vmem:[#allocation2_spill] sm:$0xff] %v3890_v48  ;;  %v1889_v4 = vrot.slane %v1887_v22, 4 }
  0xe8   : > { %v1890_v32 = vor.u32 %v1889_v4, %v3916_v53 }
  0xe9   : > { %3165 = vmatmul.msk.bf16.gmra.mxu2 %vm1037_vm2, %v1422_v45  ;;  %v3897_v13 = vpop.f32.mrf.mxu1  ;;  %v1862_v45 = vsel %vm3524_vm3, %v1857_v18, %v1861_v40  ;;  %v3381_v40 = vld [vmem:[%s3692_s28 + $0x48] sm:$0xff]  }
  0xea   : > { %v2089_v6 = vunpack.c.l.bf16 %v1862_v45  ;;  %v3339_v18 = vunpack.c.l.bf16 %v3381_v40  ;;  %v3340_v23 = vunpack.c.h.bf16 %v3381_v40  ;;  %v1891_v35 = vrot.slane %v1890_v32, 4 }
  0xec   : > { %v3901_v28 = vpop.f32.mrf.mxu2  ;;  %v2121_v16 = vmax.f32 %v2089_v6, 0.0  ;;  %v2553_v61 = vmax.f32 %v3339_v18, 0.0  ;;  %v2554_v2 = vmax.f32 %v3340_v23, 0.0  ;;  %v3204_v6 = vld [vmem:[%s3495_s16 + $0x84] sm:$0xf]  ;;  %v1896_v7 = vsel %vm3524_vm3, %v1891_v35, %v1895_v62 }
  0xed   : > { %v2646_v60 = vpop.f32.mrf.mxu0  ;;  %v1898_v23 = vshrl.u32 %v3204_v6, 16 }
  0xee   : > { %3235 = vmatmul.msk.bf16.gmra.mxu3 %vm1037_vm2, %v2144_v14  ;;  %2726 = vst [vmem:[%s3908_s13] sm:$0xff] %v2646_v60  ;;  %v2796_v14 = vmul.f32 %v2646_v60, %v2646_v60  ;;  %v2145_v3 = vpack.c.bf16 %v2122_v17, %v2121_v16  ;;  %v2576_v18 = vpack.c.bf16 %v2554_v2, %v2553_v61  ;;  %v1901_v16 = vshll.u32 %v3204_v6, 16 }
  0xf0   : > { %3252 = vmatmul.msk.bf16.gmra.mxu0 %vm2584_vm5, %v2575_v38  ;;  %v449_v38 = vunpack.c.l.bf16 %v3406_v37  ;;  %v1903_v2 = vrot.slane %v1901_v16, 5 }
  0xf1   : > { %v3919_v63 = vpop.f32.mrf.mxu3  ;;  %v1238_v0 = vpop.f32.mrf.mxu1 }
  0xf2   : > { %4263 = vst [vmem:[#allocation3_spill] sm:$0xff] %v3919_v63  ;;  %v1239_v40 = vadd.f32 %v1238_v0, %v3771_v46  ;;  %v481_v11 = vmax.f32 %v449_v38, 0.0  ;;  %v2092_v38 = vunpack.c.l.bf16 %v1896_v7  ;;  %v3382_v7 = vld [vmem:[%s3692_s28 + $0x50] sm:$0xff]  }
  0xf4   : > { %v3924_v54 = vpop.f32.mrf.mxu2  ;;  %3112 = vmatmul.msk.bf16.gmra.mxu1 %vm1037_vm2, %v503_v57  ;;  %v3369_v57 = vld [vmem:[%s3495_s16 + $0x78] sm:$0xff]  }
  0xf5   : > { %v2648_v20 = vpop.f32.mrf.mxu0 }
  0xf6   : > { %2727 = vst [vmem:[%s3908_s13 + $0x8] sm:$0xff] %v2648_v20  ;;  %v2797_v22 = vmul.f32 %v2648_v20, %v2648_v20  ;;  %v2758_v31 = vadd.f32 %v2648_v20, %v2646_v60  ;;  %v1886_v60 = vsel %vm3524_vm3, %v1881_v21, %v3916_v53  ;;  %v3288_v20 = vunpack.c.h.bf16 %v3369_v57 }
  0xf7   : > { %v1907_v21 = vshll.u32 %v3205_v8, 16  ;;  %v2091_v37 = vunpack.c.l.bf16 %v1886_v60 }
  0xf8   : > { %v2828_v4 = vadd.f32 %v2797_v22, %v2796_v14  ;;  %v3287_v14 = vunpack.c.l.bf16 %v3369_v57  ;;  %v1911_v22 = vshrl.u32 %v3205_v8, 16  ;;  %v1402_v61 = vmax.f32 %v3288_v20, 0.0  ;;  %v3206_v8 = vld [vmem:[%s3495_s16 + $0x8c] sm:$0x1] }
  0xf9   : > { %v3930_v45 = vpop.f32.mrf.mxu3  ;;  %3166 = vmatmul.msk.bf16.gmra.mxu2 %vm1037_vm2, %v1423_v10  ;;  %v1240_v52 = vpop.f32.mrf.mxu1  ;;  %v482_v10 = vmax.f32 %v450_v44, 0.0  ;;  %v3952_v6 = vrot.slane %v1907_v21, 5  ;;  %v3343_v20 = vunpack.c.l.bf16 %v3382_v7  ;;  %v3408_v21 = vld [vmem:[%s3495_s16 + $0x78] sm:$0xf] }
  0xfa   : > { %4264 = vst [vmem:[#allocation4_spill] sm:$0xff] %v3930_v45  ;;  %v1401_v0 = vmax.f32 %v3287_v14, 0.0  ;;  %v1913_v60 = vrot.slane %v1911_v22, 4  ;;  %v451_v22 = vunpack.c.l.bf16 %v3408_v21 }
  0xfb   : > { %v504_v46 = vpack.c.bf16 %v482_v10, %v481_v11  ;;  %v2124_v11 = vmax.f32 %v2092_v38, 0.0 }
  0xfc   : > { %v1497_v32 = vpop.f32.mrf.mxu2  ;;  %v1424_v10 = vpack.c.bf16 %v1402_v61, %v1401_v0  ;;  %v3207_v0 = vld [vmem:[%s3495_s16 + $0x90] sm:$0xf]  ;;  %v483_v21 = vmax.f32 %v451_v22, 0.0 }
  0xfd   : > { %v1577_v17 = vadd.f32 %v1497_v32, %v1239_v40  ;;  %v2651_v53 = vpop.f32.mrf.mxu0  ;;  %v1241_v40 = vadd.f32 %v1240_v52, %v3787_v15  ;;  %v1925_v63 = vshll.u32 %v3207_v0, 16 }
  0xfe   : > { %3236 = vmatmul.msk.bf16.gmra.mxu3 %vm1037_vm2, %v2145_v3  ;;  %2728 = vst [vmem:[%s3908_s13 + $0x10] sm:$0xff] %v2651_v53  ;;  %v2759_v35 = vadd.f32 %v2758_v31, %v2651_v53  ;;  %v2798_v62 = vmul.f32 %v2651_v53, %v2651_v53  ;;  %v1900_v31 = vrot.slane %v1898_v23, 4  ;;  %v1917_v53 = vshll.u32 %v3206_v8, 16 }
 0x100   : > { %v2829_v57 = vadd.f32 %v2828_v4, %v2798_v62  ;;  %3253 = vmatmul.msk.bf16.gmra.mxu0 %vm2584_vm5, %v2576_v18  ;;  %v2123_v4 = vmax.f32 %v2091_v37, 0.0  ;;  %v1904_v14 = vor.u32 %v1903_v2, %v1900_v31  ;;  %v3344_v18 = vunpack.c.h.bf16 %v3382_v7  ;;  %v3409_v62 = vld [vmem:[%s3495_s16 + $0x7c] sm:$0xf]  ;;  %v3140_v37 = vld [vmem:[%s3495_s16 + $0x84] sm:$0xff]  }
 0x101   : > { %v2219_v42 = vpop.f32.mrf.mxu3  ;;  %v1243_v44 = vpop.f32.mrf.mxu1 }
 0x102   : > { %v2299_v3 = vadd.f32 %v2219_v42, %v1577_v17  ;;  %v1914_v17 = vor.u32 %v1913_v60, %v3952_v6  ;;  %v2146_v38 = vpack.c.bf16 %v2124_v11, %v2123_v4  ;;  %v1905_v2 = vrot.slane %v1904_v14, 4 }
 0x103   : > { %v2555_v60 = vmax.f32 %v3343_v20, 0.0  ;;  %v2556_v7 = vmax.f32 %v3344_v18, 0.0  ;;  %v1244_v48 = vadd.f32 %v1243_v44, %v3803_v49  ;;  %v1372_v14 = vunpack.c.h.bf16 %v3140_v37 }
 0x104   : > { %2331 = vst [vmem:[%s3949_s17] sm:$0xff] %v2299_v3  ;;  %v1499_v32 = vpop.f32.mrf.mxu2  ;;  %3113 = vmatmul.msk.bf16.gmra.mxu1 %vm1037_vm2, %v504_v46  ;;  %v452_v46 = vunpack.c.l.bf16 %v3409_v62  ;;  %v1922_v62 = vshrl.u32 %v3207_v0, 16  ;;  %v2401_v4 = vmul.f32 %v2299_v3, %v2299_v3  ;;  %v1910_v22 = vsel %vm3524_vm3, %v1905_v2, %v3952_v6 }
 0x105   : > { %v1578_v23 = vadd.f32 %v1499_v32, %v1241_v40  ;;  %v2653_v16 = vpop.f32.mrf.mxu0  ;;  %v1371_v40 = vunpack.c.l.bf16 %v3140_v37  ;;  %v1919_v32 = vrot.slane %v1917_v53, 5  ;;  %v2577_v20 = vpack.c.bf16 %v2556_v7, %v2555_v60 }
 0x106   : > { %2729 = vst [vmem:[%s3908_s13 + $0x18] sm:$0xff] %v2653_v16  ;;  %v2799_v15 = vmul.f32 %v2653_v16, %v2653_v16  ;;  %v2760_v52 = vadd.f32 %v2759_v35, %v2653_v16  ;;  %v1915_v35 = vrot.slane %v1914_v17, 4  ;;  %v3208_v16 = vld [vmem:[%s3495_s16 + $0x94] sm:$0xf]  ;;  %v484_v45 = vmax.f32 %v452_v46, 0.0 }
 0x107   : > { %v1931_v18 = vshll.u32 %v3208_v16, 16  ;;  %v1924_v46 = vrot.slane %v1922_v62, 4  ;;  %v1927_v37 = vrot.slane %v1925_v63, 5  ;;  %v1404_v7 = vmax.f32 %v1372_v14, 0.0 }
 0x108   : > { %v2830_v31 = vadd.f32 %v2829_v57, %v2799_v15  ;;  %v505_v0 = vpack.c.bf16 %v484_v45, %v483_v21 }
 0x109   : > { %v2221_v42 = vpop.f32.mrf.mxu3  ;;  %3167 = vmatmul.msk.bf16.gmra.mxu2 %vm1037_vm2, %v1424_v10  ;;  %v1245_v61 = vpop.f32.mrf.mxu1  ;;  %v3978_v6 = vrot.slane %v1931_v18, 5 }
 0x10a   : > { %v2300_v8 = vadd.f32 %v2221_v42, %v1578_v23  ;;  %v1935_v23 = vshrl.u32 %v3208_v16, 16  ;;  %v1403_v42 = vmax.f32 %v1371_v40, 0.0  ;;  %v3383_v16 = vld [vmem:[%s3692_s28 + $0x58] sm:$0xff]   ;;  %v1246_v40 = vadd.f32 %v1245_v61, %v3822_v19  ;;  %v3410_v61 = vld [vmem:[%s3495_s16 + $0x84] sm:$0xf] }
 0x10b   : > { %v3348_v14 = vunpack.c.h.bf16 %v3383_v16 }
 0x10c   : > { %2332 = vst [vmem:[%s3949_s17 + $0x8] sm:$0xff] %v2300_v8  ;;  %v2363_v11 = vadd.f32 %v2300_v8, %v2299_v3  ;;  %v2402_v10 = vmul.f32 %v2300_v8, %v2300_v8  ;;  %v1502_v57 = vpop.f32.mrf.mxu2  ;;  %v1920_v3 = vsel %vm3524_vm3, %v1915_v35, %v1919_v32  ;;  %v3209_v8 = vld [vmem:[%s3495_s16 + $0x98] sm:$0x1]  ;;  %v1937_v2 = vrot.slane %v1935_v23, 4 }
 0x10d   : > { %v1579_v17 = vadd.f32 %v1502_v57, %v1244_v48  ;;  %v2656_v53 = vpop.f32.mrf.mxu0  ;;  %v2093_v32 = vunpack.c.l.bf16 %v1910_v22  ;;  %v1941_v21 = vshll.u32 %v3209_v8, 16  ;;  %v1425_v62 = vpack.c.bf16 %v1404_v7, %v1403_v42 }
 0x10e   : > { %v2433_v15 = vadd.f32 %v2402_v10, %v2401_v4  ;;  %3237 = vmatmul.msk.bf16.gmra.mxu3 %vm1037_vm2, %v2146_v38  ;;  %2730 = vst [vmem:[%s3908_s13 + $0x20] sm:$0xff] %v2656_v53  ;;  %v2761_v49 = vadd.f32 %v2760_v52, %v2656_v53  ;;  %v2800_v44 = vmul.f32 %v2656_v53, %v2656_v53  ;;  %v2094_v52 = vunpack.c.l.bf16 %v1920_v3 }
 0x10f   : > { %v1928_v4 = vor.u32 %v1927_v37, %v1924_v46  ;;  %v1938_v10 = vor.u32 %v1937_v2, %v3978_v6  ;;  %v3347_v57 = vunpack.c.l.bf16 %v3383_v16  ;;  %v2125_v23 = vmax.f32 %v2093_v32, 0.0  ;;  %v3370_v37 = vld [vmem:[%s3495_s16 + $0x90] sm:$0xff]   ;;  %v3210_v32 = vld [vmem:[%s3495_s16 + $0x9c] sm:$0xf] }
 0x110   : > { %v2831_v60 = vadd.f32 %v2830_v31, %v2800_v44  ;;  %3254 = vmatmul.msk.bf16.gmra.mxu0 %vm2584_vm5, %v2577_v20  ;;  %v453_v22 = vunpack.c.l.bf16 %v3410_v61  ;;  %v3411_v44 = vld [vmem:[%s3495_s16 + $0x88] sm:$0xf]  ;;  %v2558_v2 = vmax.f32 %v3348_v14, 0.0  ;;  %v3291_v16 = vunpack.c.l.bf16 %v3370_v37 }
 0x111   : > { %v2224_v38 = vpop.f32.mrf.mxu3  ;;  %v1248_v48 = vpop.f32.mrf.mxu1  ;;  %v1929_v3 = vrot.slane %v1928_v4, 4  ;;  %v454_v46 = vunpack.c.l.bf16 %v3411_v44  ;;  %v1939_v7 = vrot.slane %v1938_v10, 4  ;;  %v2557_v8 = vmax.f32 %v3347_v57, 0.0 }
 0x112   : > { %v2301_v35 = vadd.f32 %v2224_v38, %v1579_v17  ;;  %v2126_v17 = vmax.f32 %v2094_v52, 0.0  ;;  %v485_v52 = vmax.f32 %v453_v22, 0.0  ;;  %v3292_v4 = vunpack.c.h.bf16 %v3370_v37 }
 0x113   : > { %v486_v10 = vmax.f32 %v454_v46, 0.0  ;;  %v2578_v14 = vpack.c.bf16 %v2558_v2, %v2557_v8  ;;  %v3212_v8 = vld [vmem:[%s3495_s16 + $0xa4] sm:$0x1] }
 0x114   : > { %2333 = vst [vmem:[%s3949_s17 + $0x10] sm:$0xff] %v2301_v35  ;;  %v2364_v63 = vadd.f32 %v2363_v11, %v2301_v35  ;;  %v2403_v45 = vmul.f32 %v2301_v35, %v2301_v35  ;;  %v1504_v31 = vpop.f32.mrf.mxu2  ;;  %3114 = vmatmul.msk.bf16.gmra.mxu1 %vm1037_vm2, %v505_v0  ;;  %v1943_v0 = vrot.slane %v1941_v21, 5 }
 0x115   : > { %v1580_v18 = vadd.f32 %v1504_v31, %v1246_v40  ;;  %v2658_v11 = vpop.f32.mrf.mxu0  ;;  %v3211_v40 = vld [vmem:[%s3495_s16 + $0xa0] sm:$0xf] }
 0x116   : > { %v2434_v20 = vadd.f32 %v2433_v15, %v2403_v45  ;;  %2731 = vst [vmem:[%s3908_s13 + $0x28] sm:$0xff] %v2658_v11  ;;  %v2801_v53 = vmul.f32 %v2658_v11, %v2658_v11  ;;  %v2762_v19 = vadd.f32 %v2761_v49, %v2658_v11  ;;  %v2147_v49 = vpack.c.bf16 %v2126_v17, %v2125_v23 }
 0x117   : > { %v1934_v45 = vsel %vm3524_vm3, %v1929_v3, %v3978_v6  ;;  %v1944_v57 = vsel %vm3524_vm3, %v1939_v7, %v1943_v0  ;;  %v1949_v23 = vshll.u32 %v3210_v32, 16  ;;  %v1959_v61 = vshrl.u32 %v3211_v40, 16 }
 0x118   : > { %v2832_v38 = vadd.f32 %v2831_v60, %v2801_v53  ;;  %v1249_v60 = vadd.f32 %v1248_v48, %v3834_v55  ;;  %v1955_v53 = vshll.u32 %v3211_v40, 16  ;;  %v1405_v55 = vmax.f32 %v3291_v16, 0.0 }
 0x119   : > { %v2226_v42 = vpop.f32.mrf.mxu3  ;;  %3168 = vmatmul.msk.bf16.gmra.mxu2 %vm1037_vm2, %v1425_v62  ;;  %v1250_v15 = vpop.f32.mrf.mxu1  ;;  %v1406_v48 = vmax.f32 %v3292_v4, 0.0  ;;  %v506_v3 = vpack.c.bf16 %v486_v10, %v485_v52  ;;  %v2095_v44 = vunpack.c.l.bf16 %v1934_v45  ;;  %v1951_v2 = vrot.slane %v1949_v23, 5  ;;  %v3412_v23 = vld [vmem:[%s3495_s16 + $0x90] sm:$0xf] }
 0x11a   : > { %v2302_v35 = vadd.f32 %v2226_v42, %v1580_v18  ;;  %v1946_v18 = vshrl.u32 %v3210_v32, 16  ;;  %v1251_v4 = vadd.f32 %v1250_v15, %v3854_v33 }
 0x11b   : > { %v1426_v32 = vpack.c.bf16 %v1406_v48, %v1405_v55  ;;  %v2127_v45 = vmax.f32 %v2095_v44, 0.0 }
 0x11c   : > { %2334 = vst [vmem:[%s3949_s17 + $0x18] sm:$0xff] %v2302_v35  ;;  %v2365_v31 = vadd.f32 %v2364_v63, %v2302_v35  ;;  %v2404_v21 = vmul.f32 %v2302_v35, %v2302_v35  ;;  %v1507_v62 = vpop.f32.mrf.mxu2  ;;  %v1948_v42 = vrot.slane %v1946_v18, 4  ;;  %v4003_v35 = vrot.slane %v1955_v53, 5 }
 0x11d   : > { %v1581_v11 = vadd.f32 %v1507_v62, %v1249_v60  ;;  %v2661_v6 = vpop.f32.mrf.mxu0 }
 0x11e   : > { %v2435_v17 = vadd.f32 %v2434_v20, %v2404_v21  ;;  %3238 = vmatmul.msk.bf16.gmra.mxu3 %vm1037_vm2, %v2147_v49  ;;  %2732 = vst [vmem:[%s3908_s13 + $0x30] sm:$0xff] %v2661_v6  ;;  %v2763_v63 = vadd.f32 %v2762_v19, %v2661_v6  ;;  %v2802_v22 = vmul.f32 %v2661_v6, %v2661_v6  ;;  %v2096_v20 = vunpack.c.l.bf16 %v1944_v57  ;;  %v3384_v49 = vld [vmem:[%s3692_s28 + $0x60] sm:$0xff]   ;;  %v3413_v6 = vld [vmem:[%s3495_s16 + $0x94] sm:$0xf] }
 0x11f   : > { %v1961_v19 = vrot.slane %v1959_v61, 4  ;;  %v1965_v21 = vshll.u32 %v3212_v8, 16  ;;  %v3351_v60 = vunpack.c.l.bf16 %v3384_v49  ;;  %v3352_v62 = vunpack.c.h.bf16 %v3384_v49  ;;  %v3144_v61 = vld [vmem:[%s3495_s16 + $0x9c] sm:$0xff]   ;;  %v3214_v8 = vld [vmem:[%s3495_s16 + $0xac] sm:$0xf] }
 0x120   : > { %v2833_v0 = vadd.f32 %v2832_v38, %v2802_v22  ;;  %3255 = vmatmul.msk.bf16.gmra.mxu0 %vm2584_vm5, %v2578_v14  ;;  %v2128_v40 = vmax.f32 %v2096_v20, 0.0  ;;  %v1952_v18 = vor.u32 %v1951_v2, %v1948_v42  ;;  %v456_v53 = vunpack.c.l.bf16 %v3413_v6  ;;  %v3213_v22 = vld [vmem:[%s3495_s16 + $0xa8] sm:$0xf] }
 0x121   : > { %v2229_v46 = vpop.f32.mrf.mxu3  ;;  %v1253_v37 = vpop.f32.mrf.mxu1  ;;  %v2559_v44 = vmax.f32 %v3351_v60, 0.0  ;;  %v1970_v49 = vshrl.u32 %v3213_v22, 16 }
 0x122   : > { %v2303_v7 = vadd.f32 %v2229_v46, %v1581_v11  ;;  %v455_v11 = vunpack.c.l.bf16 %v3412_v23  ;;  %v2560_v46 = vmax.f32 %v3352_v62, 0.0  ;;  %v1953_v42 = vrot.slane %v1952_v18, 4 }
 0x123   : > { %v1979_v62 = vshll.u32 %v3214_v8, 16 }
 0x124   : > { %2335 = vst [vmem:[%s3949_s17 + $0x20] sm:$0xff] %v2303_v7  ;;  %v2366_v16 = vadd.f32 %v2365_v31, %v2303_v7  ;;  %v2405_v52 = vmul.f32 %v2303_v7, %v2303_v7  ;;  %v1509_v38 = vpop.f32.mrf.mxu2  ;;  %3115 = vmatmul.msk.bf16.gmra.mxu1 %vm1037_vm2, %v506_v3  ;;  %v1962_v31 = vor.u32 %v1961_v19, %v4003_v35  ;;  %v487_v2 = vmax.f32 %v455_v11, 0.0 }
 0x125   : > { %v1582_v57 = vadd.f32 %v1509_v38, %v1251_v4  ;;  %v2663_v14 = vpop.f32.mrf.mxu0  ;;  %v1375_v19 = vunpack.c.l.bf16 %v3144_v61  ;;  %v2579_v60 = vpack.c.bf16 %v2560_v46, %v2559_v44 }
 0x126   : > { %v2436_v10 = vadd.f32 %v2435_v17, %v2405_v52  ;;  %2733 = vst [vmem:[%s3908_s13 + $0x38] sm:$0xff] %v2663_v14  ;;  %v2803_v33 = vmul.f32 %v2663_v14, %v2663_v14  ;;  %v2764_v15 = vadd.f32 %v2763_v63, %v2663_v14  ;;  %v2148_v17 = vpack.c.bf16 %v2128_v40, %v2127_v45 }
 0x127   : > { %v1963_v7 = vrot.slane %v1962_v31, 4  ;;  %v1967_v63 = vrot.slane %v1965_v21, 5  ;;  %v1973_v52 = vshll.u32 %v3213_v22, 16  ;;  %v488_v40 = vmax.f32 %v456_v53, 0.0 }
 0x128   : > { %v2834_v3 = vadd.f32 %v2833_v0, %v2803_v33  ;;  %v1376_v0 = vunpack.c.h.bf16 %v3144_v61  ;;  %v1958_v31 = vsel %vm3524_vm3, %v1953_v42, %v4003_v35  ;;  %v1972_v33 = vrot.slane %v1970_v49, 4 }
 0x129   : > { %v2231_v55 = vpop.f32.mrf.mxu3  ;;  %3169 = vmatmul.msk.bf16.gmra.mxu2 %vm1037_vm2, %v1426_v32  ;;  %v1255_v48 = vpop.f32.mrf.mxu1  ;;  %v1254_v32 = vadd.f32 %v1253_v37, %v3870_v9  ;;  %v1975_v23 = vrot.slane %v1973_v52, 5  ;;  %v1407_v11 = vmax.f32 %v1375_v19, 0.0  ;;  %v4028_v35 = vrot.slane %v1979_v62, 5 }
 0x12a   : > { %v2304_v20 = vadd.f32 %v2231_v55, %v1582_v57  ;;  %v1983_v57 = vshrl.u32 %v3214_v8, 16  ;;  %v1408_v22 = vmax.f32 %v1376_v0, 0.0  ;;  %v3215_v55 = vld [vmem:[%s3495_s16 + $0xb0] sm:$0x1]  ;;  %v2097_v46 = vunpack.c.l.bf16 %v1958_v31  ;;  %v3371_v31 = vld [vmem:[%s3495_s16 + $0xa8] sm:$0xff]  }
 0x12b   : > { %v1976_v42 = vor.u32 %v1975_v23, %v1972_v33  ;;  %v1256_v8 = vadd.f32 %v1255_v48, %v3887_v43  ;;  %v3217_v33 = vld [vmem:[%s3495_s16 + $0xb8] sm:$0xf] }
 0x12c   : > { %2336 = vst [vmem:[%s3949_s17 + $0x28] sm:$0xff] %v2304_v20  ;;  %v2367_v4 = vadd.f32 %v2366_v16, %v2304_v20  ;;  %v2406_v38 = vmul.f32 %v2304_v20, %v2304_v20  ;;  %v1512_v45 = vpop.f32.mrf.mxu2  ;;  %v1968_v16 = vsel %vm3524_vm3, %v1963_v7, %v1967_v63  ;;  %v3385_v20 = vld [vmem:[%s3692_s28 + $0x68] sm:$0xff]   ;;  %v1427_v19 = vpack.c.bf16 %v1408_v22, %v1407_v11 }
 0x12d   : > { %v1583_v21 = vadd.f32 %v1512_v45, %v1254_v32  ;;  %v2666_v18 = vpop.f32.mrf.mxu0  ;;  %v3355_v52 = vunpack.c.l.bf16 %v3385_v20 }
 0x12e   : > { %v2437_v14 = vadd.f32 %v2436_v10, %v2406_v38  ;;  %3239 = vmatmul.msk.bf16.gmra.mxu3 %vm1037_vm2, %v2148_v17  ;;  %2734 = vst [vmem:[%s3908_s13 + $0x40] sm:$0xff] %v2666_v18  ;;  %v2765_v9 = vadd.f32 %v2764_v15, %v2666_v18  ;;  %v2804_v37 = vmul.f32 %v2666_v18, %v2666_v18  ;;  %v1985_v17 = vrot.slane %v1983_v57, 4  ;;  %v3216_v57 = vld [vmem:[%s3495_s16 + $0xb4] sm:$0xf] }
 0x12f   : > { %v507_v10 = vpack.c.bf16 %v488_v40, %v487_v2  ;;  %v2098_v15 = vunpack.c.l.bf16 %v1968_v16  ;;  %v1989_v2 = vshll.u32 %v3215_v55, 16  ;;  %v3356_v38 = vunpack.c.h.bf16 %v3385_v20 }
 0x130   : > { %v2835_v61 = vadd.f32 %v2834_v3, %v2804_v37  ;;  %3256 = vmatmul.msk.bf16.gmra.mxu0 %vm2584_vm5, %v2579_v60  ;;  %v1986_v49 = vor.u32 %v1985_v17, %v4028_v35  ;;  %v3414_v60 = vld [vmem:[%s3495_s16 + $0x9c] sm:$0xf]  ;;  %v1977_v16 = vrot.slane %v1976_v42, 4  ;;  %v1994_v17 = vshrl.u32 %v3216_v57, 16 }
 0x131   : > { %v2234_v6 = vpop.f32.mrf.mxu3  ;;  %v1258_v53 = vpop.f32.mrf.mxu1  ;;  %v2130_v40 = vmax.f32 %v2098_v15, 0.0  ;;  %v457_v62 = vunpack.c.l.bf16 %v3414_v60  ;;  %v1991_v37 = vrot.slane %v1989_v2, 5  ;;  %v2562_v22 = vmax.f32 %v3356_v38, 0.0 }
 0x132   : > { %v2305_v44 = vadd.f32 %v2234_v6, %v1583_v21  ;;  %v3415_v21 = vld [vmem:[%s3495_s16 + $0xa0] sm:$0xf]  ;;  %v1987_v11 = vrot.slane %v1986_v49, 4  ;;  %v2561_v6 = vmax.f32 %v3355_v52, 0.0  ;;  %v3295_v15 = vunpack.c.l.bf16 %v3371_v31 }
 0x133   : > { %v458_v18 = vunpack.c.l.bf16 %v3415_v21  ;;  %v2003_v20 = vshll.u32 %v3217_v33, 16  ;;  %v1982_v49 = vsel %vm3524_vm3, %v1977_v16, %v4028_v35 }
 0x134   : > { %2337 = vst [vmem:[%s3949_s17 + $0x30] sm:$0xff] %v2305_v44  ;;  %v2368_v7 = vadd.f32 %v2367_v4, %v2305_v44  ;;  %v2407_v63 = vmul.f32 %v2305_v44, %v2305_v44  ;;  %v1514_v3 = vpop.f32.mrf.mxu2  ;;  %3116 = vmatmul.msk.bf16.gmra.mxu1 %vm1037_vm2, %v507_v10  ;;  %v2129_v4 = vmax.f32 %v2097_v46, 0.0  ;;  %v1997_v44 = vshll.u32 %v3216_v57, 16 }
 0x135   : > { %v1584_v45 = vadd.f32 %v1514_v3, %v1256_v8  ;;  %v2668_v0 = vpop.f32.mrf.mxu0  ;;  %v489_v46 = vmax.f32 %v457_v62, 0.0  ;;  %v1259_v3 = vadd.f32 %v1258_v53, %v3780_v5  ;;  %v1992_v52 = vsel %vm3524_vm3, %v1987_v11, %v1991_v37 }
 0x136   : > { %v2438_v32 = vadd.f32 %v2437_v14, %v2407_v63  ;;  %2735 = vst [vmem:[%s3908_s13 + $0x48] sm:$0xff] %v2668_v0  ;;  %v2766_v43 = vadd.f32 %v2765_v9, %v2668_v0  ;;  %v2805_v48 = vmul.f32 %v2668_v0, %v2668_v0  ;;  %v2149_v55 = vpack.c.bf16 %v2130_v40, %v2129_v4 }
 0x137   : > { %v2007_v63 = vshrl.u32 %v3217_v33, 16  ;;  %v2580_v38 = vpack.c.bf16 %v2562_v22, %v2561_v6  ;;  %v1996_v40 = vrot.slane %v1994_v17, 4  ;;  %v1999_v0 = vrot.slane %v1997_v44, 5  ;;  %v3148_v44 = vld [vmem:[%s3495_s16 + $0xb4] sm:$0xff]  }
 0x138   : > { %v2836_v10 = vadd.f32 %v2835_v61, %v2805_v48  ;;  %v3296_v61 = vunpack.c.h.bf16 %v3371_v31  ;;  %v4051_v48 = vrot.slane %v2003_v20, 5  ;;  %v3218_v31 = vld [vmem:[%s3495_s16 + $0xbc] sm:$0x1]  ;;  %v2099_v37 = vunpack.c.l.bf16 %v1982_v49  ;;  %v3417_v49 = vld [vmem:[%s3495_s16 + $0xac] sm:$0xf] }
 0x139   : > { %v2236_v23 = vpop.f32.mrf.mxu3  ;;  %3170 = vmatmul.msk.bf16.gmra.mxu2 %vm1037_vm2, %v1427_v19  ;;  %v1260_v14 = vpop.f32.mrf.mxu1  ;;  %v490_v19 = vmax.f32 %v458_v18, 0.0  ;;  %v2009_v35 = vrot.slane %v2007_v63, 4  ;;  %v2100_v33 = vunpack.c.l.bf16 %v1992_v52  ;;  %v460_v52 = vunpack.c.l.bf16 %v3417_v49  ;;  %v3387_v49 = vld [vmem:[%s3692_s28 + $0x78] sm:$0xff]  }
 0x13a   : > { %v2306_v9 = vadd.f32 %v2236_v23, %v1584_v45  ;;  %v1410_v18 = vmax.f32 %v3296_v61, 0.0  ;;  %v3386_v23 = vld [vmem:[%s3692_s28 + $0x70] sm:$0xff]   ;;  %v3416_v61 = vld [vmem:[%s3495_s16 + $0xa8] sm:$0xf]  ;;  %s391_s28 = scalar_lea.vmem %s4257_s7, %s4269_s10 }
 0x13b   : > { %v508_v60 = vpack.c.bf16 %v490_v19, %v489_v46  ;;  %v2010_v11 = vor.u32 %v2009_v35, %v4051_v48  ;;  %v3359_v46 = vunpack.c.l.bf16 %v3386_v23 }
 0x13c   : > { %2338 = vst [vmem:[%s3949_s17 + $0x38] sm:$0xff] %v2306_v9  ;;  %v2369_v42 = vadd.f32 %v2368_v7, %v2306_v9  ;;  %v2408_v8 = vmul.f32 %v2306_v9, %v2306_v9  ;;  %v1517_v2 = vpop.f32.mrf.mxu2  ;;  %v1261_v9 = vadd.f32 %v1260_v14, %v3795_v58  ;;  %v459_v58 = vunpack.c.l.bf16 %v3416_v61 }
 0x13d   : > { %v1585_v4 = vadd.f32 %v1517_v2, %v1259_v3  ;;  %v2671_v7 = vpop.f32.mrf.mxu0  ;;  %v2132_v3 = vmax.f32 %v2100_v33, 0.0  ;;  %v2563_v35 = vmax.f32 %v3359_v46, 0.0 }
 0x13e   : > { %v2439_v45 = vadd.f32 %v2438_v32, %v2408_v8  ;;  %3240 = vmatmul.msk.bf16.gmra.mxu3 %vm1037_vm2, %v2149_v55  ;;  %2736 = vst [vmem:[%s3908_s13 + $0x50] sm:$0xff] %v2671_v7  ;;  %v2767_v5 = vadd.f32 %v2766_v43, %v2671_v7  ;;  %v2806_v53 = vmul.f32 %v2671_v7, %v2671_v7  ;;  %v1409_v32 = vmax.f32 %v3295_v15, 0.0 }
 0x13f   : > { %v2000_v43 = vor.u32 %v1999_v0, %v1996_v40  ;;  %v2013_v55 = vshll.u32 %v3218_v31, 16  ;;  %v3360_v15 = vunpack.c.h.bf16 %v3386_v23  ;;  %v2131_v8 = vmax.f32 %v2099_v37, 0.0  ;;  %v3219_v31 = vld [vmem:[%s3495_s16 + $0xc0] sm:$0xf] }
 0x140   : > { %v2837_v21 = vadd.f32 %v2836_v10, %v2806_v53  ;;  %3257 = vmatmul.msk.bf16.gmra.mxu0 %vm2584_vm5, %v2580_v38  ;;  %v1428_v17 = vpack.c.bf16 %v1410_v18, %v1409_v32  ;;  %v1379_v38 = vunpack.c.l.bf16 %v3148_v44  ;;  %v1380_v53 = vunpack.c.h.bf16 %v3148_v44 }
 0x141   : > { %v2239_v62 = vpop.f32.mrf.mxu3  ;;  %v1263_v57 = vpop.f32.mrf.mxu1  ;;  %v2001_v14 = vrot.slane %v2000_v43, 4  ;;  %v2015_v7 = vrot.slane %v2013_v55, 5  ;;  %v491_v32 = vmax.f32 %v459_v58, 0.0  ;;  %v492_v43 = vmax.f32 %v460_v52, 0.0 }
 0x142   : > { %v2307_v16 = vadd.f32 %v2239_v62, %v1585_v4  ;;  %v2011_v4 = vrot.slane %v2010_v11, 4  ;;  %v2150_v62 = vpack.c.bf16 %v2132_v3, %v2131_v8  ;;  %v1264_v33 = vadd.f32 %v1263_v57, %v3810_v1 }
 0x143   : > { %v2006_v18 = vsel %vm3524_vm3, %v2001_v14, %v4051_v48  ;;  %v1411_v11 = vmax.f32 %v1379_v38, 0.0  ;;  %v2018_v44 = vshrl.u32 %v3219_v31, 16  ;;  %v3221_v38 = vld [vmem:[%s3495_s16 + $0xc8] sm:$0x1] }
 0x144   : > { %2339 = vst [vmem:[%s3949_s17 + $0x40] sm:$0xff] %v2307_v16  ;;  %v2370_v6 = vadd.f32 %v2369_v42, %v2307_v16  ;;  %v2409_v22 = vmul.f32 %v2307_v16, %v2307_v16  ;;  %v1519_v10 = vpop.f32.mrf.mxu2  ;;  %3117 = vmatmul.msk.bf16.gmra.mxu1 %vm1037_vm2, %v508_v60 }
 0x145   : > { %v1586_v63 = vadd.f32 %v1519_v10, %v1261_v9  ;;  %v2673_v2 = vpop.f32.mrf.mxu0  ;;  %v2016_v9 = vsel %vm3524_vm3, %v2011_v4, %v2015_v7  ;;  %v2020_v58 = vrot.slane %v2018_v44, 4 }
 0x146   : > { %v2440_v20 = vadd.f32 %v2439_v45, %v2409_v22  ;;  %2737 = vst [vmem:[%s3908_s13 + $0x58] sm:$0xff] %v2673_v2  ;;  %v2768_v42 = vadd.f32 %v2767_v5, %v2673_v2  ;;  %v2807_v19 = vmul.f32 %v2673_v2, %v2673_v2  ;;  %v2564_v5 = vmax.f32 %v3360_v15, 0.0 }
 0x147   : > { %v1412_v22 = vmax.f32 %v1380_v53, 0.0 }
 0x148   : > { %v2838_v0 = vadd.f32 %v2837_v21, %v2807_v19  ;;  %v3220_v21 = vld [vmem:[%s3495_s16 + $0xc4] sm:$0xf]  ;;  %v2581_v10 = vpack.c.bf16 %v2564_v5, %v2563_v35  ;;  %v2101_v19 = vunpack.c.l.bf16 %v2006_v18 }
 0x149   : > { %v2241_v40 = vpop.f32.mrf.mxu3  ;;  %3171 = vmatmul.msk.bf16.gmra.mxu2 %vm1037_vm2, %v1428_v17  ;;  %v1265_v45 = vpop.f32.mrf.mxu1  ;;  %v2027_v57 = vshll.u32 %v3220_v21, 16  ;;  %v2031_v15 = vshrl.u32 %v3220_v21, 16  ;;  %v1429_v52 = vpack.c.bf16 %v1412_v22, %v1411_v11 }
 0x14a   : > { %v2308_v60 = vadd.f32 %v2241_v40, %v1586_v63  ;;  %v509_v63 = vpack.c.bf16 %v492_v43, %v491_v32  ;;  %v2133_v35 = vmax.f32 %v2101_v19, 0.0  ;;  %v3418_v43 = vld [vmem:[%s3495_s16 + $0xb4] sm:$0xf] }
 0x14b   : > { %v2033_v4 = vrot.slane %v2031_v15, 4  ;;  %v461_v21 = vunpack.c.l.bf16 %v3418_v43 }
 0x14c   : > { %2340 = vst [vmem:[%s3949_s17 + $0x48] sm:$0xff] %v2308_v60  ;;  %v2371_v16 = vadd.f32 %v2370_v6, %v2308_v60  ;;  %v2410_v37 = vmul.f32 %v2308_v60, %v2308_v60  ;;  %v1522_v23 = vpop.f32.mrf.mxu2  ;;  %v2021_v6 = vshll.u32 %v3219_v31, 16  ;;  %v3363_v60 = vunpack.c.l.bf16 %v3387_v49 }
 0x14d   : > { %v1587_v48 = vadd.f32 %v1522_v23, %v1264_v33  ;;  %v2676_v17 = vpop.f32.mrf.mxu0  ;;  %v2037_v33 = vshll.u32 %v3221_v38, 16 }
 0x14e   : > { %v2441_v55 = vadd.f32 %v2440_v20, %v2410_v37  ;;  %3241 = vmatmul.msk.bf16.gmra.mxu3 %vm1037_vm2, %v2150_v62  ;;  %2738 = vst [vmem:[%s3908_s13 + $0x60] sm:$0xff] %v2676_v17  ;;  %v2769_v46 = vadd.f32 %v2768_v42, %v2676_v17  ;;  %v2808_v1 = vmul.f32 %v2676_v17, %v2676_v17  ;;  %v2102_v20 = vunpack.c.l.bf16 %v2016_v9 }
 0x14f   : > { %v2023_v14 = vrot.slane %v2021_v6, 5  ;;  %v4079_v42 = vrot.slane %v2027_v57, 5  ;;  %v3364_v62 = vunpack.c.h.bf16 %v3387_v49  ;;  %v3372_v6 = vld [vmem:[%s3495_s16 + $0xc0] sm:$0xff]   ;;  %v2039_v15 = vrot.slane %v2037_v33, 5 }
 0x150   : > { %v2839_v2 = vadd.f32 %v2838_v0, %v2808_v1  ;;  %3258 = vmatmul.msk.bf16.gmra.mxu0 %vm2584_vm5, %v2581_v10  ;;  %v1266_v0 = vadd.f32 %v1265_v45, %v3828_v39  ;;  %v2134_v5 = vmax.f32 %v2102_v20, 0.0  ;;  %v3419_v45 = vld [vmem:[%s3495_s16 + $0xb8] sm:$0xf]  ;;  %v493_v1 = vmax.f32 %v461_v21, 0.0 }
 0x151   : > { %v2244_v8 = vpop.f32.mrf.mxu3  ;;  %v1268_v3 = vpop.f32.mrf.mxu1  ;;  %v2024_v37 = vor.u32 %v2023_v14, %v2020_v58  ;;  %v2034_v39 = vor.u32 %v2033_v4, %v4079_v42  ;;  %v462_v11 = vunpack.c.l.bf16 %v3419_v45  ;;  %v3299_v58 = vunpack.c.l.bf16 %v3372_v6 }
 0x152   : > { %v2309_v61 = vadd.f32 %v2244_v8, %v1587_v48  ;;  %v2566_v48 = vmax.f32 %v3364_v62, 0.0  ;;  %v2151_v44 = vpack.c.bf16 %v2134_v5, %v2133_v35  ;;  %v1269_v19 = vadd.f32 %v1268_v3, %v3844_v47 }
 0x153   : > { %v2035_v57 = vrot.slane %v2034_v39, 4  ;;  %v3300_v14 = vunpack.c.h.bf16 %v3372_v6  ;;  %v1413_v5 = vmax.f32 %v3299_v58, 0.0 }
 0x154   : > { %2341 = vst [vmem:[%s3949_s17 + $0x50] sm:$0xff] %v2309_v61  ;;  %v2372_v7 = vadd.f32 %v2371_v16, %v2309_v61  ;;  %v2411_v40 = vmul.f32 %v2309_v61, %v2309_v61  ;;  %v1524_v53 = vpop.f32.mrf.mxu2  ;;  %3118 = vmatmul.msk.bf16.gmra.mxu1 %vm1037_vm2, %v509_v63  ;;  %v494_v61 = vmax.f32 %v462_v11, 0.0 }
 0x155   : > { %v1588_v18 = vadd.f32 %v1524_v53, %v1266_v0  ;;  %v2678_v31 = vpop.f32.mrf.mxu0  ;;  %v2040_v47 = vsel %vm3524_vm3, %v2035_v57, %v2039_v15 }
 0x156   : > { %v2442_v32 = vadd.f32 %v2441_v55, %v2411_v40  ;;  %2739 = vst [vmem:[%s3908_s13 + $0x68] sm:$0xff] %v2678_v31  ;;  %v2770_v16 = vadd.f32 %v2769_v46, %v2678_v31  ;;  %v2809_v23 = vmul.f32 %v2678_v31, %v2678_v31  ;;  %v2565_v55 = vmax.f32 %v3363_v60, 0.0 }
 0x157   : > { %v2025_v46 = vrot.slane %v2024_v37, 4  ;;  %v510_v3 = vpack.c.bf16 %v494_v61, %v493_v1  ;;  %v1414_v60 = vmax.f32 %v3300_v14, 0.0 }
 0x158   : > { %v2840_v10 = vadd.f32 %v2839_v2, %v2809_v23  ;;  %v2582_v2 = vpack.c.bf16 %v2566_v48, %v2565_v55 }
 0x159   : > { %v2246_v22 = vpop.f32.mrf.mxu3  ;;  %3172 = vmatmul.msk.bf16.gmra.mxu2 %vm1037_vm2, %v1429_v52  ;;  %v1270_v9 = vpop.f32.mrf.mxu1  ;;  %v1430_v30 = vpack.c.bf16 %v1414_v60, %v1413_v5 }
 0x15a   : > { %v2310_v17 = vadd.f32 %v2246_v22, %v1588_v18  ;;  %v2104_v18 = vunpack.c.l.bf16 %v2040_v47 }
 0x15c   : > { %2342 = vst [vmem:[%s3949_s17 + $0x58] sm:$0xff] %v2310_v17  ;;  %v2373_v63 = vadd.f32 %v2372_v7, %v2310_v17  ;;  %v2412_v8 = vmul.f32 %v2310_v17, %v2310_v17  ;;  %v1527_v20 = vpop.f32.mrf.mxu2  ;;  %v2030_v7 = vsel %vm3524_vm3, %v2025_v46, %v4079_v42  ;;  %v1271_v42 = vadd.f32 %v1270_v9, %v3861_v50 }
 0x15d   : > { %v1589_v52 = vadd.f32 %v1527_v20, %v1269_v19  ;;  %v2681_v38 = vpop.f32.mrf.mxu0  ;;  %v2136_v21 = vmax.f32 %v2104_v18, 0.0 }
 0x15e   : > { %v2443_v49 = vadd.f32 %v2442_v32, %v2412_v8  ;;  %3242 = vmatmul.msk.bf16.gmra.mxu3 %vm1037_vm2, %v2151_v44  ;;  %2740 = vst [vmem:[%s3908_s13 + $0x70] sm:$0xff] %v2681_v38  ;;  %v2771_v4 = vadd.f32 %v2770_v16, %v2681_v38  ;;  %v2810_v40 = vmul.f32 %v2681_v38, %v2681_v38  ;;  %v2103_v32 = vunpack.c.l.bf16 %v2030_v7 }
 0x160   : > { %v2841_v35 = vadd.f32 %v2840_v10, %v2810_v40  ;;  %3259 = vmatmul.msk.bf16.gmra.mxu0 %vm2584_vm5, %v2582_v2  ;;  %v2135_v43 = vmax.f32 %v2103_v32, 0.0 }
 0x161   : > { %v2249_v0 = vpop.f32.mrf.mxu3  ;;  %v1273_v53 = vpop.f32.mrf.mxu1 }
 0x162   : > { %v2311_v62 = vadd.f32 %v2249_v0, %v1589_v52  ;;  %v2152_v9 = vpack.c.bf16 %v2136_v21, %v2135_v43  ;;  %v1274_v44 = vadd.f32 %v1273_v53, %v3880_v25 }
 0x164   : > { %2343 = vst [vmem:[%s3949_s17 + $0x60] sm:$0xff] %v2311_v62  ;;  %v2374_v31 = vadd.f32 %v2373_v63, %v2311_v62  ;;  %v2413_v37 = vmul.f32 %v2311_v62, %v2311_v62  ;;  %v1529_v33 = vpop.f32.mrf.mxu2  ;;  %3119 = vmatmul.msk.bf16.gmra.mxu1 %vm1037_vm2, %v510_v3 }
 0x165   : > { %v1590_v23 = vadd.f32 %v1529_v33, %v1271_v42  ;;  %v2683_v39 = vpop.f32.mrf.mxu0 }
 0x166   : > { %v2444_v16 = vadd.f32 %v2443_v49, %v2413_v37  ;;  %2741 = vst [vmem:[%s3908_s13 + $0x78] sm:$0xff] %v2683_v39  ;;  %v2772_v45 = vadd.f32 %v2771_v4, %v2683_v39  ;;  %v2811_v11 = vmul.f32 %v2683_v39, %v2683_v39 }
 0x168   : > { %v2842_v55 = vadd.f32 %v2841_v35, %v2811_v11 }
 0x169   : > { %v2251_v22 = vpop.f32.mrf.mxu3  ;;  %3173 = vmatmul.msk.bf16.gmra.mxu2 %vm1037_vm2, %v1430_v30  ;;  %v1275_v10 = vpop.f32.mrf.mxu1 }
 0x16a   : > { %v2312_v50 = vadd.f32 %v2251_v22, %v1590_v23  ;;  %v1276_v25 = vadd.f32 %v1275_v10, %v3897_v13 }
 0x16c   : > { %2344 = vst [vmem:[%s3949_s17 + $0x68] sm:$0xff] %v2312_v50  ;;  %v2375_v48 = vadd.f32 %v2374_v31, %v2312_v50  ;;  %v2414_v17 = vmul.f32 %v2312_v50, %v2312_v50  ;;  %v1532_v6 = vpop.f32.mrf.mxu2 }
 0x16d   : > { %v1591_v46 = vadd.f32 %v1532_v6, %v1274_v44  ;;  %v2686_v57 = vpop.f32.mrf.mxu0 }
 0x16e   : > { %v2445_v1 = vadd.f32 %v2444_v16, %v2414_v17  ;;  %3243 = vmatmul.msk.bf16.gmra.mxu3 %vm1037_vm2, %v2152_v9  ;;  %2742 = vst [vmem:[%s3908_s13 + $0x80] sm:$0xff] %v2686_v57  ;;  %v2773_v15 = vadd.f32 %v2772_v45, %v2686_v57  ;;  %v2812_v63 = vmul.f32 %v2686_v57, %v2686_v57 }
 0x170   : > { %v2843_v20 = vadd.f32 %v2842_v55, %v2812_v63 }
 0x171   : > { %v2254_v8 = vpop.f32.mrf.mxu3  ;;  %v1278_v19 = vpop.f32.mrf.mxu1 }
 0x172   : > { %v2313_v61 = vadd.f32 %v2254_v8, %v1591_v46  ;;  %v1279_v5 = vadd.f32 %v1278_v19, %v3797_v36 }
 0x174   : > { %2345 = vst [vmem:[%s3949_s17 + $0x70] sm:$0xff] %v2313_v61  ;;  %v2376_v58 = vadd.f32 %v2375_v48, %v2313_v61  ;;  %v2415_v14 = vmul.f32 %v2313_v61, %v2313_v61  ;;  %v1534_v2 = vpop.f32.mrf.mxu2 }
 0x175   : > { %v1592_v52 = vadd.f32 %v1534_v2, %v1276_v25  ;;  %v2688_v38 = vpop.f32.mrf.mxu0 }
 0x176   : > { %v2446_v49 = vadd.f32 %v2445_v1, %v2415_v14  ;;  %2743 = vst [vmem:[%s3908_s13 + $0x88] sm:$0xff] %v2688_v38  ;;  %v2774_v4 = vadd.f32 %v2773_v15, %v2688_v38  ;;  %v2813_v40 = vmul.f32 %v2688_v38, %v2688_v38 }
 0x178   : > { %v2844_v3 = vadd.f32 %v2843_v20, %v2813_v40 }
 0x179   : > { %v2256_v7 = vpop.f32.mrf.mxu3  ;;  %v1280_v47 = vpop.f32.mrf.mxu1 }
 0x17a   : > { %v2314_v0 = vadd.f32 %v2256_v7, %v1592_v52  ;;  %v1281_v43 = vadd.f32 %v1280_v47, %v3813_v27 }
 0x17c   : > { %2346 = vst [vmem:[%s3949_s17 + $0x78] sm:$0xff] %v2314_v0  ;;  %v2377_v53 = vadd.f32 %v2376_v58, %v2314_v0  ;;  %v2416_v35 = vmul.f32 %v2314_v0, %v2314_v0  ;;  %v1537_v60 = vpop.f32.mrf.mxu2 }
 0x17d   : > { %v1593_v62 = vadd.f32 %v1537_v60, %v1279_v5  ;;  %v2691_v32 = vpop.f32.mrf.mxu0 }
 0x17e   : > { %v2447_v13 = vadd.f32 %v2446_v49, %v2416_v35  ;;  %2744 = vst [vmem:[%s3908_s13 + $0x90] sm:$0xff] %v2691_v32  ;;  %v2775_v18 = vadd.f32 %v2774_v4, %v2691_v32  ;;  %v2814_v31 = vmul.f32 %v2691_v32, %v2691_v32 }
 0x180   : > { %v2845_v33 = vadd.f32 %v2844_v3, %v2814_v31 }
 0x181   : > { %v2259_v37 = vpop.f32.mrf.mxu3  ;;  %v1283_v42 = vpop.f32.mrf.mxu1 }
 0x182   : > { %v2315_v30 = vadd.f32 %v2259_v37, %v1593_v62  ;;  %v1284_v44 = vadd.f32 %v1283_v42, %v3832_v41 }
 0x184   : > { %2347 = vst [vmem:[%s3949_s17 + $0x80] sm:$0xff] %v2315_v30  ;;  %v2378_v16 = vadd.f32 %v2377_v53, %v2315_v30  ;;  %v2417_v23 = vmul.f32 %v2315_v30, %v2315_v30  ;;  %v1539_v21 = vpop.f32.mrf.mxu2 }
 0x185   : > { %v1594_v39 = vadd.f32 %v1539_v21, %v1281_v43  ;;  %v2693_v45 = vpop.f32.mrf.mxu0 }
 0x186   : > { %v2448_v36 = vadd.f32 %v2447_v13, %v2417_v23  ;;  %2745 = vst [vmem:[%s3908_s13 + $0x98] sm:$0xff] %v2693_v45  ;;  %v2776_v11 = vadd.f32 %v2775_v18, %v2693_v45  ;;  %v2815_v22 = vmul.f32 %v2693_v45, %v2693_v45 }
 0x188   : > { %v2846_v50 = vadd.f32 %v2845_v33, %v2815_v22 }
 0x189   : > { %v2261_v10 = vpop.f32.mrf.mxu3  ;;  %v1285_v55 = vpop.f32.mrf.mxu1 }
 0x18a   : > { %v2316_v9 = vadd.f32 %v2261_v10, %v1594_v39  ;;  %v1286_v41 = vadd.f32 %v1285_v55, %v3847_v12 }
 0x18c   : > { %2348 = vst [vmem:[%s3949_s17 + $0x88] sm:$0xff] %v2316_v9  ;;  %v2379_v48 = vadd.f32 %v2378_v16, %v2316_v9  ;;  %v2418_v17 = vmul.f32 %v2316_v9, %v2316_v9  ;;  %v1542_v6 = vpop.f32.mrf.mxu2 }
 0x18d   : > { %v1595_v1 = vadd.f32 %v1542_v6, %v1284_v44  ;;  %v2696_v46 = vpop.f32.mrf.mxu0 }
 0x18e   : > { %v2449_v27 = vadd.f32 %v2448_v36, %v2418_v17  ;;  %2746 = vst [vmem:[%s3908_s13 + $0xa0] sm:$0xff] %v2696_v46  ;;  %v4121_v57 = vadd.f32 %v2776_v11, %v2696_v46  ;;  %v2816_v15 = vmul.f32 %v2696_v46, %v2696_v46 }
 0x190   : > { %v4123_v19 = vadd.f32 %v2846_v50, %v2816_v15 }
 0x191   : > { %v2264_v63 = vpop.f32.mrf.mxu3  ;;  %v1288_v8 = vpop.f32.mrf.mxu1 }
 0x192   : > { %v2317_v20 = vadd.f32 %v2264_v63, %v1595_v1  ;;  %v1289_v47 = vadd.f32 %v1288_v8, %v3863_v56 }
 0x194   : > { %2349 = vst [vmem:[%s3949_s17 + $0x90] sm:$0xff] %v2317_v20  ;;  %v2380_v61 = vadd.f32 %v2379_v48, %v2317_v20  ;;  %v2419_v58 = vmul.f32 %v2317_v20, %v2317_v20  ;;  %v1544_v14 = vpop.f32.mrf.mxu2 }
 0x195   : > { %v1596_v2 = vadd.f32 %v1544_v14, %v1286_v41  ;;  %v4127_v49 = vpop.f32.mrf.mxu0 }
 0x196   : > { %v2450_v25 = vadd.f32 %v2449_v27, %v2419_v58  ;;  %2747 = vst [vmem:[%s3908_s13 + $0xa8] sm:$0xff] %v4127_v49 }
 0x199   : > { %v2266_v52 = vpop.f32.mrf.mxu3  ;;  %v1290_v38 = vpop.f32.mrf.mxu1 }
 0x19a   : > { %v2318_v4 = vadd.f32 %v2266_v52, %v1596_v2  ;;  %v1291_v32 = vadd.f32 %v1290_v38, %v3883_v34  ;;  %v2778_v52 = vadd.f32 %v4121_v57, %v4127_v49 }
 0x19c   : > { %2350 = vst [vmem:[%s3949_s17 + $0x98] sm:$0xff] %v2318_v4  ;;  %v2381_v40 = vadd.f32 %v2380_v61, %v2318_v4  ;;  %v2420_v7 = vmul.f32 %v2318_v4, %v2318_v4  ;;  %v1547_v3 = vpop.f32.mrf.mxu2 }
 0x19d   : > { %v1597_v0 = vadd.f32 %v1547_v3, %v1289_v47  ;;  %v4133_v53 = vpop.f32.mrf.mxu0 }
 0x19e   : > { %v2451_v12 = vadd.f32 %v2450_v25, %v2420_v7  ;;  %2748 = vst [vmem:[%s3908_s13 + $0xb0] sm:$0xff] %v4133_v53  ;;  %v2818_v38 = vmul.f32 %v4133_v53, %v4133_v53  ;;  %v2779_v47 = vadd.f32 %v2778_v52, %v4133_v53 }
 0x1a1   : > { %v2269_v35 = vpop.f32.mrf.mxu3  ;;  %v1293_v5 = vpop.f32.mrf.mxu1 }
 0x1a2   : > { %v2319_v60 = vadd.f32 %v2269_v35, %v1597_v0  ;;  %v1294_v16 = vadd.f32 %v1293_v5, %v3901_v28 }
 0x1a4   : > { %2351 = vst [vmem:[%s3949_s17 + $0xa0] sm:$0xff] %v2319_v60  ;;  %v4138_v13 = vadd.f32 %v2381_v40, %v2319_v60  ;;  %v2421_v62 = vmul.f32 %v2319_v60, %v2319_v60  ;;  %v1549_v56 = vpop.f32.mrf.mxu2 }
 0x1a5   : > { %v1598_v31 = vadd.f32 %v1549_v56, %v1291_v32  ;;  %v2703_v37 = vpop.f32.mrf.mxu0 }
 0x1a6   : > { %v4141_v18 = vadd.f32 %v2451_v12, %v2421_v62  ;;  %2749 = vst [vmem:[%s3908_s13 + $0xb8] sm:$0xff] %v2703_v37  ;;  %v2819_v3 = vmul.f32 %v2703_v37, %v2703_v37  ;;  %v2780_v5 = vadd.f32 %v2779_v47, %v2703_v37 }
 0x1a9   : > { %v2271_v42 = vpop.f32.mrf.mxu3  ;;  %v1295_v33 = vpop.f32.mrf.mxu1 }
 0x1aa   : > { %v4144_v30 = vadd.f32 %v2271_v42, %v1598_v31  ;;  %v1296_v45 = vadd.f32 %v1295_v33, %v3924_v54 }
 0x1ac   : > { %2352 = vst [vmem:[%s3949_s17 + $0xa8] sm:$0xff] %v4144_v30  ;;  %v1552_v23 = vpop.f32.mrf.mxu2 }
 0x1ad   : > { %v1599_v43 = vadd.f32 %v1552_v23, %v1294_v16  ;;  %v2706_v34 = vpop.f32.mrf.mxu0 }
 0x1ae   : > { %2750 = vst [vmem:[%s3908_s13 + $0xc0] sm:$0xff] %v2706_v34  ;;  %v2820_v57 = vmul.f32 %v2706_v34, %v2706_v34  ;;  %v2781_v60 = vadd.f32 %v2780_v5, %v2706_v34 }
 0x1b1   : > { %v2274_v21 = vpop.f32.mrf.mxu3  ;;  %v1298_v36 = vpop.f32.mrf.mxu1 }
 0x1b2   : > { %v4150_v39 = vadd.f32 %v2274_v21, %v1599_v43  ;;  %v1299_v9 = vadd.f32 %v1298_v36, %v3805_v51 }
 0x1b4   : > { %2353 = vst [vmem:[%s3949_s17 + $0xb0] sm:$0xff] %v4150_v39  ;;  %v1554_v11 = vpop.f32.mrf.mxu2 }
 0x1b5   : > { %v1600_v22 = vadd.f32 %v1554_v11, %v1296_v45  ;;  %v2708_v10 = vpop.f32.mrf.mxu0 }
 0x1b6   : > { %2751 = vst [vmem:[%s3908_s13 + $0xc8] sm:$0xff] %v2708_v10  ;;  %v2821_v62 = vmul.f32 %v2708_v10, %v2708_v10  ;;  %v2782_v31 = vadd.f32 %v2781_v60, %v2708_v10 }
 0x1b9   : > { %v2276_v28 = vpop.f32.mrf.mxu3  ;;  %v1300_v55 = vpop.f32.mrf.mxu1 }
 0x1ba   : > { %v4156_v50 = vadd.f32 %v2276_v28, %v1600_v22  ;;  %v1301_v1 = vadd.f32 %v1300_v55, %v3824_v26  ;;  %v2817_v26 = vmul.f32 %v4127_v49, %v4127_v49 }
 0x1bc   : > { %2354 = vst [vmem:[%s3949_s17 + $0xb8] sm:$0xff] %v4156_v50  ;;  %v1557_v48 = vpop.f32.mrf.mxu2  ;;  %v2848_v7 = vadd.f32 %v4123_v19, %v2817_v26 }
 0x1bd   : > { %v1601_v17 = vadd.f32 %v1557_v48, %v1299_v9  ;;  %v2711_v44 = vpop.f32.mrf.mxu0 }
 0x1be   : > { %2752 = vst [vmem:[%s3908_s13 + $0xd0] sm:$0xff] %v2711_v44  ;;  %v2849_v35 = vadd.f32 %v2848_v7, %v2818_v38  ;;  %v2822_v19 = vmul.f32 %v2711_v44, %v2711_v44  ;;  %v2783_v16 = vadd.f32 %v2782_v31, %v2711_v44 }
 0x1c0   : > { %v2850_v49 = vadd.f32 %v2849_v35, %v2819_v3 }
 0x1c1   : > { %v2279_v54 = vpop.f32.mrf.mxu3  ;;  %v1303_v6 = vpop.f32.mrf.mxu1 }
 0x1c2   : > { %v4162_v27 = vadd.f32 %v2279_v54, %v1601_v17  ;;  %v1304_v61 = vadd.f32 %v1303_v6, %v3839_v59  ;;  %v4265_v17 = vld [vmem:[#allocation2_spill] sm:$0xff] }
 0x1c4   : > { %2355 = vst [vmem:[%s3949_s17 + $0xc0] sm:$0xff] %v4162_v27  ;;  %v1559_v46 = vpop.f32.mrf.mxu2 }
 0x1c5   : > { %v1602_v15 = vadd.f32 %v1559_v46, %v1301_v1  ;;  %v2713_v63 = vpop.f32.mrf.mxu0  ;;  %v2422_v46 = vmul.f32 %v4144_v30, %v4144_v30 }
 0x1c6   : > { %2753 = vst [vmem:[%s3908_s13 + $0xd8] sm:$0xff] %v2713_v63  ;;  %v2823_v37 = vmul.f32 %v2713_v63, %v2713_v63  ;;  %v2784_v36 = vadd.f32 %v2783_v16, %v2713_v63 }
 0x1c7   : > { %v2453_v38 = vadd.f32 %v4141_v18, %v2422_v46 }
 0x1c9   : > { %v2281_v51 = vpop.f32.mrf.mxu3  ;;  %v1305_v8 = vpop.f32.mrf.mxu1 }
 0x1ca   : > { %v4168_v20 = vadd.f32 %v2281_v51, %v1602_v15  ;;  %v1306_v59 = vadd.f32 %v1305_v8, %v3857_v29  ;;  %v2851_v29 = vadd.f32 %v2850_v49, %v2820_v57 }
 0x1cc   : > { %2356 = vst [vmem:[%s3949_s17 + $0xc8] sm:$0xff] %v4168_v20  ;;  %v1562_v58 = vpop.f32.mrf.mxu2  ;;  %v2852_v33 = vadd.f32 %v2851_v29, %v2821_v62  ;;  %v2426_v49 = vmul.f32 %v4168_v20, %v4168_v20 }
 0x1cd   : > { %v1603_v41 = vadd.f32 %v1562_v58, %v1304_v61  ;;  %v2716_v14 = vpop.f32.mrf.mxu0 }
 0x1ce   : > { %2754 = vst [vmem:[%s3908_s13 + $0xe0] sm:$0xff] %v2716_v14  ;;  %v2853_v21 = vadd.f32 %v2852_v33, %v2822_v19  ;;  %v2824_v45 = vmul.f32 %v2716_v14, %v2716_v14  ;;  %v2785_v22 = vadd.f32 %v2784_v36, %v2716_v14  ;;  %v2423_v14 = vmul.f32 %v4150_v39, %v4150_v39 }
 0x1d0   : > { %v2854_v11 = vadd.f32 %v2853_v21, %v2823_v37  ;;  %v2454_v3 = vadd.f32 %v2453_v38, %v2423_v14 }
 0x1d1   : > { %v2284_v25 = vpop.f32.mrf.mxu3  ;;  %v1308_v4 = vpop.f32.mrf.mxu1 }
 0x1d2   : > { %v4176_v2 = vadd.f32 %v2284_v25, %v1603_v41  ;;  %v1309_v53 = vadd.f32 %v1308_v4, %v3873_v24  ;;  %v2855_v24 = vadd.f32 %v2854_v11, %v2824_v45  ;;  %v2383_v41 = vadd.f32 %v4138_v13, %v4144_v30  ;;  %v4266_v30 = vld [vmem:[#allocation3_spill] sm:$0xff]  ;;  %v4267_v45 = vld [vmem:[#allocation4_spill] sm:$0xff] }
 0x1d3   : > { %v2425_v13 = vmul.f32 %v4162_v27, %v4162_v27 }
 0x1d4   : > { %2357 = vst [vmem:[%s3949_s17 + $0xd0] sm:$0xff] %v4176_v2  ;;  %v1564_v40 = vpop.f32.mrf.mxu2  ;;  %v2384_v4 = vadd.f32 %v2383_v41, %v4150_v39  ;;  %v2427_v31 = vmul.f32 %v4176_v2, %v4176_v2 }
 0x1d5   : > { %v1604_v12 = vadd.f32 %v1564_v40, %v1306_v59  ;;  %v2718_v0 = vpop.f32.mrf.mxu0  ;;  %v2424_v59 = vmul.f32 %v4156_v50, %v4156_v50 }
 0x1d6   : > { %2755 = vst [vmem:[%s3908_s13 + $0xe8] sm:$0xff] %v2718_v0  ;;  %v2825_v28 = vmul.f32 %v2718_v0, %v2718_v0  ;;  %v2786_v9 = vadd.f32 %v2785_v22, %v2718_v0 }
 0x1d7   : > { %v2455_v57 = vadd.f32 %v2454_v3, %v2424_v59 }
 0x1d8   : > { %v2856_v6 = vadd.f32 %v2855_v24, %v2825_v28 }
 0x1d9   : > { %v2286_v32 = vpop.f32.mrf.mxu3  ;;  %v1310_v23 = vpop.f32.mrf.mxu1 }
 0x1da   : > { %v4188_v56 = vadd.f32 %v2286_v32, %v1604_v12  ;;  %v1311_v44 = vadd.f32 %v1310_v23, %v4265_v17  ;;  %v2385_v12 = vadd.f32 %v2384_v4, %v4156_v50  ;;  %v2456_v50 = vadd.f32 %v2455_v57, %v2425_v13 }
 0x1dc   : > { %2358 = vst [vmem:[%s3949_s17 + $0xd8] sm:$0xff] %v4188_v56  ;;  %v1567_v42 = vpop.f32.mrf.mxu2  ;;  %v2386_v39 = vadd.f32 %v2385_v12, %v4162_v27  ;;  %v2457_v27 = vadd.f32 %v2456_v50, %v2426_v49  ;;  %v2428_v37 = vmul.f32 %v4188_v56, %v4188_v56 }
 0x1dd   : > { %v1605_v43 = vadd.f32 %v1567_v42, %v1309_v53  ;;  %v2721_v34 = vpop.f32.mrf.mxu0 }
 0x1de   : > { %2756 = vst [vmem:[%s3908_s13 + $0xf0] sm:$0xff] %v2721_v34  ;;  %v2826_v48 = vmul.f32 %v2721_v34, %v2721_v34  ;;  %v2787_v1 = vadd.f32 %v2786_v9, %v2721_v34  ;;  %v2387_v29 = vadd.f32 %v2386_v39, %v4168_v20  ;;  %v2458_v34 = vadd.f32 %v2457_v27, %v2427_v31 }
 0x1e0   : > { %v2857_v8 = vadd.f32 %v2856_v6, %v2826_v48  ;;  %v2388_v16 = vadd.f32 %v2387_v29, %v4176_v2 }
 0x1e1   : > { %v2289_v10 = vpop.f32.mrf.mxu3  ;;  %v1313_v51 = vpop.f32.mrf.mxu1 }
 0x1e2   : > { %v4194_v55 = vadd.f32 %v2289_v10, %v1605_v43  ;;  %v1314_v0 = vadd.f32 %v1313_v51, %v4266_v30  ;;  %v2389_v21 = vadd.f32 %v2388_v16, %v4188_v56  ;;  %v2459_v10 = vadd.f32 %v2458_v34, %v2428_v37 }
 0x1e4   : > { %2359 = vst [vmem:[%s3949_s17 + $0xe0] sm:$0xff] %v4194_v55  ;;  %v1569_v54 = vpop.f32.mrf.mxu2  ;;  %v2429_v36 = vmul.f32 %v4194_v55, %v4194_v55  ;;  %v2390_v28 = vadd.f32 %v2389_v21, %v4194_v55 }
 0x1e5   : > { %v1606_v15 = vadd.f32 %v1569_v54, %v1311_v44  ;;  %v2723_v63 = vpop.f32.mrf.mxu0 }
 0x1e6   : > { %2757 = vst [vmem:[%s3908_s13 + $0xf8] sm:$0xff] %v2723_v63  ;;  %v2788_v61 = vadd.f32 %v2787_v1, %v2723_v63  ;;  %v2827_v58 = vmul.f32 %v2723_v63, %v2723_v63  ;;  %v2460_v56 = vadd.f32 %v2459_v10, %v2429_v36 }
 0x1e8   : > { %v2789_v25 = vrot.slane %v2788_v61, 4  ;;  %v2858_v52 = vadd.f32 %v2857_v8, %v2827_v58 }
 0x1e9   : > { %v2291_v26 = vpop.f32.mrf.mxu3  ;;  %v1315_v53 = vpop.f32.mrf.mxu1 }
 0x1ea   : > { %v2328_v40 = vadd.f32 %v2291_v26, %v1606_v15  ;;  %v2790_v7 = vadd.f32 %v2789_v25, %v2788_v61  ;;  %v2859_v47 = vrot.slane %v2858_v52, 4  ;;  %v1316_v11 = vadd.f32 %v1315_v53, %v4267_v45 }
 0x1ec   : > { %2360 = vst [vmem:[%s3949_s17 + $0xe8] sm:$0xff] %v2328_v40  ;;  %v1572_v35 = vpop.f32.mrf.mxu2  ;;  %v2791_v5 = vrot.slane %v2790_v7, 2  ;;  %v2860_v18 = vadd.f32 %v2859_v47, %v2858_v52  ;;  %v2430_v24 = vmul.f32 %v2328_v40, %v2328_v40  ;;  %v2391_v48 = vadd.f32 %v2390_v28, %v2328_v40 }
 0x1ed   : > { %v1607_v60 = vadd.f32 %v1572_v35, %v1314_v0 }
 0x1ee   : > { %v2792_v62 = vadd.f32 %v2791_v5, %v2790_v7  ;;  %v2861_v32 = vrot.slane %v2860_v18, 2  ;;  %v2461_v54 = vadd.f32 %v2460_v56, %v2430_v24 }
 0x1f0   : > { %v2793_v42 = vrot.slane %v2792_v62, 1  ;;  %v2862_v33 = vadd.f32 %v2861_v32, %v2860_v18 }
 0x1f1   : > { %v2294_v19 = vpop.f32.mrf.mxu3 }
 0x1f2   : > { %v2329_v23 = vadd.f32 %v2294_v19, %v1607_v60  ;;  %v2794_v20 = vadd.f32 %v2793_v42, %v2792_v62  ;;  %v2863_v43 = vrot.slane %v2862_v33, 1 }
 0x1f4   : > { %2361 = vst [vmem:[%s3949_s17 + $0xf0] sm:$0xff] %v2329_v23  ;;  %v1574_v2 = vpop.f32.mrf.mxu2  ;;  %v2864_v22 = vadd.f32 %v2863_v43, %v2862_v33  ;;  %v2431_v17 = vmul.f32 %v2329_v23, %v2329_v23  ;;  %v2392_v6 = vadd.f32 %v2391_v48, %v2329_v23 }
 0x1f5   : > { %2795 = vst [vmem:[%s394_s19] sm:$0x1] %v2794_v20  ;;  %v1608_v9 = vadd.f32 %v1574_v2, %v1316_v11 }
 0x1f6   : > { %2865 = vst [vmem:[%s397_s22] sm:$0x1] %v2864_v22  ;;  %v2462_v46 = vadd.f32 %v2461_v54, %v2431_v17 }
 0x1f9   : > { %v2296_v44 = vpop.f32.mrf.mxu3 }
 0x1fa   : > { %v2330_v1 = vadd.f32 %v2296_v44, %v1608_v9 }
 0x1fc   : > { %2362 = vst [vmem:[%s3949_s17 + $0xf8] sm:$0xff] %v2330_v1  ;;  %v2393_v15 = vadd.f32 %v2392_v6, %v2330_v1  ;;  %v2432_v63 = vmul.f32 %v2330_v1, %v2330_v1 }
 0x1fe   : > { %v2394_v51 = vrot.slane %v2393_v15, 4  ;;  %v2463_v8 = vadd.f32 %v2462_v46, %v2432_v63 }
 0x200   : > { %v2395_v61 = vadd.f32 %v2394_v51, %v2393_v15  ;;  %v2464_v55 = vrot.slane %v2463_v8, 4 }
 0x202   : > { %v2396_v58 = vrot.slane %v2395_v61, 2  ;;  %v2465_v41 = vadd.f32 %v2464_v55, %v2463_v8 }
 0x204   : > { %v2397_v14 = vadd.f32 %v2396_v58, %v2395_v61  ;;  %v2466_v26 = vrot.slane %v2465_v41, 2 }
 0x206   : > { %v2398_v25 = vrot.slane %v2397_v14, 1  ;;  %v2467_v52 = vadd.f32 %v2466_v26, %v2465_v41 }
 0x208   : > { %v2399_v38 = vadd.f32 %v2398_v25, %v2397_v14  ;;  %v2468_v4 = vrot.slane %v2467_v52, 1 }
 0x20a   : > { %2400 = vst [vmem:[%s388_s25] sm:$0x1] %v2399_v38  ;;  %v2469_v59 = vadd.f32 %v2468_v4, %v2467_v52 }
 0x20c   : > { %2470 = vst [vmem:[%s391_s28] sm:$0x1] %v2469_v59 }
 0x20d PF: > { %s20_s30 = sadd.s32 1, %s3426_s30  }
 0x20e   : > { %p17_p4 = scmp.ge.s32.totalorder %s20_s30, 4  }
 0x210   :  { %19 = sbr.rel (!%p17_p4) target bundleno = 1 (0x1), region = 133 }

// kernel: reduction_cell_forward.13
= control target key start
LH: loop header
LB: loop body
LE: loop exit
PB: predicated region body
PF: predicated region fallthrough
CT: control target
= control target key end

     0   :  { %s610_s15 = smov 0   ;;  %s880_s0 = inlined_call_operand.vmem [shape: f32[2,256,128], index: 0, kind: input, shape index: {}]   ;;  %s881_s1 = inlined_call_operand.vmem [shape: f32[2,256,128], index: 1, kind: input, shape index: {}]   ;;  %s882_s2 = inlined_call_operand.vmem [shape: f32[2,128], index: 2, kind: input, shape index: {}]   ;;  %s883_s3 = inlined_call_operand.vmem [shape: f32[2,128], index: 3, kind: input, shape index: {}]   ;;  %s884_s4 = inlined_call_operand.vmem [shape: f32[2,256,128], index: 4, kind: output, shape index: {}]  }
   0x1 LB: > { %s549_s16 = sadd.s32 4294967295, %s583_s15   ;;  %p553_p0 = scmp.ge.s32.totalorder %s583_s15, 1  ;;  %s583_s15 = sphi %s610_s15, %s14_s15  }
   0x2   : > { %p172_p1 = scmp.lt.s32.totalorder %s583_s15, 3 }
   0x4   : > { %p173_p2 = pnand %p553_p0, %p172_p1 }
   0x5   : > { %p203_p3 = scmp.lt.s32.totalorder (!%p173_p2), %s549_s16, 1 }
   0x6   : > { %176 = sbr.rel (%p173_p2) target bundleno = 60 (0x3c), region = 36 }
   0xb   : > { %s886_s16 = smov (!%p203_p3, %s549_s16), 1  ;;  %v621_v0 = vld [vmem:[%s882_s2] ss:$0 sm:$0xff]  ;;  %v641_v2 = vld [vmem:[%s882_s2 + $0x1] ss:$0 sm:$0xff] }
   0xc   : > { %v626_v1 = vld [vmem:[%s883_s3] ss:$0 sm:$0xff]  ;;  %s562_s21 = sshll.u32 %s886_s16, 8  ;;  %v646_v3 = vld [vmem:[%s883_s3 + $0x1] ss:$0 sm:$0xff] }
   0xd   : > { %s631_s24 = scalar_lea.vmem %s880_s0, %s562_s21  ;;  %s636_s27 = scalar_lea.vmem %s881_s1, %s562_s21 }
   0xe   : > { %v218_v4 = vld [vmem:[%s631_s24] sm:$0xff]  ;;  %v219_v6 = vld [vmem:[%s631_s24 + $0x8] sm:$0xff]  ;;  %v220_v11 = vld [vmem:[%s631_s24 + $0x10] sm:$0xff]  ;;  %s672_s8 = scalar_lea.vmem %s884_s4, %s562_s21 }
   0xf   : > { %v318_v5 = vld [vmem:[%s636_s27] sm:$0xff]  ;;  %v252_v7 = vmul.f32 %v621_v0, %v218_v4  ;;  %v253_v9 = vmul.f32 %v621_v0, %v219_v6  ;;  %v319_v10 = vld [vmem:[%s636_s27 + $0x8] sm:$0xff]  ;;  %v320_v12 = vld [vmem:[%s636_s27 + $0x10] sm:$0xff]  ;;  %v254_v14 = vmul.f32 %v621_v0, %v220_v11 }
  0x10   : > { %v352_v8 = vmul.f32 %v626_v1, %v318_v5  ;;  %v353_v13 = vmul.f32 %v626_v1, %v319_v10  ;;  %v354_v15 = vmul.f32 %v626_v1, %v320_v12  ;;  %v221_v16 = vld [vmem:[%s631_s24 + $0x18] sm:$0xff]  ;;  %v222_v18 = vld [vmem:[%s631_s24 + $0x20] sm:$0xff]  ;;  %v223_v24 = vld [vmem:[%s631_s24 + $0x28] sm:$0xff] }
  0x11   : > { %v321_v17 = vld [vmem:[%s636_s27 + $0x18] sm:$0xff]  ;;  %v286_v19 = vadd.f32 %v641_v2, %v252_v7  ;;  %v287_v21 = vadd.f32 %v641_v2, %v253_v9  ;;  %v255_v22 = vmul.f32 %v621_v0, %v221_v16  ;;  %v322_v23 = vld [vmem:[%s636_s27 + $0x20] sm:$0xff]  ;;  %v288_v26 = vadd.f32 %v641_v2, %v254_v14  ;;  %v323_v29 = vld [vmem:[%s636_s27 + $0x28] sm:$0xff] }
  0x12   : > { %v386_v20 = vadd.f32 %v646_v3, %v352_v8  ;;  %v387_v25 = vadd.f32 %v646_v3, %v353_v13  ;;  %v388_v27 = vadd.f32 %v646_v3, %v354_v15  ;;  %v355_v28 = vmul.f32 %v626_v1, %v321_v17  ;;  %v224_v30 = vld [vmem:[%s631_s24 + $0x30] sm:$0xff]  ;;  %v225_v36 = vld [vmem:[%s631_s24 + $0x38] sm:$0xff]  ;;  %v226_v46 = vld [vmem:[%s631_s24 + $0x40] sm:$0xff] }
  0x13   : > { %v289_v32 = vadd.f32 %v641_v2, %v255_v22  ;;  %v256_v33 = vmul.f32 %v621_v0, %v222_v18  ;;  %v356_v34 = vmul.f32 %v626_v1, %v322_v23  ;;  %v324_v35 = vld [vmem:[%s636_s27 + $0x30] sm:$0xff]  ;;  %v257_v40 = vmul.f32 %v621_v0, %v223_v24  ;;  %v325_v41 = vld [vmem:[%s636_s27 + $0x38] sm:$0xff]  ;;  %v326_v47 = vld [vmem:[%s636_s27 + $0x40] sm:$0xff] }
  0x14   : > { %v418_v31 = vadd.f32 %v386_v20, %v286_v19  ;;  %v419_v37 = vadd.f32 %v387_v25, %v287_v21  ;;  %v420_v38 = vadd.f32 %v388_v27, %v288_v26  ;;  %v389_v39 = vadd.f32 %v646_v3, %v355_v28  ;;  %v227_v52 = vld [vmem:[%s631_s24 + $0x48] sm:$0xff]  ;;  %v228_v58 = vld [vmem:[%s631_s24 + $0x50] sm:$0xff]  ;;  %v229_v8 = vld [vmem:[%s631_s24 + $0x58] sm:$0xff] }
  0x15   : > { %v290_v42 = vadd.f32 %v641_v2, %v256_v33  ;;  %v390_v43 = vadd.f32 %v646_v3, %v356_v34  ;;  %v357_v44 = vmul.f32 %v626_v1, %v323_v29  ;;  %v258_v45 = vmul.f32 %v621_v0, %v224_v30  ;;  %v327_v53 = vld [vmem:[%s636_s27 + $0x48] sm:$0xff]  ;;  %v328_v63 = vld [vmem:[%s636_s27 + $0x50] sm:$0xff]  ;;  %v329_v9 = vld [vmem:[%s636_s27 + $0x58] sm:$0xff] }
  0x16   : > { %450 = vst [vmem:[%s672_s8] sm:$0xff] %v418_v31  ;;  %v421_v48 = vadd.f32 %v389_v39, %v289_v32  ;;  %v291_v49 = vadd.f32 %v641_v2, %v257_v40  ;;  %v358_v50 = vmul.f32 %v626_v1, %v324_v35  ;;  %v259_v51 = vmul.f32 %v621_v0, %v225_v36  ;;  %v230_v14 = vld [vmem:[%s631_s24 + $0x60] sm:$0xff]  ;;  %v231_v20 = vld [vmem:[%s631_s24 + $0x68] sm:$0xff]  ;;  %v232_v26 = vld [vmem:[%s631_s24 + $0x70] sm:$0xff] }
  0x17   : > { %451 = vst [vmem:[%s672_s8 + $0x8] sm:$0xff] %v419_v37  ;;  %v422_v54 = vadd.f32 %v390_v43, %v290_v42  ;;  %v391_v55 = vadd.f32 %v646_v3, %v357_v44  ;;  %v292_v56 = vadd.f32 %v641_v2, %v258_v45  ;;  %v359_v57 = vmul.f32 %v626_v1, %v325_v41  ;;  %v330_v15 = vld [vmem:[%s636_s27 + $0x60] sm:$0xff]  ;;  %v331_v21 = vld [vmem:[%s636_s27 + $0x68] sm:$0xff]  ;;  %v332_v31 = vld [vmem:[%s636_s27 + $0x70] sm:$0xff] }
  0x18   : > { %452 = vst [vmem:[%s672_s8 + $0x10] sm:$0xff] %v420_v38  ;;  %v392_v59 = vadd.f32 %v646_v3, %v358_v50  ;;  %v293_v60 = vadd.f32 %v641_v2, %v259_v51  ;;  %v260_v61 = vmul.f32 %v621_v0, %v226_v46  ;;  %v360_v62 = vmul.f32 %v626_v1, %v326_v47  ;;  %v233_v36 = vld [vmem:[%s631_s24 + $0x78] sm:$0xff]  ;;  %v234_v42 = vld [vmem:[%s631_s24 + $0x80] sm:$0xff] }
  0x19   : > { %453 = vst [vmem:[%s672_s8 + $0x18] sm:$0xff] %v421_v48  ;;  %v423_v4 = vadd.f32 %v391_v55, %v291_v49  ;;  %v393_v5 = vadd.f32 %v646_v3, %v359_v57  ;;  %v261_v6 = vmul.f32 %v621_v0, %v227_v52  ;;  %v361_v7 = vmul.f32 %v626_v1, %v327_v53  ;;  %v333_v37 = vld [vmem:[%s636_s27 + $0x78] sm:$0xff]  ;;  %v334_v43 = vld [vmem:[%s636_s27 + $0x80] sm:$0xff]  ;;  %v235_v48 = vld [vmem:[%s631_s24 + $0x88] sm:$0xff] }
  0x1a   : > { %454 = vst [vmem:[%s672_s8 + $0x20] sm:$0xff] %v422_v54  ;;  %v424_v10 = vadd.f32 %v392_v59, %v292_v56  ;;  %v294_v11 = vadd.f32 %v641_v2, %v260_v61  ;;  %v394_v12 = vadd.f32 %v646_v3, %v360_v62  ;;  %v262_v13 = vmul.f32 %v621_v0, %v228_v58  ;;  %v335_v49 = vld [vmem:[%s636_s27 + $0x88] sm:$0xff]  ;;  %v236_v54 = vld [vmem:[%s631_s24 + $0x90] sm:$0xff] }
  0x1b   : > { %455 = vst [vmem:[%s672_s8 + $0x28] sm:$0xff] %v423_v4  ;;  %v425_v16 = vadd.f32 %v393_v5, %v293_v60  ;;  %v295_v17 = vadd.f32 %v641_v2, %v261_v6  ;;  %v395_v18 = vadd.f32 %v646_v3, %v361_v7  ;;  %v362_v19 = vmul.f32 %v626_v1, %v328_v63  ;;  %v336_v59 = vld [vmem:[%s636_s27 + $0x90] sm:$0xff]  ;;  %v237_v4 = vld [vmem:[%s631_s24 + $0x98] sm:$0xff] }
  0x1c   : > { %456 = vst [vmem:[%s672_s8 + $0x30] sm:$0xff] %v424_v10  ;;  %v426_v22 = vadd.f32 %v394_v12, %v294_v11  ;;  %v296_v23 = vadd.f32 %v641_v2, %v262_v13  ;;  %v263_v24 = vmul.f32 %v621_v0, %v229_v8  ;;  %v363_v25 = vmul.f32 %v626_v1, %v329_v9  ;;  %v337_v5 = vld [vmem:[%s636_s27 + $0x98] sm:$0xff]  ;;  %v238_v10 = vld [vmem:[%s631_s24 + $0xa0] sm:$0xff] }
  0x1d   : > { %457 = vst [vmem:[%s672_s8 + $0x38] sm:$0xff] %v425_v16  ;;  %v427_v27 = vadd.f32 %v395_v18, %v295_v17  ;;  %v396_v28 = vadd.f32 %v646_v3, %v362_v19  ;;  %v264_v29 = vmul.f32 %v621_v0, %v230_v14  ;;  %v364_v30 = vmul.f32 %v626_v1, %v330_v15  ;;  %v338_v11 = vld [vmem:[%s636_s27 + $0xa0] sm:$0xff]  ;;  %v239_v16 = vld [vmem:[%s631_s24 + $0xa8] sm:$0xff] }
  0x1e   : > { %458 = vst [vmem:[%s672_s8 + $0x40] sm:$0xff] %v426_v22  ;;  %v297_v32 = vadd.f32 %v641_v2, %v263_v24  ;;  %v397_v33 = vadd.f32 %v646_v3, %v363_v25  ;;  %v265_v34 = vmul.f32 %v621_v0, %v231_v20  ;;  %v365_v35 = vmul.f32 %v626_v1, %v331_v21  ;;  %v339_v17 = vld [vmem:[%s636_s27 + $0xa8] sm:$0xff]  ;;  %v240_v22 = vld [vmem:[%s631_s24 + $0xb0] sm:$0xff] }
  0x1f   : > { %459 = vst [vmem:[%s672_s8 + $0x48] sm:$0xff] %v427_v27  ;;  %v428_v38 = vadd.f32 %v396_v28, %v296_v23  ;;  %v298_v39 = vadd.f32 %v641_v2, %v264_v29  ;;  %v398_v40 = vadd.f32 %v646_v3, %v364_v30  ;;  %v266_v41 = vmul.f32 %v621_v0, %v232_v26  ;;  %v340_v27 = vld [vmem:[%s636_s27 + $0xb0] sm:$0xff] }
  0x20   : > { %v429_v44 = vadd.f32 %v397_v33, %v297_v32  ;;  %v299_v45 = vadd.f32 %v641_v2, %v265_v34  ;;  %v399_v46 = vadd.f32 %v646_v3, %v365_v35  ;;  %v366_v47 = vmul.f32 %v626_v1, %v332_v31  ;;  %v241_v32 = vld [vmem:[%s631_s24 + $0xb8] sm:$0xff] }
  0x21   : > { %460 = vst [vmem:[%s672_s8 + $0x50] sm:$0xff] %v428_v38  ;;  %v430_v50 = vadd.f32 %v398_v40, %v298_v39  ;;  %v300_v51 = vadd.f32 %v641_v2, %v266_v41  ;;  %v267_v52 = vmul.f32 %v621_v0, %v233_v36  ;;  %v367_v53 = vmul.f32 %v626_v1, %v333_v37  ;;  %v341_v33 = vld [vmem:[%s636_s27 + $0xb8] sm:$0xff]  ;;  %v242_v38 = vld [vmem:[%s631_s24 + $0xc0] sm:$0xff] }
  0x22   : > { %461 = vst [vmem:[%s672_s8 + $0x58] sm:$0xff] %v429_v44  ;;  %v431_v55 = vadd.f32 %v399_v46, %v299_v45  ;;  %v400_v56 = vadd.f32 %v646_v3, %v366_v47  ;;  %v268_v57 = vmul.f32 %v621_v0, %v234_v42  ;;  %v368_v58 = vmul.f32 %v626_v1, %v334_v43  ;;  %v342_v39 = vld [vmem:[%s636_s27 + $0xc0] sm:$0xff]  ;;  %v243_v44 = vld [vmem:[%s631_s24 + $0xc8] sm:$0xff] }
  0x23   : > { %462 = vst [vmem:[%s672_s8 + $0x60] sm:$0xff] %v430_v50  ;;  %v301_v60 = vadd.f32 %v641_v2, %v267_v52  ;;  %v401_v61 = vadd.f32 %v646_v3, %v367_v53  ;;  %v269_v62 = vmul.f32 %v621_v0, %v235_v48  ;;  %v369_v63 = vmul.f32 %v626_v1, %v335_v49  ;;  %v343_v45 = vld [vmem:[%s636_s27 + $0xc8] sm:$0xff]  ;;  %v244_v50 = vld [vmem:[%s631_s24 + $0xd0] sm:$0xff] }
  0x24   : > { %463 = vst [vmem:[%s672_s8 + $0x68] sm:$0xff] %v431_v55  ;;  %v432_v6 = vadd.f32 %v400_v56, %v300_v51  ;;  %v302_v7 = vadd.f32 %v641_v2, %v268_v57  ;;  %v402_v8 = vadd.f32 %v646_v3, %v368_v58  ;;  %v270_v9 = vmul.f32 %v621_v0, %v236_v54  ;;  %v344_v55 = vld [vmem:[%s636_s27 + $0xd0] sm:$0xff] }
  0x25   : > { %v433_v12 = vadd.f32 %v401_v61, %v301_v60  ;;  %v303_v13 = vadd.f32 %v641_v2, %v269_v62  ;;  %v403_v14 = vadd.f32 %v646_v3, %v369_v63  ;;  %v370_v15 = vmul.f32 %v626_v1, %v336_v59  ;;  %v245_v60 = vld [vmem:[%s631_s24 + $0xd8] sm:$0xff] }
  0x26   : > { %464 = vst [vmem:[%s672_s8 + $0x70] sm:$0xff] %v432_v6  ;;  %v434_v18 = vadd.f32 %v402_v8, %v302_v7  ;;  %v304_v19 = vadd.f32 %v641_v2, %v270_v9  ;;  %v271_v20 = vmul.f32 %v621_v0, %v237_v4  ;;  %v371_v21 = vmul.f32 %v626_v1, %v337_v5  ;;  %v345_v61 = vld [vmem:[%s636_s27 + $0xd8] sm:$0xff]  ;;  %v246_v6 = vld [vmem:[%s631_s24 + $0xe0] sm:$0xff] }
  0x27   : > { %465 = vst [vmem:[%s672_s8 + $0x78] sm:$0xff] %v433_v12  ;;  %v435_v23 = vadd.f32 %v403_v14, %v303_v13  ;;  %v404_v24 = vadd.f32 %v646_v3, %v370_v15  ;;  %v272_v25 = vmul.f32 %v621_v0, %v238_v10  ;;  %v372_v26 = vmul.f32 %v626_v1, %v338_v11  ;;  %v346_v7 = vld [vmem:[%s636_s27 + $0xe0] sm:$0xff]  ;;  %v247_v12 = vld [vmem:[%s631_s24 + $0xe8] sm:$0xff] }
  0x28   : > { %466 = vst [vmem:[%s672_s8 + $0x80] sm:$0xff] %v434_v18  ;;  %v305_v28 = vadd.f32 %v641_v2, %v271_v20  ;;  %v405_v29 = vadd.f32 %v646_v3, %v371_v21  ;;  %v273_v30 = vmul.f32 %v621_v0, %v239_v16  ;;  %v373_v31 = vmul.f32 %v626_v1, %v339_v17  ;;  %v347_v13 = vld [vmem:[%s636_s27 + $0xe8] sm:$0xff]  ;;  %v248_v18 = vld [vmem:[%s631_s24 + $0xf0] sm:$0xff] }
  0x29   : > { %467 = vst [vmem:[%s672_s8 + $0x88] sm:$0xff] %v435_v23  ;;  %v436_v34 = vadd.f32 %v404_v24, %v304_v19  ;;  %v306_v35 = vadd.f32 %v641_v2, %v272_v25  ;;  %v406_v36 = vadd.f32 %v646_v3, %v372_v26  ;;  %v274_v37 = vmul.f32 %v621_v0, %v240_v22  ;;  %v348_v23 = vld [vmem:[%s636_s27 + $0xf0] sm:$0xff] }
  0x2a   : > { %v437_v40 = vadd.f32 %v405_v29, %v305_v28  ;;  %v307_v41 = vadd.f32 %v641_v2, %v273_v30  ;;  %v407_v42 = vadd.f32 %v646_v3, %v373_v31  ;;  %v374_v43 = vmul.f32 %v626_v1, %v340_v27  ;;  %v249_v28 = vld [vmem:[%s631_s24 + $0xf8] sm:$0xff] }
  0x2b   : > { %468 = vst [vmem:[%s672_s8 + $0x90] sm:$0xff] %v436_v34  ;;  %v438_v46 = vadd.f32 %v406_v36, %v306_v35  ;;  %v308_v47 = vadd.f32 %v641_v2, %v274_v37  ;;  %v275_v48 = vmul.f32 %v621_v0, %v241_v32  ;;  %v375_v49 = vmul.f32 %v626_v1, %v341_v33  ;;  %v349_v29 = vld [vmem:[%s636_s27 + $0xf8] sm:$0xff] }
  0x2c   : > { %469 = vst [vmem:[%s672_s8 + $0x98] sm:$0xff] %v437_v40  ;;  %v439_v51 = vadd.f32 %v407_v42, %v307_v41  ;;  %v408_v52 = vadd.f32 %v646_v3, %v374_v43  ;;  %v276_v53 = vmul.f32 %v621_v0, %v242_v38  ;;  %v376_v54 = vmul.f32 %v626_v1, %v342_v39 }
  0x2d   : > { %470 = vst [vmem:[%s672_s8 + $0xa0] sm:$0xff] %v438_v46  ;;  %v309_v56 = vadd.f32 %v641_v2, %v275_v48  ;;  %v409_v57 = vadd.f32 %v646_v3, %v375_v49  ;;  %v277_v58 = vmul.f32 %v621_v0, %v243_v44  ;;  %v377_v59 = vmul.f32 %v626_v1, %v343_v45 }
  0x2e   : > { %471 = vst [vmem:[%s672_s8 + $0xa8] sm:$0xff] %v439_v51  ;;  %v440_v62 = vadd.f32 %v408_v52, %v308_v47  ;;  %v310_v63 = vadd.f32 %v641_v2, %v276_v53  ;;  %v410_v4 = vadd.f32 %v646_v3, %v376_v54  ;;  %v278_v5 = vmul.f32 %v621_v0, %v244_v50 }
  0x2f   : > { %v441_v8 = vadd.f32 %v409_v57, %v309_v56  ;;  %v311_v9 = vadd.f32 %v641_v2, %v277_v58  ;;  %v411_v10 = vadd.f32 %v646_v3, %v377_v59  ;;  %v378_v11 = vmul.f32 %v626_v1, %v344_v55 }
  0x30   : > { %472 = vst [vmem:[%s672_s8 + $0xb0] sm:$0xff] %v440_v62  ;;  %v442_v14 = vadd.f32 %v410_v4, %v310_v63  ;;  %v312_v15 = vadd.f32 %v641_v2, %v278_v5  ;;  %v279_v16 = vmul.f32 %v621_v0, %v245_v60  ;;  %v379_v17 = vmul.f32 %v626_v1, %v345_v61 }
  0x31   : > { %473 = vst [vmem:[%s672_s8 + $0xb8] sm:$0xff] %v441_v8  ;;  %v443_v19 = vadd.f32 %v411_v10, %v311_v9  ;;  %v412_v20 = vadd.f32 %v646_v3, %v378_v11  ;;  %v280_v21 = vmul.f32 %v621_v0, %v246_v6  ;;  %v380_v22 = vmul.f32 %v626_v1, %v346_v7 }
  0x32   : > { %474 = vst [vmem:[%s672_s8 + $0xc0] sm:$0xff] %v442_v14  ;;  %v313_v24 = vadd.f32 %v641_v2, %v279_v16  ;;  %v413_v25 = vadd.f32 %v646_v3, %v379_v17  ;;  %v281_v26 = vmul.f32 %v621_v0, %v247_v12  ;;  %v381_v27 = vmul.f32 %v626_v1, %v347_v13 }
  0x33   : > { %475 = vst [vmem:[%s672_s8 + $0xc8] sm:$0xff] %v443_v19  ;;  %v444_v30 = vadd.f32 %v412_v20, %v312_v15  ;;  %v314_v31 = vadd.f32 %v641_v2, %v280_v21  ;;  %v414_v32 = vadd.f32 %v646_v3, %v380_v22  ;;  %v282_v33 = vmul.f32 %v621_v0, %v248_v18 }
  0x34   : > { %v445_v34 = vadd.f32 %v413_v25, %v313_v24  ;;  %v315_v35 = vadd.f32 %v641_v2, %v281_v26  ;;  %v415_v36 = vadd.f32 %v646_v3, %v381_v27  ;;  %v382_v37 = vmul.f32 %v626_v1, %v348_v23 }
  0x35   : > { %476 = vst [vmem:[%s672_s8 + $0xd0] sm:$0xff] %v444_v30  ;;  %v446_v38 = vadd.f32 %v414_v32, %v314_v31  ;;  %v316_v39 = vadd.f32 %v641_v2, %v282_v33  ;;  %v283_v40 = vmul.f32 %v621_v0, %v249_v28  ;;  %v383_v41 = vmul.f32 %v626_v1, %v349_v29 }
  0x36   : > { %477 = vst [vmem:[%s672_s8 + $0xd8] sm:$0xff] %v445_v34  ;;  %v447_v42 = vadd.f32 %v415_v36, %v315_v35  ;;  %v416_v43 = vadd.f32 %v646_v3, %v382_v37 }
  0x37   : > { %478 = vst [vmem:[%s672_s8 + $0xe0] sm:$0xff] %v446_v38  ;;  %v317_v44 = vadd.f32 %v641_v2, %v283_v40  ;;  %v417_v45 = vadd.f32 %v646_v3, %v383_v41 }
  0x38   : > { %479 = vst [vmem:[%s672_s8 + $0xe8] sm:$0xff] %v447_v42  ;;  %v448_v46 = vadd.f32 %v416_v43, %v316_v39 }
  0x39   : > { %v449_v47 = vadd.f32 %v417_v45, %v317_v44 }
  0x3a   : > { %480 = vst [vmem:[%s672_s8 + $0xf0] sm:$0xff] %v448_v46 }
  0x3b   : > { %481 = vst [vmem:[%s672_s8 + $0xf8] sm:$0xff] %v449_v47 }
  0x3c PF: > { %s14_s15 = sadd.s32 1, %s583_s15  }
  0x3d   : > { %p11_p4 = scmp.ge.s32.totalorder %s14_s15, 4  }
  0x3f   :  { %13 = sbr.rel (!%p11_p4) target bundleno = 1 (0x1), region = 69 }

// kernel: reduction_cell_forward.11
= control target key start
LH: loop header
LB: loop body
LE: loop exit
PB: predicated region body
PF: predicated region fallthrough
CT: control target
= control target key end

     0   :  { %s5719_s15 = smov 0   ;;  %s7130_s0 = inlined_call_operand.vmem [shape: bf16[2,18,18,128], index: 0, kind: input, shape index: {}]   ;;  %s7131_s1 = inlined_call_operand.vmem [shape: bf16[9,128,128], index: 1, kind: input, shape index: {}]   ;;  %s7132_s2 = inlined_call_operand.vmem [shape: f32[2,256,128], index: 2, kind: output, shape index: {0}]   ;;  %s7133_s3 = inlined_call_operand.vmem [shape: f32[2,1,128], index: 3, kind: output, shape index: {1}]   ;;  %s7134_s4 = inlined_call_operand.vmem [shape: f32[2,1,128], index: 4, kind: output, shape index: {2}]  }
   0x1 LB: > { %s4621_s16 = sadd.s32 4294967295, %s5692_s15   ;;  %p4625_p0 = scmp.ge.s32.totalorder %s5692_s15, 1  ;;  %s5692_s15 = sphi %s5719_s15, %s15_s15  }
   0x2   : > { %p167_p1 = scmp.lt.s32.totalorder %s5692_s15, 3 }
   0x4   : > { %p168_p2 = pnand %p4625_p0, %p167_p1 }
   0x6   : > { %171 = sbr.rel (%p168_p2) target bundleno = 770 (0x302), region = 28 }
   0xb   : > { %v5511_v0 = vld [vmem:[%s7131_s1 + $0x78] sm:$0xff]  ;;  %p199_p3 = scmp.lt.s32.totalorder %s4621_s16, 1  ;;  %v5510_v1 = vld [vmem:[%s7131_s1 + $0x70] sm:$0xff]  ;;  %v5509_v2 = vld [vmem:[%s7131_s1 + $0x68] sm:$0xff]  ;;  %vm279_vm0 = vsmask.f32 3328 }
   0xc   : > { %5600 = vmatpush.bf16.msra.mxu1 %v5511_v0  ;;  %5601 = vmatpush.bf16.msra.mxu2 %v5511_v0  ;;  %vm280_vm1 = vsmask.f32 7440  ;;  %v5508_v6 = vld [vmem:[%s7131_s1 + $0x60] sm:$0xff]  ;;  %v5507_v35 = vld [vmem:[%s7131_s1 + $0x58] sm:$0xff]  ;;  %v5506_v54 = vld [vmem:[%s7131_s1 + $0x50] sm:$0xff]  ;;  %vm1165_vm3 = vcmask 1042432  }
   0xd   : > { %s7144_s16 = smov (!%p199_p3, %s4621_s16), 1  ;;  %5602 = vmatpush.bf16.msra.mxu3 %v5511_v0  ;;  %795 = vmatpush.bf16.msra.mxu0 %v5511_v0  ;;  %vm5757_vm2 = vmor %vm279_vm0, %vm280_vm1  ;;  %vm1166_vm4 = vcmask 1046532  }
   0xe   : > { %s5624_s21 = smul.u32 216, %s7144_s16  ;;  %vm6057_vm5 = vmor %vm1165_vm3, %vm1166_vm4  ;;  %s5479_s27 = sshll.u32 %s7144_s16, 8 }
   0xf   : > { %s6893_s30 = scalar_lea.vmem %s7132_s2, %s5479_s27  ;;  %s211_s6 = scalar_lea.vmem %s7133_s3, %s7144_s16 }
  0x10   : > { %5603 = vmatpush.bf16.msra.mxu1 %v5510_v1  ;;  %5604 = vmatpush.bf16.msra.mxu2 %v5510_v1  ;;  %s5742_s26 = scalar_lea.vmem %s7130_s0, %s5624_s21  ;;  %s214_s9 = scalar_lea.vmem %s7134_s4, %s7144_s16 }
  0x11   : > { %5605 = vmatpush.bf16.msra.mxu3 %v5510_v1  ;;  %796 = vmatpush.bf16.msra.mxu0 %v5510_v1  ;;  %v223_v3 = vld [vmem:[%s5742_s26 + $0x30] sm:$0xf]  ;;  %v224_v4 = vld [vmem:[%s5742_s26 + $0x34] sm:$0xf]  ;;  %v267_v5 = vld [vmem:[%s5742_s26 + $0x38] sm:$0x1] }
  0x12   : > { %v379_v7 = vshrl.u32 %v223_v3, 16  ;;  %v382_v8 = vshll.u32 %v223_v3, 16  ;;  %v388_v9 = vshll.u32 %v224_v4, 16  ;;  %v392_v10 = vshrl.u32 %v224_v4, 16  ;;  %v231_v11 = vld [vmem:[%s5742_s26 + $0x60] sm:$0xf] }
  0x13   : > { %v398_v12 = vshll.u32 %v267_v5, 16  ;;  %v232_v13 = vld [vmem:[%s5742_s26 + $0x64] sm:$0xf]  ;;  %v271_v14 = vld [vmem:[%s5742_s26 + $0x68] sm:$0x1]  ;;  %v475_v15 = vshrl.u32 %v231_v11, 16 }
  0x14   : > { %5606 = vmatpush.bf16.msra.mxu1 %v5509_v2  ;;  %5607 = vmatpush.bf16.msra.mxu2 %v5509_v2  ;;  %v381_v16 = vrot.slane %v379_v7, 4  ;;  %v384_v17 = vrot.slane %v382_v8, 5  ;;  %v390_v18 = vrot.slane %v388_v9, 5  ;;  %v394_v19 = vrot.slane %v392_v10, 4  ;;  %v239_v20 = vld [vmem:[%s5742_s26 + $0x90] sm:$0xf] }
  0x15   : > { %5608 = vmatpush.bf16.msra.mxu3 %v5509_v2  ;;  %797 = vmatpush.bf16.msra.mxu0 %v5509_v2  ;;  %v400_v21 = vrot.slane %v398_v12, 5  ;;  %v477_v22 = vrot.slane %v475_v15, 4  ;;  %v478_v23 = vshll.u32 %v231_v11, 16  ;;  %v484_v24 = vshll.u32 %v232_v13, 16  ;;  %v240_v29 = vld [vmem:[%s5742_s26 + $0x94] sm:$0xf] }
  0x16   : > { %v385_v25 = vor.u32 %v384_v17, %v381_v16  ;;  %v395_v26 = vor.u32 %v394_v19, %v390_v18  ;;  %v488_v27 = vshrl.u32 %v232_v13, 16  ;;  %v494_v28 = vshll.u32 %v271_v14, 16  ;;  %v275_v41 = vld [vmem:[%s5742_s26 + $0x98] sm:$0x1]  ;;  %v215_v49 = vld [vmem:[%s5742_s26] sm:$0xf] }
  0x17   : > { %v480_v31 = vrot.slane %v478_v23, 5  ;;  %v486_v32 = vrot.slane %v484_v24, 5  ;;  %v571_v33 = vshrl.u32 %v239_v20, 16  ;;  %v574_v34 = vshll.u32 %v239_v20, 16  ;;  %v5782_v62 = vld [vmem:[%s5742_s26 + $0x4] sm:$0xf] }
  0x18   : > { %5609 = vmatpush.bf16.msra.mxu1 %v5508_v6  ;;  %5610 = vmatpush.bf16.msra.mxu2 %v5508_v6  ;;  %v386_v36 = vrot.slane %v385_v25, 4  ;;  %v396_v37 = vrot.slane %v395_v26, 4  ;;  %v490_v38 = vrot.slane %v488_v27, 4  ;;  %v496_v39 = vrot.slane %v494_v28, 5  ;;  %v5789_v4 = vld [vmem:[%s5742_s26 + $0x8] sm:$0x1] }
  0x19   : > { %5611 = vmatpush.bf16.msra.mxu3 %v5508_v6  ;;  %798 = vmatpush.bf16.msra.mxu0 %v5508_v6  ;;  %v481_v40 = vor.u32 %v480_v31, %v477_v22  ;;  %v573_v42 = vrot.slane %v571_v33, 4  ;;  %v576_v43 = vrot.slane %v574_v34, 5  ;;  %v580_v44 = vshll.u32 %v240_v29, 16  ;;  %v225_v5 = vld [vmem:[%s5742_s26 + $0x3c] sm:$0xf]  ;;  %v5505_v10 = vld [vmem:[%s7131_s1 + $0x48] sm:$0xff] }
  0x1a   : > { %v391_v45 = vsel %vm5757_vm2, %v386_v36, %v390_v18  ;;  %v401_v46 = vsel %vm5757_vm2, %v396_v37, %v400_v21  ;;  %v491_v47 = vor.u32 %v490_v38, %v486_v32  ;;  %v584_v48 = vshrl.u32 %v240_v29, 16  ;;  %v226_v15 = vld [vmem:[%s5742_s26 + $0x40] sm:$0xf]  ;;  %v268_v19 = vld [vmem:[%s5742_s26 + $0x44] sm:$0x1]  ;;  %v5519_v37 = vld [vmem:[%s7131_s1 + $0xb8] sm:$0xff] }
  0x1b   : > { %v5770_v50 = vunpack.c.l.b16 %v391_v45  ;;  %v5772_v51 = vunpack.c.l.b16 %v401_v46  ;;  %v482_v52 = vrot.slane %v481_v40, 4  ;;  %v577_v53 = vor.u32 %v576_v43, %v573_v42  ;;  %v233_v25 = vld [vmem:[%s5742_s26 + $0x6c] sm:$0xf]  ;;  %v5504_v31 = vld [vmem:[%s7131_s1 + $0x40] sm:$0xff]  ;;  %v234_v40 = vld [vmem:[%s5742_s26 + $0x70] sm:$0xf] }
  0x1c   : > { %5612 = vmatpush.bf16.msra.mxu1 %v5507_v35  ;;  %5613 = vmatpush.bf16.msra.mxu2 %v5507_v35  ;;  %v492_v55 = vrot.slane %v491_v47, 4  ;;  %v582_v56 = vrot.slane %v580_v44, 5  ;;  %v586_v57 = vrot.slane %v584_v48, 4  ;;  %v590_v58 = vshll.u32 %v275_v41, 16  ;;  %v5543_v43 = vld [vmem:[%s7131_s1 + $0xf8] sm:$0xff] }
  0x1d   : > { %5614 = vmatpush.bf16.msra.mxu3 %v5507_v35  ;;  %799 = vmatpush.bf16.msra.mxu0 %v5507_v35  ;;  %v719_v59 = vpack.c.b16 %v5772_v51, %v5770_v50  ;;  %v487_v60 = vsel %vm5757_vm2, %v482_v52, %v486_v32  ;;  %v578_v61 = vrot.slane %v577_v53, 4  ;;  %v283_v63 = vshrl.u32 %v215_v49, 16  ;;  %v272_v47 = vld [vmem:[%s5742_s26 + $0x74] sm:$0x1] }
  0x1e   : > { %v497_v0 = vsel %vm5757_vm2, %v492_v55, %v496_v39  ;;  %v5786_v1 = vunpack.c.l.b16 %v487_v60  ;;  %v587_v2 = vor.u32 %v586_v57, %v582_v56  ;;  %v592_v3 = vrot.slane %v590_v58, 5  ;;  %v5503_v57 = vld [vmem:[%s7131_s1 + $0x38] sm:$0xff] }
  0x1f   : > { %v5792_v6 = vunpack.c.l.b16 %v497_v0  ;;  %v583_v7 = vsel %vm5757_vm2, %v578_v61, %v582_v56  ;;  %v285_v8 = vrot.slane %v283_v63, 4  ;;  %v286_v9 = vshll.u32 %v215_v49, 16  ;;  %v5518_v63 = vld [vmem:[%s7131_s1 + $0xb0] sm:$0xff] }
  0x20   : > { %5615 = vmatpush.bf16.msra.mxu1 %v5506_v54  ;;  %5616 = vmatpush.bf16.msra.mxu2 %v5506_v54  ;;  %v588_v11 = vrot.slane %v587_v2, 4  ;;  %v5799_v12 = vunpack.c.l.b16 %v583_v7  ;;  %v292_v13 = vshll.u32 %v5782_v62, 16  ;;  %v296_v14 = vshrl.u32 %v5782_v62, 16 }
  0x21   : > { %5617 = vmatpush.bf16.msra.mxu3 %v5506_v54  ;;  %800 = vmatpush.bf16.msra.mxu0 %v5506_v54  ;;  %v723_v16 = vpack.c.b16 %v5792_v6, %v5786_v1  ;;  %v288_v17 = vrot.slane %v286_v9, 5  ;;  %v302_v18 = vshll.u32 %v5789_v4, 16  ;;  %v403_v20 = vshrl.u32 %v225_v5, 16  ;;  %v241_v54 = vld [vmem:[%s5742_s26 + $0x9c] sm:$0xf] }
  0x22   : > { %v593_v21 = vsel %vm5757_vm2, %v588_v11, %v592_v3  ;;  %v294_v22 = vrot.slane %v292_v13, 5  ;;  %v298_v23 = vrot.slane %v296_v14, 4  ;;  %v406_v24 = vshll.u32 %v225_v5, 16  ;;  %v5542_v3 = vld [vmem:[%s7131_s1 + $0xf0] sm:$0xff]  ;;  %v5551_v11 = vld [vmem:[%s7131_s1 + $0x138] sm:$0xff] }
  0x23   : > { %v708_v26 = vunpack.c.l.b16 %v593_v21  ;;  %v289_v27 = vor.u32 %v288_v17, %v285_v8  ;;  %v304_v28 = vrot.slane %v302_v18, 5  ;;  %v405_v29 = vrot.slane %v403_v20, 4  ;;  %v242_v8 = vld [vmem:[%s5742_s26 + $0xa0] sm:$0xf]  ;;  %v217_v17 = vld [vmem:[%s5742_s26 + $0xc] sm:$0xf] }
  0x24   : > { %5618 = vmatpush.bf16.msra.mxu1 %v5505_v10  ;;  %5619 = vmatpush.bf16.msra.mxu2 %v5505_v10  ;;  %v299_v32 = vor.u32 %v298_v23, %v294_v22  ;;  %v408_v33 = vrot.slane %v406_v24, 5  ;;  %v412_v34 = vshll.u32 %v226_v15, 16  ;;  %v416_v35 = vshrl.u32 %v226_v15, 16  ;;  %v276_v15 = vld [vmem:[%s5742_s26 + $0xa4] sm:$0x1]  ;;  %v5502_v18 = vld [vmem:[%s7131_s1 + $0x30] sm:$0xff] }
  0x25   : > { %5620 = vmatpush.bf16.msra.mxu3 %v5505_v10  ;;  %801 = vmatpush.bf16.msra.mxu0 %v5505_v10  ;;  %v727_v36 = vpack.c.b16 %v708_v26, %v5799_v12  ;;  %v290_v38 = vrot.slane %v289_v27, 4  ;;  %v422_v39 = vshll.u32 %v268_v19, 16  ;;  %v499_v41 = vshrl.u32 %v233_v25, 16  ;;  %v5517_v23 = vld [vmem:[%s7131_s1 + $0xa8] sm:$0xff]  ;;  %v5861_v27 = vld [vmem:[%s5742_s26 + $0x10] sm:$0xf] }
  0x26   : > { %v300_v42 = vrot.slane %v299_v32, 4  ;;  %v409_v44 = vor.u32 %v408_v33, %v405_v29  ;;  %v414_v45 = vrot.slane %v412_v34, 5  ;;  %v418_v46 = vrot.slane %v416_v35, 4  ;;  %v5541_v29 = vld [vmem:[%s7131_s1 + $0xe8] sm:$0xff]  ;;  %v5871_v35 = vld [vmem:[%s5742_s26 + $0x14] sm:$0x1] }
  0x27   : > { %v295_v48 = vsel %vm5757_vm2, %v290_v38, %v294_v22  ;;  %v424_v49 = vrot.slane %v422_v39, 5  ;;  %v501_v52 = vrot.slane %v499_v41, 4  ;;  %v502_v53 = vshll.u32 %v233_v25, 16  ;;  %v5501_v41 = vld [vmem:[%s7131_s1 + $0x28] sm:$0xff] }
  0x28   : > { %5621 = vmatpush.bf16.msra.mxu1 %v5504_v31  ;;  %5622 = vmatpush.bf16.msra.mxu2 %v5504_v31  ;;  %v305_v55 = vsel %vm5757_vm2, %v300_v42, %v304_v28  ;;  %v683_v56 = vunpack.c.l.b16 %v295_v48  ;;  %v410_v58 = vrot.slane %v409_v44, 4  ;;  %v419_v60 = vor.u32 %v418_v46, %v414_v45  ;;  %v227_v46 = vld [vmem:[%s5742_s26 + $0x48] sm:$0xf] }
  0x29   : > { %5623 = vmatpush.bf16.msra.mxu3 %v5504_v31  ;;  %802 = vmatpush.bf16.msra.mxu0 %v5504_v31  ;;  %v684_v61 = vunpack.c.l.b16 %v305_v55  ;;  %v504_v0 = vrot.slane %v502_v53, 5  ;;  %v508_v1 = vshll.u32 %v234_v40, 16  ;;  %v512_v2 = vshrl.u32 %v234_v40, 16  ;;  %v5516_v53 = vld [vmem:[%s7131_s1 + $0xa0] sm:$0xff] }
  0x2a   : > { %v415_v5 = vsel %vm5757_vm2, %v410_v58, %v414_v45  ;;  %v420_v6 = vrot.slane %v419_v60, 4  ;;  %v518_v7 = vshll.u32 %v272_v47, 16  ;;  %v595_v9 = vshrl.u32 %v241_v54, 16  ;;  %v5549_v60 = vld [vmem:[%s7131_s1 + $0x128] sm:$0xff] }
  0x2b   : > { %823 = vmatmul.bf16.vlgmr.msra.gmra.mxu1 %v719_v59  ;;  %843 = vmatmul.bf16.vlgmr.msra.gmra.mxu2 %v723_v16  ;;  %v715_v10 = vpack.c.b16 %v684_v61, %v683_v56  ;;  %v5846_v12 = vunpack.c.l.b16 %v415_v5  ;;  %v505_v13 = vor.u32 %v504_v0, %v501_v52  ;;  %v510_v14 = vrot.slane %v508_v1, 5  ;;  %v5500_v61 = vld [vmem:[%s7131_s1 + $0x20] sm:$0xff] }
  0x2c   : > { %1409 = vmatpush.bf16.msrb.mxu2 %v5519_v37  ;;  %863 = vmatmul.bf16.vlgmr.msra.gmra.mxu3 %v727_v36  ;;  %v425_v50 = vsel %vm5757_vm2, %v420_v6, %v424_v49  ;;  %v514_v51 = vrot.slane %v512_v2, 4  ;;  %v520_v59 = vrot.slane %v518_v7, 5  ;;  %v597_v16 = vrot.slane %v595_v9, 4  ;;  %v5550_v36 = vld [vmem:[%s7131_s1 + $0x130] sm:$0xff]  ;;  %v5900_v2 = vld [vmem:[%s5742_s26 + $0x4c] sm:$0xf] }
  0x2d   : > { %1724 = vmatpush.bf16.msrb.mxu3 %v5543_v43  ;;  %1028 = vmatpush.bf16.msrb.mxu1 %v5503_v57  ;;  %v5855_v19 = vunpack.c.l.b16 %v425_v50  ;;  %v506_v20 = vrot.slane %v505_v13, 4  ;;  %v598_v21 = vshll.u32 %v241_v54, 16  ;;  %v604_v22 = vshll.u32 %v242_v8, 16  ;;  %v5540_v54 = vld [vmem:[%s7131_s1 + $0xe0] sm:$0xff] }
  0x2e   : > { %803 = vmatmul.bf16.vlgmr.msra.gmra.mxu0 %v715_v10  ;;  %v515_v24 = vor.u32 %v514_v51, %v510_v14  ;;  %v608_v25 = vshrl.u32 %v242_v8, 16  ;;  %v614_v26 = vshll.u32 %v276_v15, 16  ;;  %v307_v28 = vshrl.u32 %v217_v17, 16  ;;  %v269_v8 = vld [vmem:[%s5742_s26 + $0x50] sm:$0x1] }
  0x2f   : > { %2406 = vmatpush.bf16.msrb.mxu0 %v5551_v11  ;;  %v720_v31 = vpack.c.b16 %v5855_v19, %v5846_v12  ;;  %v511_v32 = vsel %vm5757_vm2, %v506_v20, %v510_v14  ;;  %v600_v33 = vrot.slane %v598_v21, 5  ;;  %v606_v34 = vrot.slane %v604_v22, 5  ;;  %v235_v10 = vld [vmem:[%s5742_s26 + $0x78] sm:$0xf] }
  0x30   : > { %1410 = vmatpush.bf16.msrb.mxu2 %v5518_v63  ;;  %v516_v37 = vrot.slane %v515_v24, 4  ;;  %v5876_v38 = vunpack.c.l.b16 %v511_v32  ;;  %v610_v39 = vrot.slane %v608_v25, 4  ;;  %v616_v40 = vrot.slane %v614_v26, 5  ;;  %v5548_v24 = vld [vmem:[%s7131_s1 + $0x120] sm:$0xff]  ;;  %v236_v32 = vld [vmem:[%s5742_s26 + $0x7c] sm:$0xf] }
  0x31   : > { %1725 = vmatpush.bf16.msrb.mxu3 %v5542_v3  ;;  %1029 = vmatpush.bf16.msrb.mxu1 %v5502_v18  ;;  %v601_v42 = vor.u32 %v600_v33, %v597_v16  ;;  %v309_v43 = vrot.slane %v307_v28, 4  ;;  %v310_v44 = vshll.u32 %v217_v17, 16  ;;  %v316_v45 = vshll.u32 %v5861_v27, 16  ;;  %v5515_v17 = vld [vmem:[%s7131_s1 + $0x98] sm:$0xff]  ;;  %v273_v33 = vld [vmem:[%s5742_s26 + $0x80] sm:$0x1] }
  0x32   : > { %v521_v47 = vsel %vm5757_vm2, %v516_v37, %v520_v59  ;;  %v611_v48 = vor.u32 %v610_v39, %v606_v34  ;;  %v320_v49 = vshrl.u32 %v5861_v27, 16  ;;  %v326_v52 = vshll.u32 %v5871_v35, 16  ;;  %v5539_v18 = vld [vmem:[%s7131_s1 + $0xd8] sm:$0xff] }
  0x33   : > { %v702_v55 = vunpack.c.l.b16 %v521_v47  ;;  %v602_v56 = vrot.slane %v601_v42, 4  ;;  %v312_v57 = vrot.slane %v310_v44, 5  ;;  %v318_v58 = vrot.slane %v316_v45, 5  ;;  %2407 = vmatpush.bf16.msrb.mxu0 %v5550_v36  ;;  %v5538_v42 = vld [vmem:[%s7131_s1 + $0xd0] sm:$0xff] }
  0x34   : > { %1411 = vmatpush.bf16.msrb.mxu2 %v5517_v23  ;;  %v612_v63 = vrot.slane %v611_v48, 4  ;;  %v322_v0 = vrot.slane %v320_v49, 4  ;;  %v328_v1 = vrot.slane %v326_v52, 5  ;;  %v427_v3 = vshrl.u32 %v227_v46, 16 }
  0x35   : > { %1726 = vmatpush.bf16.msrb.mxu3 %v5541_v29  ;;  %1030 = vmatpush.bf16.msrb.mxu1 %v5501_v41  ;;  %v724_v5 = vpack.c.b16 %v702_v55, %v5876_v38  ;;  %v607_v6 = vsel %vm5757_vm2, %v602_v56, %v606_v34  ;;  %v313_v7 = vor.u32 %v312_v57, %v309_v43  ;;  %v430_v9 = vshll.u32 %v227_v46, 16  ;;  %v5499_v34 = vld [vmem:[%s7131_s1 + $0x18] sm:$0xff]  ;;  %v5514_v41 = vld [vmem:[%s7131_s1 + $0x90] sm:$0xff] }
  0x36   : > { %v617_v11 = vsel %vm5757_vm2, %v612_v63, %v616_v40  ;;  %v709_v13 = vunpack.c.l.b16 %v607_v6  ;;  %v323_v14 = vor.u32 %v322_v0, %v318_v58  ;;  %v429_v15 = vrot.slane %v427_v3, 4  ;;  %v243_v40 = vld [vmem:[%s5742_s26 + $0xa8] sm:$0xf]  ;;  %v5498_v56 = vld [vmem:[%s7131_s1 + $0x10] sm:$0xff]  ;;  %v219_v6 = vld [vmem:[%s5742_s26 + $0x18] sm:$0xf] }
  0x37   : > { %v710_v50 = vunpack.c.l.b16 %v617_v11  ;;  %v314_v51 = vrot.slane %v313_v7, 4  ;;  %2408 = vmatpush.bf16.msrb.mxu0 %v5549_v60  ;;  %v432_v59 = vrot.slane %v430_v9, 5  ;;  %v436_v16 = vshll.u32 %v5900_v2, 16  ;;  %v277_v63 = vld [vmem:[%s5742_s26 + $0xb0] sm:$0x1] }
  0x38   : > { %1412 = vmatpush.bf16.msrb.mxu2 %v5516_v53  ;;  %v324_v20 = vrot.slane %v323_v14, 4  ;;  %v440_v21 = vshrl.u32 %v5900_v2, 16  ;;  %v446_v22 = vshll.u32 %v269_v8, 16  ;;  %v523_v23 = vshrl.u32 %v235_v10, 16  ;;  %v5547_v53 = vld [vmem:[%s7131_s1 + $0x118] sm:$0xff] }
  0x39   : > { %1727 = vmatpush.bf16.msrb.mxu3 %v5540_v54  ;;  %1031 = vmatpush.bf16.msrb.mxu1 %v5500_v61  ;;  %v728_v25 = vpack.c.b16 %v710_v50, %v709_v13  ;;  %v319_v26 = vsel %vm5757_vm2, %v314_v51, %v318_v58  ;;  %v433_v28 = vor.u32 %v432_v59, %v429_v15  ;;  %v438_v29 = vrot.slane %v436_v16, 5  ;;  %v5958_v59 = vld [vmem:[%s5742_s26 + $0x1c] sm:$0xf] }
  0x3a   : > { %v329_v36 = vsel %vm5757_vm2, %v324_v20, %v328_v1  ;;  %v685_v37 = vunpack.c.l.b16 %v319_v26  ;;  %v442_v38 = vrot.slane %v440_v21, 4  ;;  %v448_v39 = vrot.slane %v446_v22, 5 }
  0x3b   : > { %828 = vmatmul.bf16.gmra.mxu1 %v720_v31  ;;  %848 = vmatmul.bf16.gmra.mxu2 %v724_v5  ;;  %v686_v43 = vunpack.c.l.b16 %v329_v36  ;;  %v434_v44 = vrot.slane %v433_v28, 4  ;;  %v525_v45 = vrot.slane %v523_v23, 4  ;;  %v526_v46 = vshll.u32 %v235_v10, 16  ;;  %v244_v31 = vld [vmem:[%s5742_s26 + $0xac] sm:$0xf] }
  0x3c   : > { %1413 = vmatpush.bf16.msrb.mxu2 %v5515_v17  ;;  %868 = vmatmul.bf16.gmra.mxu3 %v728_v25  ;;  %v443_v47 = vor.u32 %v442_v38, %v438_v29  ;;  %v532_v48 = vshll.u32 %v236_v32, 16  ;;  %v536_v49 = vshrl.u32 %v236_v32, 16  ;;  %v542_v52 = vshll.u32 %v273_v33, 16  ;;  %v5513_v17 = vld [vmem:[%s7131_s1 + $0x88] sm:$0xff]  ;;  %v229_v25 = vld [vmem:[%s5742_s26 + $0x54] sm:$0xf] }
  0x3d   : > { %1728 = vmatpush.bf16.msrb.mxu3 %v5539_v18  ;;  %2409 = vmatpush.bf16.msrb.mxu0 %v5548_v24  ;;  %v716_v54 = vpack.c.b16 %v686_v43, %v685_v37  ;;  %v439_v12 = vsel %vm5757_vm2, %v434_v44, %v438_v29  ;;  %v528_v19 = vrot.slane %v526_v46, 5  ;;  %v619_v55 = vshrl.u32 %v243_v40, 16  ;;  %v5964_v24 = vld [vmem:[%s5742_s26 + $0x20] sm:$0x1]  ;;  %v5537_v38 = vld [vmem:[%s7131_s1 + $0xc8] sm:$0xff] }
  0x3e   : > { %1032 = vmatpush.bf16.msrb.mxu1 %v5499_v34  ;;  %v444_v57 = vrot.slane %v443_v47, 4  ;;  %v5948_v58 = vunpack.c.l.b16 %v439_v12  ;;  %v534_v60 = vrot.slane %v532_v48, 5  ;;  %v538_v61 = vrot.slane %v536_v49, 4 }
  0x3f   : > { %808 = vmatmul.bf16.gmra.mxu0 %v716_v54  ;;  %v529_v0 = vor.u32 %v528_v19, %v525_v45  ;;  %v544_v1 = vrot.slane %v542_v52, 5  ;;  %v621_v3 = vrot.slane %v619_v55, 4  ;;  %v622_v5 = vshll.u32 %v243_v40, 16  ;;  %v5497_v40 = vld [vmem:[%s7131_s1 + $0x8] sm:$0xff]  ;;  %v5512_v45 = vld [vmem:[%s7131_s1 + $0x80] sm:$0xff] }
  0x40   : > { %1414 = vmatpush.bf16.msrb.mxu2 %v5514_v41  ;;  %v449_v7 = vsel %vm5757_vm2, %v444_v57, %v448_v39  ;;  %v539_v8 = vor.u32 %v538_v61, %v534_v60  ;;  %v628_v9 = vshll.u32 %v244_v31, 16  ;;  %v632_v10 = vshrl.u32 %v244_v31, 16  ;;  %v5546_v39 = vld [vmem:[%s7131_s1 + $0x110] sm:$0xff]  ;;  %v5987_v52 = vld [vmem:[%s5742_s26 + $0x58] sm:$0xf]  ;;  %v5545_v57 = vld [vmem:[%s7131_s1 + $0x108] sm:$0xff] }
  0x41   : > { %1729 = vmatpush.bf16.msrb.mxu3 %v5538_v42  ;;  %2410 = vmatpush.bf16.msrb.mxu0 %v5547_v53  ;;  %v696_v11 = vunpack.c.l.b16 %v449_v7  ;;  %v530_v13 = vrot.slane %v529_v0, 4  ;;  %v624_v14 = vrot.slane %v622_v5, 5  ;;  %v638_v15 = vshll.u32 %v277_v63, 16  ;;  %v5990_v53 = vld [vmem:[%s5742_s26 + $0x5c] sm:$0x1]  ;;  %v5496_v0 = vld [vmem:[%s7131_s1] sm:$0xff] }
  0x42   : > { %1033 = vmatpush.bf16.msrb.mxu1 %v5498_v56  ;;  %v540_v18 = vrot.slane %v539_v8, 4  ;;  %v630_v50 = vrot.slane %v628_v9, 5  ;;  %v634_v51 = vrot.slane %v632_v10, 4  ;;  %v331_v16 = vshrl.u32 %v219_v6, 16  ;;  %v237_v55 = vld [vmem:[%s5742_s26 + $0x84] sm:$0xf] }
  0x43   : > { %v721_v20 = vpack.c.b16 %v696_v11, %v5948_v58  ;;  %v535_v21 = vsel %vm5757_vm2, %v530_v13, %v534_v60  ;;  %v625_v22 = vor.u32 %v624_v14, %v621_v3  ;;  %v640_v23 = vrot.slane %v638_v15, 5  ;;  %v5536_v56 = vld [vmem:[%s7131_s1 + $0xc0] sm:$0xff]  ;;  %v238_v10 = vld [vmem:[%s5742_s26 + $0x88] sm:$0xf] }
  0x44   : > { %1415 = vmatpush.bf16.msrb.mxu2 %v5513_v17  ;;  %v545_v26 = vsel %vm5757_vm2, %v540_v18, %v544_v1  ;;  %v703_v28 = vunpack.c.l.b16 %v535_v21  ;;  %v635_v29 = vor.u32 %v634_v51, %v630_v50  ;;  %v333_v32 = vrot.slane %v331_v16, 4  ;;  %v5544_v18 = vld [vmem:[%s7131_s1 + $0x100] sm:$0xff]  ;;  %v274_v16 = vld [vmem:[%s5742_s26 + $0x8c] sm:$0x1] }
  0x45   : > { %v704_v33 = vunpack.c.l.b16 %v545_v26  ;;  %v626_v34 = vrot.slane %v625_v22, 4  ;;  %v334_v36 = vshll.u32 %v219_v6, 16  ;;  %v340_v37 = vshll.u32 %v5958_v59, 16  ;;  %1730 = vmatpush.bf16.msrb.mxu3 %v5537_v38  ;;  %2411 = vmatpush.bf16.msrb.mxu0 %v5546_v39  ;;  %v245_v22 = vld [vmem:[%s5742_s26 + $0xb4] sm:$0xf] }
  0x46   : > { %v636_v41 = vrot.slane %v635_v29, 4  ;;  %v344_v42 = vshrl.u32 %v5958_v59, 16  ;;  %v350_v43 = vshll.u32 %v5964_v24, 16  ;;  %v451_v44 = vshrl.u32 %v229_v25, 16  ;;  %1034 = vmatpush.bf16.msrb.mxu1 %v5497_v40  ;;  %v246_v39 = vld [vmem:[%s5742_s26 + $0xb8] sm:$0xf] }
  0x47   : > { %v725_v46 = vpack.c.b16 %v704_v33, %v703_v28  ;;  %v631_v47 = vsel %vm5757_vm2, %v626_v34, %v630_v50  ;;  %v336_v48 = vrot.slane %v334_v36, 5  ;;  %v342_v49 = vrot.slane %v340_v37, 5 }
  0x48   : > { %v641_v54 = vsel %vm5757_vm2, %v636_v41, %v640_v23  ;;  %v711_v12 = vunpack.c.l.b16 %v631_v47  ;;  %v346_v19 = vrot.slane %v344_v42, 4  ;;  %v352_v31 = vrot.slane %v350_v43, 5  ;;  %1416 = vmatpush.bf16.msrb.mxu2 %v5512_v45  ;;  %v278_v45 = vld [vmem:[%s5742_s26 + $0xbc] sm:$0x1] }
  0x49   : > { %v712_v58 = vunpack.c.l.b16 %v641_v54  ;;  %v337_v60 = vor.u32 %v336_v48, %v333_v32  ;;  %v453_v61 = vrot.slane %v451_v44, 4  ;;  %v454_v63 = vshll.u32 %v229_v25, 16  ;;  %1731 = vmatpush.bf16.msrb.mxu3 %v5536_v56  ;;  %2412 = vmatpush.bf16.msrb.mxu0 %v5545_v57  ;;  %v5583_v47 = vld [vmem:[%s7131_s1 + $0x1b8] sm:$0xff] }
  0x4a   : > { %v347_v1 = vor.u32 %v346_v19, %v342_v49  ;;  %v460_v3 = vshll.u32 %v5987_v52, 16  ;;  %v464_v5 = vshrl.u32 %v5987_v52, 16  ;;  %v470_v6 = vshll.u32 %v5990_v53, 16  ;;  %1035 = vmatpush.bf16.msrb.mxu1 %v5496_v0 }
  0x4b   : > { %833 = vmatmul.bf16.gmra.mxu1 %v721_v20  ;;  %853 = vmatmul.bf16.gmra.mxu2 %v725_v46  ;;  %v729_v7 = vpack.c.b16 %v712_v58, %v711_v12  ;;  %v338_v8 = vrot.slane %v337_v60, 4  ;;  %v456_v9 = vrot.slane %v454_v63, 5  ;;  %v547_v11 = vshrl.u32 %v237_v55, 16  ;;  %v221_v46 = vld [vmem:[%s5742_s26 + $0x24] sm:$0xf] }
  0x4c   : > { %v348_v13 = vrot.slane %v347_v1, 4  ;;  %v462_v14 = vrot.slane %v460_v3, 5  ;;  %v466_v15 = vrot.slane %v464_v5, 4  ;;  %v472_v17 = vrot.slane %v470_v6, 5  ;;  %3147 = vmatpush.bf16.msra.mxu2 %v5583_v47  ;;  %v5591_v6 = vld [vmem:[%s7131_s1 + $0x1f8] sm:$0xff] }
  0x4d   : > { %873 = vmatmul.bf16.gmra.mxu3 %v729_v7  ;;  %v343_v50 = vsel %vm5757_vm2, %v338_v8, %v342_v49  ;;  %v457_v51 = vor.u32 %v456_v9, %v453_v61  ;;  %v549_v20 = vrot.slane %v547_v11, 4  ;;  %v550_v21 = vshll.u32 %v237_v55, 16  ;;  %2413 = vmatpush.bf16.msrb.mxu0 %v5544_v18  ;;  %v6028_v61 = vld [vmem:[%s5742_s26 + $0x28] sm:$0xf]  ;;  %v5559_v7 = vld [vmem:[%s7131_s1 + $0x178] sm:$0xff] }
  0x4e   : > { %v353_v23 = vsel %vm5757_vm2, %v348_v13, %v352_v31  ;;  %v687_v25 = vunpack.c.l.b16 %v343_v50  ;;  %v467_v26 = vor.u32 %v466_v15, %v462_v14  ;;  %v556_v28 = vshll.u32 %v238_v10, 16  ;;  %v5599_v8 = vld [vmem:[%s7131_s1 + $0x238] sm:$0xff]  ;;  %3829 = vmatpush.bf16.msra.mxu3 %v5591_v6  ;;  %2832 = vmatpush.bf16.msra.mxu1 %v5559_v7 }
  0x4f   : > { %v688_v29 = vunpack.c.l.b16 %v353_v23  ;;  %v458_v32 = vrot.slane %v457_v51, 4  ;;  %v552_v33 = vrot.slane %v550_v21, 5  ;;  %v560_v34 = vshrl.u32 %v238_v10, 16 }
  0x50   : > { %v468_v36 = vrot.slane %v467_v26, 4  ;;  %v558_v37 = vrot.slane %v556_v28, 5  ;;  %v566_v38 = vshll.u32 %v274_v16, 16  ;;  %v643_v40 = vshrl.u32 %v245_v22, 16  ;;  %v1117_v26 = vld [vmem:[%s5742_s26] sm:$0xe] }
  0x51   : > { %v717_v41 = vpack.c.b16 %v688_v29, %v687_v25  ;;  %v463_v42 = vsel %vm5757_vm2, %v458_v32, %v462_v14  ;;  %v553_v43 = vor.u32 %v552_v33, %v549_v20  ;;  %v562_v44 = vrot.slane %v560_v34, 4  ;;  %v6042_v14 = vld [vmem:[%s5742_s26 + $0x2c] sm:$0x1]  ;;  %4255 = vmatpush.bf16.msra.mxu0 %v5599_v8 }
  0x52   : > { %v473_v48 = vsel %vm5757_vm2, %v468_v36, %v472_v17  ;;  %v697_v49 = vunpack.c.l.b16 %v463_v42  ;;  %v568_v54 = vrot.slane %v566_v38, 5  ;;  %v645_v12 = vrot.slane %v643_v40, 4  ;;  %v4981_v38 = vld [vmem:[%s5742_s26 + $0xc] sm:$0xf] }
  0x53   : > { %813 = vmatmul.bf16.gmra.mxu0 %v717_v41  ;;  %v698_v19 = vunpack.c.l.b16 %v473_v48  ;;  %v554_v31 = vrot.slane %v553_v43, 4  ;;  %v563_v55 = vor.u32 %v562_v44, %v558_v37  ;;  %v646_v56 = vshll.u32 %v245_v22, 16 }
  0x54   : > { %v652_v57 = vshll.u32 %v246_v39, 16  ;;  %v656_v58 = vshrl.u32 %v246_v39, 16  ;;  %v662_v60 = vshll.u32 %v278_v45, 16  ;;  %v355_v63 = vshrl.u32 %v221_v46, 16  ;;  %v4982_v39 = vld [vmem:[%s5742_s26 + $0x10] sm:$0xf] }
  0x55   : > { %v722_v0 = vpack.c.b16 %v698_v19, %v697_v49  ;;  %v559_v1 = vsel %vm5757_vm2, %v554_v31, %v558_v37  ;;  %v564_v3 = vrot.slane %v563_v55, 4  ;;  %v648_v5 = vrot.slane %v646_v56, 5 }
  0x56   : > { %v705_v9 = vunpack.c.l.b16 %v559_v1  ;;  %v654_v10 = vrot.slane %v652_v57, 5  ;;  %v658_v11 = vrot.slane %v656_v58, 4  ;;  %v664_v13 = vrot.slane %v662_v60, 5  ;;  %v4983_v58 = vld [vmem:[%s5742_s26 + $0x14] sm:$0x1] }
  0x57   : > { %v569_v15 = vsel %vm5757_vm2, %v564_v3, %v568_v54  ;;  %v649_v17 = vor.u32 %v648_v5, %v645_v12  ;;  %v357_v18 = vrot.slane %v355_v63, 4  ;;  %v358_v50 = vshll.u32 %v221_v46, 16 }
  0x58   : > { %v706_v51 = vunpack.c.l.b16 %v569_v15  ;;  %v659_v16 = vor.u32 %v658_v11, %v654_v10  ;;  %v364_v20 = vshll.u32 %v6028_v61, 16  ;;  %v368_v21 = vshrl.u32 %v6028_v61, 16 }
  0x59   : > { %v650_v22 = vrot.slane %v649_v17, 4  ;;  %v360_v23 = vrot.slane %v358_v50, 5  ;;  %v374_v25 = vshll.u32 %v6042_v14, 16  ;;  %v4773_v44 = vrot.slane %v1117_v26, 9  ;;  %v4984_v50 = vld [vmem:[%s5742_s26 + $0x18] sm:$0xf] }
  0x5a   : > { %v726_v28 = vpack.c.b16 %v706_v51, %v705_v9  ;;  %v660_v29 = vrot.slane %v659_v16, 4  ;;  %v366_v32 = vrot.slane %v364_v20, 5  ;;  %v370_v33 = vrot.slane %v368_v21, 4  ;;  %v5480_v51 = vld [vmem:[%s5742_s26] sm:$0xff]  ;;  %v4985_v16 = vld [vmem:[%s5742_s26 + $0x1c] sm:$0xf] }
  0x5b   : > { %838 = vmatmul.bf16.gmra.mxu1 %v722_v0  ;;  %v655_v34 = vsel %vm5757_vm2, %v650_v22, %v654_v10  ;;  %v361_v36 = vor.u32 %v360_v23, %v357_v18  ;;  %v376_v37 = vrot.slane %v374_v25, 5  ;;  %v1170_v47 = vrot.slane %v5782_v62, 5  ;;  %v1118_v21 = vld [vmem:[%s5742_s26 + $0xc] sm:$0xe] }
  0x5c   : > { %858 = vmatmul.bf16.gmra.mxu2 %v726_v28  ;;  %v665_v40 = vsel %vm5757_vm2, %v660_v29, %v664_v13  ;;  %v713_v41 = vunpack.c.l.b16 %v655_v34  ;;  %v371_v42 = vor.u32 %v370_v33, %v366_v32  ;;  %v1173_v48 = vrot.slane %v5789_v4, 5  ;;  %v5520_v34 = vld [vmem:[%s5742_s26 + $0xc] sm:$0xff] }
  0x5d   : > { %v714_v45 = vunpack.c.l.b16 %v665_v40  ;;  %v362_v46 = vrot.slane %v361_v36, 4  ;;  %v1894_v54 = vshrl.u32 %v4981_v38, 16  ;;  %v1897_v12 = vshll.u32 %v4981_v38, 16 }
  0x5e   : > { %v372_v49 = vrot.slane %v371_v42, 4  ;;  %v1903_v19 = vshll.u32 %v4982_v39, 16  ;;  %v1171_v56 = vsel %vm6057_vm5, %v4773_v44, %v1170_v47  ;;  %v1172_v57 = vrot.slane %v1170_v47, 4  ;;  %v4986_v44 = vld [vmem:[%s5742_s26 + $0x20] sm:$0x1] }
  0x5f   : > { %v730_v31 = vpack.c.b16 %v714_v45, %v713_v41  ;;  %v367_v55 = vsel %vm5757_vm2, %v362_v46, %v366_v32  ;;  %v1297_v62 = vunpack.c.l.b16 %v1171_v56  ;;  %v1896_v0 = vrot.slane %v1894_v54, 4  ;;  %v5558_v56 = vld [vmem:[%s7131_s1 + $0x170] sm:$0xff] }
  0x60   : > { %v377_v60 = vsel %vm5757_vm2, %v372_v49, %v376_v37  ;;  %v689_v63 = vunpack.c.l.b16 %v367_v55  ;;  %v1174_v1 = vsel %vm6057_vm5, %v1172_v57, %v1173_v48  ;;  %v1899_v3 = vrot.slane %v1897_v12, 5  ;;  %v5582_v48 = vld [vmem:[%s7131_s1 + $0x1b0] sm:$0xff]  ;;  %2833 = vmatpush.bf16.msra.mxu1 %v5558_v56 }
  0x61   : > { %878 = vmatmul.bf16.gmra.mxu3 %v730_v31  ;;  %v690_v4 = vunpack.c.l.b16 %v377_v60  ;;  %v1298_v5 = vunpack.c.l.b16 %v1174_v1  ;;  %v1905_v6 = vrot.slane %v1903_v19, 5  ;;  %v1907_v7 = vshrl.u32 %v4982_v39, 16  ;;  %3148 = vmatpush.bf16.msra.mxu2 %v5582_v48  ;;  %v4987_v31 = vld [vmem:[%s5742_s26 + $0x24] sm:$0xf]  ;;  %v5590_v55 = vld [vmem:[%s7131_s1 + $0x1f0] sm:$0xff] }
  0x62   : > { %v1913_v8 = vshll.u32 %v4983_v58, 16  ;;  %v1900_v10 = vor.u32 %v1899_v3, %v1896_v0  ;;  %v1177_v22 = vrot.slane %v5861_v27, 5  ;;  %v1918_v23 = vshrl.u32 %v4984_v50, 16  ;;  %v5598_v57 = vld [vmem:[%s7131_s1 + $0x230] sm:$0xff]  ;;  %3830 = vmatpush.bf16.msra.mxu3 %v5590_v55  ;;  %v1120_v48 = vld [vmem:[%s5742_s26 + $0x24] sm:$0xe] }
  0x63   : > { %v718_v9 = vpack.c.b16 %v690_v4, %v689_v63  ;;  %v1329_v11 = vpack.c.b16 %v1298_v5, %v1297_v62  ;;  %v1909_v13 = vrot.slane %v1907_v7, 4  ;;  %v1921_v25 = vshll.u32 %v4984_v50, 16  ;;  %v4988_v62 = vld [vmem:[%s5742_s26 + $0x28] sm:$0xf]  ;;  %v5481_v0 = vld [vmem:[%s5742_s26 + $0xc] sm:$0xff]  ;;  %4256 = vmatpush.bf16.msra.mxu0 %v5598_v57 }
  0x64   : > { %v1901_v15 = vrot.slane %v1900_v10, 4  ;;  %v1915_v18 = vrot.slane %v1913_v8, 5  ;;  %v1927_v29 = vshll.u32 %v4985_v16, 16  ;;  %v1931_v32 = vshrl.u32 %v4985_v16, 16 }
  0x65   : > { %818 = vmatmul.bf16.gmra.mxu0 %v718_v9  ;;  %v1910_v17 = vor.u32 %v1909_v13, %v1905_v6  ;;  %v4774_v33 = vrot.slane %v1118_v21, 9  ;;  %v1179_v38 = vrot.slane %v1177_v22, 4  ;;  %v1180_v27 = vrot.slane %v5871_v35, 5  ;;  %v4989_v21 = vld [vmem:[%s5742_s26 + $0x2c] sm:$0x1] }
  0x66   : > { %v1906_v26 = vsel %vm5757_vm2, %v1901_v15, %v1905_v6  ;;  %v1920_v39 = vrot.slane %v1918_v23, 4  ;;  %v1923_v40 = vrot.slane %v1921_v25, 5  ;;  %v1929_v41 = vrot.slane %v1927_v29, 5  ;;  %v1119_v6 = vld [vmem:[%s5742_s26 + $0x18] sm:$0xe] }
  0x67   : > { %v1911_v20 = vrot.slane %v1910_v17, 4  ;;  %v2294_v36 = vunpack.c.l.b16 %v1906_v26  ;;  %v1933_v42 = vrot.slane %v1931_v32, 4  ;;  %v1178_v46 = vsel %vm6057_vm5, %v4774_v33, %v1177_v22 }
  0x68   : > { %v1181_v47 = vsel %vm6057_vm5, %v1179_v38, %v1180_v27  ;;  %v1924_v35 = vor.u32 %v1923_v40, %v1920_v39  ;;  %v1937_v54 = vshll.u32 %v4986_v44, 16  ;;  %v1299_v12 = vunpack.c.l.b16 %v1178_v46  ;;  %v4991_v38 = vld [vmem:[%s5742_s26 + $0x34] sm:$0xf]  ;;  %v5482_v27 = vld [vmem:[%s5742_s26 + $0x18] sm:$0xff] }
  0x69   : > { %v1916_v28 = vsel %vm5757_vm2, %v1911_v20, %v1915_v18  ;;  %v1934_v49 = vor.u32 %v1933_v42, %v1929_v41  ;;  %v1300_v19 = vunpack.c.l.b16 %v1181_v47  ;;  %v1184_v1 = vrot.slane %v5958_v59, 5  ;;  %v5521_v18 = vld [vmem:[%s5742_s26 + $0x18] sm:$0xff] }
  0x6a   : > { %v2295_v37 = vunpack.c.l.b16 %v1916_v28  ;;  %v1925_v58 = vrot.slane %v1924_v35, 4  ;;  %v1939_v63 = vrot.slane %v1937_v54, 5  ;;  %v1942_v3 = vshrl.u32 %v4987_v31, 16 }
  0x6b   : > { %1036 = vmatmul.bf16.vlgmr.msrb.gmra.mxu1 %v5480_v51  ;;  %v1935_v60 = vrot.slane %v1934_v49, 4  ;;  %v1330_v4 = vpack.c.b16 %v1300_v19, %v1299_v12  ;;  %v1945_v5 = vshll.u32 %v4987_v31, 16  ;;  %v1951_v7 = vshll.u32 %v4988_v62, 16  ;;  %v5522_v31 = vld [vmem:[%s5742_s26 + $0x24] sm:$0xff] }
  0x6c   : > { %1417 = vmatmul.bf16.vlgmr.msrb.gmra.mxu2 %v1329_v11  ;;  %v2326_v45 = vpack.c.b16 %v2295_v37, %v2294_v36  ;;  %v1955_v8 = vshrl.u32 %v4988_v62, 16  ;;  %v1930_v9 = vsel %vm5757_vm2, %v1925_v58, %v1929_v41  ;;  %v1187_v11 = vrot.slane %v5964_v24, 5  ;;  %v4990_v37 = vld [vmem:[%s5742_s26 + $0x30] sm:$0xf] }
  0x6d   : > { %v1940_v10 = vsel %vm5757_vm2, %v1935_v60, %v1939_v63  ;;  %v4775_v13 = vrot.slane %v1119_v6, 9  ;;  %v1186_v59 = vrot.slane %v1184_v1, 4  ;;  %v1944_v15 = vrot.slane %v1942_v3, 4  ;;  %v4993_v6 = vld [vmem:[%s5742_s26 + $0x3c] sm:$0xf] }
  0x6e   : > { %v1947_v17 = vrot.slane %v1945_v5, 5  ;;  %v2296_v50 = vunpack.c.l.b16 %v1930_v9  ;;  %v2297_v51 = vunpack.c.l.b16 %v1940_v10  ;;  %v1953_v16 = vrot.slane %v1951_v7, 5  ;;  %v4994_v7 = vld [vmem:[%s5742_s26 + $0x40] sm:$0xf] }
  0x6f   : > { %v1957_v20 = vrot.slane %v1955_v8, 4  ;;  %v1185_v22 = vsel %vm6057_vm5, %v4775_v13, %v1184_v1  ;;  %v1188_v25 = vsel %vm6057_vm5, %v1186_v59, %v1187_v11  ;;  %v1961_v28 = vshll.u32 %v4989_v21, 16  ;;  %v5581_v1 = vld [vmem:[%s7131_s1 + $0x1a8] sm:$0xff]  ;;  %v5633_v21 = vld [vmem:[%s5742_s26 + $0x34] sm:$0xf] }
  0x70   : > { %v1948_v23 = vor.u32 %v1947_v17, %v1944_v15  ;;  %v2327_v24 = vpack.c.b16 %v2297_v51, %v2296_v50  ;;  %v1301_v29 = vunpack.c.l.b16 %v1185_v22  ;;  %v1302_v32 = vunpack.c.l.b16 %v1188_v25  ;;  %3149 = vmatpush.bf16.msra.mxu2 %v5581_v1  ;;  %v5589_v11 = vld [vmem:[%s7131_s1 + $0x1e8] sm:$0xff]  ;;  %v1122_v1 = vld [vmem:[%s5742_s26 + $0x3c] sm:$0xe] }
  0x71   : > { %1732 = vmatmul.bf16.vlgmr.msrb.gmra.mxu3 %v5520_v34  ;;  %v1958_v26 = vor.u32 %v1957_v20, %v1953_v16  ;;  %v1963_v36 = vrot.slane %v1961_v28, 5  ;;  %v1966_v41 = vshrl.u32 %v4990_v37, 16  ;;  %v1969_v42 = vshll.u32 %v4990_v37, 16  ;;  %v5557_v13 = vld [vmem:[%s7131_s1 + $0x168] sm:$0xff]  ;;  %v5634_v37 = vld [vmem:[%s5742_s26 + $0x38] sm:$0x1] }
  0x72   : > { %v1949_v33 = vrot.slane %v1948_v23, 4  ;;  %v1331_v39 = vpack.c.b16 %v1302_v32, %v1301_v29  ;;  %v1975_v46 = vshll.u32 %v4991_v38, 16  ;;  %v1979_v47 = vshrl.u32 %v4991_v38, 16  ;;  %v5597_v59 = vld [vmem:[%s7131_s1 + $0x228] sm:$0xff]  ;;  %3831 = vmatpush.bf16.msra.mxu3 %v5589_v11  ;;  %2834 = vmatpush.bf16.msra.mxu1 %v5557_v13  ;;  %v5636_v13 = vld [vmem:[%s5742_s26 + $0x44] sm:$0x1] }
  0x73   : > { %v1959_v34 = vrot.slane %v1958_v26, 4  ;;  %v1194_v54 = vrot.slane %v6042_v14, 5  ;;  %v1968_v12 = vrot.slane %v1966_v41, 4  ;;  %v1971_v19 = vrot.slane %v1969_v42, 5  ;;  %v5483_v15 = vld [vmem:[%s5742_s26 + $0x24] sm:$0xff]  ;;  %4257 = vmatpush.bf16.msra.mxu0 %v5597_v59 }
  0x74   : > { %v1954_v40 = vsel %vm5757_vm2, %v1949_v33, %v1953_v16  ;;  %v4776_v55 = vrot.slane %v1120_v48, 9  ;;  %v1977_v57 = vrot.slane %v1975_v46, 5  ;;  %v1981_v58 = vrot.slane %v1979_v47, 4  ;;  %v5523_v33 = vld [vmem:[%s5742_s26 + $0x30] sm:$0xff] }
  0x75   : > { %2414 = vmatmul.bf16.vlgmr.msrb.gmra.mxu0 %v2326_v45  ;;  %v1964_v44 = vsel %vm5757_vm2, %v1959_v34, %v1963_v36  ;;  %v1191_v45 = vrot.slane %v6028_v61, 5  ;;  %v2298_v35 = vunpack.c.l.b16 %v1954_v40  ;;  %v4992_v61 = vld [vmem:[%s5742_s26 + $0x38] sm:$0x1]  ;;  %v1972_v63 = vor.u32 %v1971_v19, %v1968_v12  ;;  %v4996_v12 = vld [vmem:[%s5742_s26 + $0x48] sm:$0xf] }
  0x76   : > { %v2299_v49 = vunpack.c.l.b16 %v1964_v44  ;;  %v1982_v14 = vor.u32 %v1981_v58, %v1977_v57  ;;  %v1990_v17 = vshrl.u32 %v4993_v6, 16  ;;  %v1999_v51 = vshll.u32 %v4994_v7, 16  ;;  %v4997_v19 = vld [vmem:[%s5742_s26 + $0x4c] sm:$0xf] }
  0x77   : > { %v1193_v56 = vrot.slane %v1191_v45, 4  ;;  %v1192_v62 = vsel %vm6057_vm5, %v4776_v55, %v1191_v45  ;;  %v1973_v8 = vrot.slane %v1972_v63, 4  ;;  %v1198_v22 = vrot.slane %v5633_v21, 5 }
  0x78   : > { %v2328_v60 = vpack.c.b16 %v2299_v49, %v2298_v35  ;;  %v1303_v3 = vunpack.c.l.b16 %v1192_v62  ;;  %v1983_v9 = vrot.slane %v1982_v14, 4  ;;  %v2003_v23 = vshrl.u32 %v4994_v7, 16  ;;  %v5635_v62 = vld [vmem:[%s5742_s26 + $0x40] sm:$0xf] }
  0x79   : > { %v1978_v16 = vsel %vm5757_vm2, %v1973_v8, %v1977_v57  ;;  %v1992_v25 = vrot.slane %v1990_v17, 4  ;;  %v2001_v32 = vrot.slane %v1999_v51, 5  ;;  %v1200_v36 = vrot.slane %v1198_v22, 4 }
  0x7a   : > { %v2300_v28 = vunpack.c.l.b16 %v1978_v16  ;;  %v1201_v38 = vrot.slane %v5634_v37, 5  ;;  %v2014_v58 = vshrl.u32 %v4996_v12, 16  ;;  %v2027_v14 = vshrl.u32 %v4997_v19, 16  ;;  %v5000_v37 = vld [vmem:[%s5742_s26 + $0x58] sm:$0xf] }
  0x7b   : > { %1041 = vmatmul.bf16.gmra.mxu1 %v5481_v0  ;;  %v1195_v0 = vsel %vm6057_vm5, %v1193_v56, %v1194_v54  ;;  %v1208_v59 = vrot.slane %v5636_v13, 5 }
  0x7c   : > { %1422 = vmatmul.bf16.gmra.mxu2 %v1330_v4  ;;  %v1985_v4 = vshll.u32 %v4992_v61, 16  ;;  %v1304_v5 = vunpack.c.l.b16 %v1195_v0  ;;  %v1202_v44 = vsel %vm6057_vm5, %v1200_v36, %v1201_v38  ;;  %v2017_v61 = vshll.u32 %v4996_v12, 16  ;;  %v5588_v38 = vld [vmem:[%s7131_s1 + $0x1e0] sm:$0xff] }
  0x7d   : > { %v1306_v35 = vunpack.c.l.b16 %v1202_v44  ;;  %v1205_v0 = vrot.slane %v5635_v62, 5  ;;  %3832 = vmatpush.bf16.msra.mxu3 %v5588_v38  ;;  %v2051_v12 = vshrl.u32 %v5000_v37, 16 }
  0x7e   : > { %v1987_v10 = vrot.slane %v1985_v4, 5  ;;  %v1332_v50 = vpack.c.b16 %v1304_v5, %v1303_v3  ;;  %v2019_v7 = vrot.slane %v2017_v61, 5 }
  0x7f   : > { %v1207_v11 = vrot.slane %v1205_v0, 4 }
  0x80   : > { %v1988_v20 = vsel %vm5757_vm2, %v1983_v9, %v1987_v10  ;;  %v5524_v9 = vld [vmem:[%s5742_s26 + $0x3c] sm:$0xff]  ;;  %v4778_v10 = vrot.slane %v1122_v1, 9 }
  0x81   : > { %1737 = vmatmul.bf16.gmra.mxu3 %v5521_v18  ;;  %v1993_v18 = vshll.u32 %v4993_v6, 16  ;;  %v2301_v29 = vunpack.c.l.b16 %v1988_v20  ;;  %v2016_v6 = vrot.slane %v2014_v58, 4 }
  0x82   : > { %v1206_v21 = vsel %vm6057_vm5, %v4778_v10, %v1205_v0 }
  0x83   : > { %v1995_v26 = vrot.slane %v1993_v18, 5  ;;  %v2329_v41 = vpack.c.b16 %v2301_v29, %v2300_v28  ;;  %v4998_v18 = vld [vmem:[%s5742_s26 + $0x50] sm:$0x1]  ;;  %v2020_v20 = vor.u32 %v2019_v7, %v2016_v6  ;;  %v1307_v28 = vunpack.c.l.b16 %v1206_v21 }
  0x85   : > { %2419 = vmatmul.bf16.gmra.mxu0 %v2327_v24  ;;  %v1121_v24 = vld [vmem:[%s5742_s26 + $0x30] sm:$0xe]  ;;  %v1996_v40 = vor.u32 %v1995_v26, %v1992_v25  ;;  %v5580_v25 = vld [vmem:[%s7131_s1 + $0x1a0] sm:$0xff] }
  0x86   : > { %v4777_v34 = vrot.slane %v1121_v24, 9  ;;  %v2033_v24 = vshll.u32 %v4998_v18, 16  ;;  %3150 = vmatpush.bf16.msra.mxu2 %v5580_v25 }
  0x87   : > { %v1997_v47 = vrot.slane %v1996_v40, 4 }
  0x88   : > { %v1199_v42 = vsel %vm6057_vm5, %v4777_v34, %v1198_v22  ;;  %v1209_v22 = vsel %vm6057_vm5, %v1207_v11, %v1208_v59  ;;  %v2035_v36 = vrot.slane %v2033_v24, 5 }
  0x89   : > { %v1305_v48 = vunpack.c.l.b16 %v1199_v42  ;;  %v2002_v55 = vsel %vm5757_vm2, %v1997_v47, %v2001_v32  ;;  %v1308_v29 = vunpack.c.l.b16 %v1209_v22  ;;  %v2047_v47 = vshll.u32 %v5000_v37, 16  ;;  %v5002_v22 = vld [vmem:[%s5742_s26 + $0x60] sm:$0xf] }
  0x8a   : > { %v2302_v3 = vunpack.c.l.b16 %v2002_v55  ;;  %v2065_v37 = vshll.u32 %v5002_v22, 16 }
  0x8b   : > { %1046 = vmatmul.bf16.gmra.mxu1 %v5482_v27  ;;  %v2005_v27 = vrot.slane %v2003_v23, 4  ;;  %v1333_v57 = vpack.c.b16 %v1306_v35, %v1305_v48  ;;  %v5596_v48 = vld [vmem:[%s7131_s1 + $0x220] sm:$0xff] }
  0x8c   : > { %1427 = vmatmul.bf16.gmra.mxu2 %v1331_v39  ;;  %v4995_v39 = vld [vmem:[%s5742_s26 + $0x44] sm:$0x1]  ;;  %4258 = vmatpush.bf16.msra.mxu0 %v5596_v48 }
  0x8d   : > { %v2006_v45 = vor.u32 %v2005_v27, %v2001_v32  ;;  %v2009_v46 = vshll.u32 %v4995_v39, 16  ;;  %v2021_v32 = vrot.slane %v2020_v20, 4  ;;  %v5556_v27 = vld [vmem:[%s7131_s1 + $0x160] sm:$0xff] }
  0x8e   : > { %2835 = vmatpush.bf16.msra.mxu1 %v5556_v27 }
  0x8f   : > { %v2007_v49 = vrot.slane %v2006_v45, 4  ;;  %v2011_v54 = vrot.slane %v2009_v46, 5  ;;  %v1334_v46 = vpack.c.b16 %v1308_v29, %v1307_v28  ;;  %v5486_v29 = vld [vmem:[%s5742_s26 + $0x48] sm:$0xff] }
  0x91   : > { %1742 = vmatmul.bf16.gmra.mxu3 %v5522_v31  ;;  %v5484_v31 = vld [vmem:[%s5742_s26 + $0x30] sm:$0xff]  ;;  %v2012_v63 = vsel %vm5757_vm2, %v2007_v49, %v2011_v54  ;;  %v1212_v54 = vrot.slane %v5900_v2, 5 }
  0x92   : > { %v2303_v5 = vunpack.c.l.b16 %v2012_v63  ;;  %v5525_v63 = vld [vmem:[%s5742_s26 + $0x48] sm:$0xff] }
  0x93   : > { %v1214_v0 = vrot.slane %v1212_v54, 4 }
  0x94   : > { %v2330_v51 = vpack.c.b16 %v2303_v5, %v2302_v3  ;;  %v2053_v3 = vrot.slane %v2051_v12, 4  ;;  %v5001_v5 = vld [vmem:[%s5742_s26 + $0x5c] sm:$0x1] }
  0x95   : > { %2424 = vmatmul.bf16.gmra.mxu0 %v2328_v60  ;;  %v2023_v60 = vshll.u32 %v4997_v19, 16  ;;  %v1123_v19 = vld [vmem:[%s5742_s26 + $0x48] sm:$0xe]  ;;  %v2057_v59 = vshll.u32 %v5001_v5, 16  ;;  %v5579_v5 = vld [vmem:[%s7131_s1 + $0x198] sm:$0xff] }
  0x96   : > { %v4779_v62 = vrot.slane %v1123_v19, 9  ;;  %3151 = vmatpush.bf16.msra.mxu2 %v5579_v5 }
  0x97   : > { %v2025_v8 = vrot.slane %v2023_v60, 5  ;;  %v2049_v60 = vrot.slane %v2047_v47, 5  ;;  %v2059_v21 = vrot.slane %v2057_v59, 5  ;;  %v5005_v59 = vld [vmem:[%s5742_s26 + $0x6c] sm:$0xf] }
  0x98   : > { %v1213_v10 = vsel %vm6057_vm5, %v4779_v62, %v1212_v54  ;;  %v5526_v54 = vld [vmem:[%s5742_s26 + $0x54] sm:$0xff] }
  0x99   : > { %v2026_v35 = vsel %vm5757_vm2, %v2021_v32, %v2025_v8  ;;  %v2054_v13 = vor.u32 %v2053_v3, %v2049_v60  ;;  %v1309_v18 = vunpack.c.l.b16 %v1213_v10 }
  0x9a   : > { %v2304_v58 = vunpack.c.l.b16 %v2026_v35  ;;  %v2067_v35 = vrot.slane %v2065_v37, 5  ;;  %v5638_v37 = vld [vmem:[%s5742_s26 + $0x64] sm:$0xf] }
  0x9b   : > { %1051 = vmatmul.bf16.gmra.mxu1 %v5483_v15  ;;  %v2029_v15 = vrot.slane %v2027_v14, 4  ;;  %v5637_v14 = vld [vmem:[%s5742_s26 + $0x50] sm:$0x1]  ;;  %v2055_v20 = vrot.slane %v2054_v13, 4 }
  0x9c   : > { %1432 = vmatmul.bf16.gmra.mxu2 %v1332_v50  ;;  %v1215_v1 = vrot.slane %v5637_v14, 5 }
  0x9d   : > { %v2030_v23 = vor.u32 %v2029_v15, %v2025_v8  ;;  %v2060_v27 = vsel %vm5757_vm2, %v2055_v20, %v2059_v21  ;;  %v5487_v20 = vld [vmem:[%s5742_s26 + $0x54] sm:$0xff]  ;;  %v5006_v21 = vld [vmem:[%s5742_s26 + $0x70] sm:$0xf] }
  0x9e   : > { %v1216_v11 = vsel %vm6057_vm5, %v1214_v0, %v1215_v1  ;;  %v2307_v47 = vunpack.c.l.b16 %v2060_v27  ;;  %v2089_v27 = vshll.u32 %v5005_v59, 16 }
  0x9f   : > { %v2031_v34 = vrot.slane %v2030_v23, 4  ;;  %v5003_v23 = vld [vmem:[%s5742_s26 + $0x64] sm:$0xf] }
  0xa0   : > { %v2071_v38 = vshll.u32 %v5003_v23, 16 }
  0xa1   : > { %1747 = vmatmul.bf16.gmra.mxu3 %v5523_v33  ;;  %v4999_v33 = vld [vmem:[%s5742_s26 + $0x54] sm:$0xf]  ;;  %v2036_v49 = vsel %vm5757_vm2, %v2031_v34, %v2035_v36  ;;  %v2062_v36 = vshrl.u32 %v5002_v22, 16 }
  0xa2   : > { %v2038_v42 = vshrl.u32 %v4999_v33, 16  ;;  %v2041_v44 = vshll.u32 %v4999_v33, 16  ;;  %v2305_v61 = vunpack.c.l.b16 %v2036_v49  ;;  %v2073_v49 = vrot.slane %v2071_v38, 5 }
  0xa3   : > { %v2064_v48 = vrot.slane %v2062_v36, 4  ;;  %v1226_v38 = vrot.slane %v5638_v37, 5 }
  0xa4   : > { %v2043_v55 = vrot.slane %v2041_v44, 5  ;;  %v2331_v8 = vpack.c.b16 %v2305_v61, %v2304_v58  ;;  %v1124_v44 = vld [vmem:[%s5742_s26 + $0x54] sm:$0xe]  ;;  %v5004_v61 = vld [vmem:[%s5742_s26 + $0x68] sm:$0x1] }
  0xa5   : > { %2429 = vmatmul.bf16.gmra.mxu0 %v2329_v41  ;;  %v5485_v41 = vld [vmem:[%s5742_s26 + $0x3c] sm:$0xff]  ;;  %v4780_v12 = vrot.slane %v1124_v44, 9  ;;  %v2068_v62 = vor.u32 %v2067_v35, %v2064_v48  ;;  %v2081_v3 = vshll.u32 %v5004_v61, 16  ;;  %v2095_v44 = vshll.u32 %v5006_v21, 16 }
  0xa6   : > { %v2091_v61 = vrot.slane %v2089_v27, 5  ;;  %v5488_v27 = vld [vmem:[%s5742_s26 + $0x60] sm:$0xff] }
  0xa7   : > { %v2069_v10 = vrot.slane %v2068_v62, 4  ;;  %v2083_v13 = vrot.slane %v2081_v3, 5 }
  0xa8   : > { %v6165_v56 = vpop.f32.mrf.mxu1 }
  0xab   : > { %v6170_v4 = vpop.f32.mrf.mxu0  ;;  %1056 = vmatmul.bf16.gmra.mxu1 %v5484_v31  ;;  %v2040_v31 = vrot.slane %v2038_v42, 4  ;;  %v2075_v42 = vshrl.u32 %v5003_v23, 16 }
  0xac   : > { %1437 = vmatmul.bf16.gmra.mxu2 %v1333_v57 }
  0xad   : > { %v2044_v7 = vor.u32 %v2043_v55, %v2040_v31  ;;  %v1222_v31 = vrot.slane %v5990_v53, 5  ;;  %v2077_v55 = vrot.slane %v2075_v42, 4  ;;  %v1125_v42 = vld [vmem:[%s5742_s26 + $0x60] sm:$0xe] }
  0xae   : > { %v6175_v17 = vpop.f32.mrf.mxu2 }
  0xaf   : > { %v6178_v50 = vpop.f32.mrf.mxu3  ;;  %v2045_v15 = vrot.slane %v2044_v7, 4  ;;  %v2078_v1 = vor.u32 %v2077_v55, %v2073_v49 }
  0xb0   : > { %v6180_v16 = vpop.f32.mrf.mxu1 }
  0xb1   : > { %1752 = vmatmul.bf16.gmra.mxu3 %v5524_v9  ;;  %v2050_v32 = vsel %vm5757_vm2, %v2045_v15, %v2049_v60  ;;  %v5587_v15 = vld [vmem:[%s7131_s1 + $0x1d8] sm:$0xff] }
  0xb2   : > { %3833 = vmatpush.bf16.msra.mxu3 %v5587_v15 }
  0xb3   : > { %v6189_v26 = vpop.f32.mrf.mxu0 }
  0xb5   : > { %2434 = vmatmul.bf16.gmra.mxu0 %v2330_v51  ;;  %v1310_v51 = vunpack.c.l.b16 %v1216_v11  ;;  %v2079_v11 = vrot.slane %v2078_v1, 4 }
  0xb6   : > { %v6199_v39 = vpop.f32.mrf.mxu2 }
  0xb7   : > { %v6201_v40 = vpop.f32.mrf.mxu3  ;;  %v1335_v34 = vpack.c.b16 %v1310_v51, %v1309_v18  ;;  %v5555_v18 = vld [vmem:[%s7131_s1 + $0x158] sm:$0xff]  ;;  %v2084_v36 = vsel %vm5757_vm2, %v2079_v11, %v2083_v13 }
  0xb8   : > { %v6204_v45 = vpop.f32.mrf.mxu1  ;;  %2836 = vmatpush.bf16.msra.mxu1 %v5555_v18  ;;  %v2309_v35 = vunpack.c.l.b16 %v2084_v36 }
  0xbb   : > { %1061 = vmatmul.bf16.gmra.mxu1 %v5485_v41  ;;  %v1219_v41 = vrot.slane %v5987_v52, 5 }
  0xbc   : > { %v6215_v57 = vpop.f32.mrf.mxu0  ;;  %1442 = vmatmul.bf16.gmra.mxu2 %v1334_v46  ;;  %v2306_v46 = vunpack.c.l.b16 %v2050_v32 }
  0xbd   : > { %v1221_v19 = vrot.slane %v1219_v41, 4  ;;  %v1220_v14 = vsel %vm6057_vm5, %v4780_v12, %v1219_v41  ;;  %v4781_v12 = vrot.slane %v1125_v42, 9 }
  0xbe   : > { %v6219_v2 = vpop.f32.mrf.mxu2  ;;  %v2332_v60 = vpack.c.b16 %v2307_v47, %v2306_v46  ;;  %v1311_v7 = vunpack.c.l.b16 %v1220_v14  ;;  %v2099_v46 = vshrl.u32 %v5006_v21, 16  ;;  %v5595_v47 = vld [vmem:[%s7131_s1 + $0x218] sm:$0xff] }
  0xbf   : > { %v6222_v6 = vpop.f32.mrf.mxu3  ;;  %v1223_v53 = vsel %vm6057_vm5, %v1221_v19, %v1222_v31  ;;  %4259 = vmatpush.bf16.msra.mxu0 %v5595_v47  ;;  %v1228_v19 = vrot.slane %v1226_v38, 4  ;;  %v5639_v31 = vld [vmem:[%s5742_s26 + $0x68] sm:$0x1]  ;;  %v1227_v5 = vsel %vm6057_vm5, %v4781_v12, %v1226_v38  ;;  %v5009_v21 = vld [vmem:[%s5742_s26 + $0x7c] sm:$0xf] }
  0xc0   : > { %v6224_v9 = vpop.f32.mrf.mxu1  ;;  %v1229_v55 = vrot.slane %v5639_v31, 5  ;;  %v2101_v62 = vrot.slane %v2099_v46, 4  ;;  %v1313_v18 = vunpack.c.l.b16 %v1227_v5  ;;  %v2119_v42 = vshll.u32 %v5009_v21, 16  ;;  %v5640_v47 = vld [vmem:[%s5742_s26 + $0x70] sm:$0xf] }
  0xc1   : > { %1757 = vmatmul.bf16.gmra.mxu3 %v5525_v63 }
  0xc4   : > { %v6232_v24 = vpop.f32.mrf.mxu0 }
  0xc5   : > { %2439 = vmatmul.bf16.gmra.mxu0 %v2331_v8  ;;  %v1312_v8 = vunpack.c.l.b16 %v1223_v53  ;;  %v5007_v53 = vld [vmem:[%s5742_s26 + $0x74] sm:$0x1] }
  0xc6   : > { %v6234_v25 = vpop.f32.mrf.mxu2  ;;  %v2105_v13 = vshll.u32 %v5007_v53, 16 }
  0xc7   : > { %v6236_v28 = vpop.f32.mrf.mxu3  ;;  %v1336_v23 = vpack.c.b16 %v1312_v8, %v1311_v7  ;;  %v1230_v7 = vsel %vm6057_vm5, %v1228_v19, %v1229_v55 }
  0xc8   : > { %v6241_v33 = vpop.f32.mrf.mxu1 }
  0xcb   : > { %1066 = vmatmul.bf16.gmra.mxu1 %v5486_v29  ;;  %v2086_v29 = vshrl.u32 %v5005_v59, 16  ;;  %v5008_v59 = vld [vmem:[%s5742_s26 + $0x78] sm:$0xf] }
  0xcc   : > { %1447 = vmatmul.bf16.gmra.mxu2 %v1335_v34  ;;  %v2074_v34 = vsel %vm5757_vm2, %v2069_v10, %v2073_v49  ;;  %v2110_v36 = vshrl.u32 %v5008_v59, 16  ;;  %v2113_v37 = vshll.u32 %v5008_v59, 16 }
  0xcd   : > { %v2308_v48 = vunpack.c.l.b16 %v2074_v34  ;;  %v2088_v49 = vrot.slane %v2086_v29, 4  ;;  %v2107_v34 = vrot.slane %v2105_v13, 5  ;;  %v5528_v13 = vld [vmem:[%s5742_s26 + $0x6c] sm:$0xff] }
  0xce   : > { %v6249_v58 = vpop.f32.mrf.mxu2  ;;  %v2112_v55 = vrot.slane %v2110_v36, 4 }
  0xcf   : > { %v2333_v1 = vpack.c.b16 %v2309_v35, %v2308_v48  ;;  %v2092_v8 = vor.u32 %v2091_v61, %v2088_v49  ;;  %v1233_v48 = vrot.slane %v5640_v47, 5  ;;  %v2115_v61 = vrot.slane %v2113_v37, 5  ;;  %v5578_v47 = vld [vmem:[%s7131_s1 + $0x190] sm:$0xff] }
  0xd0   : > { %v6252_v52 = vpop.f32.mrf.mxu0  ;;  %v6254_v63 = vpop.f32.mrf.mxu3  ;;  %3152 = vmatpush.bf16.msra.mxu2 %v5578_v47 }
  0xd1   : > { %1762 = vmatmul.bf16.gmra.mxu3 %v5526_v54  ;;  %v6256_v0 = vpop.f32.mrf.mxu1  ;;  %v5527_v54 = vld [vmem:[%s5742_s26 + $0x60] sm:$0xff] }
  0xd5   : > { %2444 = vmatmul.bf16.gmra.mxu0 %v2332_v60  ;;  %v2097_v60 = vrot.slane %v2095_v44, 5  ;;  %v2123_v44 = vshrl.u32 %v5009_v21, 16 }
  0xd6   : > { %v6272_v51 = vpop.f32.mrf.mxu2 }
  0xd7   : > { %v2102_v11 = vor.u32 %v2101_v62, %v2097_v60  ;;  %v2121_v62 = vrot.slane %v2119_v42, 5  ;;  %v2125_v53 = vrot.slane %v2123_v44, 4 }
  0xd8   : > { %v6276_v22 = vpop.f32.mrf.mxu0  ;;  %v6285_v41 = vpop.f32.mrf.mxu3 }
  0xd9   : > { %v6278_v32 = vpop.f32.mrf.mxu1  ;;  %v2103_v29 = vrot.slane %v2102_v11, 4  ;;  %v5010_v11 = vld [vmem:[%s5742_s26 + $0x80] sm:$0x1]  ;;  %v2126_v21 = vor.u32 %v2125_v53, %v2121_v62  ;;  %v5554_v53 = vld [vmem:[%s7131_s1 + $0x150] sm:$0xff] }
  0xda   : > { %2837 = vmatpush.bf16.msra.mxu1 %v5554_v53 }
  0xdb   : > { %1071 = vmatmul.bf16.gmra.mxu1 %v5487_v20  ;;  %v1314_v20 = vunpack.c.l.b16 %v1230_v7  ;;  %v2108_v31 = vsel %vm5757_vm2, %v2103_v29, %v2107_v34  ;;  %v5641_v7 = vld [vmem:[%s5742_s26 + $0x74] sm:$0x1] }
  0xdc   : > { %1452 = vmatmul.bf16.gmra.mxu2 %v1336_v23  ;;  %v2093_v23 = vrot.slane %v2092_v8, 4  ;;  %v1236_v8 = vrot.slane %v5641_v7, 5  ;;  %v5489_v7 = vld [vmem:[%s5742_s26 + $0x6c] sm:$0xff] }
  0xdd   : > { %v1337_v46 = vpack.c.b16 %v1314_v20, %v1313_v18  ;;  %v2311_v18 = vunpack.c.l.b16 %v2108_v31  ;;  %v5011_v31 = vld [vmem:[%s5742_s26 + $0x84] sm:$0xf] }
  0xde   : > { %v2098_v49 = vsel %vm5757_vm2, %v2093_v23, %v2097_v60  ;;  %v1235_v60 = vrot.slane %v1233_v48, 4  ;;  %v2129_v23 = vshll.u32 %v5010_v11, 16 }
  0xdf   : > { %v6293_v14 = vpop.f32.mrf.mxu2  ;;  %v2310_v59 = vunpack.c.l.b16 %v2098_v49 }
  0xe0   : > { %v1237_v36 = vsel %vm6057_vm5, %v1235_v60, %v1236_v8 }
  0xe1   : > { %1767 = vmatmul.bf16.gmra.mxu3 %v5527_v54  ;;  %v6296_v3 = vpop.f32.mrf.mxu1  ;;  %v1126_v54 = vld [vmem:[%s5742_s26 + $0x6c] sm:$0xe]  ;;  %v2334_v37 = vpack.c.b16 %v2311_v18, %v2310_v59  ;;  %v1316_v49 = vunpack.c.l.b16 %v1237_v36 }
  0xe2   : > { %v6302_v10 = vpop.f32.mrf.mxu0  ;;  %v4782_v5 = vrot.slane %v1126_v54, 9  ;;  %v2127_v54 = vrot.slane %v2126_v21, 4 }
  0xe4   : > { %v6305_v15 = vpop.f32.mrf.mxu3  ;;  %v1234_v34 = vsel %vm6057_vm5, %v4782_v5, %v1233_v48  ;;  %v2131_v48 = vrot.slane %v2129_v23, 5 }
  0xe5   : > { %2449 = vmatmul.bf16.gmra.mxu0 %v2333_v1 }
  0xe6   : > { %v2132_v11 = vsel %vm5757_vm2, %v2127_v54, %v2131_v48 }
  0xe7   : > { %v6308_v38 = vpop.f32.mrf.mxu2 }
  0xe9   : > { %v1037_v35 = vpop.f32.mrf.mxu1 }
  0xea   : > { %v6315_v12 = vpop.f32.mrf.mxu0  ;;  %v1038_v19 = vadd.f32 %v1037_v35, %v6170_v4  ;;  %v2116_v4 = vor.u32 %v2115_v61, %v2112_v55  ;;  %v1315_v35 = vunpack.c.l.b16 %v1234_v34  ;;  %v5012_v61 = vld [vmem:[%s5742_s26 + $0x88] sm:$0xf] }
  0xeb   : > { %1076 = vmatmul.bf16.gmra.mxu1 %v5488_v27  ;;  %v2147_v21 = vshrl.u32 %v5012_v61, 16 }
  0xec   : > { %v6320_v1 = vpop.f32.mrf.mxu3  ;;  %1457 = vmatmul.bf16.gmra.mxu2 %v1337_v46  ;;  %v2117_v46 = vrot.slane %v2116_v4, 4  ;;  %v1338_v8 = vpack.c.b16 %v1316_v49, %v1315_v35  ;;  %v2137_v4 = vshll.u32 %v5011_v31, 16 }
  0xed   : > { %v2149_v54 = vrot.slane %v2147_v21, 4 }
  0xee   : > { %v2122_v5 = vsel %vm5757_vm2, %v2117_v46, %v2121_v62  ;;  %v2139_v35 = vrot.slane %v2137_v4, 5 }
  0xef   : > { %v1418_v20 = vpop.f32.mrf.mxu2 }
  0xf0   : > { %v1498_v29 = vadd.f32 %v1418_v20, %v1038_v19  ;;  %v2143_v20 = vshll.u32 %v5012_v61, 16 }
  0xf1   : > { %1772 = vmatmul.bf16.gmra.mxu3 %v5528_v13  ;;  %v1039_v27 = vpop.f32.mrf.mxu1  ;;  %v2134_v13 = vshrl.u32 %v5011_v31, 16 }
  0xf2   : > { %v2415_v42 = vpop.f32.mrf.mxu0  ;;  %v1040_v44 = vadd.f32 %v1039_v27, %v6189_v26  ;;  %v5586_v26 = vld [vmem:[%s7131_s1 + $0x1d0] sm:$0xff]  ;;  %v2145_v49 = vrot.slane %v2143_v20, 5 }
  0xf3   : > { %3834 = vmatpush.bf16.msra.mxu3 %v5586_v26  ;;  %v5594_v27 = vld [vmem:[%s7131_s1 + $0x210] sm:$0xff]  ;;  %v2136_v47 = vrot.slane %v2134_v13, 4  ;;  %v5013_v26 = vld [vmem:[%s5742_s26 + $0x8c] sm:$0x1] }
  0xf4   : > { %v1733_v19 = vpop.f32.mrf.mxu3  ;;  %4260 = vmatpush.bf16.msra.mxu0 %v5594_v27  ;;  %v2153_v4 = vshll.u32 %v5013_v26, 16  ;;  %v5644_v26 = vld [vmem:[%s5742_s26 + $0x88] sm:$0xf] }
  0xf5   : > { %2454 = vmatmul.bf16.gmra.mxu0 %v2334_v37  ;;  %v1813_v55 = vadd.f32 %v1733_v19, %v1498_v29  ;;  %v5642_v29 = vld [vmem:[%s5742_s26 + $0x7c] sm:$0xf]  ;;  %v1127_v37 = vld [vmem:[%s5742_s26 + $0x78] sm:$0xe] }
  0xf6   : > { %v1240_v34 = vrot.slane %v5642_v29, 5  ;;  %v5529_v19 = vld [vmem:[%s5742_s26 + $0x78] sm:$0xff] }
  0xf7   : > { %v1420_v60 = vpop.f32.mrf.mxu2  ;;  %v6346_v59 = vadd.f32 %v2415_v42, %v1813_v55  ;;  %v2312_v42 = vunpack.c.l.b16 %v2122_v5  ;;  %v5643_v55 = vld [vmem:[%s5742_s26 + $0x80] sm:$0x1] }
  0xf8   : > { %v1499_v18 = vadd.f32 %v1420_v60, %v1040_v44  ;;  %v2313_v44 = vunpack.c.l.b16 %v2132_v11  ;;  %v1242_v31 = vrot.slane %v1240_v34, 4  ;;  %v1243_v61 = vrot.slane %v5643_v55, 5 }
  0xf9   : > { %v1042_v23 = vpop.f32.mrf.mxu1 }
  0xfa   : > { %v2417_v62 = vpop.f32.mrf.mxu0  ;;  %v1043_v36 = vadd.f32 %v1042_v23, %v6215_v57  ;;  %v4783_v57 = vrot.slane %v1127_v37, 9  ;;  %v2335_v60 = vpack.c.b16 %v2313_v44, %v2312_v42  ;;  %v2140_v23 = vor.u32 %v2139_v35, %v2136_v47  ;;  %v5490_v47 = vld [vmem:[%s5742_s26 + $0x78] sm:$0xff]  ;;  %v5015_v35 = vld [vmem:[%s5742_s26 + $0x94] sm:$0xf] }
  0xfb   : > { %1081 = vmatmul.bf16.gmra.mxu1 %v5489_v7  ;;  %v1244_v13 = vsel %vm6057_vm5, %v1242_v31, %v1243_v61  ;;  %v2155_v44 = vrot.slane %v2153_v4, 5 }
  0xfc   : > { %v1735_v46 = vpop.f32.mrf.mxu3  ;;  %1462 = vmatmul.bf16.gmra.mxu2 %v1338_v8  ;;  %v1241_v11 = vsel %vm6057_vm5, %v4783_v57, %v1240_v34  ;;  %v2141_v27 = vrot.slane %v2140_v23, 4  ;;  %v5014_v34 = vld [vmem:[%s5742_s26 + $0x90] sm:$0xf]  ;;  %v1128_v23 = vld [vmem:[%s5742_s26 + $0x84] sm:$0xe] }
  0xfd   : > { %v1814_v48 = vadd.f32 %v1735_v46, %v1499_v18  ;;  %v2150_v18 = vor.u32 %v2149_v54, %v2145_v49  ;;  %v2158_v57 = vshrl.u32 %v5014_v34, 16 }
  0xfe   : > { %v2146_v55 = vsel %vm5757_vm2, %v2141_v27, %v2145_v49 }
  0xff   : > { %v1423_v53 = vpop.f32.mrf.mxu2  ;;  %v6357_v5 = vadd.f32 %v2417_v62, %v1814_v48  ;;  %v1318_v62 = vunpack.c.l.b16 %v1244_v13  ;;  %v2151_v42 = vrot.slane %v2150_v18, 4  ;;  %v2314_v18 = vunpack.c.l.b16 %v2146_v55 }
 0x100   : > { %v1500_v7 = vadd.f32 %v1423_v53, %v1043_v36  ;;  %v1317_v36 = vunpack.c.l.b16 %v1241_v11  ;;  %v1247_v53 = vrot.slane %v5644_v26, 5  ;;  %v2171_v11 = vshrl.u32 %v5015_v35, 16 }
 0x101   : > { %1777 = vmatmul.bf16.gmra.mxu3 %v5529_v19  ;;  %v1044_v8 = vpop.f32.mrf.mxu1  ;;  %v2156_v61 = vsel %vm5757_vm2, %v2151_v42, %v2155_v44  ;;  %v2160_v49 = vrot.slane %v2158_v57, 4 }
 0x102   : > { %v2420_v20 = vpop.f32.mrf.mxu0  ;;  %v1045_v21 = vadd.f32 %v1044_v8, %v6232_v24  ;;  %v1339_v19 = vpack.c.b16 %v1318_v62, %v1317_v36  ;;  %v2161_v24 = vshll.u32 %v5014_v34, 16  ;;  %v2167_v8 = vshll.u32 %v5015_v35, 16  ;;  %v5016_v34 = vld [vmem:[%s5742_s26 + $0x98] sm:$0x1] }
 0x103   : > { %v2315_v4 = vunpack.c.l.b16 %v2156_v61  ;;  %v4784_v36 = vrot.slane %v1128_v23, 9  ;;  %v1249_v62 = vrot.slane %v1247_v53, 4  ;;  %v2177_v26 = vshll.u32 %v5016_v34, 16 }
 0x104   : > { %v1738_v29 = vpop.f32.mrf.mxu3  ;;  %v6378_v42 = vrot.slane %v2167_v8, 5 }
 0x105   : > { %2459 = vmatmul.bf16.gmra.mxu0 %v2335_v60  ;;  %v1815_v37 = vadd.f32 %v1738_v29, %v1500_v7  ;;  %v5530_v29 = vld [vmem:[%s5742_s26 + $0x84] sm:$0xff]  ;;  %v2336_v35 = vpack.c.b16 %v2315_v4, %v2314_v18 }
 0x106   : > { %v5553_v4 = vld [vmem:[%s7131_s1 + $0x148] sm:$0xff] }
 0x107   : > { %v1425_v46 = vpop.f32.mrf.mxu2  ;;  %v6367_v48 = vadd.f32 %v2420_v20, %v1815_v37  ;;  %v2163_v20 = vrot.slane %v2161_v24, 5  ;;  %v5645_v37 = vld [vmem:[%s5742_s26 + $0x8c] sm:$0x1]  ;;  %2838 = vmatpush.bf16.msra.mxu1 %v5553_v4 }
 0x108   : > { %v1501_v54 = vadd.f32 %v1425_v46, %v1045_v21  ;;  %v1250_v27 = vrot.slane %v5645_v37, 5 }
 0x109   : > { %v1047_v31 = vpop.f32.mrf.mxu1  ;;  %v2164_v24 = vor.u32 %v2163_v20, %v2160_v49  ;;  %v2179_v20 = vrot.slane %v2177_v26, 5 }
 0x10a   : > { %v2422_v60 = vpop.f32.mrf.mxu0  ;;  %v1048_v7 = vadd.f32 %v1047_v31, %v6252_v52  ;;  %v2173_v52 = vrot.slane %v2171_v11, 4  ;;  %v1251_v57 = vsel %vm6057_vm5, %v1249_v62, %v1250_v27  ;;  %v5491_v62 = vld [vmem:[%s5742_s26 + $0x84] sm:$0xff] }
 0x10b   : > { %1086 = vmatmul.bf16.gmra.mxu1 %v5490_v47  ;;  %v1320_v11 = vunpack.c.l.b16 %v1251_v57  ;;  %v2165_v18 = vrot.slane %v2164_v24, 4  ;;  %v1129_v57 = vld [vmem:[%s5742_s26 + $0x90] sm:$0xe] }
 0x10c   : > { %v1740_v13 = vpop.f32.mrf.mxu3  ;;  %1467 = vmatmul.bf16.gmra.mxu2 %v1339_v19  ;;  %v2174_v61 = vor.u32 %v2173_v52, %v6378_v42 }
 0x10d   : > { %v1816_v21 = vadd.f32 %v1740_v13, %v1501_v54  ;;  %v1248_v54 = vsel %vm6057_vm5, %v4784_v36, %v1247_v53  ;;  %v5018_v53 = vld [vmem:[%s5742_s26 + $0xa0] sm:$0xf] }
 0x10e   : > { %v1319_v8 = vunpack.c.l.b16 %v1248_v54  ;;  %v2175_v49 = vrot.slane %v2174_v61, 4  ;;  %v2191_v37 = vshll.u32 %v5018_v53, 16  ;;  %v2195_v27 = vshrl.u32 %v5018_v53, 16  ;;  %v5647_v53 = vld [vmem:[%s5742_s26 + $0x98] sm:$0x1] }
 0x10f   : > { %v1428_v44 = vpop.f32.mrf.mxu2  ;;  %v6381_v47 = vadd.f32 %v2422_v60, %v1816_v21  ;;  %v5577_v60 = vld [vmem:[%s7131_s1 + $0x188] sm:$0xff]  ;;  %v2170_v54 = vsel %vm5757_vm2, %v2165_v18, %v6378_v42  ;;  %v4785_v42 = vrot.slane %v1129_v57, 9 }
 0x110   : > { %v1502_v46 = vadd.f32 %v1428_v44, %v1048_v7  ;;  %v5017_v7 = vld [vmem:[%s5742_s26 + $0x9c] sm:$0xf]  ;;  %3153 = vmatpush.bf16.msra.mxu2 %v5577_v60  ;;  %v1340_v34 = vpack.c.b16 %v1320_v11, %v1319_v8  ;;  %v2180_v26 = vsel %vm5757_vm2, %v2175_v49, %v2179_v20  ;;  %v5593_v60 = vld [vmem:[%s7131_s1 + $0x208] sm:$0xff]  ;;  %v2316_v4 = vunpack.c.l.b16 %v2170_v54 }
 0x111   : > { %1782 = vmatmul.bf16.gmra.mxu3 %v5530_v29  ;;  %v1049_v19 = vpop.f32.mrf.mxu1  ;;  %v2182_v21 = vshrl.u32 %v5017_v7, 16  ;;  %v2185_v29 = vshll.u32 %v5017_v7, 16  ;;  %v2193_v7 = vrot.slane %v2191_v37, 5  ;;  %4261 = vmatpush.bf16.msra.mxu0 %v5593_v60  ;;  %v2317_v49 = vunpack.c.l.b16 %v2180_v26 }
 0x112   : > { %v2425_v31 = vpop.f32.mrf.mxu0  ;;  %v1050_v55 = vadd.f32 %v1049_v19, %v6276_v22  ;;  %v5585_v22 = vld [vmem:[%s7131_s1 + $0x1c8] sm:$0xff] }
 0x113   : > { %3835 = vmatpush.bf16.msra.mxu3 %v5585_v22  ;;  %v5531_v22 = vld [vmem:[%s5742_s26 + $0x90] sm:$0xff] }
 0x114   : > { %v1743_v23 = vpop.f32.mrf.mxu3 }
 0x115   : > { %2464 = vmatmul.bf16.gmra.mxu0 %v2336_v35  ;;  %v1817_v13 = vadd.f32 %v1743_v23, %v1502_v46  ;;  %v5646_v46 = vld [vmem:[%s5742_s26 + $0x94] sm:$0xf]  ;;  %v2197_v23 = vrot.slane %v2195_v27, 4 }
 0x116   : > { %v1254_v35 = vrot.slane %v5646_v46, 5 }
 0x117   : > { %v1430_v36 = vpop.f32.mrf.mxu2  ;;  %v6401_v52 = vadd.f32 %v2425_v31, %v1817_v13  ;;  %v2184_v31 = vrot.slane %v2182_v21, 4  ;;  %v1257_v13 = vrot.slane %v5647_v53, 5 }
 0x118   : > { %v1503_v44 = vadd.f32 %v1430_v36, %v1050_v55  ;;  %v2187_v55 = vrot.slane %v2185_v29, 5  ;;  %v1256_v11 = vrot.slane %v1254_v35, 4  ;;  %v2198_v29 = vor.u32 %v2197_v23, %v2193_v7 }
 0x119   : > { %v1052_v19 = vpop.f32.mrf.mxu1  ;;  %v1255_v37 = vsel %vm6057_vm5, %v4785_v42, %v1254_v35  ;;  %v5020_v35 = vld [vmem:[%s5742_s26 + $0xa8] sm:$0xf] }
 0x11a   : > { %v2427_v24 = vpop.f32.mrf.mxu0  ;;  %v1053_v61 = vadd.f32 %v1052_v19, %v6302_v10  ;;  %v5019_v10 = vld [vmem:[%s5742_s26 + $0xa4] sm:$0x1]  ;;  %v2188_v20 = vor.u32 %v2187_v55, %v2184_v31  ;;  %v1258_v27 = vsel %vm6057_vm5, %v1256_v11, %v1257_v13  ;;  %v1321_v26 = vunpack.c.l.b16 %v1255_v37  ;;  %v5492_v11 = vld [vmem:[%s5742_s26 + $0x90] sm:$0xff] }
 0x11b   : > { %1091 = vmatmul.bf16.gmra.mxu1 %v5491_v62  ;;  %v2201_v36 = vshll.u32 %v5019_v10, 16  ;;  %v1322_v31 = vunpack.c.l.b16 %v1258_v27  ;;  %v2206_v13 = vshrl.u32 %v5020_v35, 16 }
 0x11c   : > { %v1745_v8 = vpop.f32.mrf.mxu3  ;;  %1472 = vmatmul.bf16.gmra.mxu2 %v1340_v34  ;;  %v2189_v57 = vrot.slane %v2188_v20, 4 }
 0x11d   : > { %v1818_v18 = vadd.f32 %v1745_v8, %v1503_v44  ;;  %v2337_v44 = vpack.c.b16 %v2317_v49, %v2316_v4  ;;  %v2203_v55 = vrot.slane %v2201_v36, 5  ;;  %v5021_v8 = vld [vmem:[%s5742_s26 + $0xac] sm:$0xf]  ;;  %v1341_v53 = vpack.c.b16 %v1322_v31, %v1321_v26  ;;  %v5532_v26 = vld [vmem:[%s5742_s26 + $0x9c] sm:$0xff] }
 0x11e   : > { %v2215_v4 = vshll.u32 %v5021_v8, 16  ;;  %v2219_v49 = vshrl.u32 %v5021_v8, 16 }
 0x11f   : > { %v1433_v21 = vpop.f32.mrf.mxu2  ;;  %v6421_v34 = vadd.f32 %v2427_v24, %v1818_v18  ;;  %v2194_v24 = vsel %vm5757_vm2, %v2189_v57, %v2193_v7  ;;  %v1130_v7 = vld [vmem:[%s5742_s26 + $0x9c] sm:$0xe] }
 0x120   : > { %v1504_v62 = vadd.f32 %v1433_v21, %v1053_v61  ;;  %v2199_v61 = vrot.slane %v2198_v29, 4  ;;  %v5648_v21 = vld [vmem:[%s5742_s26 + $0xa0] sm:$0xf]  ;;  %v4786_v31 = vrot.slane %v1130_v7, 9  ;;  %v5023_v7 = vld [vmem:[%s5742_s26 + $0xb4] sm:$0xf] }
 0x121   : > { %1787 = vmatmul.bf16.gmra.mxu3 %v5531_v22  ;;  %v1054_v46 = vpop.f32.mrf.mxu1  ;;  %v2209_v22 = vshll.u32 %v5020_v35, 16  ;;  %v1261_v29 = vrot.slane %v5648_v21, 5 }
 0x122   : > { %v2430_v19 = vpop.f32.mrf.mxu0  ;;  %v1055_v54 = vadd.f32 %v1054_v46, %v6315_v12  ;;  %v2204_v12 = vsel %vm5757_vm2, %v2199_v61, %v2203_v55  ;;  %v5649_v55 = vld [vmem:[%s5742_s26 + $0xa4] sm:$0x1] }
 0x123   : > { %v2319_v37 = vunpack.c.l.b16 %v2204_v12  ;;  %v2211_v46 = vrot.slane %v2209_v22, 5  ;;  %v1263_v61 = vrot.slane %v1261_v29, 4 }
 0x124   : > { %v1748_v60 = vpop.f32.mrf.mxu3 }
 0x125   : > { %2469 = vmatmul.bf16.gmra.mxu0 %v2337_v44  ;;  %v1819_v23 = vadd.f32 %v1748_v60, %v1504_v62  ;;  %v2318_v62 = vunpack.c.l.b16 %v2194_v24  ;;  %v2208_v44 = vrot.slane %v2206_v13, 4  ;;  %v1264_v60 = vrot.slane %v5649_v55, 5 }
 0x126   : > { %v1262_v13 = vsel %vm6057_vm5, %v4786_v31, %v1261_v29  ;;  %v5024_v31 = vld [vmem:[%s5742_s26 + $0xb8] sm:$0xf]  ;;  %v2233_v55 = vshll.u32 %v5023_v7, 16 }
 0x127   : > { %v1435_v42 = vpop.f32.mrf.mxu2  ;;  %v6431_v10 = vadd.f32 %v2430_v19, %v1819_v23  ;;  %v2217_v19 = vrot.slane %v2215_v4, 5  ;;  %v5022_v23 = vld [vmem:[%s5742_s26 + $0xb0] sm:$0x1]  ;;  %v1323_v21 = vunpack.c.l.b16 %v1262_v13  ;;  %v1131_v13 = vld [vmem:[%s5742_s26 + $0xa8] sm:$0xe] }
 0x128   : > { %v1505_v18 = vadd.f32 %v1435_v42, %v1055_v54  ;;  %v2221_v54 = vrot.slane %v2219_v49, 4  ;;  %v2338_v42 = vpack.c.b16 %v2319_v37, %v2318_v62  ;;  %v2225_v4 = vshll.u32 %v5022_v23, 16 }
 0x129   : > { %v1057_v20 = vpop.f32.mrf.mxu1 }
 0x12a   : > { %v2432_v36 = vpop.f32.mrf.mxu0  ;;  %v1058_v35 = vadd.f32 %v1057_v20, %v6165_v56  ;;  %v2222_v22 = vor.u32 %v2221_v54, %v2217_v19  ;;  %v5576_v56 = vld [vmem:[%s7131_s1 + $0x180] sm:$0xff] }
 0x12b   : > { %1096 = vmatmul.bf16.gmra.mxu1 %v5492_v11  ;;  %v2212_v11 = vor.u32 %v2211_v46, %v2208_v44  ;;  %3154 = vmatpush.bf16.msra.mxu2 %v5576_v56  ;;  %v5584_v44 = vld [vmem:[%s7131_s1 + $0x1c0] sm:$0xff]  ;;  %v2235_v56 = vrot.slane %v2233_v55, 5 }
 0x12c   : > { %v1750_v27 = vpop.f32.mrf.mxu3  ;;  %1477 = vmatmul.bf16.gmra.mxu2 %v1341_v53  ;;  %v2223_v37 = vrot.slane %v2222_v22, 4  ;;  %v5552_v46 = vld [vmem:[%s7131_s1 + $0x140] sm:$0xff]  ;;  %3836 = vmatpush.bf16.msra.mxu3 %v5584_v44  ;;  %v2243_v22 = vshrl.u32 %v5024_v31, 16 }
 0x12d   : > { %v1820_v57 = vadd.f32 %v1750_v27, %v1505_v18  ;;  %v1265_v18 = vsel %vm6057_vm5, %v1263_v61, %v1264_v60  ;;  %v2213_v29 = vrot.slane %v2212_v11, 4  ;;  %v2227_v27 = vrot.slane %v2225_v4, 5  ;;  %2839 = vmatpush.bf16.msra.mxu1 %v5552_v46  ;;  %v5592_v4 = vld [vmem:[%s7131_s1 + $0x200] sm:$0xff] }
 0x12e   : > { %v2230_v61 = vshrl.u32 %v5023_v7, 16  ;;  %4262 = vmatpush.bf16.msra.mxu0 %v5592_v4  ;;  %v5533_v7 = vld [vmem:[%s5742_s26 + $0xa8] sm:$0xff]  ;;  %v5026_v4 = vld [vmem:[%s5742_s26 + $0xc0] sm:$0xf] }
 0x12f   : > { %v1438_v8 = vpop.f32.mrf.mxu2  ;;  %v6439_v12 = vadd.f32 %v2432_v36, %v1820_v57  ;;  %v1324_v36 = vunpack.c.l.b16 %v1265_v18  ;;  %v2239_v18 = vshll.u32 %v5024_v31, 16 }
 0x130   : > { %v1506_v24 = vadd.f32 %v1438_v8, %v1058_v35 }
 0x131   : > { %1792 = vmatmul.bf16.gmra.mxu3 %v5532_v26  ;;  %v1059_v53 = vpop.f32.mrf.mxu1  ;;  %v5493_v26 = vld [vmem:[%s5742_s26 + $0x9c] sm:$0xff]  ;;  %v1342_v23 = vpack.c.b16 %v1324_v36, %v1323_v21  ;;  %v2241_v46 = vrot.slane %v2239_v18, 5 }
 0x132   : > { %v2435_v49 = vpop.f32.mrf.mxu0  ;;  %v1060_v54 = vadd.f32 %v1059_v53, %v6180_v16  ;;  %v5650_v16 = vld [vmem:[%s5742_s26 + $0xac] sm:$0xf] }
 0x133   : > { %v1268_v11 = vrot.slane %v5650_v16, 5 }
 0x134   : > { %v1753_v20 = vpop.f32.mrf.mxu3 }
 0x135   : > { %2474 = vmatmul.bf16.gmra.mxu0 %v2338_v42  ;;  %v1821_v62 = vadd.f32 %v1753_v20, %v1506_v24  ;;  %v2218_v42 = vsel %vm5757_vm2, %v2213_v29, %v2217_v19  ;;  %v2228_v24 = vsel %vm5757_vm2, %v2223_v37, %v2227_v27  ;;  %v1270_v29 = vrot.slane %v1268_v11, 4  ;;  %v5651_v37 = vld [vmem:[%s5742_s26 + $0xb0] sm:$0x1] }
 0x136   : > { %v2320_v20 = vunpack.c.l.b16 %v2218_v42  ;;  %v2321_v21 = vunpack.c.l.b16 %v2228_v24  ;;  %v1271_v27 = vrot.slane %v5651_v37, 5  ;;  %v2254_v37 = vshrl.u32 %v5026_v4, 16 }
 0x137   : > { %v1440_v57 = vpop.f32.mrf.mxu2  ;;  %v6458_v60 = vadd.f32 %v2435_v49, %v1821_v62  ;;  %v2232_v49 = vrot.slane %v2230_v61, 4  ;;  %v4787_v62 = vrot.slane %v1131_v13, 9 }
 0x138   : > { %v1507_v35 = vadd.f32 %v1440_v57, %v1060_v54  ;;  %v2245_v54 = vrot.slane %v2243_v22, 4 }
 0x139   : > { %v1062_v8 = vpop.f32.mrf.mxu1  ;;  %v2236_v31 = vor.u32 %v2235_v56, %v2232_v49  ;;  %v1269_v42 = vsel %vm6057_vm5, %v4787_v62, %v1268_v11  ;;  %v5027_v56 = vld [vmem:[%s5742_s26 + $0xc4] sm:$0xf]  ;;  %v5494_v62 = vld [vmem:[%s5742_s26 + $0xa8] sm:$0xff] }
 0x13a   : > { %v2437_v53 = vpop.f32.mrf.mxu0  ;;  %v1063_v44 = vadd.f32 %v1062_v8, %v6204_v45  ;;  %v1272_v45 = vsel %vm6057_vm5, %v1270_v29, %v1271_v27  ;;  %v2246_v24 = vor.u32 %v2245_v54, %v2241_v46  ;;  %v1325_v22 = vunpack.c.l.b16 %v1269_v42 }
 0x13b   : > { %1101 = vmatmul.bf16.gmra.mxu1 %v5493_v26  ;;  %v5025_v26 = vld [vmem:[%s5742_s26 + $0xbc] sm:$0x1]  ;;  %v2237_v13 = vrot.slane %v2236_v31, 4  ;;  %v2257_v27 = vshll.u32 %v5026_v4, 16  ;;  %v2267_v31 = vshrl.u32 %v5027_v56, 16 }
 0x13c   : > { %v1755_v19 = vpop.f32.mrf.mxu3  ;;  %1482 = vmatmul.bf16.gmra.mxu2 %v1342_v23  ;;  %v2249_v16 = vshll.u32 %v5025_v26, 16  ;;  %v2263_v26 = vshll.u32 %v5027_v56, 16 }
 0x13d   : > { %v1822_v36 = vadd.f32 %v1755_v19, %v1507_v35  ;;  %v2339_v35 = vpack.c.b16 %v2321_v21, %v2320_v20  ;;  %v5652_v19 = vld [vmem:[%s5742_s26 + $0x10] sm:$0xf]  ;;  %v2247_v21 = vrot.slane %v2246_v24, 4  ;;  %v2242_v29 = vsel %vm5757_vm2, %v2237_v13, %v2241_v46 }
 0x13e   : > { %v2593_v20 = vrot.slane %v5652_v19, 5  ;;  %v2256_v13 = vrot.slane %v2254_v37, 4  ;;  %v2269_v56 = vrot.slane %v2267_v31, 4 }
 0x13f   : > { %v1443_v57 = vpop.f32.mrf.mxu2  ;;  %v6473_v55 = vadd.f32 %v2437_v53, %v1822_v36  ;;  %v1326_v53 = vunpack.c.l.b16 %v1272_v45  ;;  %v2251_v36 = vrot.slane %v2249_v16, 5  ;;  %v5654_v45 = vld [vmem:[%s5742_s26 + $0x14] sm:$0x1] }
 0x140   : > { %v1508_v61 = vadd.f32 %v1443_v57, %v1063_v44  ;;  %v2595_v42 = vrot.slane %v2593_v20, 4  ;;  %v2596_v24 = vrot.slane %v5654_v45, 5 }
 0x141   : > { %7139 = vst [vmem:[#allocation2_spill] sm:$0xff] %v6473_v55  ;;  %1797 = vmatmul.bf16.gmra.mxu3 %v5533_v7  ;;  %v1064_v23 = vpop.f32.mrf.mxu1  ;;  %v1343_v57 = vpack.c.b16 %v1326_v53, %v1325_v22  ;;  %v2252_v46 = vsel %vm5757_vm2, %v2247_v21, %v2251_v36  ;;  %v5077_v22 = vld [vmem:[%s5742_s26 + $0xc] sm:$0xe]  ;;  %v5028_v21 = vld [vmem:[%s5742_s26 + $0xc8] sm:$0x1] }
 0x142   : > { %v2440_v8 = vpop.f32.mrf.mxu0  ;;  %v1065_v11 = vadd.f32 %v1064_v23, %v6224_v9  ;;  %v5653_v9 = vld [vmem:[%s5742_s26 + $0xb8] sm:$0xf]  ;;  %v5093_v19 = vrot.slane %v5077_v22, 9 }
 0x143   : > { %v1275_v23 = vrot.slane %v5653_v9, 5  ;;  %v2323_v9 = vunpack.c.l.b16 %v2252_v46 }
 0x144   : > { %v1758_v18 = vpop.f32.mrf.mxu3 }
 0x145   : > { %2479 = vmatmul.bf16.gmra.mxu0 %v2339_v35  ;;  %v1823_v49 = vadd.f32 %v1758_v18, %v1508_v61  ;;  %v1132_v35 = vld [vmem:[%s5742_s26 + $0xb4] sm:$0xe]  ;;  %v2259_v18 = vrot.slane %v2257_v27, 5  ;;  %v1277_v45 = vrot.slane %v1275_v23, 4 }
 0x146   : > { %v4788_v4 = vrot.slane %v1132_v35, 9  ;;  %v2273_v35 = vshll.u32 %v5028_v21, 16  ;;  %v5495_v21 = vld [vmem:[%s5742_s26 + $0xb4] sm:$0xff] }
 0x147   : > { %v1445_v7 = vpop.f32.mrf.mxu2  ;;  %v6486_v44 = vadd.f32 %v2440_v8, %v1823_v49  ;;  %v2322_v8 = vunpack.c.l.b16 %v2242_v29  ;;  %v2265_v49 = vrot.slane %v2263_v26, 5  ;;  %v2597_v29 = vsel %vm6057_vm5, %v2595_v42, %v2596_v24  ;;  %v5301_v42 = vld [vmem:[%s5742_s26 + $0x18] sm:$0xf] }
 0x148   : > { %v1509_v54 = vadd.f32 %v1445_v7, %v1065_v11  ;;  %v5534_v7 = vld [vmem:[%s5742_s26 + $0xb4] sm:$0xff]  ;;  %v2260_v27 = vor.u32 %v2259_v18, %v2256_v13  ;;  %v1276_v31 = vsel %vm6057_vm5, %v4788_v4, %v1275_v23  ;;  %v6512_v18 = vld [vmem:[%s5742_s26 + $0x1c] sm:$0xf] }
 0x149   : > { %7140 = vst [vmem:[#allocation3_spill] sm:$0xff] %v6486_v44  ;;  %v1067_v61 = vpop.f32.mrf.mxu1  ;;  %v5655_v44 = vld [vmem:[%s5742_s26 + $0xbc] sm:$0x1]  ;;  %v1327_v22 = vunpack.c.l.b16 %v1276_v31 }
 0x14a   : > { %v2442_v16 = vpop.f32.mrf.mxu0  ;;  %v1278_v55 = vrot.slane %v5655_v44, 5  ;;  %v1068_v36 = vadd.f32 %v1067_v61, %v6241_v33  ;;  %v2270_v44 = vor.u32 %v2269_v56, %v2265_v49  ;;  %v2340_v33 = vpack.c.b16 %v2323_v9, %v2322_v8 }
 0x14b   : > { %1106 = vmatmul.bf16.gmra.mxu1 %v5494_v62  ;;  %v2594_v62 = vsel %vm6057_vm5, %v5093_v19, %v2593_v20  ;;  %v2275_v19 = vrot.slane %v2273_v35, 5  ;;  %v3317_v8 = vshrl.u32 %v5301_v42, 16  ;;  %v3320_v9 = vshll.u32 %v5301_v42, 16  ;;  %v5303_v35 = vld [vmem:[%s5742_s26 + $0x20] sm:$0x1] }
 0x14c   : > { %v1760_v53 = vpop.f32.mrf.mxu3  ;;  %1487 = vmatmul.bf16.gmra.mxu2 %v1343_v57  ;;  %v2720_v57 = vunpack.c.l.b16 %v2594_v62  ;;  %v1279_v20 = vsel %vm6057_vm5, %v1277_v45, %v1278_v55  ;;  %v2271_v56 = vrot.slane %v2270_v44, 4  ;;  %v3326_v55 = vshll.u32 %v6512_v18, 16 }
 0x14d   : > { %v1824_v11 = vadd.f32 %v1760_v53, %v1509_v54  ;;  %v2721_v54 = vunpack.c.l.b16 %v2597_v29  ;;  %v2261_v53 = vrot.slane %v2260_v27, 4  ;;  %v1328_v4 = vunpack.c.l.b16 %v1279_v20 }
 0x14e   : > { %v2276_v27 = vsel %vm5757_vm2, %v2271_v56, %v2275_v19  ;;  %v3328_v31 = vrot.slane %v3326_v55, 5  ;;  %v5304_v56 = vld [vmem:[%s5742_s26 + $0x24] sm:$0xf] }
 0x14f   : > { %v1448_v37 = vpop.f32.mrf.mxu2  ;;  %v6506_v46 = vpack.c.b16 %v2721_v54, %v2720_v57  ;;  %v6509_v24 = vadd.f32 %v2442_v16, %v1824_v11  ;;  %v3330_v16 = vshrl.u32 %v6512_v18, 16  ;;  %v1344_v29 = vpack.c.b16 %v1328_v4, %v1327_v22 }
 0x150   : > { %v1510_v26 = vadd.f32 %v1448_v37, %v1068_v36  ;;  %v2266_v37 = vsel %vm5757_vm2, %v2261_v53, %v2265_v49  ;;  %v3319_v54 = vrot.slane %v3317_v8, 4  ;;  %v2325_v20 = vunpack.c.l.b16 %v2276_v27 }
 0x151   : > { %1802 = vmatmul.bf16.gmra.mxu3 %v5534_v7  ;;  %v1069_v61 = vpop.f32.mrf.mxu1  ;;  %v3332_v44 = vrot.slane %v3330_v16, 4  ;;  %v3336_v53 = vshll.u32 %v5303_v35, 16  ;;  %v3344_v27 = vshll.u32 %v5304_v56, 16 }
 0x152   : > { %v2445_v13 = vpop.f32.mrf.mxu0  ;;  %v1070_v11 = vadd.f32 %v1069_v61, %v6256_v0  ;;  %v2324_v61 = vunpack.c.l.b16 %v2266_v37  ;;  %v3341_v37 = vshrl.u32 %v5304_v56, 16  ;;  %v5656_v56 = vld [vmem:[%s5742_s26 + $0x1c] sm:$0xf] }
 0x153   : > { %v3333_v22 = vor.u32 %v3332_v44, %v3328_v31 }
 0x154   : > { %v1763_v23 = vpop.f32.mrf.mxu3  ;;  %v2341_v19 = vpack.c.b16 %v2325_v20, %v2324_v61  ;;  %v4019_v20 = vrot.slane %v5303_v35, 5 }
 0x155   : > { %2484 = vmatmul.bf16.gmra.mxu0 %v2340_v33  ;;  %v1825_v7 = vadd.f32 %v1763_v23, %v1510_v26  ;;  %v3322_v26 = vrot.slane %v3320_v9, 5  ;;  %v3334_v16 = vrot.slane %v3333_v22, 4 }
 0x157   : > { %v1450_v45 = vpop.f32.mrf.mxu2  ;;  %v6518_v36 = vadd.f32 %v2445_v13, %v1825_v7  ;;  %v5535_v13 = vld [vmem:[%s5742_s26 + $0xc0] sm:$0xff]  ;;  %v3323_v49 = vor.u32 %v3322_v26, %v3319_v54  ;;  %v6529_v7 = vld [vmem:[%s5742_s26 + $0x28] sm:$0xf] }
 0x158   : > { %v1511_v62 = vadd.f32 %v1450_v45, %v1070_v11  ;;  %v3338_v11 = vrot.slane %v3336_v53, 5 }
 0x159   : > { %v1072_v57 = vpop.f32.mrf.mxu1  ;;  %v3324_v55 = vrot.slane %v3323_v49, 4  ;;  %v3346_v49 = vrot.slane %v3344_v27, 5 }
 0x15a   : > { %v2447_v0 = vpop.f32.mrf.mxu0  ;;  %v1073_v23 = vadd.f32 %v1072_v57, %v6278_v32  ;;  %v3350_v32 = vshll.u32 %v6529_v7, 16  ;;  %v3354_v57 = vshrl.u32 %v6529_v7, 16 }
 0x15b   : > { %1111 = vmatmul.bf16.gmra.mxu1 %v5495_v21  ;;  %v3329_v44 = vsel %vm5757_vm2, %v3324_v55, %v3328_v31  ;;  %v5560_v31 = vld [vmem:[%s5742_s26 + $0x18] sm:$0xff] }
 0x15c   : > { %v1765_v33 = vpop.f32.mrf.mxu3  ;;  %1492 = vmatmul.bf16.gmra.mxu2 %v1344_v29  ;;  %v4016_v29 = vrot.slane %v6512_v18, 5  ;;  %v6542_v22 = vrot.slane %v3350_v32, 5  ;;  %v3356_v53 = vrot.slane %v3354_v57, 4 }
 0x15d   : > { %v1826_v42 = vadd.f32 %v1765_v33, %v1511_v62  ;;  %v5397_v62 = vld [vmem:[%s5742_s26 + $0x18] sm:$0xe] }
 0x15e   : > { %v5413_v33 = vrot.slane %v5397_v62, 9  ;;  %v4018_v61 = vrot.slane %v4016_v29, 4 }
 0x15f   : > { %v1453_v4 = vpop.f32.mrf.mxu2  ;;  %v6531_v45 = vadd.f32 %v2447_v0, %v1826_v42  ;;  %v3339_v0 = vsel %vm5757_vm2, %v3334_v16, %v3338_v11  ;;  %v3343_v42 = vrot.slane %v3341_v37, 4  ;;  %v5078_v16 = vld [vmem:[%s5742_s26 + $0x18] sm:$0xe]  ;;  %v3357_v37 = vor.u32 %v3356_v53, %v6542_v22 }
 0x160   : > { %v1512_v8 = vadd.f32 %v1453_v4, %v1073_v23  ;;  %v4017_v11 = vsel %vm6057_vm5, %v5413_v33, %v4016_v29  ;;  %v4020_v62 = vsel %vm6057_vm5, %v4018_v61, %v4019_v20  ;;  %v5094_v57 = vrot.slane %v5078_v16, 9  ;;  %v5307_v16 = vld [vmem:[%s5742_s26 + $0x30] sm:$0xf] }
 0x161   : > { %1807 = vmatmul.bf16.gmra.mxu3 %v5535_v13  ;;  %v1074_v9 = vpop.f32.mrf.mxu1  ;;  %v4143_v29 = vunpack.c.l.b16 %v4017_v11  ;;  %v4144_v33 = vunpack.c.l.b16 %v4020_v62  ;;  %v6571_v11 = vld [vmem:[%s5742_s26 + $0x34] sm:$0xf] }
 0x162   : > { %v2450_v21 = vpop.f32.mrf.mxu0  ;;  %v1075_v18 = vadd.f32 %v1074_v9, %v6296_v3  ;;  %v3717_v3 = vunpack.c.l.b16 %v3329_v44  ;;  %v3718_v9 = vunpack.c.l.b16 %v3339_v0 }
 0x164   : > { %v1768_v54 = vpop.f32.mrf.mxu3 }
 0x165   : > { %2489 = vmatmul.bf16.gmra.mxu0 %v2341_v19  ;;  %v1827_v26 = vadd.f32 %v1768_v54, %v1512_v8  ;;  %v2600_v19 = vrot.slane %v5656_v56, 5  ;;  %v6549_v8 = vld [vmem:[%s5742_s26 + $0x2c] sm:$0x1]  ;;  %v5398_v56 = vld [vmem:[%s5742_s26 + $0x24] sm:$0xe] }
 0x166   : > { %v3360_v27 = vshll.u32 %v6549_v8, 16 }
 0x167   : > { %v1455_v13 = vpop.f32.mrf.mxu2  ;;  %v6544_v23 = vadd.f32 %v2450_v21, %v1827_v26  ;;  %v3347_v21 = vor.u32 %v3346_v49, %v3343_v42  ;;  %v2602_v54 = vrot.slane %v2600_v19, 4  ;;  %v5657_v26 = vld [vmem:[%s5742_s26 + $0x20] sm:$0x1]  ;;  %v3358_v42 = vrot.slane %v3357_v37, 4 }
 0x168   : > { %v1513_v4 = vadd.f32 %v1455_v13, %v1075_v18  ;;  %v2603_v44 = vrot.slane %v5657_v26, 5  ;;  %v3749_v18 = vpack.c.b16 %v3718_v9, %v3717_v3  ;;  %v3362_v13 = vrot.slane %v3360_v27, 5 }
 0x169   : > { %v1077_v55 = vpop.f32.mrf.mxu1  ;;  %v3348_v20 = vrot.slane %v3347_v21, 4  ;;  %v2601_v53 = vsel %vm6057_vm5, %v5094_v57, %v2600_v19  ;;  %v4175_v3 = vpack.c.b16 %v4144_v33, %v4143_v29  ;;  %v5414_v37 = vrot.slane %v5398_v56, 9 }
 0x16a   : > { %v2452_v35 = vpop.f32.mrf.mxu0  ;;  %v1078_v61 = vadd.f32 %v1077_v55, %v6175_v17  ;;  %v2722_v62 = vunpack.c.l.b16 %v2601_v53  ;;  %v3365_v57 = vshrl.u32 %v5307_v16, 16  ;;  %v4026_v26 = vrot.slane %v6549_v8, 5  ;;  %v5079_v53 = vld [vmem:[%s5742_s26 + $0x24] sm:$0xe] }
 0x16b   : > { %2840 = vmatmul.bf16.vlgmr.msra.gmra.mxu1 %v6506_v46  ;;  %v3353_v19 = vsel %vm5757_vm2, %v3348_v20, %v6542_v22 }
 0x16c   : > { %v1770_v32 = vpop.f32.mrf.mxu3  ;;  %3155 = vmatmul.bf16.vlgmr.msra.gmra.mxu2 %v5560_v31  ;;  %v2604_v31 = vsel %vm6057_vm5, %v2602_v54, %v2603_v44  ;;  %v3374_v44 = vshll.u32 %v6571_v11, 16  ;;  %v3719_v33 = vunpack.c.l.b16 %v3353_v19  ;;  %v3367_v8 = vrot.slane %v3365_v57, 4 }
 0x16d   : > { %v1828_v0 = vadd.f32 %v1770_v32, %v1513_v4  ;;  %v4023_v4 = vrot.slane %v6529_v7, 5  ;;  %v2723_v21 = vunpack.c.l.b16 %v2604_v31  ;;  %v3363_v7 = vsel %vm5757_vm2, %v3358_v42, %v3362_v13  ;;  %v5561_v13 = vld [vmem:[%s5742_s26 + $0x24] sm:$0xff] }
 0x16f   : > { %v1458_v46 = vpop.f32.mrf.mxu2  ;;  %v6568_v17 = vadd.f32 %v2452_v35, %v1828_v0  ;;  %v4025_v32 = vrot.slane %v4023_v4, 4  ;;  %v3368_v35 = vshll.u32 %v5307_v16, 16  ;;  %v3378_v0 = vshrl.u32 %v6571_v11, 16 }
 0x170   : > { %v1514_v49 = vadd.f32 %v1458_v46, %v1078_v61  ;;  %v2753_v29 = vpack.c.b16 %v2723_v21, %v2722_v62  ;;  %v5658_v61 = vld [vmem:[%s5742_s26 + $0x28] sm:$0xf]  ;;  %v5095_v21 = vrot.slane %v5079_v53, 9 }
 0x171   : > { %3837 = vmatmul.bf16.vlgmr.msra.gmra.mxu3 %v3749_v18  ;;  %v1079_v9 = vpop.f32.mrf.mxu1  ;;  %v2607_v46 = vrot.slane %v5658_v61, 5  ;;  %v3370_v31 = vrot.slane %v3368_v35, 5  ;;  %v3380_v16 = vrot.slane %v3378_v0, 4  ;;  %v5310_v61 = vld [vmem:[%s5742_s26 + $0x3c] sm:$0xf] }
 0x172   : > { %v2455_v55 = vpop.f32.mrf.mxu0  ;;  %v1080_v22 = vadd.f32 %v1079_v9, %v6199_v39  ;;  %v4027_v39 = vsel %vm6057_vm5, %v4025_v32, %v4026_v26  ;;  %v6591_v9 = vrot.slane %v3374_v44, 5 }
 0x173   : > { %v2609_v19 = vrot.slane %v2607_v46, 4 }
 0x174   : > { %v1773_v27 = vpop.f32.mrf.mxu3  ;;  %v3381_v26 = vor.u32 %v3380_v16, %v6591_v9  ;;  %v5399_v16 = vld [vmem:[%s5742_s26 + $0x30] sm:$0xe] }
 0x175   : > { %4263 = vmatmul.bf16.vlgmr.msra.gmra.mxu0 %v4175_v3  ;;  %v1829_v54 = vadd.f32 %v1773_v27, %v1514_v49  ;;  %v3720_v49 = vunpack.c.l.b16 %v3363_v7  ;;  %v4024_v3 = vsel %vm6057_vm5, %v5414_v37, %v4023_v4  ;;  %v5659_v27 = vld [vmem:[%s5742_s26 + $0x2c] sm:$0x1]  ;;  %v4146_v4 = vunpack.c.l.b16 %v4027_v39 }
 0x176   : > { %v2610_v7 = vrot.slane %v5659_v27, 5  ;;  %v4145_v35 = vunpack.c.l.b16 %v4024_v3  ;;  %v3371_v37 = vor.u32 %v3370_v31, %v3367_v8 }
 0x177   : > { %v1460_v18 = vpop.f32.mrf.mxu2  ;;  %v6583_v20 = vadd.f32 %v2455_v55, %v1829_v54  ;;  %v6594_v55 = vld [vmem:[%s5742_s26 + $0x38] sm:$0x1]  ;;  %v3750_v32 = vpack.c.b16 %v3720_v49, %v3719_v33  ;;  %v3382_v49 = vrot.slane %v3381_v26, 4 }
 0x178   : > { %v1515_v42 = vadd.f32 %v1460_v18, %v1080_v22  ;;  %v3384_v44 = vshll.u32 %v6594_v55, 16  ;;  %v2608_v18 = vsel %vm6057_vm5, %v5095_v21, %v2607_v46  ;;  %v3372_v8 = vrot.slane %v3371_v37, 4 }
 0x179   : > { %v1082_v56 = vpop.f32.mrf.mxu1  ;;  %v2724_v46 = vunpack.c.l.b16 %v2608_v18  ;;  %v3389_v21 = vshrl.u32 %v5310_v61, 16  ;;  %v4033_v26 = vrot.slane %v6594_v55, 5 }
 0x17a   : > { %v2457_v62 = vpop.f32.mrf.mxu0  ;;  %v1083_v0 = vadd.f32 %v1082_v56, %v6219_v2  ;;  %v3386_v31 = vrot.slane %v3384_v44, 5  ;;  %v4030_v2 = vrot.slane %v6571_v11, 5 }
 0x17b   : > { %2845 = vmatmul.bf16.gmra.mxu1 %v2753_v29  ;;  %v2611_v29 = vsel %vm6057_vm5, %v2609_v19, %v2610_v7  ;;  %v3392_v19 = vshll.u32 %v5310_v61, 16  ;;  %v3391_v44 = vrot.slane %v3389_v21, 4 }
 0x17c   : > { %v1775_v57 = vpop.f32.mrf.mxu3  ;;  %3160 = vmatmul.bf16.gmra.mxu2 %v5561_v13  ;;  %v4176_v13 = vpack.c.b16 %v4146_v4, %v4145_v35  ;;  %v2725_v39 = vunpack.c.l.b16 %v2611_v29  ;;  %v3377_v35 = vsel %vm5757_vm2, %v3372_v8, %v6591_v9  ;;  %v5415_v4 = vrot.slane %v5399_v16, 9 }
 0x17d   : > { %v1830_v54 = vadd.f32 %v1775_v57, %v1515_v42  ;;  %v6606_v42 = vld [vmem:[%s5742_s26 + $0x40] sm:$0xf]  ;;  %v4032_v37 = vrot.slane %v4030_v2, 4 }
 0x17e   : > { %v3398_v27 = vshll.u32 %v6606_v42, 16  ;;  %v3402_v7 = vshrl.u32 %v6606_v42, 16 }
 0x17f   : > { %v1463_v22 = vpop.f32.mrf.mxu2  ;;  %v6609_v56 = vadd.f32 %v2457_v62, %v1830_v54  ;;  %v3387_v62 = vsel %vm5757_vm2, %v3382_v49, %v3386_v31  ;;  %v6628_v49 = vld [vmem:[%s5742_s26 + $0x44] sm:$0x1]  ;;  %v4034_v16 = vsel %vm6057_vm5, %v4032_v37, %v4033_v26 }
 0x180   : > { %v1516_v53 = vadd.f32 %v1463_v22, %v1083_v0  ;;  %v3394_v22 = vrot.slane %v3392_v19, 5  ;;  %v6621_v9 = vrot.slane %v3398_v27, 5  ;;  %v3404_v18 = vrot.slane %v3402_v7, 4 }
 0x181   : > { %3842 = vmatmul.bf16.gmra.mxu3 %v3750_v32  ;;  %v1084_v33 = vpop.f32.mrf.mxu1  ;;  %v2754_v32 = vpack.c.b16 %v2725_v39, %v2724_v46  ;;  %v3722_v31 = vunpack.c.l.b16 %v3387_v62  ;;  %v5080_v46 = vld [vmem:[%s5742_s26 + $0x30] sm:$0xe]  ;;  %v4031_v39 = vsel %vm6057_vm5, %v5415_v4, %v4030_v2  ;;  %v3408_v19 = vshll.u32 %v6628_v49, 16 }
 0x182   : > { %v2460_v3 = vpop.f32.mrf.mxu0  ;;  %v1085_v54 = vadd.f32 %v1084_v33, %v6234_v25  ;;  %v3721_v33 = vunpack.c.l.b16 %v3377_v35  ;;  %v3405_v21 = vor.u32 %v3404_v18, %v6621_v9  ;;  %v5096_v7 = vrot.slane %v5080_v46, 9  ;;  %v5661_v35 = vld [vmem:[%s5742_s26 + $0x38] sm:$0x1]  ;;  %v5313_v46 = vld [vmem:[%s5742_s26 + $0x48] sm:$0xf] }
 0x183   : > { %v4147_v2 = vunpack.c.l.b16 %v4031_v39  ;;  %v4148_v4 = vunpack.c.l.b16 %v4034_v16  ;;  %v6649_v39 = vld [vmem:[%s5742_s26 + $0x4c] sm:$0xf] }
 0x184   : > { %v1778_v57 = vpop.f32.mrf.mxu3 }
 0x185   : > { %4268 = vmatmul.bf16.gmra.mxu0 %v4176_v13  ;;  %v1831_v11 = vadd.f32 %v1778_v57, %v1516_v53  ;;  %v5562_v13 = vld [vmem:[%s5742_s26 + $0x30] sm:$0xff] }
 0x186   : > { %v5660_v53 = vld [vmem:[%s5742_s26 + $0x34] sm:$0xf] }
 0x187   : > { %v1465_v0 = vpop.f32.mrf.mxu2  ;;  %v6623_v29 = vadd.f32 %v2460_v3, %v1831_v11  ;;  %v2614_v8 = vrot.slane %v5660_v53, 5  ;;  %v3395_v3 = vor.u32 %v3394_v22, %v3391_v44  ;;  %v2617_v11 = vrot.slane %v5661_v35, 5  ;;  %v5400_v53 = vld [vmem:[%s5742_s26 + $0x3c] sm:$0xe] }
 0x188   : > { %v1517_v61 = vadd.f32 %v1465_v0, %v1085_v54  ;;  %v3751_v54 = vpack.c.b16 %v3722_v31, %v3721_v33  ;;  %v3406_v44 = vrot.slane %v3405_v21, 4  ;;  %v3410_v0 = vrot.slane %v3408_v19, 5 }
 0x189   : > { %v1087_v25 = vpop.f32.mrf.mxu1  ;;  %v2616_v57 = vrot.slane %v2614_v8, 4  ;;  %v3396_v26 = vrot.slane %v3395_v3, 4  ;;  %v2615_v18 = vsel %vm6057_vm5, %v5096_v7, %v2614_v8  ;;  %v4177_v33 = vpack.c.b16 %v4148_v4, %v4147_v2 }
 0x18a   : > { %v2462_v55 = vpop.f32.mrf.mxu0  ;;  %v1088_v37 = vadd.f32 %v1087_v25, %v6249_v58  ;;  %v2726_v16 = vunpack.c.l.b16 %v2615_v18  ;;  %v5416_v21 = vrot.slane %v5400_v53, 9  ;;  %v3413_v7 = vshrl.u32 %v5313_v46, 16  ;;  %v5081_v18 = vld [vmem:[%s5742_s26 + $0x3c] sm:$0xe] }
 0x18b   : > { %2850 = vmatmul.bf16.gmra.mxu1 %v2754_v32  ;;  %v3401_v8 = vsel %vm5757_vm2, %v3396_v26, %v6621_v9  ;;  %v4040_v35 = vrot.slane %v6628_v49, 5 }
 0x18c   : > { %v1780_v27 = vpop.f32.mrf.mxu3  ;;  %3165 = vmatmul.bf16.gmra.mxu2 %v5562_v13  ;;  %v2618_v13 = vsel %vm6057_vm5, %v2616_v57, %v2617_v11  ;;  %v3422_v11 = vshll.u32 %v6649_v39, 16  ;;  %v3723_v4 = vunpack.c.l.b16 %v3401_v8  ;;  %v3415_v49 = vrot.slane %v3413_v7, 4 }
 0x18d   : > { %v1832_v62 = vadd.f32 %v1780_v27, %v1517_v61  ;;  %v4037_v61 = vrot.slane %v6606_v42, 5  ;;  %v2727_v3 = vunpack.c.l.b16 %v2618_v13  ;;  %v3411_v42 = vsel %vm5757_vm2, %v3406_v44, %v3410_v0  ;;  %v5563_v0 = vld [vmem:[%s5742_s26 + $0x3c] sm:$0xff] }
 0x18f   : > { %v1468_v32 = vpop.f32.mrf.mxu2  ;;  %v6646_v58 = vadd.f32 %v2462_v55, %v1832_v62  ;;  %v4039_v27 = vrot.slane %v4037_v61, 4  ;;  %v3416_v55 = vshll.u32 %v5313_v46, 16  ;;  %v3426_v62 = vshrl.u32 %v6649_v39, 16 }
 0x190   : > { %v1518_v22 = vadd.f32 %v1468_v32, %v1088_v37  ;;  %v2755_v2 = vpack.c.b16 %v2727_v3, %v2726_v16  ;;  %v5662_v37 = vld [vmem:[%s5742_s26 + $0x40] sm:$0xf]  ;;  %v5097_v3 = vrot.slane %v5081_v18, 9 }
 0x191   : > { %3847 = vmatmul.bf16.gmra.mxu3 %v3751_v54  ;;  %v1089_v31 = vpop.f32.mrf.mxu1  ;;  %v2621_v32 = vrot.slane %v5662_v37, 5  ;;  %v3418_v13 = vrot.slane %v3416_v55, 5  ;;  %v3428_v46 = vrot.slane %v3426_v62, 4  ;;  %v5316_v37 = vld [vmem:[%s5742_s26 + $0x54] sm:$0xf] }
 0x192   : > { %v2465_v25 = vpop.f32.mrf.mxu0  ;;  %v1090_v9 = vadd.f32 %v1089_v31, %v6272_v51  ;;  %v4041_v51 = vsel %vm6057_vm5, %v4039_v27, %v4040_v35  ;;  %v6669_v31 = vrot.slane %v3422_v11, 5 }
 0x193   : > { %v2623_v8 = vrot.slane %v2621_v32, 4 }
 0x194   : > { %v1783_v19 = vpop.f32.mrf.mxu3  ;;  %v3429_v35 = vor.u32 %v3428_v46, %v6669_v31  ;;  %v5401_v46 = vld [vmem:[%s5742_s26 + $0x48] sm:$0xe] }
 0x195   : > { %4273 = vmatmul.bf16.gmra.mxu0 %v4177_v33  ;;  %v1833_v57 = vadd.f32 %v1783_v19, %v1518_v22  ;;  %v3724_v22 = vunpack.c.l.b16 %v3411_v42  ;;  %v4038_v33 = vsel %vm6057_vm5, %v5416_v21, %v4037_v61  ;;  %v5663_v19 = vld [vmem:[%s5742_s26 + $0x44] sm:$0x1]  ;;  %v4150_v61 = vunpack.c.l.b16 %v4041_v51 }
 0x196   : > { %v2624_v42 = vrot.slane %v5663_v19, 5  ;;  %v4149_v55 = vunpack.c.l.b16 %v4038_v33  ;;  %v3419_v21 = vor.u32 %v3418_v13, %v3415_v49 }
 0x197   : > { %v1470_v54 = vpop.f32.mrf.mxu2  ;;  %v6661_v26 = vadd.f32 %v2465_v25, %v1833_v57  ;;  %v6672_v25 = vld [vmem:[%s5742_s26 + $0x50] sm:$0x1]  ;;  %v3752_v27 = vpack.c.b16 %v3724_v22, %v3723_v4  ;;  %v3430_v22 = vrot.slane %v3429_v35, 4 }
 0x198   : > { %v1519_v44 = vadd.f32 %v1470_v54, %v1090_v9  ;;  %v3432_v11 = vshll.u32 %v6672_v25, 16  ;;  %v2622_v54 = vsel %vm6057_vm5, %v5097_v3, %v2621_v32  ;;  %v3420_v49 = vrot.slane %v3419_v21, 4 }
 0x199   : > { %v1092_v53 = vpop.f32.mrf.mxu1  ;;  %v2728_v32 = vunpack.c.l.b16 %v2622_v54  ;;  %v3437_v3 = vshrl.u32 %v5316_v37, 16  ;;  %v4047_v35 = vrot.slane %v6672_v25, 5 }
 0x19a   : > { %v2467_v16 = vpop.f32.mrf.mxu0  ;;  %v1093_v62 = vadd.f32 %v1092_v53, %v6293_v14  ;;  %v3434_v13 = vrot.slane %v3432_v11, 5  ;;  %v4044_v14 = vrot.slane %v6649_v39, 5 }
 0x19b   : > { %2855 = vmatmul.bf16.gmra.mxu1 %v2755_v2  ;;  %v2625_v2 = vsel %vm6057_vm5, %v2623_v8, %v2624_v42  ;;  %v3440_v8 = vshll.u32 %v5316_v37, 16  ;;  %v3439_v11 = vrot.slane %v3437_v3, 4 }
 0x19c   : > { %v1785_v7 = vpop.f32.mrf.mxu3  ;;  %3170 = vmatmul.bf16.gmra.mxu2 %v5563_v0  ;;  %v4178_v0 = vpack.c.b16 %v4150_v61, %v4149_v55  ;;  %v2729_v51 = vunpack.c.l.b16 %v2625_v2  ;;  %v3425_v55 = vsel %vm5757_vm2, %v3420_v49, %v6669_v31  ;;  %v5417_v61 = vrot.slane %v5401_v46, 9 }
 0x19d   : > { %v1834_v57 = vadd.f32 %v1785_v7, %v1519_v44  ;;  %v6684_v44 = vld [vmem:[%s5742_s26 + $0x58] sm:$0xf]  ;;  %v4046_v21 = vrot.slane %v4044_v14, 4 }
 0x19e   : > { %v3446_v19 = vshll.u32 %v6684_v44, 16  ;;  %v3450_v42 = vshrl.u32 %v6684_v44, 16 }
 0x19f   : > { %v1473_v9 = vpop.f32.mrf.mxu2  ;;  %v6687_v53 = vadd.f32 %v2467_v16, %v1834_v57  ;;  %v3435_v16 = vsel %vm5757_vm2, %v3430_v22, %v3434_v13  ;;  %v6706_v22 = vld [vmem:[%s5742_s26 + $0x5c] sm:$0x1]  ;;  %v4048_v46 = vsel %vm6057_vm5, %v4046_v21, %v4047_v35 }
 0x1a0   : > { %v1520_v18 = vadd.f32 %v1473_v9, %v1093_v62  ;;  %v3442_v9 = vrot.slane %v3440_v8, 5  ;;  %v6699_v31 = vrot.slane %v3446_v19, 5  ;;  %v3452_v54 = vrot.slane %v3450_v42, 4 }
 0x1a1   : > { %3852 = vmatmul.bf16.gmra.mxu3 %v3752_v27  ;;  %v1094_v4 = vpop.f32.mrf.mxu1  ;;  %v2756_v27 = vpack.c.b16 %v2729_v51, %v2728_v32  ;;  %v3726_v13 = vunpack.c.l.b16 %v3435_v16  ;;  %v5082_v32 = vld [vmem:[%s5742_s26 + $0x48] sm:$0xe]  ;;  %v4045_v51 = vsel %vm6057_vm5, %v5417_v61, %v4044_v14  ;;  %v3456_v8 = vshll.u32 %v6706_v22, 16 }
 0x1a2   : > { %v2470_v33 = vpop.f32.mrf.mxu0  ;;  %v1095_v57 = vadd.f32 %v1094_v4, %v6308_v38  ;;  %v3725_v4 = vunpack.c.l.b16 %v3425_v55  ;;  %v3453_v3 = vor.u32 %v3452_v54, %v6699_v31  ;;  %v5098_v42 = vrot.slane %v5082_v32, 9  ;;  %v5665_v55 = vld [vmem:[%s5742_s26 + $0x50] sm:$0x1]  ;;  %v5319_v32 = vld [vmem:[%s5742_s26 + $0x60] sm:$0xf] }
 0x1a3   : > { %v4151_v14 = vunpack.c.l.b16 %v4045_v51  ;;  %v4152_v61 = vunpack.c.l.b16 %v4048_v46  ;;  %v6727_v51 = vld [vmem:[%s5742_s26 + $0x64] sm:$0xf] }
 0x1a4   : > { %v1788_v7 = vpop.f32.mrf.mxu3 }
 0x1a5   : > { %4278 = vmatmul.bf16.gmra.mxu0 %v4178_v0  ;;  %v1835_v39 = vadd.f32 %v1788_v7, %v1520_v18  ;;  %v5564_v0 = vld [vmem:[%s5742_s26 + $0x48] sm:$0xff] }
 0x1a6   : > { %v5664_v18 = vld [vmem:[%s5742_s26 + $0x4c] sm:$0xf] }
 0x1a7   : > { %v1475_v62 = vpop.f32.mrf.mxu2  ;;  %v6701_v2 = vadd.f32 %v2470_v33, %v1835_v39  ;;  %v2628_v49 = vrot.slane %v5664_v18, 5  ;;  %v3443_v33 = vor.u32 %v3442_v9, %v3439_v11  ;;  %v2631_v39 = vrot.slane %v5665_v55, 5  ;;  %v5402_v18 = vld [vmem:[%s5742_s26 + $0x54] sm:$0xe] }
 0x1a8   : > { %v1521_v37 = vadd.f32 %v1475_v62, %v1095_v57  ;;  %v3753_v57 = vpack.c.b16 %v3726_v13, %v3725_v4  ;;  %v3454_v11 = vrot.slane %v3453_v3, 4  ;;  %v3458_v62 = vrot.slane %v3456_v8, 5 }
 0x1a9   : > { %v1097_v38 = vpop.f32.mrf.mxu1  ;;  %v2630_v7 = vrot.slane %v2628_v49, 4  ;;  %v3444_v35 = vrot.slane %v3443_v33, 4  ;;  %v2629_v54 = vsel %vm6057_vm5, %v5098_v42, %v2628_v49  ;;  %v4179_v4 = vpack.c.b16 %v4152_v61, %v4151_v14 }
 0x1aa   : > { %v2472_v25 = vpop.f32.mrf.mxu0  ;;  %v1098_v21 = vadd.f32 %v1097_v38, %v6178_v50  ;;  %v2730_v46 = vunpack.c.l.b16 %v2629_v54  ;;  %v5418_v3 = vrot.slane %v5402_v18, 9  ;;  %v3461_v42 = vshrl.u32 %v5319_v32, 16  ;;  %v5083_v54 = vld [vmem:[%s5742_s26 + $0x54] sm:$0xe] }
 0x1ab   : > { %2860 = vmatmul.bf16.gmra.mxu1 %v2756_v27  ;;  %v3449_v49 = vsel %vm5757_vm2, %v3444_v35, %v6699_v31  ;;  %v4054_v55 = vrot.slane %v6706_v22, 5 }
 0x1ac   : > { %v1790_v19 = vpop.f32.mrf.mxu3  ;;  %3175 = vmatmul.bf16.gmra.mxu2 %v5564_v0  ;;  %v2632_v0 = vsel %vm6057_vm5, %v2630_v7, %v2631_v39  ;;  %v3470_v39 = vshll.u32 %v6727_v51, 16  ;;  %v3727_v61 = vunpack.c.l.b16 %v3449_v49  ;;  %v3463_v22 = vrot.slane %v3461_v42, 4 }
 0x1ad   : > { %v1836_v16 = vadd.f32 %v1790_v19, %v1521_v37  ;;  %v4051_v37 = vrot.slane %v6684_v44, 5  ;;  %v2731_v33 = vunpack.c.l.b16 %v2632_v0  ;;  %v3459_v44 = vsel %vm5757_vm2, %v3454_v11, %v3458_v62  ;;  %v5565_v62 = vld [vmem:[%s5742_s26 + $0x54] sm:$0xff] }
 0x1af   : > { %v1478_v27 = vpop.f32.mrf.mxu2  ;;  %v6724_v50 = vadd.f32 %v2472_v25, %v1836_v16  ;;  %v4053_v19 = vrot.slane %v4051_v37, 4  ;;  %v3464_v25 = vshll.u32 %v5319_v32, 16  ;;  %v3474_v16 = vshrl.u32 %v6727_v51, 16 }
 0x1b0   : > { %v1522_v9 = vadd.f32 %v1478_v27, %v1098_v21  ;;  %v2757_v14 = vpack.c.b16 %v2731_v33, %v2730_v46  ;;  %v5666_v21 = vld [vmem:[%s5742_s26 + $0x58] sm:$0xf]  ;;  %v5099_v33 = vrot.slane %v5083_v54, 9 }
 0x1b1   : > { %3857 = vmatmul.bf16.gmra.mxu3 %v3753_v57  ;;  %v1099_v13 = vpop.f32.mrf.mxu1  ;;  %v2635_v27 = vrot.slane %v5666_v21, 5  ;;  %v3466_v0 = vrot.slane %v3464_v25, 5  ;;  %v3476_v32 = vrot.slane %v3474_v16, 4  ;;  %v5322_v21 = vld [vmem:[%s5742_s26 + $0x6c] sm:$0xf] }
 0x1b2   : > { %v2475_v38 = vpop.f32.mrf.mxu0  ;;  %v1100_v31 = vadd.f32 %v1099_v13, %v6201_v40  ;;  %v4055_v40 = vsel %vm6057_vm5, %v4053_v19, %v4054_v55  ;;  %v6747_v13 = vrot.slane %v3470_v39, 5 }
 0x1b3   : > { %v2637_v49 = vrot.slane %v2635_v27, 4 }
 0x1b4   : > { %v1793_v8 = vpop.f32.mrf.mxu3  ;;  %v3477_v55 = vor.u32 %v3476_v32, %v6747_v13  ;;  %v5403_v32 = vld [vmem:[%s5742_s26 + $0x60] sm:$0xe] }
 0x1b5   : > { %4283 = vmatmul.bf16.gmra.mxu0 %v4179_v4  ;;  %v1837_v7 = vadd.f32 %v1793_v8, %v1522_v9  ;;  %v3728_v9 = vunpack.c.l.b16 %v3459_v44  ;;  %v4052_v4 = vsel %vm6057_vm5, %v5418_v3, %v4051_v37  ;;  %v5667_v8 = vld [vmem:[%s5742_s26 + $0x5c] sm:$0x1]  ;;  %v4154_v37 = vunpack.c.l.b16 %v4055_v40 }
 0x1b6   : > { %v2638_v44 = vrot.slane %v5667_v8, 5  ;;  %v4153_v25 = vunpack.c.l.b16 %v4052_v4  ;;  %v3467_v3 = vor.u32 %v3466_v0, %v3463_v22 }
 0x1b7   : > { %v1480_v57 = vpop.f32.mrf.mxu2  ;;  %v6739_v35 = vadd.f32 %v2475_v38, %v1837_v7  ;;  %v6750_v38 = vld [vmem:[%s5742_s26 + $0x68] sm:$0x1]  ;;  %v3754_v19 = vpack.c.b16 %v3728_v9, %v3727_v61  ;;  %v3478_v9 = vrot.slane %v3477_v55, 4 }
 0x1b8   : > { %v1523_v11 = vadd.f32 %v1480_v57, %v1100_v31  ;;  %v3480_v39 = vshll.u32 %v6750_v38, 16  ;;  %v2636_v57 = vsel %vm6057_vm5, %v5099_v33, %v2635_v27  ;;  %v3468_v22 = vrot.slane %v3467_v3, 4 }
 0x1b9   : > { %v1102_v18 = vpop.f32.mrf.mxu1  ;;  %v2732_v27 = vunpack.c.l.b16 %v2636_v57  ;;  %v3485_v33 = vshrl.u32 %v5322_v21, 16  ;;  %v4061_v55 = vrot.slane %v6750_v38, 5 }
 0x1ba   : > { %v2477_v46 = vpop.f32.mrf.mxu0  ;;  %v1103_v16 = vadd.f32 %v1102_v18, %v6222_v6  ;;  %v3482_v0 = vrot.slane %v3480_v39, 5  ;;  %v4058_v6 = vrot.slane %v6727_v51, 5 }
 0x1bb   : > { %2865 = vmatmul.bf16.gmra.mxu1 %v2757_v14  ;;  %v2639_v14 = vsel %vm6057_vm5, %v2637_v49, %v2638_v44  ;;  %v3488_v49 = vshll.u32 %v5322_v21, 16  ;;  %v3487_v39 = vrot.slane %v3485_v33, 4 }
 0x1bc   : > { %v1795_v42 = vpop.f32.mrf.mxu3  ;;  %3180 = vmatmul.bf16.gmra.mxu2 %v5565_v62  ;;  %v4180_v62 = vpack.c.b16 %v4154_v37, %v4153_v25  ;;  %v2733_v40 = vunpack.c.l.b16 %v2639_v14  ;;  %v3473_v25 = vsel %vm5757_vm2, %v3468_v22, %v6747_v13  ;;  %v5419_v37 = vrot.slane %v5403_v32, 9 }
 0x1bd   : > { %v1838_v7 = vadd.f32 %v1795_v42, %v1523_v11  ;;  %v6762_v11 = vld [vmem:[%s5742_s26 + $0x70] sm:$0xf]  ;;  %v4060_v3 = vrot.slane %v4058_v6, 4 }
 0x1be   : > { %v3494_v8 = vshll.u32 %v6762_v11, 16  ;;  %v3498_v44 = vshrl.u32 %v6762_v11, 16 }
 0x1bf   : > { %v1483_v31 = vpop.f32.mrf.mxu2  ;;  %v6765_v18 = vadd.f32 %v2477_v46, %v1838_v7  ;;  %v3483_v46 = vsel %vm5757_vm2, %v3478_v9, %v3482_v0  ;;  %v6784_v9 = vld [vmem:[%s5742_s26 + $0x74] sm:$0x1]  ;;  %v4062_v32 = vsel %vm6057_vm5, %v4060_v3, %v4061_v55 }
 0x1c0   : > { %v1524_v54 = vadd.f32 %v1483_v31, %v1103_v16  ;;  %v3490_v31 = vrot.slane %v3488_v49, 5  ;;  %v6777_v13 = vrot.slane %v3494_v8, 5  ;;  %v3500_v57 = vrot.slane %v3498_v44, 4 }
 0x1c1   : > { %3862 = vmatmul.bf16.gmra.mxu3 %v3754_v19  ;;  %v1104_v61 = vpop.f32.mrf.mxu1  ;;  %v2758_v19 = vpack.c.b16 %v2733_v40, %v2732_v27  ;;  %v3730_v0 = vunpack.c.l.b16 %v3483_v46  ;;  %v5084_v27 = vld [vmem:[%s5742_s26 + $0x60] sm:$0xe]  ;;  %v4059_v40 = vsel %vm6057_vm5, %v5419_v37, %v4058_v6  ;;  %v3504_v49 = vshll.u32 %v6784_v9, 16 }
 0x1c2   : > { %v2480_v4 = vpop.f32.mrf.mxu0  ;;  %v1105_v7 = vadd.f32 %v1104_v61, %v6236_v28  ;;  %v3729_v61 = vunpack.c.l.b16 %v3473_v25  ;;  %v3501_v33 = vor.u32 %v3500_v57, %v6777_v13  ;;  %v5100_v44 = vrot.slane %v5084_v27, 9  ;;  %v5669_v25 = vld [vmem:[%s5742_s26 + $0x68] sm:$0x1]  ;;  %v5325_v27 = vld [vmem:[%s5742_s26 + $0x78] sm:$0xf] }
 0x1c3   : > { %v4155_v6 = vunpack.c.l.b16 %v4059_v40  ;;  %v4156_v37 = vunpack.c.l.b16 %v4062_v32  ;;  %v6805_v40 = vld [vmem:[%s5742_s26 + $0x7c] sm:$0xf] }
 0x1c4   : > { %v1798_v42 = vpop.f32.mrf.mxu3 }
 0x1c5   : > { %4288 = vmatmul.bf16.gmra.mxu0 %v4180_v62  ;;  %v1839_v51 = vadd.f32 %v1798_v42, %v1524_v54  ;;  %v5566_v62 = vld [vmem:[%s5742_s26 + $0x60] sm:$0xff] }
 0x1c6   : > { %v5668_v54 = vld [vmem:[%s5742_s26 + $0x64] sm:$0xf] }
 0x1c7   : > { %v1485_v16 = vpop.f32.mrf.mxu2  ;;  %v6779_v14 = vadd.f32 %v2480_v4, %v1839_v51  ;;  %v2642_v22 = vrot.slane %v5668_v54, 5  ;;  %v3491_v4 = vor.u32 %v3490_v31, %v3487_v39  ;;  %v2645_v51 = vrot.slane %v5669_v25, 5  ;;  %v5404_v54 = vld [vmem:[%s5742_s26 + $0x6c] sm:$0xe] }
 0x1c8   : > { %v1525_v21 = vadd.f32 %v1485_v16, %v1105_v7  ;;  %v3755_v7 = vpack.c.b16 %v3730_v0, %v3729_v61  ;;  %v3502_v39 = vrot.slane %v3501_v33, 4  ;;  %v3506_v16 = vrot.slane %v3504_v49, 5 }
 0x1c9   : > { %v1107_v28 = vpop.f32.mrf.mxu1  ;;  %v2644_v42 = vrot.slane %v2642_v22, 4  ;;  %v3492_v55 = vrot.slane %v3491_v4, 4  ;;  %v2643_v57 = vsel %vm6057_vm5, %v5100_v44, %v2642_v22  ;;  %v4181_v61 = vpack.c.b16 %v4156_v37, %v4155_v6 }
 0x1ca   : > { %v2482_v38 = vpop.f32.mrf.mxu0  ;;  %v1108_v3 = vadd.f32 %v1107_v28, %v6254_v63  ;;  %v2734_v32 = vunpack.c.l.b16 %v2643_v57  ;;  %v5420_v33 = vrot.slane %v5404_v54, 9  ;;  %v3509_v44 = vshrl.u32 %v5325_v27, 16  ;;  %v5085_v57 = vld [vmem:[%s5742_s26 + $0x6c] sm:$0xe] }
 0x1cb   : > { %2870 = vmatmul.bf16.gmra.mxu1 %v2758_v19  ;;  %v3497_v22 = vsel %vm5757_vm2, %v3492_v55, %v6777_v13  ;;  %v4068_v25 = vrot.slane %v6784_v9, 5 }
 0x1cc   : > { %v1800_v8 = vpop.f32.mrf.mxu3  ;;  %3185 = vmatmul.bf16.gmra.mxu2 %v5566_v62  ;;  %v2646_v62 = vsel %vm6057_vm5, %v2644_v42, %v2645_v51  ;;  %v3518_v51 = vshll.u32 %v6805_v40, 16  ;;  %v3731_v37 = vunpack.c.l.b16 %v3497_v22  ;;  %v3511_v9 = vrot.slane %v3509_v44, 4 }
 0x1cd   : > { %v1840_v46 = vadd.f32 %v1800_v8, %v1525_v21  ;;  %v4065_v21 = vrot.slane %v6762_v11, 5  ;;  %v2735_v4 = vunpack.c.l.b16 %v2646_v62  ;;  %v3507_v11 = vsel %vm5757_vm2, %v3502_v39, %v3506_v16  ;;  %v5567_v16 = vld [vmem:[%s5742_s26 + $0x6c] sm:$0xff] }
 0x1cf   : > { %v1488_v19 = vpop.f32.mrf.mxu2  ;;  %v6802_v63 = vadd.f32 %v2482_v38, %v1840_v46  ;;  %v4067_v8 = vrot.slane %v4065_v21, 4  ;;  %v3512_v38 = vshll.u32 %v5325_v27, 16  ;;  %v3522_v46 = vshrl.u32 %v6805_v40, 16 }
 0x1d0   : > { %v1526_v31 = vadd.f32 %v1488_v19, %v1108_v3  ;;  %v2759_v6 = vpack.c.b16 %v2735_v4, %v2734_v32  ;;  %v5670_v3 = vld [vmem:[%s5742_s26 + $0x70] sm:$0xf]  ;;  %v6826_v4 = vld [vmem:[%s5742_s26 + $0x80] sm:$0x1] }
 0x1d1   : > { %3867 = vmatmul.bf16.gmra.mxu3 %v3755_v7  ;;  %v1109_v0 = vpop.f32.mrf.mxu1  ;;  %v2649_v19 = vrot.slane %v5670_v3, 5  ;;  %v3514_v62 = vrot.slane %v3512_v38, 5  ;;  %v3524_v27 = vrot.slane %v3522_v46, 4  ;;  %v5328_v3 = vld [vmem:[%s5742_s26 + $0x84] sm:$0xf] }
 0x1d2   : > { %v2485_v28 = vpop.f32.mrf.mxu0  ;;  %v1110_v13 = vadd.f32 %v1109_v0, %v6285_v41  ;;  %v4069_v41 = vsel %vm6057_vm5, %v4067_v8, %v4068_v25  ;;  %v3520_v0 = vrot.slane %v3518_v51, 5  ;;  %v3528_v25 = vshll.u32 %v6826_v4, 16 }
 0x1d3   : > { %v2651_v22 = vrot.slane %v2649_v19, 4 }
 0x1d4   : > { %v1803_v49 = vpop.f32.mrf.mxu3  ;;  %v3525_v8 = vor.u32 %v3524_v27, %v3520_v0  ;;  %v5405_v27 = vld [vmem:[%s5742_s26 + $0x78] sm:$0xe] }
 0x1d5   : > { %4293 = vmatmul.bf16.gmra.mxu0 %v4181_v61  ;;  %v1841_v42 = vadd.f32 %v1803_v49, %v1526_v31  ;;  %v3732_v31 = vunpack.c.l.b16 %v3507_v11  ;;  %v4066_v61 = vsel %vm6057_vm5, %v5420_v33, %v4065_v21  ;;  %v5671_v49 = vld [vmem:[%s5742_s26 + $0x74] sm:$0x1]  ;;  %v3515_v21 = vor.u32 %v3514_v62, %v3511_v9  ;;  %v6837_v9 = vld [vmem:[%s5742_s26 + $0x88] sm:$0xf] }
 0x1d6   : > { %v2652_v11 = vrot.slane %v5671_v49, 5  ;;  %v4157_v38 = vunpack.c.l.b16 %v4066_v61  ;;  %v3542_v49 = vshll.u32 %v6837_v9, 16 }
 0x1d7   : > { %v1490_v7 = vpop.f32.mrf.mxu2  ;;  %v6817_v55 = vadd.f32 %v2485_v28, %v1841_v42  ;;  %v5101_v28 = vrot.slane %v5085_v57, 9  ;;  %v4158_v42 = vunpack.c.l.b16 %v4069_v41  ;;  %v3516_v61 = vrot.slane %v3515_v21, 4 }
 0x1d8   : > { %v1527_v39 = vadd.f32 %v1490_v7, %v1110_v13  ;;  %v3756_v13 = vpack.c.b16 %v3732_v31, %v3731_v37  ;;  %v3530_v31 = vrot.slane %v3528_v25, 5 }
 0x1d9   : > { %v1112_v54 = vpop.f32.mrf.mxu1  ;;  %v2650_v7 = vsel %vm6057_vm5, %v5101_v28, %v2649_v19  ;;  %v3533_v28 = vshrl.u32 %v5328_v3, 16 }
 0x1da   : > { %v2487_v32 = vpop.f32.mrf.mxu0  ;;  %v1113_v51 = vadd.f32 %v1112_v54, %v6305_v15  ;;  %v4072_v15 = vrot.slane %v6805_v40, 5  ;;  %v2736_v19 = vunpack.c.l.b16 %v2650_v7 }
 0x1db   : > { %2875 = vmatmul.bf16.gmra.mxu1 %v2759_v6  ;;  %v2653_v6 = vsel %vm6057_vm5, %v2651_v22, %v2652_v11  ;;  %v3536_v22 = vshll.u32 %v5328_v3, 16  ;;  %v3546_v11 = vshrl.u32 %v6837_v9, 16  ;;  %v3535_v25 = vrot.slane %v3533_v28, 4 }
 0x1dc   : > { %v1805_v44 = vpop.f32.mrf.mxu3  ;;  %3190 = vmatmul.bf16.gmra.mxu2 %v5567_v16  ;;  %v4182_v16 = vpack.c.b16 %v4158_v42, %v4157_v38  ;;  %v2737_v41 = vunpack.c.l.b16 %v2653_v6  ;;  %v3521_v38 = vsel %vm5757_vm2, %v3516_v61, %v3520_v0  ;;  %v5421_v42 = vrot.slane %v5405_v27, 9 }
 0x1dd   : > { %v1842_v33 = vadd.f32 %v1805_v44, %v1527_v39  ;;  %v3526_v39 = vrot.slane %v3525_v8, 4  ;;  %v4074_v21 = vrot.slane %v4072_v15, 4  ;;  %v4075_v8 = vrot.slane %v6826_v4, 5 }
 0x1de   : > { %v6851_v0 = vrot.slane %v3542_v49, 5  ;;  %v3548_v7 = vrot.slane %v3546_v11, 4 }
 0x1df   : > { %v1493_v46 = vpop.f32.mrf.mxu2  ;;  %v6840_v62 = vadd.f32 %v2487_v32, %v1842_v33  ;;  %v3531_v32 = vsel %vm5757_vm2, %v3526_v39, %v3530_v31  ;;  %v5086_v31 = vld [vmem:[%s5742_s26 + $0x78] sm:$0xe]  ;;  %v4076_v27 = vsel %vm6057_vm5, %v4074_v21, %v4075_v8 }
 0x1e0   : > { %v1528_v57 = vadd.f32 %v1493_v46, %v1113_v51  ;;  %v3538_v46 = vrot.slane %v3536_v22, 5  ;;  %v3549_v28 = vor.u32 %v3548_v7, %v6851_v0  ;;  %v5102_v49 = vrot.slane %v5086_v31, 9 }
 0x1e1   : > { %3872 = vmatmul.bf16.gmra.mxu3 %v3756_v13  ;;  %v1114_v37 = vpop.f32.mrf.mxu1  ;;  %v2760_v13 = vpack.c.b16 %v2737_v41, %v2736_v19  ;;  %v6859_v19 = vld [vmem:[%s5742_s26 + $0x8c] sm:$0x1]  ;;  %v4073_v41 = vsel %vm6057_vm5, %v5421_v42, %v4072_v15  ;;  %v4160_v42 = vunpack.c.l.b16 %v4076_v27 }
 0x1e2   : > { %v2490_v54 = vpop.f32.mrf.mxu0  ;;  %v1115_v33 = vadd.f32 %v1114_v37, %v6320_v1  ;;  %v3733_v1 = vunpack.c.l.b16 %v3521_v38  ;;  %v3734_v37 = vunpack.c.l.b16 %v3531_v32  ;;  %v4159_v15 = vunpack.c.l.b16 %v4073_v41  ;;  %v6879_v41 = vld [vmem:[%s5742_s26 + $0x94] sm:$0xf] }
 0x1e4   : > { %v1808_v44 = vpop.f32.mrf.mxu3 }
 0x1e5   : > { %4298 = vmatmul.bf16.gmra.mxu0 %v4182_v16  ;;  %v1843_v40 = vadd.f32 %v1808_v44, %v1528_v57  ;;  %v5568_v16 = vld [vmem:[%s5742_s26 + $0x78] sm:$0xff]  ;;  %v5673_v44 = vld [vmem:[%s5742_s26 + $0x80] sm:$0x1] }
 0x1e6   : > { %v5672_v57 = vld [vmem:[%s5742_s26 + $0x7c] sm:$0xf]  ;;  %v2659_v38 = vrot.slane %v5673_v44, 5 }
 0x1e7   : > { %v1495_v51 = vpop.f32.mrf.mxu2  ;;  %v6853_v6 = vadd.f32 %v2490_v54, %v1843_v40  ;;  %v2656_v61 = vrot.slane %v5672_v57, 5  ;;  %v3539_v54 = vor.u32 %v3538_v46, %v3535_v25  ;;  %v3552_v40 = vshll.u32 %v6859_v19, 16 }
 0x1e8   : > { %v1529_v3 = vadd.f32 %v1495_v51, %v1115_v33  ;;  %v3757_v33 = vpack.c.b16 %v3734_v37, %v3733_v1  ;;  %v3550_v25 = vrot.slane %v3549_v28, 4  ;;  %v5331_v51 = vld [vmem:[%s5742_s26 + $0x90] sm:$0xf]  ;;  %v4183_v57 = vpack.c.b16 %v4160_v42, %v4159_v15 }
 0x1e9   : > { %v2841_v39 = vpop.f32.mrf.mxu1  ;;  %v2658_v11 = vrot.slane %v2656_v61, 4  ;;  %v3540_v8 = vrot.slane %v3539_v54, 4  ;;  %v2657_v46 = vsel %vm6057_vm5, %v5102_v49, %v2656_v61  ;;  %v3557_v27 = vshrl.u32 %v5331_v51, 16 }
 0x1ea   : > { %v2492_v4 = vpop.f32.mrf.mxu0  ;;  %v2921_v21 = vadd.f32 %v2841_v39, %v6346_v59  ;;  %v5406_v59 = vld [vmem:[%s5742_s26 + $0x84] sm:$0xe]  ;;  %v3560_v54 = vshll.u32 %v5331_v51, 16  ;;  %v2738_v61 = vunpack.c.l.b16 %v2657_v46 }
 0x1eb   : > { %2880 = vmatmul.bf16.gmra.mxu1 %v2760_v13  ;;  %v2660_v7 = vsel %vm6057_vm5, %v2658_v11, %v2659_v38  ;;  %v5422_v11 = vrot.slane %v5406_v59, 9  ;;  %v4082_v38 = vrot.slane %v6859_v19, 5 }
 0x1ec   : > { %v1810_v22 = vpop.f32.mrf.mxu3  ;;  %3195 = vmatmul.bf16.gmra.mxu2 %v5568_v16  ;;  %v3554_v16 = vrot.slane %v3552_v40, 5  ;;  %v2739_v28 = vunpack.c.l.b16 %v2660_v7  ;;  %v3566_v40 = vshll.u32 %v6879_v41, 16 }
 0x1ed   : > { %v1844_v32 = vadd.f32 %v1810_v22, %v1529_v3  ;;  %v4079_v3 = vrot.slane %v6837_v9, 5  ;;  %v3545_v9 = vsel %vm5757_vm2, %v3540_v8, %v6851_v0  ;;  %v3559_v0 = vrot.slane %v3557_v27, 4  ;;  %v5674_v8 = vld [vmem:[%s5742_s26 + $0x88] sm:$0xf] }
 0x1ee   : > { %v3555_v49 = vsel %vm5757_vm2, %v3550_v25, %v3554_v16  ;;  %v2663_v19 = vrot.slane %v5674_v8, 5  ;;  %v5569_v25 = vld [vmem:[%s5742_s26 + $0x84] sm:$0xff]  ;;  %v3735_v51 = vunpack.c.l.b16 %v3545_v9  ;;  %v5333_v9 = vld [vmem:[%s5742_s26 + $0x98] sm:$0x1]  ;;  %v5407_v8 = vld [vmem:[%s5742_s26 + $0x90] sm:$0xe] }
 0x1ef   : > { %v3156_v13 = vpop.f32.mrf.mxu2  ;;  %v6876_v39 = vadd.f32 %v2492_v4, %v1844_v32  ;;  %v4081_v4 = vrot.slane %v4079_v3, 4  ;;  %v3570_v32 = vshrl.u32 %v6879_v41, 16  ;;  %v3736_v46 = vunpack.c.l.b16 %v3555_v49  ;;  %v5087_v16 = vld [vmem:[%s5742_s26 + $0x84] sm:$0xe] }
 0x1f0   : > { %v3236_v1 = vadd.f32 %v3156_v13, %v2921_v21  ;;  %v2761_v13 = vpack.c.b16 %v2739_v28, %v2738_v61  ;;  %v4080_v7 = vsel %vm6057_vm5, %v5422_v11, %v4079_v3  ;;  %v2665_v61 = vrot.slane %v2663_v19, 4  ;;  %v5675_v28 = vld [vmem:[%s5742_s26 + $0x8c] sm:$0x1] }
 0x1f1   : > { %3877 = vmatmul.bf16.gmra.mxu3 %v3757_v33  ;;  %v2843_v37 = vpop.f32.mrf.mxu1  ;;  %v3562_v33 = vrot.slane %v3560_v54, 5  ;;  %v4083_v59 = vsel %vm6057_vm5, %v4081_v4, %v4082_v38  ;;  %v5103_v54 = vrot.slane %v5087_v16, 9  ;;  %v4161_v3 = vunpack.c.l.b16 %v4080_v7 }
 0x1f2   : > { %v4264_v31 = vpop.f32.mrf.mxu0  ;;  %v2922_v42 = vadd.f32 %v2843_v37, %v6357_v5  ;;  %v3568_v5 = vrot.slane %v3566_v40, 5  ;;  %v3572_v37 = vrot.slane %v3570_v32, 4  ;;  %v4162_v11 = vunpack.c.l.b16 %v4083_v59 }
 0x1f3   : > { %v3563_v27 = vor.u32 %v3562_v33, %v3559_v0  ;;  %v3576_v40 = vshll.u32 %v5333_v9, 16  ;;  %v4086_v16 = vrot.slane %v6879_v41, 5 }
 0x1f4   : > { %v3838_v22 = vpop.f32.mrf.mxu3  ;;  %v3573_v4 = vor.u32 %v3572_v37, %v3568_v5  ;;  %v4184_v7 = vpack.c.b16 %v4162_v11, %v4161_v3  ;;  %v6916_v37 = vld [vmem:[%s5742_s26 + $0xa0] sm:$0xf]  ;;  %v4089_v11 = vrot.slane %v5333_v9, 5 }
 0x1f5   : > { %4303 = vmatmul.bf16.gmra.mxu0 %v4183_v57  ;;  %v3918_v44 = vadd.f32 %v3838_v22, %v3236_v1  ;;  %v2666_v22 = vrot.slane %v5675_v28, 5  ;;  %v3564_v38 = vrot.slane %v3563_v27, 4 }
 0x1f7   : > { %v4344_v15 = vadd.f32 %v4264_v31, %v3918_v44  ;;  %v3158_v21 = vpop.f32.mrf.mxu2 }
 0x1f8   : > { %v3237_v57 = vadd.f32 %v3158_v21, %v2922_v42  ;;  %v3758_v42 = vpack.c.b16 %v3736_v46, %v3735_v51  ;;  %v2664_v21 = vsel %vm6057_vm5, %v5103_v54, %v2663_v19  ;;  %v5334_v51 = vld [vmem:[%s5742_s26 + $0x9c] sm:$0xf]  ;;  %v3578_v54 = vrot.slane %v3576_v40, 5 }
 0x1f9   : > { %4376 = vst [vmem:[%s6893_s30] sm:$0xff] %v4344_v15  ;;  %v2846_v1 = vpop.f32.mrf.mxu1  ;;  %v2740_v19 = vunpack.c.l.b16 %v2664_v21  ;;  %v3581_v41 = vshrl.u32 %v5334_v51, 16 }
 0x1fa   : > { %v4266_v31 = vpop.f32.mrf.mxu0  ;;  %v2923_v0 = vadd.f32 %v2846_v1, %v6367_v48  ;;  %v3574_v1 = vrot.slane %v3573_v4, 4 }
 0x1fb   : > { %2885 = vmatmul.bf16.gmra.mxu1 %v2761_v13  ;;  %v2667_v13 = vsel %vm6057_vm5, %v2665_v61, %v2666_v22  ;;  %v5423_v61 = vrot.slane %v5407_v8, 9  ;;  %v3569_v22 = vsel %vm5757_vm2, %v3564_v38, %v3568_v5  ;;  %v3583_v21 = vrot.slane %v3581_v41, 4  ;;  %v5570_v8 = vld [vmem:[%s5742_s26 + $0x90] sm:$0xff] }
 0x1fc   : > { %v3840_v49 = vpop.f32.mrf.mxu3  ;;  %3200 = vmatmul.bf16.gmra.mxu2 %v5569_v25  ;;  %v4446_v25 = vmul.f32 %v4344_v15, %v4344_v15  ;;  %v2741_v27 = vunpack.c.l.b16 %v2667_v13 }
 0x1fd   : > { %v3919_v44 = vadd.f32 %v3840_v49, %v3237_v57  ;;  %v3584_v49 = vshll.u32 %v5334_v51, 16  ;;  %v4087_v5 = vsel %vm6057_vm5, %v5423_v61, %v4086_v16 }
 0x1fe   : > { %v2762_v40 = vpack.c.b16 %v2741_v27, %v2740_v19 }
 0x1ff   : > { %v4345_v32 = vadd.f32 %v4266_v31, %v3919_v44  ;;  %v3161_v33 = vpop.f32.mrf.mxu2  ;;  %v3590_v44 = vshll.u32 %v6916_v37, 16  ;;  %v3586_v13 = vrot.slane %v3584_v49, 5 }
 0x200   : > { %v3238_v59 = vadd.f32 %v3161_v33, %v2923_v0  ;;  %v3737_v0 = vunpack.c.l.b16 %v3569_v22  ;;  %v4163_v22 = vunpack.c.l.b16 %v4087_v5 }
 0x201   : > { %4377 = vst [vmem:[%s6893_s30 + $0x8] sm:$0xff] %v4345_v32  ;;  %v4408_v46 = vadd.f32 %v4345_v32, %v4344_v15  ;;  %v4447_v57 = vmul.f32 %v4345_v32, %v4345_v32  ;;  %3882 = vmatmul.bf16.gmra.mxu3 %v3758_v42  ;;  %v2848_v48 = vpop.f32.mrf.mxu1  ;;  %v4088_v15 = vrot.slane %v4086_v16, 4  ;;  %v3594_v42 = vshrl.u32 %v6916_v37, 16 }
 0x202   : > { %v4269_v31 = vpop.f32.mrf.mxu0  ;;  %v3579_v32 = vsel %vm5757_vm2, %v3574_v1, %v3578_v54  ;;  %v2924_v33 = vadd.f32 %v2848_v48, %v6381_v47  ;;  %v5088_v48 = vld [vmem:[%s5742_s26 + $0x90] sm:$0xe]  ;;  %v6934_v54 = vld [vmem:[%s5742_s26 + $0xa4] sm:$0x1]  ;;  %v3587_v49 = vor.u32 %v3586_v13, %v3583_v21  ;;  %v5337_v21 = vld [vmem:[%s5742_s26 + $0xa8] sm:$0xf] }
 0x203   : > { %v4478_v28 = vadd.f32 %v4447_v57, %v4446_v25  ;;  %v4090_v25 = vsel %vm6057_vm5, %v4088_v15, %v4089_v11  ;;  %v3592_v57 = vrot.slane %v3590_v44, 5  ;;  %v3738_v47 = vunpack.c.l.b16 %v3579_v32 }
 0x204   : > { %v3843_v3 = vpop.f32.mrf.mxu3  ;;  %v4164_v41 = vunpack.c.l.b16 %v4090_v25  ;;  %v5104_v15 = vrot.slane %v5088_v48, 9 }
 0x205   : > { %4308 = vmatmul.bf16.gmra.mxu0 %v4184_v7  ;;  %v3920_v4 = vadd.f32 %v3843_v3, %v3238_v59  ;;  %v5676_v7 = vld [vmem:[%s5742_s26 + $0x94] sm:$0xf]  ;;  %v3596_v59 = vrot.slane %v3594_v42, 4  ;;  %v3759_v32 = vpack.c.b16 %v3738_v47, %v3737_v0  ;;  %v4093_v0 = vrot.slane %v6916_v37, 5  ;;  %v6948_v47 = vld [vmem:[%s5742_s26 + $0xac] sm:$0xf] }
 0x206   : > { %v2670_v51 = vrot.slane %v5676_v7, 5 }
 0x207   : > { %v4346_v38 = vadd.f32 %v4269_v31, %v3920_v4  ;;  %v3163_v9 = vpop.f32.mrf.mxu2  ;;  %v3597_v42 = vor.u32 %v3596_v59, %v3592_v57 }
 0x208   : > { %v3239_v16 = vadd.f32 %v3163_v9, %v2924_v33  ;;  %v2672_v11 = vrot.slane %v2670_v51, 4  ;;  %v3588_v9 = vrot.slane %v3587_v49, 4  ;;  %v2671_v13 = vsel %vm6057_vm5, %v5104_v15, %v2670_v51 }
 0x209   : > { %4378 = vst [vmem:[%s6893_s30 + $0x10] sm:$0xff] %v4346_v38  ;;  %v4409_v1 = vadd.f32 %v4408_v46, %v4346_v38  ;;  %v4448_v19 = vmul.f32 %v4346_v38, %v4346_v38  ;;  %v2851_v31 = vpop.f32.mrf.mxu1  ;;  %v5677_v46 = vld [vmem:[%s5742_s26 + $0x98] sm:$0x1]  ;;  %v3600_v38 = vshll.u32 %v6934_v54, 16  ;;  %v3598_v25 = vrot.slane %v3597_v42, 4 }
 0x20a   : > { %v4271_v27 = vpop.f32.mrf.mxu0  ;;  %v2673_v44 = vrot.slane %v5677_v46, 5  ;;  %v4095_v15 = vrot.slane %v4093_v0, 4  ;;  %v3614_v46 = vshll.u32 %v6948_v47, 16  ;;  %v3618_v42 = vshrl.u32 %v6948_v47, 16 }
 0x20b   : > { %v4479_v61 = vadd.f32 %v4478_v28, %v4448_v19  ;;  %2890 = vmatmul.bf16.gmra.mxu1 %v2762_v40  ;;  %v2925_v28 = vadd.f32 %v2851_v31, %v6401_v52  ;;  %v4185_v40 = vpack.c.b16 %v4164_v41, %v4163_v22  ;;  %v5408_v31 = vld [vmem:[%s5742_s26 + $0x9c] sm:$0xe]  ;;  %v3608_v22 = vshll.u32 %v5337_v21, 16 }
 0x20c   : > { %v3845_v3 = vpop.f32.mrf.mxu3  ;;  %3205 = vmatmul.bf16.gmra.mxu2 %v5570_v8  ;;  %v2674_v8 = vsel %vm6057_vm5, %v2672_v11, %v2673_v44  ;;  %v2742_v41 = vunpack.c.l.b16 %v2671_v13  ;;  %v4096_v11 = vrot.slane %v6934_v54, 5  ;;  %v5678_v54 = vld [vmem:[%s5742_s26 + $0xa0] sm:$0xf] }
 0x20d   : > { %v3921_v4 = vadd.f32 %v3845_v3, %v3239_v16  ;;  %v3602_v16 = vrot.slane %v3600_v38, 5  ;;  %v2743_v49 = vunpack.c.l.b16 %v2674_v8  ;;  %v3593_v3 = vsel %vm5757_vm2, %v3588_v9, %v3592_v57 }
 0x20e   : > { %v2677_v9 = vrot.slane %v5678_v54, 5  ;;  %v4097_v8 = vsel %vm6057_vm5, %v4095_v15, %v4096_v11  ;;  %v4100_v54 = vrot.slane %v6948_v47, 5 }
 0x20f   : > { %v4347_v33 = vadd.f32 %v4271_v27, %v3921_v4  ;;  %v3166_v5 = vpop.f32.mrf.mxu2  ;;  %v3605_v27 = vshrl.u32 %v5337_v21, 16  ;;  %v3739_v4 = vunpack.c.l.b16 %v3593_v3  ;;  %v5571_v21 = vld [vmem:[%s5742_s26 + $0x9c] sm:$0xff] }
 0x210   : > { %v3240_v52 = vadd.f32 %v3166_v5, %v2925_v28  ;;  %v2763_v5 = vpack.c.b16 %v2743_v49, %v2742_v41  ;;  %v2679_v49 = vrot.slane %v2677_v9, 4 }
 0x211   : > { %4379 = vst [vmem:[%s6893_s30 + $0x18] sm:$0xff] %v4347_v33  ;;  %v4410_v7 = vadd.f32 %v4409_v1, %v4347_v33  ;;  %v4449_v59 = vmul.f32 %v4347_v33, %v4347_v33  ;;  %3887 = vmatmul.bf16.gmra.mxu3 %v3759_v32  ;;  %v2853_v19 = vpop.f32.mrf.mxu1  ;;  %v5424_v1 = vrot.slane %v5408_v31, 9  ;;  %v3607_v57 = vrot.slane %v3605_v27, 4 }
 0x212   : > { %v4274_v48 = vpop.f32.mrf.mxu0  ;;  %v3610_v32 = vrot.slane %v3608_v22, 5  ;;  %v2926_v33 = vadd.f32 %v2853_v19, %v6421_v34  ;;  %v3620_v31 = vrot.slane %v3618_v42, 4 }
 0x213   : > { %v4480_v51 = vadd.f32 %v4479_v61, %v4449_v59  ;;  %v3603_v61 = vsel %vm5757_vm2, %v3598_v25, %v3602_v16  ;;  %v4094_v13 = vsel %vm6057_vm5, %v5424_v1, %v4093_v0  ;;  %v5089_v25 = vld [vmem:[%s5742_s26 + $0x9c] sm:$0xe]  ;;  %v3616_v59 = vrot.slane %v3614_v46, 5  ;;  %v5679_v0 = vld [vmem:[%s5742_s26 + $0xa4] sm:$0x1] }
 0x214   : > { %v3848_v37 = vpop.f32.mrf.mxu3  ;;  %v3611_v27 = vor.u32 %v3610_v32, %v3607_v57  ;;  %v5105_v41 = vrot.slane %v5089_v25, 9  ;;  %v2680_v3 = vrot.slane %v5679_v0, 5  ;;  %v4165_v15 = vunpack.c.l.b16 %v4094_v13 }
 0x215   : > { %4313 = vmatmul.bf16.gmra.mxu0 %v4185_v40  ;;  %v3922_v44 = vadd.f32 %v3848_v37, %v3240_v52  ;;  %v3740_v40 = vunpack.c.l.b16 %v3603_v61  ;;  %v5339_v37 = vld [vmem:[%s5742_s26 + $0xb0] sm:$0x1] }
 0x216   : > { %v3612_v61 = vrot.slane %v3611_v27, 4  ;;  %v3624_v42 = vshll.u32 %v5339_v37, 16  ;;  %v4103_v0 = vrot.slane %v5339_v37, 5 }
 0x217   : > { %v4348_v38 = vadd.f32 %v4274_v48, %v3922_v44  ;;  %v3168_v28 = vpop.f32.mrf.mxu2  ;;  %v3760_v46 = vpack.c.b16 %v3740_v40, %v3739_v4  ;;  %v3621_v44 = vor.u32 %v3620_v31, %v3616_v59 }
 0x218   : > { %v3241_v34 = vadd.f32 %v3168_v28, %v2926_v33  ;;  %v2681_v33 = vsel %vm6057_vm5, %v2679_v49, %v2680_v3  ;;  %v5409_v28 = vld [vmem:[%s5742_s26 + $0xa8] sm:$0xe]  ;;  %v3617_v27 = vsel %vm5757_vm2, %v3612_v61, %v3616_v59 }
 0x219   : > { %4380 = vst [vmem:[%s6893_s30 + $0x20] sm:$0xff] %v4348_v38  ;;  %v4411_v52 = vadd.f32 %v4410_v7, %v4348_v38  ;;  %v4450_v16 = vmul.f32 %v4348_v38, %v4348_v38  ;;  %v2856_v19 = vpop.f32.mrf.mxu1  ;;  %v4166_v7 = vunpack.c.l.b16 %v4097_v8  ;;  %v2678_v38 = vsel %vm6057_vm5, %v5105_v41, %v2677_v9 }
 0x21a   : > { %v4276_v48 = vpop.f32.mrf.mxu0  ;;  %v3622_v25 = vrot.slane %v3621_v44, 4  ;;  %v2745_v9 = vunpack.c.l.b16 %v2681_v33  ;;  %v5425_v31 = vrot.slane %v5409_v28, 9 }
 0x21b   : > { %v4481_v22 = vadd.f32 %v4480_v51, %v4450_v16  ;;  %2895 = vmatmul.bf16.gmra.mxu1 %v2763_v5  ;;  %v2927_v51 = vadd.f32 %v2856_v19, %v6431_v10  ;;  %v4186_v5 = vpack.c.b16 %v4166_v7, %v4165_v15  ;;  %v6978_v10 = vld [vmem:[%s5742_s26 + $0xb8] sm:$0xf]  ;;  %v3626_v19 = vrot.slane %v3624_v42, 5 }
 0x21c   : > { %v3850_v1 = vpop.f32.mrf.mxu3  ;;  %3210 = vmatmul.bf16.gmra.mxu2 %v5571_v21  ;;  %v5340_v21 = vld [vmem:[%s5742_s26 + $0xb4] sm:$0xf]  ;;  %v3638_v3 = vshll.u32 %v6978_v10, 16  ;;  %v4101_v59 = vsel %vm6057_vm5, %v5425_v31, %v4100_v54 }
 0x21d   : > { %v3923_v11 = vadd.f32 %v3850_v1, %v3241_v34  ;;  %v2744_v34 = vunpack.c.l.b16 %v2678_v38  ;;  %v3629_v47 = vshrl.u32 %v5340_v21, 16  ;;  %v3632_v41 = vshll.u32 %v5340_v21, 16 }
 0x21e   : > { %v3642_v1 = vshrl.u32 %v6978_v10, 16  ;;  %v3640_v33 = vrot.slane %v3638_v3, 5 }
 0x21f   : > { %v4349_v57 = vadd.f32 %v4276_v48, %v3923_v11  ;;  %v3171_v32 = vpop.f32.mrf.mxu2  ;;  %v2764_v7 = vpack.c.b16 %v2745_v9, %v2744_v34  ;;  %v3741_v11 = vunpack.c.l.b16 %v3617_v27  ;;  %v3631_v61 = vrot.slane %v3629_v47, 4 }
 0x220   : > { %v3242_v13 = vadd.f32 %v3171_v32, %v2927_v51  ;;  %v3634_v42 = vrot.slane %v3632_v41, 5  ;;  %v5680_v32 = vld [vmem:[%s5742_s26 + $0xac] sm:$0xf]  ;;  %v3644_v28 = vrot.slane %v3642_v1, 4  ;;  %v4167_v34 = vunpack.c.l.b16 %v4101_v59  ;;  %v5343_v59 = vld [vmem:[%s5742_s26 + $0xc0] sm:$0xf] }
 0x221   : > { %4381 = vst [vmem:[%s6893_s30 + $0x28] sm:$0xff] %v4349_v57  ;;  %v4412_v4 = vadd.f32 %v4411_v52, %v4349_v57  ;;  %v4451_v40 = vmul.f32 %v4349_v57, %v4349_v57  ;;  %3892 = vmatmul.bf16.gmra.mxu3 %v3760_v46  ;;  %v2858_v8 = vpop.f32.mrf.mxu1  ;;  %v4102_v52 = vrot.slane %v4100_v54, 4  ;;  %v5572_v57 = vld [vmem:[%s5742_s26 + $0xa8] sm:$0xff]  ;;  %v2684_v38 = vrot.slane %v5680_v32, 5  ;;  %v5410_v32 = vld [vmem:[%s5742_s26 + $0xb4] sm:$0xe] }
 0x222   : > { %v4279_v16 = vpop.f32.mrf.mxu0  ;;  %v2928_v44 = vadd.f32 %v2858_v8, %v6439_v12 }
 0x223   : > { %v4482_v48 = vadd.f32 %v4481_v22, %v4451_v40  ;;  %v3627_v22 = vsel %vm5757_vm2, %v3622_v25, %v3626_v19  ;;  %v4104_v51 = vsel %vm6057_vm5, %v4102_v52, %v4103_v0  ;;  %v6996_v25 = vld [vmem:[%s5742_s26 + $0xbc] sm:$0x1]  ;;  %v3635_v19 = vor.u32 %v3634_v42, %v3631_v61 }
 0x224   : > { %v3853_v49 = vpop.f32.mrf.mxu3  ;;  %v3742_v12 = vunpack.c.l.b16 %v3627_v22  ;;  %v4168_v9 = vunpack.c.l.b16 %v4104_v51  ;;  %v2686_v47 = vrot.slane %v2684_v38, 4  ;;  %v3648_v3 = vshll.u32 %v6996_v25, 16 }
 0x225   : > { %4318 = vmatmul.bf16.gmra.mxu0 %v4186_v5  ;;  %v3924_v15 = vadd.f32 %v3853_v49, %v3242_v13  ;;  %v5090_v13 = vld [vmem:[%s5742_s26 + $0xa8] sm:$0xe]  ;;  %v3645_v49 = vor.u32 %v3644_v28, %v3640_v33  ;;  %v3636_v22 = vrot.slane %v3635_v19, 4  ;;  %v7010_v28 = vld [vmem:[%s5742_s26 + $0xc4] sm:$0xf] }
 0x226   : > { %v5106_v27 = vrot.slane %v5090_v13, 9  ;;  %v3761_v0 = vpack.c.b16 %v3742_v12, %v3741_v11  ;;  %v4107_v11 = vrot.slane %v6978_v10, 5  ;;  %v3650_v51 = vrot.slane %v3648_v3, 5 }
 0x227   : > { %v4350_v46 = vadd.f32 %v4279_v16, %v3924_v15  ;;  %v3173_v37 = vpop.f32.mrf.mxu2  ;;  %v4187_v15 = vpack.c.b16 %v4168_v9, %v4167_v34  ;;  %v4110_v9 = vrot.slane %v6996_v25, 5  ;;  %v3662_v19 = vshll.u32 %v7010_v28, 16  ;;  %v5682_v25 = vld [vmem:[%s5742_s26 + $0xb8] sm:$0xf] }
 0x228   : > { %v3243_v54 = vadd.f32 %v3173_v37, %v2928_v44  ;;  %v3646_v37 = vrot.slane %v3645_v49, 4  ;;  %v4109_v34 = vrot.slane %v4107_v11, 4  ;;  %v7141_v49 = vld [vmem:[#allocation2_spill] sm:$0xff] }
 0x229   : > { %4382 = vst [vmem:[%s6893_s30 + $0x30] sm:$0xff] %v4350_v46  ;;  %v4413_v5 = vadd.f32 %v4412_v4, %v4350_v46  ;;  %v4452_v21 = vmul.f32 %v4350_v46, %v4350_v46  ;;  %v2861_v40 = vpop.f32.mrf.mxu1  ;;  %v5681_v4 = vld [vmem:[%s5742_s26 + $0xb0] sm:$0x1]  ;;  %v2685_v46 = vsel %vm6057_vm5, %v5106_v27, %v2684_v38  ;;  %v3666_v27 = vshrl.u32 %v7010_v28, 16 }
 0x22a   : > { %v4281_v8 = vpop.f32.mrf.mxu0  ;;  %v2687_v41 = vrot.slane %v5681_v4, 5  ;;  %v2746_v12 = vunpack.c.l.b16 %v2685_v46  ;;  %v3664_v46 = vrot.slane %v3662_v19, 5 }
 0x22b   : > { %v4483_v16 = vadd.f32 %v4482_v48, %v4452_v21  ;;  %2900 = vmatmul.bf16.gmra.mxu1 %v2764_v7  ;;  %v2929_v48 = vadd.f32 %v2861_v40, %v6458_v60  ;;  %v3656_v40 = vshll.u32 %v5343_v59, 16 }
 0x22c   : > { %v3855_v31 = vpop.f32.mrf.mxu3  ;;  %3215 = vmatmul.bf16.gmra.mxu2 %v5572_v57  ;;  %v2688_v44 = vsel %vm6057_vm5, %v2686_v47, %v2687_v41 }
 0x22d   : > { %v3925_v52 = vadd.f32 %v3855_v31, %v3243_v54  ;;  %v3653_v54 = vshrl.u32 %v5343_v59, 16  ;;  %v2747_v13 = vunpack.c.l.b16 %v2688_v44  ;;  %v3658_v4 = vrot.slane %v3656_v40, 5  ;;  %v5091_v59 = vld [vmem:[%s5742_s26 + $0xb4] sm:$0xe] }
 0x22f   : > { %v4351_v1 = vadd.f32 %v4281_v8, %v3925_v52  ;;  %v3176_v7 = vpop.f32.mrf.mxu2  ;;  %v3641_v8 = vsel %vm5757_vm2, %v3636_v22, %v3640_v33  ;;  %v3655_v33 = vrot.slane %v3653_v54, 4  ;;  %v2765_v3 = vpack.c.b16 %v2747_v13, %v2746_v12  ;;  %v5345_v13 = vld [vmem:[%s5742_s26 + $0xc8] sm:$0x1] }
 0x230   : > { %v3244_v60 = vadd.f32 %v3176_v7, %v2929_v48  ;;  %v3743_v47 = vunpack.c.l.b16 %v3641_v8  ;;  %v5573_v48 = vld [vmem:[%s5742_s26 + $0xb4] sm:$0xff]  ;;  %v4111_v22 = vsel %vm6057_vm5, %v4109_v34, %v4110_v9  ;;  %v5107_v54 = vrot.slane %v5091_v59, 9 }
 0x231   : > { %4383 = vst [vmem:[%s6893_s30 + $0x38] sm:$0xff] %v4351_v1  ;;  %v4414_v61 = vadd.f32 %v4413_v5, %v4351_v1  ;;  %v4453_v42 = vmul.f32 %v4351_v1, %v4351_v1  ;;  %3897 = vmatmul.bf16.gmra.mxu3 %v3761_v0  ;;  %v2863_v57 = vpop.f32.mrf.mxu1  ;;  %v5426_v5 = vrot.slane %v5410_v32, 9  ;;  %v2691_v1 = vrot.slane %v5682_v25, 5 }
 0x232   : > { %v4284_v21 = vpop.f32.mrf.mxu0  ;;  %v2930_v52 = vadd.f32 %v2863_v57, %v7141_v49  ;;  %v3668_v57 = vrot.slane %v3666_v27, 4  ;;  %v3659_v32 = vor.u32 %v3658_v4, %v3655_v33  ;;  %v5411_v49 = vld [vmem:[%s5742_s26 + $0xc0] sm:$0xe] }
 0x233   : > { %v4484_v38 = vadd.f32 %v4483_v16, %v4453_v42  ;;  %v3651_v16 = vsel %vm5757_vm2, %v3646_v37, %v3650_v51  ;;  %v4108_v7 = vsel %vm6057_vm5, %v5426_v5, %v4107_v11  ;;  %v2693_v40 = vrot.slane %v2691_v1, 4  ;;  %v5683_v11 = vld [vmem:[%s5742_s26 + $0xbc] sm:$0x1] }
 0x234   : > { %v3858_v10 = vpop.f32.mrf.mxu3  ;;  %v2694_v12 = vrot.slane %v5683_v11, 5  ;;  %v3669_v9 = vor.u32 %v3668_v57, %v3664_v46  ;;  %v3660_v19 = vrot.slane %v3659_v32, 4  ;;  %v2692_v4 = vsel %vm6057_vm5, %v5107_v54, %v2691_v1 }
 0x235   : > { %4323 = vmatmul.bf16.gmra.mxu0 %v4187_v15  ;;  %v3926_v31 = vadd.f32 %v3858_v10, %v3244_v60  ;;  %v3744_v15 = vunpack.c.l.b16 %v3651_v16  ;;  %v4169_v10 = vunpack.c.l.b16 %v4108_v7 }
 0x236   : > { %v3670_v7 = vrot.slane %v3669_v9, 4 }
 0x237   : > { %v4352_v41 = vadd.f32 %v4284_v21, %v3926_v31  ;;  %v3178_v0 = vpop.f32.mrf.mxu2  ;;  %v3762_v34 = vpack.c.b16 %v3744_v15, %v3743_v47  ;;  %v3672_v31 = vshll.u32 %v5345_v13, 16 }
 0x238   : > { %v3245_v42 = vadd.f32 %v3178_v0, %v2930_v52  ;;  %v4114_v0 = vrot.slane %v7010_v28, 5 }
 0x239   : > { %4384 = vst [vmem:[%s6893_s30 + $0x40] sm:$0xff] %v4352_v41  ;;  %v4415_v44 = vadd.f32 %v4414_v61, %v4352_v41  ;;  %v4454_v37 = vmul.f32 %v4352_v41, %v4352_v41  ;;  %v2866_v60 = vpop.f32.mrf.mxu1  ;;  %v4170_v61 = vunpack.c.l.b16 %v4111_v22  ;;  %v2695_v41 = vsel %vm6057_vm5, %v2693_v40, %v2694_v12  ;;  %v7040_v22 = vld [vmem:[%s5742_s26 + $0xd0] sm:$0xf] }
 0x23a   : > { %v4286_v51 = vpop.f32.mrf.mxu0  ;;  %v2749_v1 = vunpack.c.l.b16 %v2695_v41  ;;  %v4117_v40 = vrot.slane %v5345_v13, 5  ;;  %v3686_v11 = vshll.u32 %v7040_v22, 16  ;;  %v3690_v12 = vshrl.u32 %v7040_v22, 16 }
 0x23b   : > { %v4485_v21 = vadd.f32 %v4484_v38, %v4454_v37  ;;  %2905 = vmatmul.bf16.gmra.mxu1 %v2765_v3  ;;  %v7142_v38 = vld [vmem:[#allocation3_spill] sm:$0xff]  ;;  %v4188_v52 = vpack.c.b16 %v4170_v61, %v4169_v10  ;;  %v2748_v37 = vunpack.c.l.b16 %v2692_v4 }
 0x23c   : > { %v3860_v8 = vpop.f32.mrf.mxu3  ;;  %3220 = vmatmul.bf16.gmra.mxu2 %v5573_v48  ;;  %v2931_v27 = vadd.f32 %v2866_v60, %v7142_v38  ;;  %v5346_v3 = vld [vmem:[%s5742_s26 + $0xcc] sm:$0xf]  ;;  %v5427_v60 = vrot.slane %v5411_v49, 9  ;;  %v5684_v38 = vld [vmem:[%s5742_s26 + $0xc4] sm:$0xf]  ;;  %v3688_v4 = vrot.slane %v3686_v11, 5 }
 0x23d   : > { %v3927_v5 = vadd.f32 %v3860_v8, %v3245_v42  ;;  %v3674_v42 = vrot.slane %v3672_v31, 5  ;;  %v3677_v28 = vshrl.u32 %v5346_v3, 16  ;;  %v3680_v32 = vshll.u32 %v5346_v3, 16  ;;  %v5574_v31 = vld [vmem:[%s5742_s26 + $0xc0] sm:$0xff] }
 0x23e   : > { %v2766_v10 = vpack.c.b16 %v2749_v1, %v2748_v37  ;;  %v4115_v61 = vsel %vm6057_vm5, %v5427_v60, %v4114_v0  ;;  %v3692_v41 = vrot.slane %v3690_v12, 4 }
 0x23f   : > { %v4353_v16 = vadd.f32 %v4286_v51, %v3927_v5  ;;  %v3181_v33 = vpop.f32.mrf.mxu2  ;;  %v3665_v51 = vsel %vm5757_vm2, %v3660_v19, %v3664_v46  ;;  %v3679_v9 = vrot.slane %v3677_v28, 4  ;;  %v3682_v19 = vrot.slane %v3680_v32, 5 }
 0x240   : > { %v3246_v48 = vadd.f32 %v3181_v33, %v2931_v27  ;;  %v3745_v46 = vunpack.c.l.b16 %v3665_v51  ;;  %v2698_v27 = vrot.slane %v5684_v38, 5  ;;  %v7056_v33 = vld [vmem:[%s5742_s26 + $0xd4] sm:$0x1]  ;;  %v3693_v32 = vor.u32 %v3692_v41, %v3688_v4 }
 0x241   : > { %4385 = vst [vmem:[%s6893_s30 + $0x48] sm:$0xff] %v4353_v16  ;;  %v4416_v47 = vadd.f32 %v4415_v44, %v4353_v16  ;;  %v4455_v25 = vmul.f32 %v4353_v16, %v4353_v16  ;;  %3902 = vmatmul.bf16.gmra.mxu3 %v3762_v34  ;;  %v2868_v15 = vpop.f32.mrf.mxu1  ;;  %v4116_v44 = vrot.slane %v4114_v0, 4  ;;  %v3683_v37 = vor.u32 %v3682_v19, %v3679_v9  ;;  %v5412_v19 = vld [vmem:[%s5742_s26 + $0xcc] sm:$0xe] }
 0x242   : > { %v4289_v59 = vpop.f32.mrf.mxu0  ;;  %v2932_v13 = vadd.f32 %v2868_v15, %v6509_v24  ;;  %v4171_v15 = vunpack.c.l.b16 %v4115_v61  ;;  %v3696_v1 = vshll.u32 %v7056_v33, 16  ;;  %v2700_v51 = vrot.slane %v2698_v27, 4 }
 0x243   : > { %v4486_v57 = vadd.f32 %v4485_v21, %v4455_v25  ;;  %v3675_v21 = vsel %vm5757_vm2, %v3670_v7, %v3674_v42  ;;  %v4118_v16 = vsel %vm6057_vm5, %v4116_v44, %v4117_v40  ;;  %v5092_v25 = vld [vmem:[%s5742_s26 + $0xc0] sm:$0xe]  ;;  %v3694_v61 = vrot.slane %v3693_v32, 4 }
 0x244   : > { %v3863_v54 = vpop.f32.mrf.mxu3  ;;  %v3746_v3 = vunpack.c.l.b16 %v3675_v21  ;;  %v5108_v60 = vrot.slane %v5092_v25, 9  ;;  %v4124_v25 = vrot.slane %v7056_v33, 5 }
 0x245   : > { %4328 = vmatmul.bf16.gmra.mxu0 %v4188_v52  ;;  %v3928_v8 = vadd.f32 %v3863_v54, %v3246_v48 }
 0x246   : > { %v3763_v44 = vpack.c.b16 %v3746_v3, %v3745_v46 }
 0x247   : > { %v4354_v5 = vadd.f32 %v4289_v59, %v3928_v8  ;;  %v3183_v34 = vpop.f32.mrf.mxu2  ;;  %v4172_v59 = vunpack.c.l.b16 %v4118_v16  ;;  %v3684_v8 = vrot.slane %v3683_v37, 4 }
 0x248   : > { %v3247_v0 = vadd.f32 %v3183_v34, %v2932_v13 }
 0x249   : > { %4386 = vst [vmem:[%s6893_s30 + $0x50] sm:$0xff] %v4354_v5  ;;  %v4417_v49 = vadd.f32 %v4416_v47, %v4354_v5  ;;  %v4456_v52 = vmul.f32 %v4354_v5, %v4354_v5  ;;  %v2871_v24 = vpop.f32.mrf.mxu1  ;;  %v5685_v47 = vld [vmem:[%s5742_s26 + $0xc8] sm:$0x1]  ;;  %v3698_v5 = vrot.slane %v3696_v1, 5 }
 0x24a   : > { %v4291_v48 = vpop.f32.mrf.mxu0  ;;  %v2701_v28 = vrot.slane %v5685_v47, 5  ;;  %v2933_v11 = vadd.f32 %v2871_v24, %v6518_v36  ;;  %v4121_v36 = vrot.slane %v7040_v22, 5 }
 0x24b   : > { %v4487_v7 = vadd.f32 %v4486_v57, %v4456_v52  ;;  %2910 = vmatmul.bf16.gmra.mxu1 %v2766_v10  ;;  %v4189_v57 = vpack.c.b16 %v4172_v59, %v4171_v15  ;;  %v2699_v10 = vsel %vm6057_vm5, %v5108_v60, %v2698_v27  ;;  %v3689_v52 = vsel %vm5757_vm2, %v3684_v8, %v3688_v4  ;;  %v5575_v59 = vld [vmem:[%s5742_s26 + $0xcc] sm:$0xff] }
 0x24c   : > { %v3865_v42 = vpop.f32.mrf.mxu3  ;;  %3225 = vmatmul.bf16.gmra.mxu2 %v5574_v31  ;;  %v2702_v21 = vsel %vm6057_vm5, %v2700_v51, %v2701_v28  ;;  %v2750_v38 = vunpack.c.l.b16 %v2699_v10  ;;  %v3699_v24 = vsel %vm5757_vm2, %v3694_v61, %v3698_v5  ;;  %v4123_v3 = vrot.slane %v4121_v36, 4 }
 0x24d   : > { %v3929_v54 = vadd.f32 %v3865_v42, %v3247_v0  ;;  %v2751_v41 = vunpack.c.l.b16 %v2702_v21  ;;  %v5428_v0 = vrot.slane %v5412_v19, 9  ;;  %v3747_v37 = vunpack.c.l.b16 %v3689_v52 }
 0x24e   : > { %v3748_v1 = vunpack.c.l.b16 %v3699_v24  ;;  %v4125_v33 = vsel %vm6057_vm5, %v4123_v3, %v4124_v25 }
 0x24f   : > { %v4355_v40 = vadd.f32 %v4291_v48, %v3929_v54  ;;  %v3186_v12 = vpop.f32.mrf.mxu2  ;;  %v4122_v4 = vsel %vm6057_vm5, %v5428_v0, %v4121_v36  ;;  %v4174_v54 = vunpack.c.l.b16 %v4125_v33 }
 0x250   : > { %v3248_v46 = vadd.f32 %v3186_v12, %v2933_v11  ;;  %v4173_v32 = vunpack.c.l.b16 %v4122_v4 }
 0x251   : > { %4387 = vst [vmem:[%s6893_s30 + $0x58] sm:$0xff] %v4355_v40  ;;  %v4418_v13 = vadd.f32 %v4417_v49, %v4355_v40  ;;  %v4457_v34 = vmul.f32 %v4355_v40, %v4355_v40  ;;  %3907 = vmatmul.bf16.gmra.mxu3 %v3763_v44  ;;  %v2873_v9 = vpop.f32.mrf.mxu1  ;;  %v3764_v40 = vpack.c.b16 %v3748_v1, %v3747_v37 }
 0x252   : > { %v4294_v31 = vpop.f32.mrf.mxu0  ;;  %v2934_v48 = vadd.f32 %v2873_v9, %v6531_v45  ;;  %v4190_v8 = vpack.c.b16 %v4174_v54, %v4173_v32 }
 0x253   : > { %v4488_v16 = vadd.f32 %v4487_v7, %v4457_v34  ;;  %v2767_v7 = vpack.c.b16 %v2751_v41, %v2750_v38 }
 0x254   : > { %v3868_v27 = vpop.f32.mrf.mxu3 }
 0x255   : > { %4333 = vmatmul.bf16.gmra.mxu0 %v4189_v57  ;;  %v3930_v49 = vadd.f32 %v3868_v27, %v3248_v46 }
 0x257   : > { %v4356_v22 = vadd.f32 %v4294_v31, %v3930_v49  ;;  %v3188_v15 = vpop.f32.mrf.mxu2 }
 0x258   : > { %v3249_v51 = vadd.f32 %v3188_v15, %v2934_v48 }
 0x259   : > { %4388 = vst [vmem:[%s6893_s30 + $0x60] sm:$0xff] %v4356_v22  ;;  %v4419_v42 = vadd.f32 %v4418_v13, %v4356_v22  ;;  %v4458_v60 = vmul.f32 %v4356_v22, %v4356_v22  ;;  %v2876_v30 = vpop.f32.mrf.mxu1 }
 0x25a   : > { %v4296_v47 = vpop.f32.mrf.mxu0  ;;  %v2935_v57 = vadd.f32 %v2876_v30, %v6544_v23 }
 0x25b   : > { %v4489_v28 = vadd.f32 %v4488_v16, %v4458_v60  ;;  %2915 = vmatmul.bf16.gmra.mxu1 %v2767_v7 }
 0x25c   : > { %v3870_v45 = vpop.f32.mrf.mxu3  ;;  %3230 = vmatmul.bf16.gmra.mxu2 %v5575_v59 }
 0x25d   : > { %v3931_v44 = vadd.f32 %v3870_v45, %v3249_v51 }
 0x25f   : > { %v4357_v11 = vadd.f32 %v4296_v47, %v3931_v44  ;;  %v3191_v12 = vpop.f32.mrf.mxu2 }
 0x260   : > { %v3250_v43 = vadd.f32 %v3191_v12, %v2935_v57 }
 0x261   : > { %4389 = vst [vmem:[%s6893_s30 + $0x68] sm:$0xff] %v4357_v11  ;;  %v4420_v10 = vadd.f32 %v4419_v42, %v4357_v11  ;;  %v4459_v21 = vmul.f32 %v4357_v11, %v4357_v11  ;;  %3912 = vmatmul.bf16.gmra.mxu3 %v3764_v40  ;;  %v2878_v61 = vpop.f32.mrf.mxu1 }
 0x262   : > { %v4299_v5 = vpop.f32.mrf.mxu0  ;;  %v2936_v19 = vadd.f32 %v2878_v61, %v6568_v17 }
 0x263   : > { %v4490_v13 = vadd.f32 %v4489_v28, %v4459_v21 }
 0x264   : > { %v3873_v34 = vpop.f32.mrf.mxu3 }
 0x265   : > { %4338 = vmatmul.bf16.gmra.mxu0 %v4190_v8  ;;  %v3932_v46 = vadd.f32 %v3873_v34, %v3250_v43 }
 0x267   : > { %v4358_v9 = vadd.f32 %v4299_v5, %v3932_v46  ;;  %v3193_v36 = vpop.f32.mrf.mxu2 }
 0x268   : > { %v3251_v16 = vadd.f32 %v3193_v36, %v2936_v19 }
 0x269   : > { %4390 = vst [vmem:[%s6893_s30 + $0x70] sm:$0xff] %v4358_v9  ;;  %v4421_v23 = vadd.f32 %v4420_v10, %v4358_v9  ;;  %v4460_v31 = vmul.f32 %v4358_v9, %v4358_v9  ;;  %v2881_v38 = vpop.f32.mrf.mxu1 }
 0x26a   : > { %v4301_v41 = vpop.f32.mrf.mxu0  ;;  %v2937_v24 = vadd.f32 %v2881_v38, %v6583_v20 }
 0x26b   : > { %v4491_v27 = vadd.f32 %v4490_v13, %v4460_v31 }
 0x26c   : > { %v3875_v52 = vpop.f32.mrf.mxu3 }
 0x26d   : > { %v3933_v0 = vadd.f32 %v3875_v52, %v3251_v16 }
 0x26f   : > { %v4359_v49 = vadd.f32 %v4301_v41, %v3933_v0  ;;  %v3196_v3 = vpop.f32.mrf.mxu2 }
 0x270   : > { %v3252_v48 = vadd.f32 %v3196_v3, %v2937_v24 }
 0x271   : > { %4391 = vst [vmem:[%s6893_s30 + $0x78] sm:$0xff] %v4359_v49  ;;  %v4422_v25 = vadd.f32 %v4421_v23, %v4359_v49  ;;  %v4461_v22 = vmul.f32 %v4359_v49, %v4359_v49  ;;  %v2883_v17 = vpop.f32.mrf.mxu1 }
 0x272   : > { %v4304_v15 = vpop.f32.mrf.mxu0  ;;  %v2938_v4 = vadd.f32 %v2883_v17, %v6609_v56 }
 0x273   : > { %v4492_v7 = vadd.f32 %v4491_v27, %v4461_v22 }
 0x274   : > { %v3878_v59 = vpop.f32.mrf.mxu3 }
 0x275   : > { %v3934_v37 = vadd.f32 %v3878_v59, %v3252_v48 }
 0x277   : > { %v4360_v1 = vadd.f32 %v4304_v15, %v3934_v37  ;;  %v3198_v42 = vpop.f32.mrf.mxu2 }
 0x278   : > { %v3253_v30 = vadd.f32 %v3198_v42, %v2938_v4 }
 0x279   : > { %4392 = vst [vmem:[%s6893_s30 + $0x80] sm:$0xff] %v4360_v1  ;;  %v4423_v60 = vadd.f32 %v4422_v25, %v4360_v1  ;;  %v4462_v51 = vmul.f32 %v4360_v1, %v4360_v1  ;;  %v2886_v20 = vpop.f32.mrf.mxu1 }
 0x27a   : > { %v4306_v33 = vpop.f32.mrf.mxu0  ;;  %v2939_v54 = vadd.f32 %v2886_v20, %v6623_v29 }
 0x27b   : > { %v4493_v47 = vadd.f32 %v4492_v7, %v4462_v51 }
 0x27c   : > { %v3880_v28 = vpop.f32.mrf.mxu3 }
 0x27d   : > { %v3935_v45 = vadd.f32 %v3880_v28, %v3253_v30 }
 0x27f   : > { %v4361_v32 = vadd.f32 %v4306_v33, %v3935_v45  ;;  %v3201_v44 = vpop.f32.mrf.mxu2 }
 0x280   : > { %v3254_v57 = vadd.f32 %v3201_v44, %v2939_v54 }
 0x281   : > { %4393 = vst [vmem:[%s6893_s30 + $0x88] sm:$0xff] %v4361_v32  ;;  %v4424_v40 = vadd.f32 %v4423_v60, %v4361_v32  ;;  %v4463_v11 = vmul.f32 %v4361_v32, %v4361_v32  ;;  %v2888_v56 = vpop.f32.mrf.mxu1 }
 0x282   : > { %v4309_v12 = vpop.f32.mrf.mxu0  ;;  %v2940_v61 = vadd.f32 %v2888_v56, %v6646_v58 }
 0x283   : > { %v4494_v8 = vadd.f32 %v4493_v47, %v4463_v11 }
 0x284   : > { %v3883_v10 = vpop.f32.mrf.mxu3 }
 0x285   : > { %v3936_v21 = vadd.f32 %v3883_v10, %v3254_v57 }
 0x287   : > { %v4362_v43 = vadd.f32 %v4309_v12, %v3936_v21  ;;  %v3203_v5 = vpop.f32.mrf.mxu2 }
 0x288   : > { %v3255_v46 = vadd.f32 %v3203_v5, %v2940_v61 }
 0x289   : > { %4394 = vst [vmem:[%s6893_s30 + $0x90] sm:$0xff] %v4362_v43  ;;  %v4425_v13 = vadd.f32 %v4424_v40, %v4362_v43  ;;  %v4464_v34 = vmul.f32 %v4362_v43, %v4362_v43  ;;  %v2891_v29 = vpop.f32.mrf.mxu1 }
 0x28a   : > { %v4311_v9 = vpop.f32.mrf.mxu0  ;;  %v2941_v16 = vadd.f32 %v2891_v29, %v6661_v26 }
 0x28b   : > { %v4495_v19 = vadd.f32 %v4494_v8, %v4464_v34 }
 0x28c   : > { %v3885_v36 = vpop.f32.mrf.mxu3 }
 0x28d   : > { %v3937_v23 = vadd.f32 %v3885_v36, %v3255_v46 }
 0x28f   : > { %v4363_v31 = vadd.f32 %v4311_v9, %v3937_v23  ;;  %v3206_v38 = vpop.f32.mrf.mxu2 }
 0x290   : > { %v3256_v52 = vadd.f32 %v3206_v38, %v2941_v16 }
 0x291   : > { %4395 = vst [vmem:[%s6893_s30 + $0x98] sm:$0xff] %v4363_v31  ;;  %v4426_v41 = vadd.f32 %v4425_v13, %v4363_v31  ;;  %v4465_v27 = vmul.f32 %v4363_v31, %v4363_v31  ;;  %v2893_v58 = vpop.f32.mrf.mxu1 }
 0x292   : > { %v4314_v0 = vpop.f32.mrf.mxu0  ;;  %v2942_v22 = vadd.f32 %v2893_v58, %v6687_v53 }
 0x293   : > { %v4496_v49 = vadd.f32 %v4495_v19, %v4465_v27 }
 0x294   : > { %v3888_v24 = vpop.f32.mrf.mxu3 }
 0x295   : > { %v3938_v3 = vadd.f32 %v3888_v24, %v3256_v52 }
 0x297   : > { %v4364_v25 = vadd.f32 %v4314_v0, %v3938_v3  ;;  %v3208_v48 = vpop.f32.mrf.mxu2 }
 0x298   : > { %v3257_v7 = vadd.f32 %v3208_v48, %v2942_v22 }
 0x299   : > { %4396 = vst [vmem:[%s6893_s30 + $0xa0] sm:$0xff] %v4364_v25  ;;  %v4427_v17 = vadd.f32 %v4426_v41, %v4364_v25  ;;  %v4466_v15 = vmul.f32 %v4364_v25, %v4364_v25  ;;  %v2896_v26 = vpop.f32.mrf.mxu1 }
 0x29a   : > { %v4316_v59 = vpop.f32.mrf.mxu0  ;;  %v2943_v60 = vadd.f32 %v2896_v26, %v6701_v2 }
 0x29b   : > { %v4497_v37 = vadd.f32 %v4496_v49, %v4466_v15 }
 0x29c   : > { %v3890_v1 = vpop.f32.mrf.mxu3 }
 0x29d   : > { %v3939_v4 = vadd.f32 %v3890_v1, %v3257_v7 }
 0x29f   : > { %v4365_v42 = vadd.f32 %v4316_v59, %v3939_v4  ;;  %v3211_v51 = vpop.f32.mrf.mxu2 }
 0x2a0   : > { %v3258_v33 = vadd.f32 %v3211_v51, %v2943_v60 }
 0x2a1   : > { %4397 = vst [vmem:[%s6893_s30 + $0xa8] sm:$0xff] %v4365_v42  ;;  %v4428_v30 = vadd.f32 %v4427_v17, %v4365_v42  ;;  %v4467_v20 = vmul.f32 %v4365_v42, %v4365_v42  ;;  %v2898_v53 = vpop.f32.mrf.mxu1 }
 0x2a2   : > { %v4319_v47 = vpop.f32.mrf.mxu0  ;;  %v2944_v44 = vadd.f32 %v2898_v53, %v6724_v50 }
 0x2a3   : > { %v4498_v28 = vadd.f32 %v4497_v37, %v4467_v20 }
 0x2a4   : > { %v3893_v45 = vpop.f32.mrf.mxu3 }
 0x2a5   : > { %v3940_v32 = vadd.f32 %v3893_v45, %v3258_v33 }
 0x2a7   : > { %v4366_v54 = vadd.f32 %v4319_v47, %v3940_v32  ;;  %v3213_v40 = vpop.f32.mrf.mxu2 }
 0x2a8   : > { %v3259_v56 = vadd.f32 %v3213_v40, %v2944_v44 }
 0x2a9   : > { %4398 = vst [vmem:[%s6893_s30 + $0xb0] sm:$0xff] %v4366_v54  ;;  %v4429_v11 = vadd.f32 %v4428_v30, %v4366_v54  ;;  %v4468_v57 = vmul.f32 %v4366_v54, %v4366_v54  ;;  %v2901_v2 = vpop.f32.mrf.mxu1 }
 0x2aa   : > { %v4321_v12 = vpop.f32.mrf.mxu0  ;;  %v2945_v61 = vadd.f32 %v2901_v2, %v6739_v35 }
 0x2ab   : > { %v4499_v8 = vadd.f32 %v4498_v28, %v4468_v57 }
 0x2ac   : > { %v3895_v10 = vpop.f32.mrf.mxu3 }
 0x2ad   : > { %v3941_v21 = vadd.f32 %v3895_v10, %v3259_v56 }
 0x2af   : > { %v4367_v43 = vadd.f32 %v4321_v12, %v3941_v21  ;;  %v3216_v5 = vpop.f32.mrf.mxu2 }
 0x2b0   : > { %v3260_v46 = vadd.f32 %v3216_v5, %v2945_v61 }
 0x2b1   : > { %4399 = vst [vmem:[%s6893_s30 + $0xb8] sm:$0xff] %v4367_v43  ;;  %v4430_v13 = vadd.f32 %v4429_v11, %v4367_v43  ;;  %v4469_v34 = vmul.f32 %v4367_v43, %v4367_v43  ;;  %v2903_v50 = vpop.f32.mrf.mxu1 }
 0x2b2   : > { %v4324_v29 = vpop.f32.mrf.mxu0  ;;  %v2946_v31 = vadd.f32 %v2903_v50, %v6765_v18 }
 0x2b3   : > { %v4500_v9 = vadd.f32 %v4499_v8, %v4469_v34 }
 0x2b4   : > { %v3898_v19 = vpop.f32.mrf.mxu3 }
 0x2b5   : > { %v3942_v36 = vadd.f32 %v3898_v19, %v3260_v46 }
 0x2b7   : > { %v4368_v23 = vadd.f32 %v4324_v29, %v3942_v36  ;;  %v3218_v16 = vpop.f32.mrf.mxu2 }
 0x2b8   : > { %v3261_v27 = vadd.f32 %v3218_v16, %v2946_v31 }
 0x2b9   : > { %4400 = vst [vmem:[%s6893_s30 + $0xc0] sm:$0xff] %v4368_v23  ;;  %v4431_v38 = vadd.f32 %v4430_v13, %v4368_v23  ;;  %v4470_v41 = vmul.f32 %v4368_v23, %v4368_v23  ;;  %v2906_v35 = vpop.f32.mrf.mxu1 }
 0x2ba   : > { %v4326_v52 = vpop.f32.mrf.mxu0  ;;  %v2947_v3 = vadd.f32 %v2906_v35, %v6779_v14 }
 0x2bb   : > { %v4501_v58 = vadd.f32 %v4500_v9, %v4470_v41 }
 0x2bc   : > { %v3900_v0 = vpop.f32.mrf.mxu3 }
 0x2bd   : > { %v3943_v49 = vadd.f32 %v3900_v0, %v3261_v27 }
 0x2bf   : > { %v4369_v24 = vadd.f32 %v4326_v52, %v3943_v49  ;;  %v3221_v25 = vpop.f32.mrf.mxu2 }
 0x2c0   : > { %v3262_v17 = vadd.f32 %v3221_v25, %v2947_v3 }
 0x2c1   : > { %4401 = vst [vmem:[%s6893_s30 + $0xc8] sm:$0xff] %v4369_v24  ;;  %v4432_v22 = vadd.f32 %v4431_v38, %v4369_v24  ;;  %v4471_v48 = vmul.f32 %v4369_v24, %v4369_v24  ;;  %v2908_v18 = vpop.f32.mrf.mxu1 }
 0x2c2   : > { %v4329_v15 = vpop.f32.mrf.mxu0  ;;  %v2948_v1 = vadd.f32 %v2908_v18, %v6802_v63 }
 0x2c3   : > { %v4502_v7 = vadd.f32 %v4501_v58, %v4471_v48 }
 0x2c4   : > { %v3903_v26 = vpop.f32.mrf.mxu3 }
 0x2c5   : > { %v3944_v59 = vadd.f32 %v3903_v26, %v3262_v17 }
 0x2c7   : > { %v4370_v37 = vadd.f32 %v4329_v15, %v3944_v59  ;;  %v3223_v4 = vpop.f32.mrf.mxu2 }
 0x2c8   : > { %v3263_v51 = vadd.f32 %v3223_v4, %v2948_v1 }
 0x2c9   : > { %4402 = vst [vmem:[%s6893_s30 + $0xd0] sm:$0xff] %v4370_v37  ;;  %v4433_v42 = vadd.f32 %v4432_v22, %v4370_v37  ;;  %v4472_v60 = vmul.f32 %v4370_v37, %v4370_v37  ;;  %v2911_v14 = vpop.f32.mrf.mxu1 }
 0x2ca   : > { %v4331_v30 = vpop.f32.mrf.mxu0  ;;  %v2949_v28 = vadd.f32 %v2911_v14, %v6817_v55 }
 0x2cb   : > { %v4503_v20 = vadd.f32 %v4502_v7, %v4472_v60 }
 0x2cc   : > { %v3905_v33 = vpop.f32.mrf.mxu3 }
 0x2cd   : > { %v3945_v53 = vadd.f32 %v3905_v33, %v3263_v51 }
 0x2cf   : > { %v4371_v47 = vadd.f32 %v4331_v30, %v3945_v53  ;;  %v3226_v45 = vpop.f32.mrf.mxu2 }
 0x2d0   : > { %v3264_v44 = vadd.f32 %v3226_v45, %v2949_v28 }
 0x2d1   : > { %4403 = vst [vmem:[%s6893_s30 + $0xd8] sm:$0xff] %v4371_v47  ;;  %v4434_v32 = vadd.f32 %v4433_v42, %v4371_v47  ;;  %v4473_v54 = vmul.f32 %v4371_v47, %v4371_v47  ;;  %v2913_v63 = vpop.f32.mrf.mxu1 }
 0x2d2   : > { %v4334_v40 = vpop.f32.mrf.mxu0  ;;  %v2950_v12 = vadd.f32 %v2913_v63, %v6840_v62 }
 0x2d3   : > { %v4504_v11 = vadd.f32 %v4503_v20, %v4473_v54 }
 0x2d4   : > { %v3908_v57 = vpop.f32.mrf.mxu3 }
 0x2d5   : > { %v3946_v56 = vadd.f32 %v3908_v57, %v3264_v44 }
 0x2d7   : > { %v4372_v2 = vadd.f32 %v4334_v40, %v3946_v56  ;;  %v3228_v8 = vpop.f32.mrf.mxu2 }
 0x2d8   : > { %v3265_v43 = vadd.f32 %v3228_v8, %v2950_v12 }
 0x2d9   : > { %4404 = vst [vmem:[%s6893_s30 + $0xe0] sm:$0xff] %v4372_v2  ;;  %v4435_v10 = vadd.f32 %v4434_v32, %v4372_v2  ;;  %v4474_v21 = vmul.f32 %v4372_v2, %v4372_v2  ;;  %v2916_v55 = vpop.f32.mrf.mxu1 }
 0x2da   : > { %v4336_v61 = vpop.f32.mrf.mxu0  ;;  %v2951_v50 = vadd.f32 %v2916_v55, %v6853_v6 }
 0x2db   : > { %v4505_v5 = vadd.f32 %v4504_v11, %v4474_v21 }
 0x2dc   : > { %v3910_v13 = vpop.f32.mrf.mxu3 }
 0x2dd   : > { %v3947_v34 = vadd.f32 %v3910_v13, %v3265_v43 }
 0x2df   : > { %v4373_v46 = vadd.f32 %v4336_v61, %v3947_v34  ;;  %v3231_v29 = vpop.f32.mrf.mxu2 }
 0x2e0   : > { %v3266_v36 = vadd.f32 %v3231_v29, %v2951_v50 }
 0x2e1   : > { %4405 = vst [vmem:[%s6893_s30 + $0xe8] sm:$0xff] %v4373_v46  ;;  %v4436_v9 = vadd.f32 %v4435_v10, %v4373_v46  ;;  %v4475_v19 = vmul.f32 %v4373_v46, %v4373_v46  ;;  %v2918_v23 = vpop.f32.mrf.mxu1 }
 0x2e2   : > { %v4339_v31 = vpop.f32.mrf.mxu0  ;;  %v2952_v27 = vadd.f32 %v2918_v23, %v6876_v39 }
 0x2e3   : > { %v4506_v62 = vadd.f32 %v4505_v5, %v4475_v19 }
 0x2e4   : > { %v3913_v16 = vpop.f32.mrf.mxu3 }
 0x2e5   : > { %v3948_v38 = vadd.f32 %v3913_v16, %v3266_v36 }
 0x2e7   : > { %v4374_v41 = vadd.f32 %v4339_v31, %v3948_v38  ;;  %v3233_v35 = vpop.f32.mrf.mxu2 }
 0x2e8   : > { %v3267_v0 = vadd.f32 %v3233_v35, %v2952_v27 }
 0x2e9   : > { %4406 = vst [vmem:[%s6893_s30 + $0xf0] sm:$0xff] %v4374_v41  ;;  %v4437_v52 = vadd.f32 %v4436_v9, %v4374_v41  ;;  %v4476_v58 = vmul.f32 %v4374_v41, %v4374_v41 }
 0x2ea   : > { %v4341_v3 = vpop.f32.mrf.mxu0 }
 0x2eb   : > { %v4507_v6 = vadd.f32 %v4506_v62, %v4476_v58 }
 0x2ec   : > { %v3915_v49 = vpop.f32.mrf.mxu3 }
 0x2ed   : > { %v3949_v24 = vadd.f32 %v3915_v49, %v3267_v0 }
 0x2ef   : > { %v4375_v25 = vadd.f32 %v4341_v3, %v3949_v24 }
 0x2f1   : > { %4407 = vst [vmem:[%s6893_s30 + $0xf8] sm:$0xff] %v4375_v25  ;;  %v4438_v22 = vadd.f32 %v4437_v52, %v4375_v25  ;;  %v4477_v48 = vmul.f32 %v4375_v25, %v4375_v25 }
 0x2f3   : > { %v4439_v17 = vrot.slane %v4438_v22, 4  ;;  %v4508_v18 = vadd.f32 %v4507_v6, %v4477_v48 }
 0x2f5   : > { %v4440_v15 = vadd.f32 %v4439_v17, %v4438_v22  ;;  %v4509_v7 = vrot.slane %v4508_v18, 4 }
 0x2f7   : > { %v4441_v39 = vrot.slane %v4440_v15, 2  ;;  %v4510_v26 = vadd.f32 %v4509_v7, %v4508_v18 }
 0x2f9   : > { %v4442_v59 = vadd.f32 %v4441_v39, %v4440_v15  ;;  %v4511_v37 = vrot.slane %v4510_v26, 2 }
 0x2fb   : > { %v4443_v1 = vrot.slane %v4442_v59, 1  ;;  %v4512_v4 = vadd.f32 %v4511_v37, %v4510_v26 }
 0x2fd   : > { %v4444_v42 = vadd.f32 %v4443_v1, %v4442_v59  ;;  %v4513_v60 = vrot.slane %v4512_v4, 1 }
 0x2ff   : > { %4445 = vst [vmem:[%s211_s6] sm:$0x1] %v4444_v42  ;;  %v4514_v51 = vadd.f32 %v4513_v60, %v4512_v4 }
 0x301   : > { %4515 = vst [vmem:[%s214_s9] sm:$0x1] %v4514_v51 }
 0x302 PF: > { %s15_s15 = sadd.s32 1, %s5692_s15  }
 0x303   : > { %p12_p4 = scmp.ge.s32.totalorder %s15_s15, 4  }
 0x305   :  { %14 = sbr.rel (!%p12_p4) target bundleno = 1 (0x1), region = 92 }

</bundles_post_ra>
